<compile_context>
chip_gen: v6e
topology: v6e:2x2x1
jax: 0.10.0
libtpu: 0.0.40
codegen_flags: <defaults>
</compile_context>

<pallas_src>
import jax
import jax.numpy as jnp
from jax.experimental import pallas as pl
from jax.experimental.pallas import tpu as pltpu

DIMS_TAIL = [4056, 1024, 256, 64]   # fixed by the module: [in_dim, 4056, 1024, 256, 64]
EPS = 1e-5                          # torch.nn.BatchNorm1d default eps


def _make_layer_kernel(act: str):
    """Fused Linear (+ folded eval-BatchNorm) + activation kernel body."""
    def kernel(x_ref, w_ref, b_ref, o_ref):
        x = x_ref[...].astype(jnp.bfloat16)                  # bf16 MXU path
        y = jnp.dot(x, w_ref[...], preferred_element_type=jnp.float32)
        y = y + b_ref[...]                                   # folded bias, broadcast [1, tn]
        if act == "leaky_relu":
            y = jnp.where(y > 0, y, 0.2 * y)                 # LeakyReLU(0.2)
        else:
            y = jnp.tanh(y)                                  # final decoder activation
        o_ref[...] = y.astype(o_ref.dtype)
    return kernel


def _pick_tn(K: int, N: int) -> int:
    """Pick an N tile: ~2 MiB bf16 weight slabs (128-aligned); full N if weight is small."""
    if K * N * 2 <= 4 * 1024 * 1024:        # whole weight <= 4 MiB: no tiling needed
        return N
    tn = (2 * 1024 * 1024 // (K * 2)) // 128 * 128
    return int(max(128, min(tn, N)))


def linear_act(x, w, b, act):
    """One fused layer: N-tiled grid, double-buffered bf16 weight streaming."""
    B, K = x.shape
    Kw, N = w.shape
    assert K == Kw
    tn = _pick_tn(K, N)
    grid = (pl.cdiv(N, tn),)
    cost = pl.CostEstimate(
        flops=2 * B * K * N,
        transcendentals=B * N if act == "tanh" else 0,
        bytes_accessed=K * N * 2 + B * K * 4 + B * N * 4 + N * 4,   # mem-bound hint
    )
    return pl.pallas_call(
        _make_layer_kernel(act),
        out_shape=jax.ShapeDtypeStruct((B, N), jnp.float32),
        grid=grid,
        in_specs=[
            pl.BlockSpec((B, K), lambda j: (0, 0)),    # activations (resident)
            pl.BlockSpec((K, tn), lambda j: (0, j)),   # bf16 weight column slab
            pl.BlockSpec((1, tn), lambda j: (0, j)),   # folded bias slab
        ],
        out_specs=pl.BlockSpec((B, tn), lambda j: (0, j)),
        compiler_params=pltpu.CompilerParams(
            dimension_semantics=("parallel",),         # independent column slabs
        ),
        cost_estimate=cost,
    )(x, w, b)


def init_params(key, in_dim):
    """Deterministic synthetic parameters; BN(eval) folded into W/b, W cast to bf16 once."""
    dims = [in_dim] + DIMS_TAIL
    enc = list(zip(dims[:-1], dims[1:]))                     # encoder Linear shapes
    rdims = dims[::-1]
    dec = list(zip(rdims[:-1], rdims[1:]))                   # decoder Linear shapes
    layers = []
    for (din, dout) in enc + dec:
        key, kw, kb = jax.random.split(key, 3)
        bound = 1.0 / float(din) ** 0.5                      # torch Linear default init range
        w = jax.random.uniform(kw, (din, dout), jnp.float32, -bound, bound)
        b = jax.random.uniform(kb, (dout,), jnp.float32, -bound, bound)
        gamma = jnp.ones((dout,), jnp.float32)               # BN affine defaults
        beta = jnp.zeros((dout,), jnp.float32)
        mean = jnp.zeros((dout,), jnp.float32)               # BN running stats defaults
        var = jnp.ones((dout,), jnp.float32)
        # Fold eval-mode BatchNorm into the Linear parameters (constant running stats).
        scale = gamma * jax.lax.rsqrt(var + EPS)
        w_fold = (w * scale[None, :]).astype(jnp.bfloat16)   # stream weights as bf16
        b_fold = ((b - mean) * scale + beta).reshape(1, dout).astype(jnp.float32)
        layers.append((w_fold, b_fold))
    return layers


def ae_forward(x, layers):
    """decoder(encoder(x)): 8 fused Linear(+BN fold)+activation layers; last uses Tanh."""
    x = x.astype(jnp.float32)
    n = len(layers)
    for i, (w, b) in enumerate(layers):
        act = "tanh" if i == n - 1 else "leaky_relu"
        x = linear_act(x, w, b, act)
    return x
    # TODO(synk): training-mode BatchNorm1d (batch statistics) not implemented;
    # eval-mode running-stats normalization is folded into W/b instead.
    # TODO(synk): fusing all 8 layers into one pallas_call (activations resident in VMEM,
    # weights streamed via manual DMA / emit_pipeline) would remove per-call launch and
    # pipeline fill/drain overhead; kept as separate tiled calls for robustness.


if __name__ == "__main__":
    key = jax.random.PRNGKey(0)
    B, IN_DIM = 8, 128                      # small batch; in_channels[0] = 128
    kx, kp = jax.random.split(key)
    x = jax.random.normal(kx, (B, IN_DIM), jnp.float32)
    layers = init_params(kp, IN_DIM)

    fwd = jax.jit(ae_forward)
    out = fwd(x, layers)
    out = jax.block_until_ready(out)
    assert out.shape == (B, IN_DIM) and out.dtype == jnp.float32
    assert bool(jnp.all(jnp.isfinite(out)))
    print("KERNEL_OK")
</pallas_src>

<mosaic_0001>
module attributes {stable_mosaic.version = 11 : i64} {
  func.func @kernel(%arg0: i32, %arg1: memref<8x4056xf32, #tpu.memory_space<vmem>>, %arg2: memref<4056x256xbf16, #tpu.memory_space<vmem>>, %arg3: memref<1x256xf32, #tpu.memory_space<vmem>>, %arg4: memref<8x256xf32, #tpu.memory_space<vmem>>) attributes {dimension_semantics = [#tpu.dimension_semantics<parallel>], iteration_bounds = array<i64: 4>, scalar_prefetch = 0 : i64, scratch_operands = 0 : i64, tpu.core_type = #tpu.core_type<tc>, window_params = [{pipeline_mode = #tpu.pipeline_mode<synchronous>, transform_indices = @transform_0, window_bounds = array<i64: 8, 4056>}, {transform_indices = @transform_1, window_bounds = array<i64: 4056, 256>}, {transform_indices = @transform_2, window_bounds = array<i64: 1, 256>}, {transform_indices = @transform_3, window_bounds = array<i64: 8, 256>}]} {
    %c0 = arith.constant 0 : index
    %c0_0 = arith.constant 0 : index
    %0 = vector.load %arg1[%c0, %c0_0] : memref<8x4056xf32, #tpu.memory_space<vmem>>, vector<8x4056xf32>
    %1 = arith.truncf %0 : vector<8x4056xf32> to vector<8x4056xbf16>
    %c0_1 = arith.constant 0 : index
    %c0_2 = arith.constant 0 : index
    %2 = vector.load %arg2[%c0_1, %c0_2] : memref<4056x256xbf16, #tpu.memory_space<vmem>>, vector<4056x256xbf16>
    %cst = arith.constant dense<0.000000e+00> : vector<8x256xf32>
    %3 = tpu.matmul %1, %2, %cst {dimension_numbers = #tpu.dot_dimension_numbers<[1], [0], [0], [1], [0, 0, 1, 1], [], []>} : vector<8x4056xbf16>, vector<4056x256xbf16>, vector<8x256xf32> -> vector<8x256xf32>
    %c0_3 = arith.constant 0 : index
    %c0_4 = arith.constant 0 : index
    %4 = vector.load %arg3[%c0_3, %c0_4] : memref<1x256xf32, #tpu.memory_space<vmem>>, vector<1x256xf32>
    %5 = vector.broadcast %4 : vector<1x256xf32> to vector<8x256xf32>
    %6 = arith.addf %3, %5 : vector<8x256xf32>
    %cst_5 = arith.constant 0.000000e+00 : f32
    %7 = vector.broadcast %cst_5 : f32 to vector<8x256xf32>
    %8 = arith.cmpf ogt, %6, %7 : vector<8x256xf32>
    %cst_6 = arith.constant 2.000000e-01 : f32
    %9 = vector.broadcast %cst_6 : f32 to vector<8x256xf32>
    %10 = arith.mulf %9, %6 : vector<8x256xf32>
    %11 = arith.select %8, %6, %10 : vector<8x256xi1>, vector<8x256xf32>
    %c0_7 = arith.constant 0 : index
    %c0_8 = arith.constant 0 : index
    %12 = vector.load %arg4[%c0_7, %c0_8] : memref<8x256xf32, #tpu.memory_space<vmem>>, vector<8x256xf32>
    tpu.vector_store %arg4[%c0_7, %c0_8], %11 {strides = array<i32>} : memref<8x256xf32, #tpu.memory_space<vmem>>, vector<8x256xf32>,
    return
  }
  func.func @transform_0(%arg0: i32) -> (i32, i32) {
    %c0_i32 = arith.constant 0 : i32
    %c0_i32_0 = arith.constant 0 : i32
    %c0_i32_1 = arith.constant 0 : i32
    return %c0_i32, %c0_i32_0 : i32, i32
  }
  func.func @transform_1(%arg0: i32) -> (i32, i32) {
    %c0_i32 = arith.constant 0 : i32
    %c0_i32_0 = arith.constant 0 : i32
    return %c0_i32, %arg0 : i32, i32
  }
  func.func @transform_2(%arg0: i32) -> (i32, i32) {
    %c0_i32 = arith.constant 0 : i32
    %c0_i32_0 = arith.constant 0 : i32
    return %c0_i32, %arg0 : i32, i32
  }
  func.func @transform_3(%arg0: i32) -> (i32, i32) {
    %c0_i32 = arith.constant 0 : i32
    %c0_i32_0 = arith.constant 0 : i32
    return %c0_i32, %arg0 : i32, i32
  }
}

module attributes {stable_mosaic.version = 11 : i64} {
  func.func @kernel(%arg0: i32, %arg1: memref<8x128xf32, #tpu.memory_space<vmem>>, %arg2: memref<128x4056xbf16, #tpu.memory_space<vmem>>, %arg3: memref<1x4056xf32, #tpu.memory_space<vmem>>, %arg4: memref<8x4056xf32, #tpu.memory_space<vmem>>) attributes {dimension_semantics = [#tpu.dimension_semantics<parallel>], iteration_bounds = array<i64: 1>, scalar_prefetch = 0 : i64, scratch_operands = 0 : i64, tpu.core_type = #tpu.core_type<tc>, window_params = [{pipeline_mode = #tpu.pipeline_mode<synchronous>, transform_indices = @transform_0, window_bounds = array<i64: 8, 128>}, {transform_indices = @transform_1, window_bounds = array<i64: 128, 4056>}, {transform_indices = @transform_2, window_bounds = array<i64: 1, 4056>}, {transform_indices = @transform_3, window_bounds = array<i64: 8, 4056>}]} {
    %c0 = arith.constant 0 : index
    %c0_0 = arith.constant 0 : index
    %0 = vector.load %arg1[%c0, %c0_0] : memref<8x128xf32, #tpu.memory_space<vmem>>, vector<8x128xf32>
    %1 = arith.truncf %0 : vector<8x128xf32> to vector<8x128xbf16>
    %c0_1 = arith.constant 0 : index
    %c0_2 = arith.constant 0 : index
    %2 = vector.load %arg2[%c0_1, %c0_2] : memref<128x4056xbf16, #tpu.memory_space<vmem>>, vector<128x4056xbf16>
    %cst = arith.constant dense<0.000000e+00> : vector<8x4056xf32>
    %3 = tpu.matmul %1, %2, %cst {dimension_numbers = #tpu.dot_dimension_numbers<[1], [0], [0], [1], [0, 0, 1, 1], [], []>} : vector<8x128xbf16>, vector<128x4056xbf16>, vector<8x4056xf32> -> vector<8x4056xf32>
    %c0_3 = arith.constant 0 : index
    %c0_4 = arith.constant 0 : index
    %4 = vector.load %arg3[%c0_3, %c0_4] : memref<1x4056xf32, #tpu.memory_space<vmem>>, vector<1x4056xf32>
    %5 = vector.broadcast %4 : vector<1x4056xf32> to vector<8x4056xf32>
    %6 = arith.addf %3, %5 : vector<8x4056xf32>
    %cst_5 = arith.constant 0.000000e+00 : f32
    %7 = vector.broadcast %cst_5 : f32 to vector<8x4056xf32>
    %8 = arith.cmpf ogt, %6, %7 : vector<8x4056xf32>
    %cst_6 = arith.constant 2.000000e-01 : f32
    %9 = vector.broadcast %cst_6 : f32 to vector<8x4056xf32>
    %10 = arith.mulf %9, %6 : vector<8x4056xf32>
    %11 = arith.select %8, %6, %10 : vector<8x4056xi1>, vector<8x4056xf32>
    %c0_7 = arith.constant 0 : index
    %c0_8 = arith.constant 0 : index
    %12 = vector.load %arg4[%c0_7, %c0_8] : memref<8x4056xf32, #tpu.memory_space<vmem>>, vector<8x4056xf32>
    tpu.vector_store %arg4[%c0_7, %c0_8], %11 {strides = array<i32>} : memref<8x4056xf32, #tpu.memory_space<vmem>>, vector<8x4056xf32>,
    return
  }
  func.func @transform_0(%arg0: i32) -> (i32, i32) {
    %c0_i32 = arith.constant 0 : i32
    %c0_i32_0 = arith.constant 0 : i32
    %c0_i32_1 = arith.constant 0 : i32
    return %c0_i32, %c0_i32_0 : i32, i32
  }
  func.func @transform_1(%arg0: i32) -> (i32, i32) {
    %c0_i32 = arith.constant 0 : i32
    %c0_i32_0 = arith.constant 0 : i32
    return %c0_i32, %arg0 : i32, i32
  }
  func.func @transform_2(%arg0: i32) -> (i32, i32) {
    %c0_i32 = arith.constant 0 : i32
    %c0_i32_0 = arith.constant 0 : i32
    return %c0_i32, %arg0 : i32, i32
  }
  func.func @transform_3(%arg0: i32) -> (i32, i32) {
    %c0_i32 = arith.constant 0 : i32
    %c0_i32_0 = arith.constant 0 : i32
    return %c0_i32, %arg0 : i32, i32
  }
}

module attributes {stable_mosaic.version = 11 : i64} {
  func.func @kernel(%arg0: i32, %arg1: memref<8x1024xf32, #tpu.memory_space<vmem>>, %arg2: memref<1024x256xbf16, #tpu.memory_space<vmem>>, %arg3: memref<1x256xf32, #tpu.memory_space<vmem>>, %arg4: memref<8x256xf32, #tpu.memory_space<vmem>>) attributes {dimension_semantics = [#tpu.dimension_semantics<parallel>], iteration_bounds = array<i64: 1>, scalar_prefetch = 0 : i64, scratch_operands = 0 : i64, tpu.core_type = #tpu.core_type<tc>, window_params = [{pipeline_mode = #tpu.pipeline_mode<synchronous>, transform_indices = @transform_0, window_bounds = array<i64: 8, 1024>}, {transform_indices = @transform_1, window_bounds = array<i64: 1024, 256>}, {transform_indices = @transform_2, window_bounds = array<i64: 1, 256>}, {transform_indices = @transform_3, window_bounds = array<i64: 8, 256>}]} {
    %c0 = arith.constant 0 : index
    %c0_0 = arith.constant 0 : index
    %0 = vector.load %arg1[%c0, %c0_0] : memref<8x1024xf32, #tpu.memory_space<vmem>>, vector<8x1024xf32>
    %1 = arith.truncf %0 : vector<8x1024xf32> to vector<8x1024xbf16>
    %c0_1 = arith.constant 0 : index
    %c0_2 = arith.constant 0 : index
    %2 = vector.load %arg2[%c0_1, %c0_2] : memref<1024x256xbf16, #tpu.memory_space<vmem>>, vector<1024x256xbf16>
    %cst = arith.constant dense<0.000000e+00> : vector<8x256xf32>
    %3 = tpu.matmul %1, %2, %cst {dimension_numbers = #tpu.dot_dimension_numbers<[1], [0], [0], [1], [0, 0, 1, 1], [], []>} : vector<8x1024xbf16>, vector<1024x256xbf16>, vector<8x256xf32> -> vector<8x256xf32>
    %c0_3 = arith.constant 0 : index
    %c0_4 = arith.constant 0 : index
    %4 = vector.load %arg3[%c0_3, %c0_4] : memref<1x256xf32, #tpu.memory_space<vmem>>, vector<1x256xf32>
    %5 = vector.broadcast %4 : vector<1x256xf32> to vector<8x256xf32>
    %6 = arith.addf %3, %5 : vector<8x256xf32>
    %cst_5 = arith.constant 0.000000e+00 : f32
    %7 = vector.broadcast %cst_5 : f32 to vector<8x256xf32>
    %8 = arith.cmpf ogt, %6, %7 : vector<8x256xf32>
    %cst_6 = arith.constant 2.000000e-01 : f32
    %9 = vector.broadcast %cst_6 : f32 to vector<8x256xf32>
    %10 = arith.mulf %9, %6 : vector<8x256xf32>
    %11 = arith.select %8, %6, %10 : vector<8x256xi1>, vector<8x256xf32>
    %c0_7 = arith.constant 0 : index
    %c0_8 = arith.constant 0 : index
    %12 = vector.load %arg4[%c0_7, %c0_8] : memref<8x256xf32, #tpu.memory_space<vmem>>, vector<8x256xf32>
    tpu.vector_store %arg4[%c0_7, %c0_8], %11 {strides = array<i32>} : memref<8x256xf32, #tpu.memory_space<vmem>>, vector<8x256xf32>,
    return
  }
  func.func @transform_0(%arg0: i32) -> (i32, i32) {
    %c0_i32 = arith.constant 0 : i32
    %c0_i32_0 = arith.constant 0 : i32
    %c0_i32_1 = arith.constant 0 : i32
    return %c0_i32, %c0_i32_0 : i32, i32
  }
  func.func @transform_1(%arg0: i32) -> (i32, i32) {
    %c0_i32 = arith.constant 0 : i32
    %c0_i32_0 = arith.constant 0 : i32
    return %c0_i32, %arg0 : i32, i32
  }
  func.func @transform_2(%arg0: i32) -> (i32, i32) {
    %c0_i32 = arith.constant 0 : i32
    %c0_i32_0 = arith.constant 0 : i32
    return %c0_i32, %arg0 : i32, i32
  }
  func.func @transform_3(%arg0: i32) -> (i32, i32) {
    %c0_i32 = arith.constant 0 : i32
    %c0_i32_0 = arith.constant 0 : i32
    return %c0_i32, %arg0 : i32, i32
  }
}

module attributes {stable_mosaic.version = 11 : i64} {
  func.func @kernel(%arg0: i32, %arg1: memref<8x256xf32, #tpu.memory_space<vmem>>, %arg2: memref<256x64xbf16, #tpu.memory_space<vmem>>, %arg3: memref<1x64xf32, #tpu.memory_space<vmem>>, %arg4: memref<8x64xf32, #tpu.memory_space<vmem>>) attributes {dimension_semantics = [#tpu.dimension_semantics<parallel>], iteration_bounds = array<i64: 1>, scalar_prefetch = 0 : i64, scratch_operands = 0 : i64, tpu.core_type = #tpu.core_type<tc>, window_params = [{pipeline_mode = #tpu.pipeline_mode<synchronous>, transform_indices = @transform_0, window_bounds = array<i64: 8, 256>}, {transform_indices = @transform_1, window_bounds = array<i64: 256, 64>}, {transform_indices = @transform_2, window_bounds = array<i64: 1, 64>}, {transform_indices = @transform_3, window_bounds = array<i64: 8, 64>}]} {
    %c0 = arith.constant 0 : index
    %c0_0 = arith.constant 0 : index
    %0 = vector.load %arg1[%c0, %c0_0] : memref<8x256xf32, #tpu.memory_space<vmem>>, vector<8x256xf32>
    %1 = arith.truncf %0 : vector<8x256xf32> to vector<8x256xbf16>
    %c0_1 = arith.constant 0 : index
    %c0_2 = arith.constant 0 : index
    %2 = vector.load %arg2[%c0_1, %c0_2] : memref<256x64xbf16, #tpu.memory_space<vmem>>, vector<256x64xbf16>
    %cst = arith.constant dense<0.000000e+00> : vector<8x64xf32>
    %3 = tpu.matmul %1, %2, %cst {dimension_numbers = #tpu.dot_dimension_numbers<[1], [0], [0], [1], [0, 0, 1, 1], [], []>} : vector<8x256xbf16>, vector<256x64xbf16>, vector<8x64xf32> -> vector<8x64xf32>
    %c0_3 = arith.constant 0 : index
    %c0_4 = arith.constant 0 : index
    %4 = vector.load %arg3[%c0_3, %c0_4] : memref<1x64xf32, #tpu.memory_space<vmem>>, vector<1x64xf32>
    %5 = vector.broadcast %4 : vector<1x64xf32> to vector<8x64xf32>
    %6 = arith.addf %3, %5 : vector<8x64xf32>
    %cst_5 = arith.constant 0.000000e+00 : f32
    %7 = vector.broadcast %cst_5 : f32 to vector<8x64xf32>
    %8 = arith.cmpf ogt, %6, %7 : vector<8x64xf32>
    %cst_6 = arith.constant 2.000000e-01 : f32
    %9 = vector.broadcast %cst_6 : f32 to vector<8x64xf32>
    %10 = arith.mulf %9, %6 : vector<8x64xf32>
    %11 = arith.select %8, %6, %10 : vector<8x64xi1>, vector<8x64xf32>
    %c0_7 = arith.constant 0 : index
    %c0_8 = arith.constant 0 : index
    %12 = vector.load %arg4[%c0_7, %c0_8] : memref<8x64xf32, #tpu.memory_space<vmem>>, vector<8x64xf32>
    tpu.vector_store %arg4[%c0_7, %c0_8], %11 {strides = array<i32>} : memref<8x64xf32, #tpu.memory_space<vmem>>, vector<8x64xf32>,
    return
  }
  func.func @transform_0(%arg0: i32) -> (i32, i32) {
    %c0_i32 = arith.constant 0 : i32
    %c0_i32_0 = arith.constant 0 : i32
    %c0_i32_1 = arith.constant 0 : i32
    return %c0_i32, %c0_i32_0 : i32, i32
  }
  func.func @transform_1(%arg0: i32) -> (i32, i32) {
    %c0_i32 = arith.constant 0 : i32
    %c0_i32_0 = arith.constant 0 : i32
    return %c0_i32, %arg0 : i32, i32
  }
  func.func @transform_2(%arg0: i32) -> (i32, i32) {
    %c0_i32 = arith.constant 0 : i32
    %c0_i32_0 = arith.constant 0 : i32
    return %c0_i32, %arg0 : i32, i32
  }
  func.func @transform_3(%arg0: i32) -> (i32, i32) {
    %c0_i32 = arith.constant 0 : i32
    %c0_i32_0 = arith.constant 0 : i32
    return %c0_i32, %arg0 : i32, i32
  }
}

module attributes {stable_mosaic.version = 11 : i64} {
  func.func @kernel(%arg0: i32, %arg1: memref<8x64xf32, #tpu.memory_space<vmem>>, %arg2: memref<64x256xbf16, #tpu.memory_space<vmem>>, %arg3: memref<1x256xf32, #tpu.memory_space<vmem>>, %arg4: memref<8x256xf32, #tpu.memory_space<vmem>>) attributes {dimension_semantics = [#tpu.dimension_semantics<parallel>], iteration_bounds = array<i64: 1>, scalar_prefetch = 0 : i64, scratch_operands = 0 : i64, tpu.core_type = #tpu.core_type<tc>, window_params = [{pipeline_mode = #tpu.pipeline_mode<synchronous>, transform_indices = @transform_0, window_bounds = array<i64: 8, 64>}, {transform_indices = @transform_1, window_bounds = array<i64: 64, 256>}, {transform_indices = @transform_2, window_bounds = array<i64: 1, 256>}, {transform_indices = @transform_3, window_bounds = array<i64: 8, 256>}]} {
    %c0 = arith.constant 0 : index
    %c0_0 = arith.constant 0 : index
    %0 = vector.load %arg1[%c0, %c0_0] : memref<8x64xf32, #tpu.memory_space<vmem>>, vector<8x64xf32>
    %1 = arith.truncf %0 : vector<8x64xf32> to vector<8x64xbf16>
    %c0_1 = arith.constant 0 : index
    %c0_2 = arith.constant 0 : index
    %2 = vector.load %arg2[%c0_1, %c0_2] : memref<64x256xbf16, #tpu.memory_space<vmem>>, vector<64x256xbf16>
    %cst = arith.constant dense<0.000000e+00> : vector<8x256xf32>
    %3 = tpu.matmul %1, %2, %cst {dimension_numbers = #tpu.dot_dimension_numbers<[1], [0], [0], [1], [0, 0, 1, 1], [], []>} : vector<8x64xbf16>, vector<64x256xbf16>, vector<8x256xf32> -> vector<8x256xf32>
    %c0_3 = arith.constant 0 : index
    %c0_4 = arith.constant 0 : index
    %4 = vector.load %arg3[%c0_3, %c0_4] : memref<1x256xf32, #tpu.memory_space<vmem>>, vector<1x256xf32>
    %5 = vector.broadcast %4 : vector<1x256xf32> to vector<8x256xf32>
    %6 = arith.addf %3, %5 : vector<8x256xf32>
    %cst_5 = arith.constant 0.000000e+00 : f32
    %7 = vector.broadcast %cst_5 : f32 to vector<8x256xf32>
    %8 = arith.cmpf ogt, %6, %7 : vector<8x256xf32>
    %cst_6 = arith.constant 2.000000e-01 : f32
    %9 = vector.broadcast %cst_6 : f32 to vector<8x256xf32>
    %10 = arith.mulf %9, %6 : vector<8x256xf32>
    %11 = arith.select %8, %6, %10 : vector<8x256xi1>, vector<8x256xf32>
    %c0_7 = arith.constant 0 : index
    %c0_8 = arith.constant 0 : index
    %12 = vector.load %arg4[%c0_7, %c0_8] : memref<8x256xf32, #tpu.memory_space<vmem>>, vector<8x256xf32>
    tpu.vector_store %arg4[%c0_7, %c0_8], %11 {strides = array<i32>} : memref<8x256xf32, #tpu.memory_space<vmem>>, vector<8x256xf32>,
    return
  }
  func.func @transform_0(%arg0: i32) -> (i32, i32) {
    %c0_i32 = arith.constant 0 : i32
    %c0_i32_0 = arith.constant 0 : i32
    %c0_i32_1 = arith.constant 0 : i32
    return %c0_i32, %c0_i32_0 : i32, i32
  }
  func.func @transform_1(%arg0: i32) -> (i32, i32) {
    %c0_i32 = arith.constant 0 : i32
    %c0_i32_0 = arith.constant 0 : i32
    return %c0_i32, %arg0 : i32, i32
  }
  func.func @transform_2(%arg0: i32) -> (i32, i32) {
    %c0_i32 = arith.constant 0 : i32
    %c0_i32_0 = arith.constant 0 : i32
    return %c0_i32, %arg0 : i32, i32
  }
  func.func @transform_3(%arg0: i32) -> (i32, i32) {
    %c0_i32 = arith.constant 0 : i32
    %c0_i32_0 = arith.constant 0 : i32
    return %c0_i32, %arg0 : i32, i32
  }
}

module attributes {stable_mosaic.version = 11 : i64} {
  func.func @kernel(%arg0: i32, %arg1: memref<8x256xf32, #tpu.memory_space<vmem>>, %arg2: memref<256x1024xbf16, #tpu.memory_space<vmem>>, %arg3: memref<1x1024xf32, #tpu.memory_space<vmem>>, %arg4: memref<8x1024xf32, #tpu.memory_space<vmem>>) attributes {dimension_semantics = [#tpu.dimension_semantics<parallel>], iteration_bounds = array<i64: 1>, scalar_prefetch = 0 : i64, scratch_operands = 0 : i64, tpu.core_type = #tpu.core_type<tc>, window_params = [{pipeline_mode = #tpu.pipeline_mode<synchronous>, transform_indices = @transform_0, window_bounds = array<i64: 8, 256>}, {transform_indices = @transform_1, window_bounds = array<i64: 256, 1024>}, {transform_indices = @transform_2, window_bounds = array<i64: 1, 1024>}, {transform_indices = @transform_3, window_bounds = array<i64: 8, 1024>}]} {
    %c0 = arith.constant 0 : index
    %c0_0 = arith.constant 0 : index
    %0 = vector.load %arg1[%c0, %c0_0] : memref<8x256xf32, #tpu.memory_space<vmem>>, vector<8x256xf32>
    %1 = arith.truncf %0 : vector<8x256xf32> to vector<8x256xbf16>
    %c0_1 = arith.constant 0 : index
    %c0_2 = arith.constant 0 : index
    %2 = vector.load %arg2[%c0_1, %c0_2] : memref<256x1024xbf16, #tpu.memory_space<vmem>>, vector<256x1024xbf16>
    %cst = arith.constant dense<0.000000e+00> : vector<8x1024xf32>
    %3 = tpu.matmul %1, %2, %cst {dimension_numbers = #tpu.dot_dimension_numbers<[1], [0], [0], [1], [0, 0, 1, 1], [], []>} : vector<8x256xbf16>, vector<256x1024xbf16>, vector<8x1024xf32> -> vector<8x1024xf32>
    %c0_3 = arith.constant 0 : index
    %c0_4 = arith.constant 0 : index
    %4 = vector.load %arg3[%c0_3, %c0_4] : memref<1x1024xf32, #tpu.memory_space<vmem>>, vector<1x1024xf32>
    %5 = vector.broadcast %4 : vector<1x1024xf32> to vector<8x1024xf32>
    %6 = arith.addf %3, %5 : vector<8x1024xf32>
    %cst_5 = arith.constant 0.000000e+00 : f32
    %7 = vector.broadcast %cst_5 : f32 to vector<8x1024xf32>
    %8 = arith.cmpf ogt, %6, %7 : vector<8x1024xf32>
    %cst_6 = arith.constant 2.000000e-01 : f32
    %9 = vector.broadcast %cst_6 : f32 to vector<8x1024xf32>
    %10 = arith.mulf %9, %6 : vector<8x1024xf32>
    %11 = arith.select %8, %6, %10 : vector<8x1024xi1>, vector<8x1024xf32>
    %c0_7 = arith.constant 0 : index
    %c0_8 = arith.constant 0 : index
    %12 = vector.load %arg4[%c0_7, %c0_8] : memref<8x1024xf32, #tpu.memory_space<vmem>>, vector<8x1024xf32>
    tpu.vector_store %arg4[%c0_7, %c0_8], %11 {strides = array<i32>} : memref<8x1024xf32, #tpu.memory_space<vmem>>, vector<8x1024xf32>,
    return
  }
  func.func @transform_0(%arg0: i32) -> (i32, i32) {
    %c0_i32 = arith.constant 0 : i32
    %c0_i32_0 = arith.constant 0 : i32
    %c0_i32_1 = arith.constant 0 : i32
    return %c0_i32, %c0_i32_0 : i32, i32
  }
  func.func @transform_1(%arg0: i32) -> (i32, i32) {
    %c0_i32 = arith.constant 0 : i32
    %c0_i32_0 = arith.constant 0 : i32
    return %c0_i32, %arg0 : i32, i32
  }
  func.func @transform_2(%arg0: i32) -> (i32, i32) {
    %c0_i32 = arith.constant 0 : i32
    %c0_i32_0 = arith.constant 0 : i32
    return %c0_i32, %arg0 : i32, i32
  }
  func.func @transform_3(%arg0: i32) -> (i32, i32) {
    %c0_i32 = arith.constant 0 : i32
    %c0_i32_0 = arith.constant 0 : i32
    return %c0_i32, %arg0 : i32, i32
  }
}

module attributes {stable_mosaic.version = 11 : i64} {
  func.func @kernel(%arg0: i32, %arg1: memref<8x1024xf32, #tpu.memory_space<vmem>>, %arg2: memref<1024x1024xbf16, #tpu.memory_space<vmem>>, %arg3: memref<1x1024xf32, #tpu.memory_space<vmem>>, %arg4: memref<8x1024xf32, #tpu.memory_space<vmem>>) attributes {dimension_semantics = [#tpu.dimension_semantics<parallel>], iteration_bounds = array<i64: 4>, scalar_prefetch = 0 : i64, scratch_operands = 0 : i64, tpu.core_type = #tpu.core_type<tc>, window_params = [{pipeline_mode = #tpu.pipeline_mode<synchronous>, transform_indices = @transform_0, window_bounds = array<i64: 8, 1024>}, {transform_indices = @transform_1, window_bounds = array<i64: 1024, 1024>}, {transform_indices = @transform_2, window_bounds = array<i64: 1, 1024>}, {transform_indices = @transform_3, window_bounds = array<i64: 8, 1024>}]} {
    %c0 = arith.constant 0 : index
    %c0_0 = arith.constant 0 : index
    %0 = vector.load %arg1[%c0, %c0_0] : memref<8x1024xf32, #tpu.memory_space<vmem>>, vector<8x1024xf32>
    %1 = arith.truncf %0 : vector<8x1024xf32> to vector<8x1024xbf16>
    %c0_1 = arith.constant 0 : index
    %c0_2 = arith.constant 0 : index
    %2 = vector.load %arg2[%c0_1, %c0_2] : memref<1024x1024xbf16, #tpu.memory_space<vmem>>, vector<1024x1024xbf16>
    %cst = arith.constant dense<0.000000e+00> : vector<8x1024xf32>
    %3 = tpu.matmul %1, %2, %cst {dimension_numbers = #tpu.dot_dimension_numbers<[1], [0], [0], [1], [0, 0, 1, 1], [], []>} : vector<8x1024xbf16>, vector<1024x1024xbf16>, vector<8x1024xf32> -> vector<8x1024xf32>
    %c0_3 = arith.constant 0 : index
    %c0_4 = arith.constant 0 : index
    %4 = vector.load %arg3[%c0_3, %c0_4] : memref<1x1024xf32, #tpu.memory_space<vmem>>, vector<1x1024xf32>
    %5 = vector.broadcast %4 : vector<1x1024xf32> to vector<8x1024xf32>
    %6 = arith.addf %3, %5 : vector<8x1024xf32>
    %cst_5 = arith.constant 0.000000e+00 : f32
    %7 = vector.broadcast %cst_5 : f32 to vector<8x1024xf32>
    %8 = arith.cmpf ogt, %6, %7 : vector<8x1024xf32>
    %cst_6 = arith.constant 2.000000e-01 : f32
    %9 = vector.broadcast %cst_6 : f32 to vector<8x1024xf32>
    %10 = arith.mulf %9, %6 : vector<8x1024xf32>
    %11 = arith.select %8, %6, %10 : vector<8x1024xi1>, vector<8x1024xf32>
    %c0_7 = arith.constant 0 : index
    %c0_8 = arith.constant 0 : index
    %12 = vector.load %arg4[%c0_7, %c0_8] : memref<8x1024xf32, #tpu.memory_space<vmem>>, vector<8x1024xf32>
    tpu.vector_store %arg4[%c0_7, %c0_8], %11 {strides = array<i32>} : memref<8x1024xf32, #tpu.memory_space<vmem>>, vector<8x1024xf32>,
    return
  }
  func.func @transform_0(%arg0: i32) -> (i32, i32) {
    %c0_i32 = arith.constant 0 : i32
    %c0_i32_0 = arith.constant 0 : i32
    %c0_i32_1 = arith.constant 0 : i32
    return %c0_i32, %c0_i32_0 : i32, i32
  }
  func.func @transform_1(%arg0: i32) -> (i32, i32) {
    %c0_i32 = arith.constant 0 : i32
    %c0_i32_0 = arith.constant 0 : i32
    return %c0_i32, %arg0 : i32, i32
  }
  func.func @transform_2(%arg0: i32) -> (i32, i32) {
    %c0_i32 = arith.constant 0 : i32
    %c0_i32_0 = arith.constant 0 : i32
    return %c0_i32, %arg0 : i32, i32
  }
  func.func @transform_3(%arg0: i32) -> (i32, i32) {
    %c0_i32 = arith.constant 0 : i32
    %c0_i32_0 = arith.constant 0 : i32
    return %c0_i32, %arg0 : i32, i32
  }
}

module attributes {stable_mosaic.version = 11 : i64} {
  func.func @kernel(%arg0: i32, %arg1: memref<8x4056xf32, #tpu.memory_space<vmem>>, %arg2: memref<4056x128xbf16, #tpu.memory_space<vmem>>, %arg3: memref<1x128xf32, #tpu.memory_space<vmem>>, %arg4: memref<8x128xf32, #tpu.memory_space<vmem>>) attributes {dimension_semantics = [#tpu.dimension_semantics<parallel>], iteration_bounds = array<i64: 1>, scalar_prefetch = 0 : i64, scratch_operands = 0 : i64, tpu.core_type = #tpu.core_type<tc>, window_params = [{pipeline_mode = #tpu.pipeline_mode<synchronous>, transform_indices = @transform_0, window_bounds = array<i64: 8, 4056>}, {transform_indices = @transform_1, window_bounds = array<i64: 4056, 128>}, {transform_indices = @transform_2, window_bounds = array<i64: 1, 128>}, {transform_indices = @transform_3, window_bounds = array<i64: 8, 128>}]} {
    %c0 = arith.constant 0 : index
    %c0_0 = arith.constant 0 : index
    %0 = vector.load %arg1[%c0, %c0_0] : memref<8x4056xf32, #tpu.memory_space<vmem>>, vector<8x4056xf32>
    %1 = arith.truncf %0 : vector<8x4056xf32> to vector<8x4056xbf16>
    %c0_1 = arith.constant 0 : index
    %c0_2 = arith.constant 0 : index
    %2 = vector.load %arg2[%c0_1, %c0_2] : memref<4056x128xbf16, #tpu.memory_space<vmem>>, vector<4056x128xbf16>
    %cst = arith.constant dense<0.000000e+00> : vector<8x128xf32>
    %3 = tpu.matmul %1, %2, %cst {dimension_numbers = #tpu.dot_dimension_numbers<[1], [0], [0], [1], [0, 0, 1, 1], [], []>} : vector<8x4056xbf16>, vector<4056x128xbf16>, vector<8x128xf32> -> vector<8x128xf32>
    %c0_3 = arith.constant 0 : index
    %c0_4 = arith.constant 0 : index
    %4 = vector.load %arg3[%c0_3, %c0_4] : memref<1x128xf32, #tpu.memory_space<vmem>>, vector<1x128xf32>
    %5 = vector.broadcast %4 : vector<1x128xf32> to vector<8x128xf32>
    %6 = arith.addf %3, %5 : vector<8x128xf32>
    %7 = math.tanh %6 : vector<8x128xf32>
    %c0_5 = arith.constant 0 : index
    %c0_6 = arith.constant 0 : index
    %8 = vector.load %arg4[%c0_5, %c0_6] : memref<8x128xf32, #tpu.memory_space<vmem>>, vector<8x128xf32>
    tpu.vector_store %arg4[%c0_5, %c0_6], %7 {strides = array<i32>} : memref<8x128xf32, #tpu.memory_space<vmem>>, vector<8x128xf32>,
    return
  }
  func.func @transform_0(%arg0: i32) -> (i32, i32) {
    %c0_i32 = arith.constant 0 : i32
    %c0_i32_0 = arith.constant 0 : i32
    %c0_i32_1 = arith.constant 0 : i32
    return %c0_i32, %c0_i32_0 : i32, i32
  }
  func.func @transform_1(%arg0: i32) -> (i32, i32) {
    %c0_i32 = arith.constant 0 : i32
    %c0_i32_0 = arith.constant 0 : i32
    return %c0_i32, %arg0 : i32, i32
  }
  func.func @transform_2(%arg0: i32) -> (i32, i32) {
    %c0_i32 = arith.constant 0 : i32
    %c0_i32_0 = arith.constant 0 : i32
    return %c0_i32, %arg0 : i32, i32
  }
  func.func @transform_3(%arg0: i32) -> (i32, i32) {
    %c0_i32 = arith.constant 0 : i32
    %c0_i32_0 = arith.constant 0 : i32
    return %c0_i32, %arg0 : i32, i32
  }
}

</mosaic_0001>

<bundles_post_ra>
// kernel: ae_forward.10
= control target key start
LH: loop header
LB: loop body
LE: loop exit
PB: predicated region body
PF: predicated region fallthrough
CT: control target
= control target key end

     0   :  { %s1743_s1 = inlined_call_operand.vmem [shape: bf16[1024,256], index: 1, kind: input, shape index: {}]   ;;  %s1744_s0 = inlined_call_operand.vmem [shape: f32[8,1024], index: 0, kind: input, shape index: {}]   ;;  %s1745_s2 = inlined_call_operand.vmem [shape: f32[1,256], index: 2, kind: input, shape index: {}]   ;;  %s1746_s3 = inlined_call_operand.vmem [shape: f32[8,256], index: 3, kind: output, shape index: {}]  }
   0x1   :  { %v1114_v0 = vld [vmem:[%s1743_s1 + $0x74] ss:$8 sps:$4 sm:$0xff]   ;;  %v1118_v2 = vld [vmem:[%s1743_s1 + $0x70] ss:$8 sps:$4 sm:$0xff]   ;;  %v1120_v4 = vld [vmem:[%s1743_s1 + $0x64] ss:$8 sps:$4 sm:$0xff]  }
   0x2   :  { %v1116_v1 = vld [vmem:[%s1743_s1 + $0x174] ss:$8 sps:$4 sm:$0xff]   ;;  %810 = vmatprep.subr.bf16.mxu0 %v1114_v0  ;;  %v1119_v3 = vld [vmem:[%s1743_s1 + $0x170] ss:$8 sps:$4 sm:$0xff]   ;;  %v1122_v5 = vld [vmem:[%s1743_s1 + $0x164] ss:$8 sps:$4 sm:$0xff]  }
   0x3   :  { %851 = vmatprep.subr.bf16.mxu1 %v1116_v1  ;;  %811 = vmatpush1.bf16.msra.mxu0 %v1118_v2  ;;  %v1124_v6 = vld [vmem:[%s1743_s1 + $0x60] ss:$8 sps:$4 sm:$0xff]   ;;  %v1126_v8 = vld [vmem:[%s1743_s1 + $0x54] ss:$8 sps:$4 sm:$0xff]   ;;  %v1130_v10 = vld [vmem:[%s1743_s1 + $0x50] ss:$8 sps:$4 sm:$0xff]  }
   0x4   :  { %852 = vmatpush1.bf16.msra.mxu1 %v1119_v3  ;;  %812 = vmatprep.subr.bf16.mxu0 %v1120_v4  ;;  %v1125_v7 = vld [vmem:[%s1743_s1 + $0x160] ss:$8 sps:$4 sm:$0xff]   ;;  %v1128_v9 = vld [vmem:[%s1743_s1 + $0x154] ss:$8 sps:$4 sm:$0xff]   ;;  %v1131_v11 = vld [vmem:[%s1743_s1 + $0x150] ss:$8 sps:$4 sm:$0xff]  }
   0x5   :  { %853 = vmatprep.subr.bf16.mxu1 %v1122_v5  ;;  %v1132_v12 = vld [vmem:[%s1743_s1 + $0x44] ss:$8 sps:$4 sm:$0xff]   ;;  %v1136_v14 = vld [vmem:[%s1743_s1 + $0x40] ss:$8 sps:$4 sm:$0xff]   ;;  %v1138_v16 = vld [vmem:[%s1743_s1 + $0x34] ss:$8 sps:$4 sm:$0xff]  }
   0x6   :  { %v1134_v13 = vld [vmem:[%s1743_s1 + $0x144] ss:$8 sps:$4 sm:$0xff]   ;;  %v1137_v15 = vld [vmem:[%s1743_s1 + $0x140] ss:$8 sps:$4 sm:$0xff]   ;;  %v1140_v17 = vld [vmem:[%s1743_s1 + $0x134] ss:$8 sps:$4 sm:$0xff]  }
   0x7   :  { %813 = vmatpush1.bf16.msra.mxu0 %v1124_v6  ;;  %v1142_v18 = vld [vmem:[%s1743_s1 + $0x30] ss:$8 sps:$4 sm:$0xff]   ;;  %v1144_v20 = vld [vmem:[%s1743_s1 + $0x24] ss:$8 sps:$4 sm:$0xff]   ;;  %v1148_v22 = vld [vmem:[%s1743_s1 + $0x20] ss:$8 sps:$4 sm:$0xff]  }
   0x8   :  { %854 = vmatpush1.bf16.msra.mxu1 %v1125_v7  ;;  %814 = vmatprep.subr.bf16.mxu0 %v1126_v8  ;;  %v1143_v19 = vld [vmem:[%s1743_s1 + $0x130] ss:$8 sps:$4 sm:$0xff]   ;;  %v1146_v21 = vld [vmem:[%s1743_s1 + $0x124] ss:$8 sps:$4 sm:$0xff]   ;;  %v1149_v23 = vld [vmem:[%s1743_s1 + $0x120] ss:$8 sps:$4 sm:$0xff]  }
   0x9   :  { %855 = vmatprep.subr.bf16.mxu1 %v1128_v9  ;;  %v1150_v24 = vld [vmem:[%s1743_s1 + $0x14] ss:$8 sps:$4 sm:$0xff]   ;;  %v1154_v26 = vld [vmem:[%s1743_s1 + $0x10] ss:$8 sps:$4 sm:$0xff]   ;;  %v1156_v28 = vld [vmem:[%s1743_s1 + $0x4] ss:$8 sps:$4 sm:$0xff]  }
   0xa   :  { %v1152_v25 = vld [vmem:[%s1743_s1 + $0x114] ss:$8 sps:$4 sm:$0xff]   ;;  %v1155_v27 = vld [vmem:[%s1743_s1 + $0x110] ss:$8 sps:$4 sm:$0xff]   ;;  %v1158_v29 = vld [vmem:[%s1743_s1 + $0x104] ss:$8 sps:$4 sm:$0xff]  }
   0xb   :  { %815 = vmatpush1.bf16.msra.mxu0 %v1130_v10  ;;  %v1160_v30 = vld [vmem:[%s1743_s1] ss:$8 sps:$4 sm:$0xff]   ;;  %v1162_v32 = vld [vmem:[%s1743_s1 + $0xf4] ss:$8 sps:$4 sm:$0xff]   ;;  %v1166_v34 = vld [vmem:[%s1743_s1 + $0xf0] ss:$8 sps:$4 sm:$0xff]  }
   0xc   :  { %856 = vmatpush1.bf16.msra.mxu1 %v1131_v11  ;;  %816 = vmatprep.subr.bf16.mxu0 %v1132_v12  ;;  %v1161_v31 = vld [vmem:[%s1743_s1 + $0x100] ss:$8 sps:$4 sm:$0xff]   ;;  %v1164_v33 = vld [vmem:[%s1743_s1 + $0x1f4] ss:$8 sps:$4 sm:$0xff]   ;;  %v1167_v35 = vld [vmem:[%s1743_s1 + $0x1f0] ss:$8 sps:$4 sm:$0xff]  }
   0xd   :  { %857 = vmatprep.subr.bf16.mxu1 %v1134_v13  ;;  %v1168_v36 = vld [vmem:[%s1743_s1 + $0xe4] ss:$8 sps:$4 sm:$0xff]   ;;  %v1172_v38 = vld [vmem:[%s1743_s1 + $0xe0] ss:$8 sps:$4 sm:$0xff]   ;;  %v1174_v40 = vld [vmem:[%s1743_s1 + $0xd4] ss:$8 sps:$4 sm:$0xff]  }
   0xe   :  { %v1170_v37 = vld [vmem:[%s1743_s1 + $0x1e4] ss:$8 sps:$4 sm:$0xff]   ;;  %v1173_v39 = vld [vmem:[%s1743_s1 + $0x1e0] ss:$8 sps:$4 sm:$0xff]   ;;  %v1176_v41 = vld [vmem:[%s1743_s1 + $0x1d4] ss:$8 sps:$4 sm:$0xff]  }
   0xf   :  { %817 = vmatpush1.bf16.msra.mxu0 %v1136_v14  ;;  %v1178_v42 = vld [vmem:[%s1743_s1 + $0xd0] ss:$8 sps:$4 sm:$0xff]   ;;  %v1180_v44 = vld [vmem:[%s1743_s1 + $0xc4] ss:$8 sps:$4 sm:$0xff]   ;;  %v1184_v47 = vld [vmem:[%s1743_s1 + $0xc0] ss:$8 sps:$4 sm:$0xff]  }
  0x10   :  { %858 = vmatpush1.bf16.msra.mxu1 %v1137_v15  ;;  %818 = vmatprep.subr.bf16.mxu0 %v1138_v16  ;;  %v1179_v43 = vld [vmem:[%s1743_s1 + $0x1d0] ss:$8 sps:$4 sm:$0xff]   ;;  %v1182_v45 = vld [vmem:[%s1743_s1 + $0x1c4] ss:$8 sps:$4 sm:$0xff]   ;;  %v1185_v48 = vld [vmem:[%s1743_s1 + $0x1c0] ss:$8 sps:$4 sm:$0xff]  }
  0x11   :  { %859 = vmatprep.subr.bf16.mxu1 %v1140_v17  ;;  %v15_v46 = vld [vmem:[%s1744_s0 + $0x8] sm:$0xff]  ;;  %v17_v50 = vld [vmem:[%s1744_s0 + $0x18] sm:$0xff]  ;;  %v14_v4 = vld [vmem:[%s1744_s0] sm:$0xff] }
  0x12   :  { %v23_v49 = vpack.c.bf16 %v15_v46, %v15_v46  ;;  %v1186_v51 = vld [vmem:[%s1743_s1 + $0xb4] ss:$8 sps:$4 sm:$0xff]   ;;  %v25_v52 = vpack.c.bf16 %v17_v50, %v17_v50  ;;  %v1190_v54 = vld [vmem:[%s1743_s1 + $0xb0] ss:$8 sps:$4 sm:$0xff]   ;;  %v1192_v56 = vld [vmem:[%s1743_s1 + $0xa4] ss:$8 sps:$4 sm:$0xff]   ;;  %v22_v8 = vpack.c.bf16 %v14_v4, %v14_v4 }
  0x13   :  { %819 = vmatpush1.bf16.msra.mxu0 %v1142_v18  ;;  %v1188_v53 = vld [vmem:[%s1743_s1 + $0x1b4] ss:$8 sps:$4 sm:$0xff]   ;;  %v1191_v55 = vld [vmem:[%s1743_s1 + $0x1b0] ss:$8 sps:$4 sm:$0xff]   ;;  %v1194_v57 = vld [vmem:[%s1743_s1 + $0x1a4] ss:$8 sps:$4 sm:$0xff]  }
  0x14   :  { %860 = vmatpush1.bf16.msra.mxu1 %v1143_v19  ;;  %820 = vmatprep.subr.bf16.mxu0 %v1144_v20  ;;  %v1196_v58 = vld [vmem:[%s1743_s1 + $0xa0] ss:$8 sps:$4 sm:$0xff]   ;;  %v1198_v60 = vld [vmem:[%s1743_s1 + $0x94] ss:$8 sps:$4 sm:$0xff]   ;;  %v1202_v62 = vld [vmem:[%s1743_s1 + $0x90] ss:$8 sps:$4 sm:$0xff]  }
  0x15   :  { %861 = vmatprep.subr.bf16.mxu1 %v1146_v21  ;;  %842 = vmatprep.mubr.bf16.mxu0 %v23_v49  ;;  %v1197_v59 = vld [vmem:[%s1743_s1 + $0x1a0] ss:$8 sps:$4 sm:$0xff]   ;;  %v1200_v61 = vld [vmem:[%s1743_s1 + $0x194] ss:$8 sps:$4 sm:$0xff]   ;;  %v1203_v63 = vld [vmem:[%s1743_s1 + $0x190] ss:$8 sps:$4 sm:$0xff]  }
  0x16   :  { %883 = vmatprep.mubr.bf16.mxu1 %v25_v52  ;;  %v1204_v0 = vld [vmem:[%s1743_s1 + $0x84] ss:$8 sps:$4 sm:$0xff]   ;;  %v1208_v2 = vld [vmem:[%s1743_s1 + $0x80] ss:$8 sps:$4 sm:$0xff]   ;;  %v16_v5 = vld [vmem:[%s1744_s0 + $0x10] sm:$0xff] }
  0x17   :  { %821 = vmatpush1.bf16.msra.mxu0 %v1148_v22  ;;  %v1206_v1 = vld [vmem:[%s1743_s1 + $0x184] ss:$8 sps:$4 sm:$0xff]   ;;  %v1209_v3 = vld [vmem:[%s1743_s1 + $0x180] ss:$8 sps:$4 sm:$0xff]   ;;  %v1212_v6 = vld [vmem:[%s1743_s1 + $0x274] ss:$8 sps:$4 sm:$0xff]   ;;  %v24_v9 = vpack.c.bf16 %v16_v5, %v16_v5 }
  0x18   :  { %862 = vmatpush1.bf16.msra.mxu1 %v1149_v23  ;;  %822 = vmatprep.subr.bf16.mxu0 %v1150_v24  ;;  %v1215_v7 = vld [vmem:[%s1743_s1 + $0x374] ss:$8 sps:$4 sm:$0xff]   ;;  %v1210_v10 = vld [vmem:[%s1743_s1 + $0x270] ss:$8 sps:$4 sm:$0xff]   ;;  %v1218_v12 = vld [vmem:[%s1743_s1 + $0x264] ss:$8 sps:$4 sm:$0xff]  }
  0x19   :  { %863 = vmatprep.subr.bf16.mxu1 %v1152_v25  ;;  %v1213_v11 = vld [vmem:[%s1743_s1 + $0x370] ss:$8 sps:$4 sm:$0xff]   ;;  %v1221_v13 = vld [vmem:[%s1743_s1 + $0x364] ss:$8 sps:$4 sm:$0xff]   ;;  %v1216_v14 = vld [vmem:[%s1743_s1 + $0x260] ss:$8 sps:$4 sm:$0xff]  }
  0x1a   :  { %v1219_v15 = vld [vmem:[%s1743_s1 + $0x360] ss:$8 sps:$4 sm:$0xff]   ;;  %v1224_v16 = vld [vmem:[%s1743_s1 + $0x254] ss:$8 sps:$4 sm:$0xff]   ;;  %v1222_v18 = vld [vmem:[%s1743_s1 + $0x250] ss:$8 sps:$4 sm:$0xff]  }
  0x1b   :  { %823 = vmatpush1.bf16.msra.mxu0 %v1154_v26  ;;  %v1227_v17 = vld [vmem:[%s1743_s1 + $0x354] ss:$8 sps:$4 sm:$0xff]   ;;  %v1225_v19 = vld [vmem:[%s1743_s1 + $0x350] ss:$8 sps:$4 sm:$0xff]   ;;  %v1230_v20 = vld [vmem:[%s1743_s1 + $0x244] ss:$8 sps:$4 sm:$0xff]  }
  0x1c   :  { %864 = vmatpush1.bf16.msra.mxu1 %v1155_v27  ;;  %824 = vmatprep.subr.bf16.mxu0 %v1156_v28  ;;  %v1233_v21 = vld [vmem:[%s1743_s1 + $0x344] ss:$8 sps:$4 sm:$0xff]   ;;  %v1228_v22 = vld [vmem:[%s1743_s1 + $0x240] ss:$8 sps:$4 sm:$0xff]   ;;  %v1236_v24 = vld [vmem:[%s1743_s1 + $0x234] ss:$8 sps:$4 sm:$0xff]  }
  0x1d   :  { %865 = vmatprep.subr.bf16.mxu1 %v1158_v29  ;;  %v1231_v23 = vld [vmem:[%s1743_s1 + $0x340] ss:$8 sps:$4 sm:$0xff]   ;;  %v1239_v25 = vld [vmem:[%s1743_s1 + $0x334] ss:$8 sps:$4 sm:$0xff]   ;;  %v1234_v26 = vld [vmem:[%s1743_s1 + $0x230] ss:$8 sps:$4 sm:$0xff]  }
  0x1e   :  { %v1237_v27 = vld [vmem:[%s1743_s1 + $0x330] ss:$8 sps:$4 sm:$0xff]   ;;  %v1242_v28 = vld [vmem:[%s1743_s1 + $0x224] ss:$8 sps:$4 sm:$0xff]   ;;  %v1264_v50 = vld [vmem:[%s1743_s1 + $0x2e0] ss:$8 sps:$4 sm:$0xff]  }
  0x1f   :  { %825 = vmatpush1.bf16.msra.mxu0 %v1160_v30  ;;  %v1245_v29 = vld [vmem:[%s1743_s1 + $0x324] ss:$8 sps:$4 sm:$0xff]   ;;  %v1240_v30 = vld [vmem:[%s1743_s1 + $0x220] ss:$8 sps:$4 sm:$0xff]   ;;  %v1258_v46 = vld [vmem:[%s1743_s1 + $0x2f0] ss:$8 sps:$4 sm:$0xff]  }
  0x20   :  { %866 = vmatpush1.bf16.msra.mxu1 %v1161_v31  ;;  %826 = vmatprep.subr.bf16.mxu0 %v1162_v32  ;;  %v1243_v31 = vld [vmem:[%s1743_s1 + $0x320] ss:$8 sps:$4 sm:$0xff]   ;;  %v1248_v32 = vld [vmem:[%s1743_s1 + $0x214] ss:$8 sps:$4 sm:$0xff]   ;;  %v1269_v49 = vld [vmem:[%s1743_s1 + $0x3e4] ss:$8 sps:$4 sm:$0xff]  }
  0x21   :  { %867 = vmatprep.subr.bf16.mxu1 %v1164_v33  ;;  %v1251_v33 = vld [vmem:[%s1743_s1 + $0x314] ss:$8 sps:$4 sm:$0xff]  }
  0x22   :  { %v1272_v52 = vld [vmem:[%s1743_s1 + $0x2d4] ss:$8 sps:$4 sm:$0xff]  }
  0x23   :  { %827 = vmatpush2.bf16.msra.mxu0 %v1166_v34  ;;  %v19_v34 = vld [vmem:[%s1744_s0 + $0x28] sm:$0xff]  ;;  %v1296_v4 = vld [vmem:[%s1743_s1 + $0x294] ss:$8 sps:$4 sm:$0xff]  }
  0x24   :  { %868 = vmatpush2.bf16.msra.mxu1 %v1167_v35  ;;  %828 = vmatprep.subr.bf16.mxu0 %v1168_v36  ;;  %v27_v35 = vpack.c.bf16 %v19_v34, %v19_v34  ;;  %v21_v36 = vld [vmem:[%s1744_s0 + $0x38] sm:$0xff] }
  0x25   :  { %869 = vmatprep.subr.bf16.mxu1 %v1170_v37  ;;  %v1246_v37 = vld [vmem:[%s1743_s1 + $0x210] ss:$8 sps:$4 sm:$0xff]   ;;  %v1299_v5 = vld [vmem:[%s1743_s1 + $0x394] ss:$8 sps:$4 sm:$0xff]  }
  0x27   :  { %829 = vmatpush2.bf16.msra.mxu0 %v1172_v38  ;;  %v1249_v38 = vld [vmem:[%s1743_s1 + $0x310] ss:$8 sps:$4 sm:$0xff]  }
  0x28   :  { %870 = vmatpush2.bf16.msra.mxu1 %v1173_v39  ;;  %830 = vmatprep.subr.bf16.mxu0 %v1174_v40  ;;  %v29_v39 = vpack.c.bf16 %v21_v36, %v21_v36  ;;  %v1254_v40 = vld [vmem:[%s1743_s1 + $0x204] ss:$8 sps:$4 sm:$0xff]  }
  0x29   :  { %871 = vmatprep.subr.bf16.mxu1 %v1176_v41  ;;  %v1257_v41 = vld [vmem:[%s1743_s1 + $0x304] ss:$8 sps:$4 sm:$0xff]  }
  0x2b   :  { %831 = vmatpush2.bf16.msra.mxu0 %v1178_v42  ;;  %v1252_v42 = vld [vmem:[%s1743_s1 + $0x200] ss:$8 sps:$4 sm:$0xff]  }
  0x2c   :  { %872 = vmatpush2.bf16.msra.mxu1 %v1179_v43  ;;  %832 = vmatprep.subr.bf16.mxu0 %v1180_v44  ;;  %v1255_v43 = vld [vmem:[%s1743_s1 + $0x300] ss:$8 sps:$4 sm:$0xff]   ;;  %v1260_v44 = vld [vmem:[%s1743_s1 + $0x2f4] ss:$8 sps:$4 sm:$0xff]  }
  0x2d   :  { %873 = vmatprep.subr.bf16.mxu1 %v1182_v45  ;;  %v1263_v45 = vld [vmem:[%s1743_s1 + $0x3f4] ss:$8 sps:$4 sm:$0xff]  }
  0x2f   :  { %833 = vmatpush2.bf16.msra.mxu0 %v1184_v47  ;;  %v1261_v47 = vld [vmem:[%s1743_s1 + $0x3f0] ss:$8 sps:$4 sm:$0xff]  }
  0x30   :  { %874 = vmatpush2.bf16.msra.mxu1 %v1185_v48  ;;  %834 = vmatprep.subr.bf16.mxu0 %v1186_v51  ;;  %v1266_v48 = vld [vmem:[%s1743_s1 + $0x2e4] ss:$8 sps:$4 sm:$0xff]   ;;  %v1267_v51 = vld [vmem:[%s1743_s1 + $0x3e0] ss:$8 sps:$4 sm:$0xff]  }
  0x31   :  { %875 = vmatprep.subr.bf16.mxu1 %v1188_v53  ;;  %v1275_v53 = vld [vmem:[%s1743_s1 + $0x3d4] ss:$8 sps:$4 sm:$0xff]  }
  0x33   :  { %835 = vmatpush2.bf16.msra.mxu0 %v1190_v54  ;;  %v1270_v54 = vld [vmem:[%s1743_s1 + $0x2d0] ss:$8 sps:$4 sm:$0xff]  }
  0x34   :  { %876 = vmatpush2.bf16.msra.mxu1 %v1191_v55  ;;  %836 = vmatprep.subr.bf16.mxu0 %v1192_v56  ;;  %v1273_v55 = vld [vmem:[%s1743_s1 + $0x3d0] ss:$8 sps:$4 sm:$0xff]   ;;  %v1278_v56 = vld [vmem:[%s1743_s1 + $0x2c4] ss:$8 sps:$4 sm:$0xff]  }
  0x35   :  { %877 = vmatprep.subr.bf16.mxu1 %v1194_v57  ;;  %v1281_v57 = vld [vmem:[%s1743_s1 + $0x3c4] ss:$8 sps:$4 sm:$0xff]  }
  0x37   :  { %837 = vmatpush2.bf16.msra.mxu0 %v1196_v58  ;;  %v1276_v58 = vld [vmem:[%s1743_s1 + $0x2c0] ss:$8 sps:$4 sm:$0xff]  }
  0x38   :  { %878 = vmatpush2.bf16.msra.mxu1 %v1197_v59  ;;  %838 = vmatprep.subr.bf16.mxu0 %v1198_v60  ;;  %v1279_v59 = vld [vmem:[%s1743_s1 + $0x3c0] ss:$8 sps:$4 sm:$0xff]   ;;  %v1284_v60 = vld [vmem:[%s1743_s1 + $0x2b4] ss:$8 sps:$4 sm:$0xff]  }
  0x39   :  { %879 = vmatprep.subr.bf16.mxu1 %v1200_v61  ;;  %v1287_v61 = vld [vmem:[%s1743_s1 + $0x3b4] ss:$8 sps:$4 sm:$0xff]  }
  0x3b   :  { %839 = vmatpush2.bf16.msra.mxu0 %v1202_v62  ;;  %v1282_v62 = vld [vmem:[%s1743_s1 + $0x2b0] ss:$8 sps:$4 sm:$0xff]  }
  0x3c   :  { %880 = vmatpush2.bf16.msra.mxu1 %v1203_v63  ;;  %840 = vmatprep.subr.bf16.mxu0 %v1204_v0  ;;  %v1285_v63 = vld [vmem:[%s1743_s1 + $0x3b0] ss:$8 sps:$4 sm:$0xff]   ;;  %v1290_v0 = vld [vmem:[%s1743_s1 + $0x2a4] ss:$8 sps:$4 sm:$0xff]  }
  0x3d   :  { %881 = vmatprep.subr.bf16.mxu1 %v1206_v1  ;;  %v1293_v1 = vld [vmem:[%s1743_s1 + $0x3a4] ss:$8 sps:$4 sm:$0xff]  }
  0x3f   :  { %841 = vmatpush2.bf16.msra.mxu0 %v1208_v2  ;;  %v1288_v2 = vld [vmem:[%s1743_s1 + $0x2a0] ss:$8 sps:$4 sm:$0xff]  }
  0x40   :  { %882 = vmatpush2.bf16.msra.mxu1 %v1209_v3  ;;  %892 = vmatprep.subr.bf16.mxu0 %v1212_v6  ;;  %v1291_v3 = vld [vmem:[%s1743_s1 + $0x3a0] ss:$8 sps:$4 sm:$0xff]   ;;  %v1294_v6 = vld [vmem:[%s1743_s1 + $0x290] ss:$8 sps:$4 sm:$0xff]  }
  0x41   :  { %933 = vmatprep.subr.bf16.mxu1 %v1215_v7  ;;  %v1297_v7 = vld [vmem:[%s1743_s1 + $0x390] ss:$8 sps:$4 sm:$0xff]  }
  0x42   :  { %843 = vmatmul.mubr.bf16.vlgmr.msra.gmra.mxu0 %v22_v8  ;;  %v1302_v8 = vld [vmem:[%s1743_s1 + $0x284] ss:$8 sps:$4 sm:$0xff]  }
  0x43   :  { %884 = vmatmul.mubr.bf16.vlgmr.msra.gmra.mxu1 %v24_v9  ;;  %893 = vmatpush1.bf16.msra.mxu0 %v1210_v10  ;;  %v1305_v9 = vld [vmem:[%s1743_s1 + $0x384] ss:$8 sps:$4 sm:$0xff]   ;;  %v1300_v10 = vld [vmem:[%s1743_s1 + $0x280] ss:$8 sps:$4 sm:$0xff]  }
  0x44   :  { %934 = vmatpush1.bf16.msra.mxu1 %v1213_v11  ;;  %894 = vmatprep.subr.bf16.mxu0 %v1218_v12  ;;  %v1303_v11 = vld [vmem:[%s1743_s1 + $0x380] ss:$8 sps:$4 sm:$0xff]  }
  0x45   :  { %935 = vmatprep.subr.bf16.mxu1 %v1221_v13  ;;  %924 = vmatprep.mubr.bf16.mxu0 %v27_v35  ;;  %v18_v12 = vld [vmem:[%s1744_s0 + $0x20] sm:$0xff]  ;;  %v20_v13 = vld [vmem:[%s1744_s0 + $0x30] sm:$0xff] }
  0x46   :  { %965 = vmatprep.mubr.bf16.mxu1 %v29_v39 }
  0x47   :  { %895 = vmatpush1.bf16.msra.mxu0 %v1216_v14  ;;  %v26_v14 = vpack.c.bf16 %v18_v12, %v18_v12 }
  0x48   :  { %936 = vmatpush1.bf16.msra.mxu1 %v1219_v15  ;;  %896 = vmatprep.subr.bf16.mxu0 %v1224_v16  ;;  %v28_v15 = vpack.c.bf16 %v20_v13, %v20_v13 }
  0x49   :  { %937 = vmatprep.subr.bf16.mxu1 %v1227_v17 }
  0x4b   :  { %897 = vmatpush1.bf16.msra.mxu0 %v1222_v18 }
  0x4c   :  { %938 = vmatpush1.bf16.msra.mxu1 %v1225_v19  ;;  %898 = vmatprep.subr.bf16.mxu0 %v1230_v20 }
  0x4d   :  { %939 = vmatprep.subr.bf16.mxu1 %v1233_v21 }
  0x4f   :  { %899 = vmatpush1.bf16.msra.mxu0 %v1228_v22 }
  0x50   :  { %940 = vmatpush1.bf16.msra.mxu1 %v1231_v23  ;;  %900 = vmatprep.subr.bf16.mxu0 %v1236_v24  ;;  %v160_v24 = vlaneseq }
  0x51   :  { %941 = vmatprep.subr.bf16.mxu1 %v1239_v25 }
  0x52   :  { %v161_v25 = vshrl.u32 %v160_v24, 7 }
  0x53   :  { %901 = vmatpush1.bf16.msra.mxu0 %v1234_v26 }
  0x54   :  { %942 = vmatpush1.bf16.msra.mxu1 %v1237_v27  ;;  %902 = vmatprep.subr.bf16.mxu0 %v1242_v28  ;;  %v162_v26 = vsub.s32 0, %v161_v25  ;;  %v158_v27 = vld [vmem:[%s1745_s2] sm:$0x3]  ;;  %v166_v28 = vsub.s32 1, %v161_v25 }
  0x55   :  { %943 = vmatprep.subr.bf16.mxu1 %v1245_v29 }
  0x56   :  { %v163_v29 = vrot.slane %v158_v27, %v162_v26 }
  0x57   :  { %903 = vmatpush1.bf16.msra.mxu0 %v1240_v30  ;;  %v167_v30 = vrot.slane %v158_v27, %v166_v28 }
  0x58   :  { %944 = vmatpush1.bf16.msra.mxu1 %v1243_v31  ;;  %904 = vmatprep.subr.bf16.mxu0 %v1248_v32 }
  0x59   :  { %945 = vmatprep.subr.bf16.mxu1 %v1251_v33 }
  0x5b   :  { %905 = vmatpush1.bf16.msra.mxu0 %v1246_v37 }
  0x5c   :  { %946 = vmatpush1.bf16.msra.mxu1 %v1249_v38  ;;  %906 = vmatprep.subr.bf16.mxu0 %v1254_v40 }
  0x5d   :  { %947 = vmatprep.subr.bf16.mxu1 %v1257_v41 }
  0x5f   :  { %907 = vmatpush1.bf16.msra.mxu0 %v1252_v42 }
  0x60   :  { %948 = vmatpush1.bf16.msra.mxu1 %v1255_v43  ;;  %908 = vmatprep.subr.bf16.mxu0 %v1260_v44 }
  0x61   :  { %949 = vmatprep.subr.bf16.mxu1 %v1263_v45 }
  0x63   :  { %909 = vmatpush2.bf16.msra.mxu0 %v1258_v46 }
  0x64   :  { %950 = vmatpush2.bf16.msra.mxu1 %v1261_v47  ;;  %910 = vmatprep.subr.bf16.mxu0 %v1266_v48 }
  0x65   :  { %951 = vmatprep.subr.bf16.mxu1 %v1269_v49 }
  0x67   :  { %911 = vmatpush2.bf16.msra.mxu0 %v1264_v50 }
  0x68   :  { %952 = vmatpush2.bf16.msra.mxu1 %v1267_v51  ;;  %912 = vmatprep.subr.bf16.mxu0 %v1272_v52 }
  0x69   :  { %953 = vmatprep.subr.bf16.mxu1 %v1275_v53 }
  0x6b   :  { %913 = vmatpush2.bf16.msra.mxu0 %v1270_v54 }
  0x6c   :  { %954 = vmatpush2.bf16.msra.mxu1 %v1273_v55  ;;  %914 = vmatprep.subr.bf16.mxu0 %v1278_v56 }
  0x6d   :  { %955 = vmatprep.subr.bf16.mxu1 %v1281_v57 }
  0x6f   :  { %915 = vmatpush2.bf16.msra.mxu0 %v1276_v58 }
  0x70   :  { %956 = vmatpush2.bf16.msra.mxu1 %v1279_v59  ;;  %916 = vmatprep.subr.bf16.mxu0 %v1284_v60 }
  0x71   :  { %957 = vmatprep.subr.bf16.mxu1 %v1287_v61 }
  0x73   :  { %917 = vmatpush2.bf16.msra.mxu0 %v1282_v62 }
  0x74   :  { %958 = vmatpush2.bf16.msra.mxu1 %v1285_v63  ;;  %918 = vmatprep.subr.bf16.mxu0 %v1290_v0 }
  0x75   :  { %959 = vmatprep.subr.bf16.mxu1 %v1293_v1 }
  0x77   :  { %919 = vmatpush2.bf16.msra.mxu0 %v1288_v2 }
  0x78   :  { %960 = vmatpush2.bf16.msra.mxu1 %v1291_v3  ;;  %920 = vmatprep.subr.bf16.mxu0 %v1296_v4 }
  0x79   :  { %961 = vmatprep.subr.bf16.mxu1 %v1299_v5 }
  0x7b   :  { %921 = vmatpush2.bf16.msra.mxu0 %v1294_v6 }
  0x7c   :  { %962 = vmatpush2.bf16.msra.mxu1 %v1297_v7  ;;  %922 = vmatprep.subr.bf16.mxu0 %v1302_v8 }
  0x7d   :  { %963 = vmatprep.subr.bf16.mxu1 %v1305_v9 }
  0x7f   :  { %923 = vmatpush2.bf16.msra.mxu0 %v1300_v10 }
  0x80   :  { %964 = vmatpush2.bf16.msra.mxu1 %v1303_v11 }
  0x82   :  { %925 = vmatmul.mubr.bf16.vlgmr.msra.gmra.mxu0 %v26_v14 }
  0x83   :  { %966 = vmatmul.mubr.bf16.vlgmr.msra.gmra.mxu1 %v28_v15 }
 0x102   :  { %v844_v16 = vpop.f32.mrf.mxu0 }
 0x103   :  { %v885_v17 = vpop.f32.mrf.mxu1  ;;  %v845_v31 = vadd.f32 %v844_v16, %v163_v29 }
 0x104   :  { %v846_v18 = vpop.f32.mrf.mxu0 }
 0x105   :  { %v887_v19 = vpop.f32.mrf.mxu1  ;;  %v847_v32 = vadd.f32 %v846_v18, %v167_v30  ;;  %v886_v33 = vadd.f32 %v885_v17, %v845_v31 }
 0x106   :  { %v848_v20 = vpop.f32.mrf.mxu0 }
 0x107   :  { %v889_v21 = vpop.f32.mrf.mxu1  ;;  %v888_v36 = vadd.f32 %v887_v19, %v847_v32 }
 0x108   :  { %v849_v22 = vpop.f32.mrf.mxu0 }
 0x109   :  { %v890_v23 = vpop.f32.mrf.mxu1 }
 0x142   :  { %v926_v34 = vpop.f32.mrf.mxu0 }
 0x143   :  { %v967_v35 = vpop.f32.mrf.mxu1  ;;  %v927_v37 = vadd.f32 %v926_v34, %v886_v33 }
 0x144   :  { %v928_v38 = vpop.f32.mrf.mxu0 }
 0x145   :  { %v969_v39 = vpop.f32.mrf.mxu1  ;;  %v968_v40 = vadd.f32 %v967_v35, %v927_v37  ;;  %v929_v41 = vadd.f32 %v928_v38, %v888_v36 }
 0x146   :  { %v930_v42 = vpop.f32.mrf.mxu0 }
 0x147   :  { %v971_v43 = vpop.f32.mrf.mxu1  ;;  %vm974_vm0 = vcmp.gt.f32.partialorder %v968_v40, 0.0  ;;  %v976_v44 = vmul.f32 0.2, %v968_v40  ;;  %v970_v45 = vadd.f32 %v969_v39, %v929_v41 }
 0x148   :  { %v931_v46 = vpop.f32.mrf.mxu0 }
 0x149   :  { %v972_v47 = vpop.f32.mrf.mxu1  ;;  %v978_v48 = vsel %vm974_vm0, %v968_v40, %v976_v44  ;;  %vm975_vm1 = vcmp.gt.f32.partialorder %v970_v45, 0.0  ;;  %v977_v49 = vmul.f32 0.2, %v970_v45 }
 0x14a   :  { %980 = vst [vmem:[%s1746_s3] sm:$0xff] %v978_v48 }
 0x14b   :  { %v979_v50 = vsel %vm975_vm1, %v970_v45, %v977_v49 }
 0x14c   :  { %981 = vst [vmem:[%s1746_s3 + $0x8] sm:$0xff] %v979_v50 }

// kernel: ae_forward.11
= control target key start
LH: loop header
LB: loop body
LE: loop exit
PB: predicated region body
PF: predicated region fallthrough
CT: control target
= control target key end

     0   :  { %vm197_vm1 = vcmask 523264   ;;  %s338_s1 = inlined_call_operand.vmem [shape: bf16[256,64], index: 1, kind: input, shape index: {}]   ;;  %s339_s0 = inlined_call_operand.vmem [shape: f32[8,256], index: 0, kind: input, shape index: {}]   ;;  %s340_s2 = inlined_call_operand.vmem [shape: f32[1,64], index: 2, kind: input, shape index: {}]   ;;  %s341_s3 = inlined_call_operand.vmem [shape: f32[8,64], index: 3, kind: output, shape index: {}]  }
   0x1   :  { %v242_v0 = vld [vmem:[%s338_s1 + $0x78] sm:$0xff]   ;;  %v244_v2 = vld [vmem:[%s338_s1 + $0x70] sm:$0xff]   ;;  %v246_v4 = vld [vmem:[%s338_s1 + $0x68] sm:$0xff]  }
   0x2   :  { %v243_v1 = vld [vmem:[%s338_s1 + $0x38] sm:$0xff]   ;;  %220 = vmatprep.subr.bf16.mxu0 %v242_v0  ;;  %v245_v3 = vld [vmem:[%s338_s1 + $0x30] sm:$0xff]   ;;  %v247_v5 = vld [vmem:[%s338_s1 + $0x28] sm:$0xff]  }
   0x3   :  { %221 = vmatpush3.bf16.msra.mxu0 %v243_v1  ;;  %v248_v6 = vld [vmem:[%s338_s1 + $0x60] sm:$0xff]   ;;  %v250_v8 = vld [vmem:[%s338_s1 + $0x58] sm:$0xff]   ;;  %v252_v10 = vld [vmem:[%s338_s1 + $0x50] sm:$0xff]  }
   0x4   :  { %222 = vmatprep.subr.bf16.mxu0 %v244_v2  ;;  %v249_v7 = vld [vmem:[%s338_s1 + $0x20] sm:$0xff]   ;;  %v251_v9 = vld [vmem:[%s338_s1 + $0x18] sm:$0xff]   ;;  %v16_v11 = vld [vmem:[%s339_s0 + $0x8] sm:$0xff] }
   0x5   :  { %v18_v12 = vpack.c.bf16 %v16_v11, %v16_v11  ;;  %v253_v13 = vld [vmem:[%s338_s1 + $0x10] sm:$0xff]   ;;  %v254_v14 = vld [vmem:[%s338_s1 + $0x48] sm:$0xff]   ;;  %v256_v16 = vld [vmem:[%s338_s1 + $0x40] sm:$0xff]  }
   0x6   :  { %v255_v15 = vld [vmem:[%s338_s1 + $0x8] sm:$0xff]   ;;  %v257_v17 = vld [vmem:[%s338_s1] sm:$0xff]  }
   0x7   :  { %223 = vmatpush3.bf16.msra.mxu0 %v245_v3  ;;  %186 = vmatprep.mubr.bf16.mxu0 %v18_v12  ;;  %v15_v18 = vld [vmem:[%s339_s0] sm:$0xff] }
   0x8   :  { %224 = vmatprep.subr.bf16.mxu0 %v246_v4  ;;  %v17_v19 = vpack.c.bf16 %v15_v18, %v15_v18  ;;  %v203_v21 = vld [vmem:[%s340_s2] ss:$0 sm:$0xff] }
   0xb   :  { %225 = vmatpush3.bf16.msra.mxu0 %v247_v5 }
   0xc   :  { %226 = vmatprep.subr.bf16.mxu0 %v248_v6 }
   0xf   :  { %227 = vmatpush3.bf16.msra.mxu0 %v249_v7 }
  0x10   :  { %228 = vmatprep.subr.bf16.mxu0 %v250_v8 }
  0x13   :  { %229 = vmatpush3.bf16.msra.mxu0 %v251_v9 }
  0x14   :  { %230 = vmatprep.subr.bf16.mxu0 %v252_v10 }
  0x17   :  { %231 = vmatpush3.bf16.msra.mxu0 %v253_v13 }
  0x18   :  { %232 = vmatprep.subr.bf16.mxu0 %v254_v14 }
  0x1b   :  { %233 = vmatpush3.bf16.msra.mxu0 %v255_v15 }
  0x1c   :  { %234 = vmatprep.subr.bf16.mxu0 %v256_v16 }
  0x1f   :  { %235 = vmatpush3.bf16.msra.mxu0 %v257_v17 }
  0x22   :  { %187 = vmatmul.mubr.bf16.vlgmr.msra.gmra.mxu0 %v17_v19 }
  0xe2   :  { %v236_v20 = vpop.f32.mrf.mxu0 }
  0xe4   :  { %v237_v22 = vpop.f32.mrf.mxu0 }
  0xe5   :  { %v238_v23 = vadd.f32 %v237_v22, %v236_v20 }
  0xe6   :  { %v239_v24 = vpop.f32.mrf.mxu0 }
  0xe7   :  { %v189_v25 = vadd.f32 %v238_v23, %v203_v21 }
  0xe8   :  { %v240_v26 = vpop.f32.mrf.mxu0 }
  0xe9   :  { %vm194_vm0 = vcmp.gt.f32.partialorder %v189_v25, 0.0  ;;  %v195_v27 = vmul.f32 0.2, %v189_v25 }
  0xeb   :  { %v196_v28 = vsel %vm194_vm0, %v189_v25, %v195_v27 }
  0xec   :  { %198 = vst.msk [vmem:[%s341_s3] sm:$0xff] %vm197_vm1, %v196_v28 }

// kernel: ae_forward.12
= control target key start
LH: loop header
LB: loop body
LE: loop exit
PB: predicated region body
PF: predicated region fallthrough
CT: control target
= control target key end

     0   :  { %v156_v1 = vmov 0   ;;  %vm77_vm0 = vcmask 523264   ;;  %v27_v11 = vlaneseq  ;;  %s213_s1 = inlined_call_operand.vmem [shape: bf16[64,256], index: 1, kind: input, shape index: {}]   ;;  %s214_s0 = inlined_call_operand.vmem [shape: f32[8,64], index: 0, kind: input, shape index: {}]   ;;  %s215_s2 = inlined_call_operand.vmem [shape: f32[1,256], index: 2, kind: input, shape index: {}]   ;;  %s216_s3 = inlined_call_operand.vmem [shape: f32[8,256], index: 3, kind: output, shape index: {}]  }
   0x1   :  { %v144_v0 = vld [vmem:[%s213_s1 + $0x34] ss:$8 sps:$4 sm:$0xff]   ;;  %113 = vmatprep.mubr.bf16.mxu0 %v156_v1  ;;  %v146_v2 = vld [vmem:[%s213_s1 + $0x30] ss:$8 sps:$4 sm:$0xff]   ;;  %v147_v3 = vld [vmem:[%s213_s1 + $0x24] ss:$8 sps:$4 sm:$0xff]  }
   0x2   :  { %89 = vmatprep.subr.bf16.mxu0 %v144_v0  ;;  %v149_v4 = vld [vmem:[%s213_s1 + $0x20] ss:$8 sps:$4 sm:$0xff]   ;;  %v150_v5 = vld [vmem:[%s213_s1 + $0x14] ss:$8 sps:$4 sm:$0xff]   ;;  %v152_v6 = vld [vmem:[%s213_s1 + $0x10] ss:$8 sps:$4 sm:$0xff]  }
   0x3   :  { %90 = vmatpush1.bf16.msra.mxu0 %v146_v2  ;;  %v153_v7 = vld [vmem:[%s213_s1 + $0x4] ss:$8 sps:$4 sm:$0xff]   ;;  %v155_v8 = vld [vmem:[%s213_s1] ss:$8 sps:$4 sm:$0xff]   ;;  %v28_v12 = vshrl.u32 %v27_v11, 7 }
   0x4   :  { %91 = vmatprep.subr.bf16.mxu0 %v147_v3  ;;  %v15_v9 = vld [vmem:[%s214_s0] sm:$0xff] }
   0x5   :  { %v16_v10 = vpack.c.bf16 %v15_v9, %v15_v9  ;;  %v29_v13 = vsub.s32 0, %v28_v12  ;;  %v25_v14 = vld [vmem:[%s215_s2] sm:$0x3]  ;;  %v33_v15 = vsub.s32 1, %v28_v12 }
   0x7   :  { %92 = vmatpush1.bf16.msra.mxu0 %v149_v4  ;;  %v30_v16 = vrot.slane %v25_v14, %v29_v13  ;;  %v34_v17 = vrot.slane %v25_v14, %v33_v15 }
   0x8   :  { %93 = vmatprep.subr.bf16.mxu0 %v150_v5 }
   0xb   :  { %94 = vmatpush1.bf16.msra.mxu0 %v152_v6 }
   0xc   :  { %95 = vmatprep.subr.bf16.mxu0 %v153_v7 }
   0xf   :  { %96 = vmatpush1.bf16.msra.mxu0 %v155_v8 }
  0x12   :  { %142 = vmatmul.mubr.msk.bf16.vlgmr.msra.gmra.mxu0 %vm77_vm0, %v16_v10 }
  0xd2   :  { %v115_v18 = vpop.f32.mrf.mxu0 }
  0xd3   :  { %v116_v19 = vadd.f32 %v115_v18, %v30_v16 }
  0xd4   :  { %v117_v20 = vpop.f32.mrf.mxu0 }
  0xd5   :  { %vm122_vm1 = vcmp.gt.f32.partialorder %v116_v19, 0.0  ;;  %v124_v21 = vmul.f32 0.2, %v116_v19  ;;  %v118_v22 = vadd.f32 %v117_v20, %v34_v17 }
  0xd6   :  { %v119_v23 = vpop.f32.mrf.mxu0 }
  0xd7   :  { %v126_v24 = vsel %vm122_vm1, %v116_v19, %v124_v21  ;;  %vm123_vm2 = vcmp.gt.f32.partialorder %v118_v22, 0.0  ;;  %v125_v25 = vmul.f32 0.2, %v118_v22 }
  0xd8   :  { %128 = vst [vmem:[%s216_s3] sm:$0xff] %v126_v24  ;;  %v120_v26 = vpop.f32.mrf.mxu0 }
  0xd9   :  { %v127_v27 = vsel %vm123_vm2, %v118_v22, %v125_v25 }
  0xda   :  { %129 = vst [vmem:[%s216_s3 + $0x8] sm:$0xff] %v127_v27 }

// kernel: ae_forward.8
= control target key start
LH: loop header
LB: loop body
LE: loop exit
PB: predicated region body
PF: predicated region fallthrough
CT: control target
= control target key end

     0   :  { %8 = vsyncpa [#allocation3], 0  ;;  %s3835_s0 = inlined_call_operand.hbm [shape: f32[8,128], index: 0, kind: input, shape index: {}]   ;;  %s3836_s1 = inlined_call_operand.vmem [shape: bf16[128,4056], index: 1, kind: input, shape index: {}]   ;;  %s3837_s2 = inlined_call_operand.hbm [shape: f32[1,4056], index: 2, kind: input, shape index: {}]   ;;  %s3838_s3 = inlined_call_operand.vmem [shape: f32[8,4056], index: 3, kind: output, shape index: {}]  }
   0x1   :  { %9 = vsyncpa [#allocation5], 0  ;;  %s2839_s12 = smov [#allocation2]   ;;  %s2840_s14 = smov [#allocation4]  }
   0x2   :  { %s16_s13 = sshll.u32 %s2839_s12, 4  ;;  %s28_s15 = sshll.u32 %s2840_s14, 4  ;;  %s17_s13 = int_to_ptr.vmem [resolvable:$true] %s16_s13  ;;  %s29_s15 = int_to_ptr.vmem [resolvable:$true] %s28_s15 }
   0x3   :  { %s2803_s16 = scalar_lea.vmem %s17_s13, 128  ;;  %p2808_p1 = scmp.lt.s32.totalorder %s17_s13, %s17_s13 }
   0x4   :  { %p2804_p0 = scmp.ne.s32.totalorder %s17_s13, %s2803_s16  ;;  %p2809_p2 = scmp.lt.s32.totalorder %s2803_s16, %s2803_s16 }
   0x6   :  { %p2810_p3 = por %p2809_p2, %p2808_p1 }
   0x8   :  { %p2811_p4 = pnand %p2810_p3, %p2804_p0 }
   0xa   :  { %2814 = shalt.err (!%p2811_p4)
}
   0xb   :  { %19 = dma.hbm_to_vmem [thread:$0]  %s3835_s0, 128, %s17_s13, [#allocation3]  }
   0xc   :  { %s2823_s19 = scalar_lea.vmem %s29_s15, 512  ;;  %p2828_p6 = scmp.lt.s32.totalorder %s29_s15, %s29_s15 }
   0xd   :  { %p2824_p5 = scmp.ne.s32.totalorder %s29_s15, %s2823_s19  ;;  %p2829_p7 = scmp.lt.s32.totalorder %s2823_s19, %s2823_s19 }
   0xf   :  { %p2830_p8 = por %p2829_p7, %p2828_p6 }
  0x11   :  { %p2831_p9 = pnand %p2830_p8, %p2824_p5 }
  0x13   :  { %2834 = shalt.err (!%p2831_p9)
}
  0x14   :  { %31 = dma.hbm_to_vmem [thread:$0]  %s3837_s2, 512, %s29_s15, [#allocation5]  }
  0x15   :  { %2835 = dma.done.wait [#allocation3], 128  }
  0x16   :  { %2836 = vsyncadd [#allocation3], 4294967168 }
  0x17   :  { %2837 = dma.done.wait [#allocation5], 512  }
  0x18   :  { %2838 = vsyncadd [#allocation5], 4294966784  ;;  %v2841_v0 = vmov 0   ;;  %v265_v1 = vld [vmem:[%s3836_s1 + $0x700] sm:$0xff]  ;;  %v266_v3 = vld [vmem:[%s3836_s1 + $0x708] sm:$0xff] }
  0x19   :  { %1777 = vmatprep.mubr.bf16.mxu0 %v2841_v0  ;;  %1818 = vmatprep.mubr.bf16.mxu1 %v2841_v0  ;;  %v281_v2 = vld [vmem:[%s3836_s1 + $0x780] sm:$0xff]  ;;  %v282_v5 = vld [vmem:[%s3836_s1 + $0x788] sm:$0xff]  ;;  %v267_v63 = vld [vmem:[%s3836_s1 + $0x710] sm:$0xff] }
  0x1a   :  { %v2761_v4 = vcombine.high %v265_v1, %v281_v2  ;;  %v2760_v6 = vcombine.low %v265_v1, %v281_v2  ;;  %v233_v7 = vld [vmem:[%s3836_s1 + $0x600] sm:$0xff]  ;;  %v2763_v9 = vcombine.high %v266_v3, %v282_v5  ;;  %v2762_v10 = vcombine.low %v266_v3, %v282_v5  ;;  %v234_v12 = vld [vmem:[%s3836_s1 + $0x608] sm:$0xff]  ;;  %v283_v1 = vld [vmem:[%s3836_s1 + $0x790] sm:$0xff] }
  0x1b   :  { %v249_v8 = vld [vmem:[%s3836_s1 + $0x680] sm:$0xff]  ;;  %v250_v13 = vld [vmem:[%s3836_s1 + $0x688] sm:$0xff]  ;;  %v268_v2 = vld [vmem:[%s3836_s1 + $0x718] sm:$0xff] }
  0x1c   :  { %v2729_v11 = vcombine.high %v233_v7, %v249_v8  ;;  %v201_v14 = vld [vmem:[%s3836_s1 + $0x500] sm:$0xff]  ;;  %1745 = vmatprep.subr.bf16.mxu0 %v2761_v4  ;;  %v2731_v15 = vcombine.high %v234_v12, %v250_v13  ;;  %v202_v17 = vld [vmem:[%s3836_s1 + $0x508] sm:$0xff]  ;;  %1786 = vmatprep.subr.bf16.mxu1 %v2763_v9  ;;  %v2728_v19 = vcombine.low %v233_v7, %v249_v8  ;;  %v284_v3 = vld [vmem:[%s3836_s1 + $0x798] sm:$0xff] }
  0x1d   :  { %v217_v16 = vld [vmem:[%s3836_s1 + $0x580] sm:$0xff]  ;;  %v218_v18 = vld [vmem:[%s3836_s1 + $0x588] sm:$0xff]  ;;  %1746 = vmatpush1.bf16.msra.mxu0 %v2760_v6  ;;  %1787 = vmatpush1.bf16.msra.mxu1 %v2762_v10  ;;  %v2730_v20 = vcombine.low %v234_v12, %v250_v13  ;;  %v2765_v7 = vcombine.high %v267_v63, %v283_v1  ;;  %v2767_v8 = vcombine.high %v268_v2, %v284_v3  ;;  %v235_v9 = vld [vmem:[%s3836_s1 + $0x610] sm:$0xff] }
  0x1e   :  { %1747 = vmatprep.subr.bf16.mxu0 %v2729_v11  ;;  %v2697_v21 = vcombine.high %v201_v14, %v217_v16  ;;  %1788 = vmatprep.subr.bf16.mxu1 %v2731_v15  ;;  %v2699_v22 = vcombine.high %v202_v17, %v218_v18  ;;  %v169_v23 = vld [vmem:[%s3836_s1 + $0x400] sm:$0xff]  ;;  %v170_v25 = vld [vmem:[%s3836_s1 + $0x408] sm:$0xff]  ;;  %v2696_v27 = vcombine.low %v201_v14, %v217_v16  ;;  %v251_v10 = vld [vmem:[%s3836_s1 + $0x690] sm:$0xff] }
  0x1f   :  { %v185_v24 = vld [vmem:[%s3836_s1 + $0x480] sm:$0xff]  ;;  %v186_v26 = vld [vmem:[%s3836_s1 + $0x488] sm:$0xff]  ;;  %v2698_v28 = vcombine.low %v202_v17, %v218_v18  ;;  %v236_v12 = vld [vmem:[%s3836_s1 + $0x618] sm:$0xff]  ;;  %v2764_v14 = vcombine.low %v267_v63, %v283_v1  ;;  %v2766_v15 = vcombine.low %v268_v2, %v284_v3  ;;  %v2733_v16 = vcombine.high %v235_v9, %v251_v10 }
  0x20   :  { %v2665_v29 = vcombine.high %v169_v23, %v185_v24  ;;  %v2667_v30 = vcombine.high %v170_v25, %v186_v26  ;;  %v137_v31 = vld [vmem:[%s3836_s1 + $0x300] sm:$0xff]  ;;  %v138_v33 = vld [vmem:[%s3836_s1 + $0x308] sm:$0xff]  ;;  %v2664_v35 = vcombine.low %v169_v23, %v185_v24  ;;  %v2666_v36 = vcombine.low %v170_v25, %v186_v26  ;;  %v252_v13 = vld [vmem:[%s3836_s1 + $0x698] sm:$0xff] }
  0x21   :  { %1748 = vmatpush1.bf16.msra.mxu0 %v2728_v19  ;;  %1789 = vmatpush1.bf16.msra.mxu1 %v2730_v20  ;;  %v153_v32 = vld [vmem:[%s3836_s1 + $0x380] sm:$0xff]  ;;  %v154_v34 = vld [vmem:[%s3836_s1 + $0x388] sm:$0xff]  ;;  %v2735_v17 = vcombine.high %v236_v12, %v252_v13  ;;  %v203_v18 = vld [vmem:[%s3836_s1 + $0x510] sm:$0xff]  ;;  %v2734_v23 = vcombine.low %v236_v12, %v252_v13 }
  0x22   :  { %1749 = vmatprep.subr.bf16.mxu0 %v2697_v21  ;;  %1790 = vmatprep.subr.bf16.mxu1 %v2699_v22  ;;  %v2633_v37 = vcombine.high %v137_v31, %v153_v32  ;;  %v2635_v38 = vcombine.high %v138_v33, %v154_v34  ;;  %v105_v39 = vld [vmem:[%s3836_s1 + $0x200] sm:$0xff]  ;;  %v106_v41 = vld [vmem:[%s3836_s1 + $0x208] sm:$0xff]  ;;  %v2632_v43 = vcombine.low %v137_v31, %v153_v32  ;;  %v219_v19 = vld [vmem:[%s3836_s1 + $0x590] sm:$0xff] }
  0x23   :  { %v121_v40 = vld [vmem:[%s3836_s1 + $0x280] sm:$0xff]  ;;  %v122_v42 = vld [vmem:[%s3836_s1 + $0x288] sm:$0xff]  ;;  %v2634_v44 = vcombine.low %v138_v33, %v154_v34  ;;  %v204_v20 = vld [vmem:[%s3836_s1 + $0x518] sm:$0xff]  ;;  %v2732_v22 = vcombine.low %v235_v9, %v251_v10  ;;  %v2701_v24 = vcombine.high %v203_v18, %v219_v19 }
  0x24   :  { %v2601_v45 = vcombine.high %v105_v39, %v121_v40  ;;  %v2603_v46 = vcombine.high %v106_v41, %v122_v42  ;;  %v73_v47 = vld [vmem:[%s3836_s1 + $0x100] sm:$0xff]  ;;  %v74_v49 = vld [vmem:[%s3836_s1 + $0x108] sm:$0xff]  ;;  %v2600_v51 = vcombine.low %v105_v39, %v121_v40  ;;  %v2602_v52 = vcombine.low %v106_v41, %v122_v42  ;;  %v220_v21 = vld [vmem:[%s3836_s1 + $0x598] sm:$0xff] }
  0x25   :  { %1750 = vmatpush1.bf16.msra.mxu0 %v2696_v27  ;;  %1791 = vmatpush1.bf16.msra.mxu1 %v2698_v28  ;;  %v89_v48 = vld [vmem:[%s3836_s1 + $0x180] sm:$0xff]  ;;  %v90_v50 = vld [vmem:[%s3836_s1 + $0x188] sm:$0xff]  ;;  %v2703_v25 = vcombine.high %v204_v20, %v220_v21  ;;  %v171_v26 = vld [vmem:[%s3836_s1 + $0x410] sm:$0xff]  ;;  %v2702_v31 = vcombine.low %v204_v20, %v220_v21 }
  0x26   :  { %1751 = vmatprep.subr.bf16.mxu0 %v2665_v29  ;;  %1792 = vmatprep.subr.bf16.mxu1 %v2667_v30  ;;  %v2569_v53 = vcombine.high %v73_v47, %v89_v48  ;;  %v2571_v54 = vcombine.high %v74_v49, %v90_v50  ;;  %v41_v55 = vld [vmem:[%s3836_s1] sm:$0xff]  ;;  %v42_v57 = vld [vmem:[%s3836_s1 + $0x8] sm:$0xff]  ;;  %v2568_v59 = vcombine.low %v73_v47, %v89_v48  ;;  %v187_v27 = vld [vmem:[%s3836_s1 + $0x490] sm:$0xff] }
  0x27   :  { %v57_v56 = vld [vmem:[%s3836_s1 + $0x80] sm:$0xff]  ;;  %v58_v58 = vld [vmem:[%s3836_s1 + $0x88] sm:$0xff]  ;;  %v2570_v60 = vcombine.low %v74_v49, %v90_v50  ;;  %v172_v28 = vld [vmem:[%s3836_s1 + $0x418] sm:$0xff]  ;;  %v2700_v30 = vcombine.low %v203_v18, %v219_v19  ;;  %v2669_v32 = vcombine.high %v171_v26, %v187_v27 }
  0x28   :  { %v2537_v61 = vcombine.high %v41_v55, %v57_v56  ;;  %v2539_v62 = vcombine.high %v42_v57, %v58_v58  ;;  %v2536_v4 = vcombine.low %v41_v55, %v57_v56  ;;  %v39_v5 = vld [vmem:[#allocation2] sm:$0xff]  ;;  %v2538_v6 = vcombine.low %v42_v57, %v58_v58  ;;  %v188_v29 = vld [vmem:[%s3836_s1 + $0x498] sm:$0xff]  ;;  %v139_v34 = vld [vmem:[%s3836_s1 + $0x310] sm:$0xff] }
  0x29   :  { %1752 = vmatpush1.bf16.msra.mxu0 %v2664_v35  ;;  %1793 = vmatpush1.bf16.msra.mxu1 %v2666_v36  ;;  %v2984_v11 = vpack.c.bf16 %v39_v5, %v39_v5  ;;  %v2671_v33 = vcombine.high %v172_v28, %v188_v29  ;;  %v155_v35 = vld [vmem:[%s3836_s1 + $0x390] sm:$0xff]  ;;  %v140_v36 = vld [vmem:[%s3836_s1 + $0x318] sm:$0xff]  ;;  %v2670_v39 = vcombine.low %v172_v28, %v188_v29  ;;  %v269_v3 = vld [vmem:[%s3836_s1 + $0x720] sm:$0xff] }
  0x2a   :  { %1753 = vmatprep.subr.bf16.mxu0 %v2633_v37  ;;  %1794 = vmatprep.subr.bf16.mxu1 %v2635_v38  ;;  %v156_v37 = vld [vmem:[%s3836_s1 + $0x398] sm:$0xff]  ;;  %v2668_v38 = vcombine.low %v171_v26, %v187_v27  ;;  %v2637_v40 = vcombine.high %v139_v34, %v155_v35  ;;  %v107_v42 = vld [vmem:[%s3836_s1 + $0x210] sm:$0xff]  ;;  %v270_v5 = vld [vmem:[%s3836_s1 + $0x728] sm:$0xff] }
  0x2b   :  { %v2639_v41 = vcombine.high %v140_v36, %v156_v37  ;;  %v2638_v47 = vcombine.low %v140_v36, %v156_v37  ;;  %v75_v50 = vld [vmem:[%s3836_s1 + $0x110] sm:$0xff]  ;;  %v237_v12 = vld [vmem:[%s3836_s1 + $0x620] sm:$0xff] }
  0x2c   :  { %v43_v58 = vld [vmem:[%s3836_s1 + $0x10] sm:$0xff]  ;;  %v253_v13 = vld [vmem:[%s3836_s1 + $0x6a0] sm:$0xff] }
  0x2d   :  { %1754 = vmatpush1.bf16.msra.mxu0 %v2632_v43  ;;  %1795 = vmatpush1.bf16.msra.mxu1 %v2634_v44  ;;  %v123_v43 = vld [vmem:[%s3836_s1 + $0x290] sm:$0xff]  ;;  %v108_v44 = vld [vmem:[%s3836_s1 + $0x218] sm:$0xff]  ;;  %v2737_v18 = vcombine.high %v237_v12, %v253_v13  ;;  %v205_v20 = vld [vmem:[%s3836_s1 + $0x520] sm:$0xff] }
  0x2e   :  { %1755 = vmatprep.subr.bf16.mxu0 %v2601_v45  ;;  %1796 = vmatprep.subr.bf16.mxu1 %v2603_v46  ;;  %v124_v45 = vld [vmem:[%s3836_s1 + $0x298] sm:$0xff]  ;;  %v2636_v46 = vcombine.low %v139_v34, %v155_v35  ;;  %v2605_v48 = vcombine.high %v107_v42, %v123_v43  ;;  %v221_v21 = vld [vmem:[%s3836_s1 + $0x5a0] sm:$0xff] }
  0x2f   :  { %v2607_v49 = vcombine.high %v108_v44, %v124_v45  ;;  %v2606_v55 = vcombine.low %v108_v44, %v124_v45  ;;  %v2705_v26 = vcombine.high %v205_v20, %v221_v21  ;;  %v173_v28 = vld [vmem:[%s3836_s1 + $0x420] sm:$0xff] }
  0x30   :  { %v189_v29 = vld [vmem:[%s3836_s1 + $0x4a0] sm:$0xff] }
  0x31   :  { %1756 = vmatpush1.bf16.msra.mxu0 %v2600_v51  ;;  %1797 = vmatpush1.bf16.msra.mxu1 %v2602_v52  ;;  %v91_v51 = vld [vmem:[%s3836_s1 + $0x190] sm:$0xff]  ;;  %v76_v52 = vld [vmem:[%s3836_s1 + $0x118] sm:$0xff]  ;;  %v2673_v34 = vcombine.high %v173_v28, %v189_v29  ;;  %v141_v36 = vld [vmem:[%s3836_s1 + $0x320] sm:$0xff] }
  0x32   :  { %1757 = vmatprep.subr.bf16.mxu0 %v2569_v53  ;;  %1798 = vmatprep.subr.bf16.mxu1 %v2571_v54  ;;  %v92_v53 = vld [vmem:[%s3836_s1 + $0x198] sm:$0xff]  ;;  %v2604_v54 = vcombine.low %v107_v42, %v123_v43  ;;  %v2573_v56 = vcombine.high %v75_v50, %v91_v51  ;;  %v157_v37 = vld [vmem:[%s3836_s1 + $0x3a0] sm:$0xff] }
  0x33   :  { %v2575_v57 = vcombine.high %v76_v52, %v92_v53  ;;  %v2574_v63 = vcombine.low %v76_v52, %v92_v53  ;;  %v2641_v42 = vcombine.high %v141_v36, %v157_v37  ;;  %v109_v44 = vld [vmem:[%s3836_s1 + $0x220] sm:$0xff] }
  0x34   :  { %v125_v45 = vld [vmem:[%s3836_s1 + $0x2a0] sm:$0xff] }
  0x35   :  { %1758 = vmatpush1.bf16.msra.mxu0 %v2568_v59  ;;  %1799 = vmatpush1.bf16.msra.mxu1 %v2570_v60  ;;  %v59_v59 = vld [vmem:[%s3836_s1 + $0x90] sm:$0xff]  ;;  %v44_v60 = vld [vmem:[%s3836_s1 + $0x18] sm:$0xff]  ;;  %v77_v52 = vld [vmem:[%s3836_s1 + $0x120] sm:$0xff] }
  0x36   :  { %1759 = vmatprep.subr.bf16.mxu0 %v2537_v61  ;;  %1800 = vmatprep.subr.bf16.mxu1 %v2539_v62  ;;  %v60_v61 = vld [vmem:[%s3836_s1 + $0x98] sm:$0xff]  ;;  %v2572_v62 = vcombine.low %v75_v50, %v91_v51  ;;  %v2541_v1 = vcombine.high %v43_v58, %v59_v59  ;;  %v2609_v50 = vcombine.high %v109_v44, %v125_v45  ;;  %v93_v53 = vld [vmem:[%s3836_s1 + $0x1a0] sm:$0xff] }
  0x37   :  { %v2543_v2 = vcombine.high %v44_v60, %v60_v61 }
  0x39   :  { %1760 = vmatpush1.bf16.msra.mxu0 %v2536_v4  ;;  %1801 = vmatpush1.bf16.msra.mxu1 %v2538_v6  ;;  %v285_v4 = vld [vmem:[%s3836_s1 + $0x7a0] sm:$0xff]  ;;  %v286_v6 = vld [vmem:[%s3836_s1 + $0x7a8] sm:$0xff] }
  0x3a   :  { %1827 = vmatprep.subr.bf16.mxu0 %v2765_v7  ;;  %1868 = vmatprep.subr.bf16.mxu1 %v2767_v8  ;;  %v2540_v7 = vcombine.low %v43_v58, %v59_v59  ;;  %v2542_v8 = vcombine.low %v44_v60, %v60_v61  ;;  %v2769_v9 = vcombine.high %v269_v3, %v285_v4  ;;  %v45_v60 = vld [vmem:[%s3836_s1 + $0x20] sm:$0xff] }
  0x3b   :  { %v2771_v10 = vcombine.high %v270_v5, %v286_v6  ;;  %v2577_v58 = vcombine.high %v77_v52, %v93_v53  ;;  %v61_v61 = vld [vmem:[%s3836_s1 + $0xa0] sm:$0xff] }
  0x3c   :  { %1778 = vmatmul.mubr.bf16.vlgmr.msra.gmra.mxu0 %v2984_v11  ;;  %1819 = vmatmul.mubr.bf16.vlgmr.msra.gmra.mxu1 %v2984_v11 }
  0x3d   :  { %1828 = vmatpush1.bf16.msra.mxu0 %v2764_v14  ;;  %1869 = vmatpush1.bf16.msra.mxu1 %v2766_v15  ;;  %v238_v14 = vld [vmem:[%s3836_s1 + $0x628] sm:$0xff] }
  0x3e   :  { %1829 = vmatprep.subr.bf16.mxu0 %v2733_v16  ;;  %1870 = vmatprep.subr.bf16.mxu1 %v2735_v17  ;;  %v254_v15 = vld [vmem:[%s3836_s1 + $0x6a8] sm:$0xff]  ;;  %v2768_v16 = vcombine.low %v269_v3, %v285_v4  ;;  %v2770_v17 = vcombine.low %v270_v5, %v286_v6  ;;  %v2545_v3 = vcombine.high %v45_v60, %v61_v61  ;;  %v271_v5 = vld [vmem:[%s3836_s1 + $0x730] sm:$0xff] }
  0x3f   :  { %1859 = vmatprep.mubr.bf16.mxu0 %v2841_v0  ;;  %1900 = vmatprep.mubr.bf16.mxu1 %v2841_v0  ;;  %v2739_v19 = vcombine.high %v238_v14, %v254_v15  ;;  %v287_v6 = vld [vmem:[%s3836_s1 + $0x7b0] sm:$0xff] }
  0x41   :  { %1830 = vmatpush1.bf16.msra.mxu0 %v2732_v22  ;;  %1871 = vmatpush1.bf16.msra.mxu1 %v2734_v23  ;;  %v206_v22 = vld [vmem:[%s3836_s1 + $0x528] sm:$0xff] }
  0x42   :  { %1831 = vmatprep.subr.bf16.mxu0 %v2701_v24  ;;  %1872 = vmatprep.subr.bf16.mxu1 %v2703_v25  ;;  %v222_v23 = vld [vmem:[%s3836_s1 + $0x5a8] sm:$0xff]  ;;  %v2736_v24 = vcombine.low %v237_v12, %v253_v13  ;;  %v2738_v25 = vcombine.low %v238_v14, %v254_v15  ;;  %v2773_v12 = vcombine.high %v271_v5, %v287_v6  ;;  %v239_v14 = vld [vmem:[%s3836_s1 + $0x630] sm:$0xff] }
  0x43   :  { %v2707_v27 = vcombine.high %v206_v22, %v222_v23  ;;  %v255_v15 = vld [vmem:[%s3836_s1 + $0x6b0] sm:$0xff] }
  0x45   :  { %1832 = vmatpush1.bf16.msra.mxu0 %v2700_v30  ;;  %1873 = vmatpush1.bf16.msra.mxu1 %v2702_v31  ;;  %v174_v30 = vld [vmem:[%s3836_s1 + $0x428] sm:$0xff] }
  0x46   :  { %1833 = vmatprep.subr.bf16.mxu0 %v2669_v32  ;;  %1874 = vmatprep.subr.bf16.mxu1 %v2671_v33  ;;  %v190_v31 = vld [vmem:[%s3836_s1 + $0x4a8] sm:$0xff]  ;;  %v2704_v32 = vcombine.low %v205_v20, %v221_v21  ;;  %v2706_v33 = vcombine.low %v206_v22, %v222_v23  ;;  %v2741_v20 = vcombine.high %v239_v14, %v255_v15  ;;  %v207_v22 = vld [vmem:[%s3836_s1 + $0x530] sm:$0xff] }
  0x47   :  { %v2675_v35 = vcombine.high %v174_v30, %v190_v31  ;;  %v223_v23 = vld [vmem:[%s3836_s1 + $0x5b0] sm:$0xff] }
  0x49   :  { %1834 = vmatpush1.bf16.msra.mxu0 %v2668_v38  ;;  %1875 = vmatpush1.bf16.msra.mxu1 %v2670_v39  ;;  %v142_v38 = vld [vmem:[%s3836_s1 + $0x328] sm:$0xff] }
  0x4a   :  { %1835 = vmatprep.subr.bf16.mxu0 %v2637_v40  ;;  %1876 = vmatprep.subr.bf16.mxu1 %v2639_v41  ;;  %v158_v39 = vld [vmem:[%s3836_s1 + $0x3a8] sm:$0xff]  ;;  %v2672_v40 = vcombine.low %v173_v28, %v189_v29  ;;  %v2674_v41 = vcombine.low %v174_v30, %v190_v31  ;;  %v2709_v28 = vcombine.high %v207_v22, %v223_v23  ;;  %v175_v30 = vld [vmem:[%s3836_s1 + $0x430] sm:$0xff] }
  0x4b   :  { %v2643_v43 = vcombine.high %v142_v38, %v158_v39  ;;  %v191_v31 = vld [vmem:[%s3836_s1 + $0x4b0] sm:$0xff] }
  0x4d   :  { %1836 = vmatpush1.bf16.msra.mxu0 %v2636_v46  ;;  %1877 = vmatpush1.bf16.msra.mxu1 %v2638_v47  ;;  %v110_v46 = vld [vmem:[%s3836_s1 + $0x228] sm:$0xff] }
  0x4e   :  { %1837 = vmatprep.subr.bf16.mxu0 %v2605_v48  ;;  %1878 = vmatprep.subr.bf16.mxu1 %v2607_v49  ;;  %v126_v47 = vld [vmem:[%s3836_s1 + $0x2a8] sm:$0xff]  ;;  %v2640_v48 = vcombine.low %v141_v36, %v157_v37  ;;  %v2642_v49 = vcombine.low %v142_v38, %v158_v39  ;;  %v2677_v36 = vcombine.high %v175_v30, %v191_v31  ;;  %v143_v38 = vld [vmem:[%s3836_s1 + $0x330] sm:$0xff] }
  0x4f   :  { %v2611_v51 = vcombine.high %v110_v46, %v126_v47  ;;  %v159_v39 = vld [vmem:[%s3836_s1 + $0x3b0] sm:$0xff] }
  0x51   :  { %1838 = vmatpush1.bf16.msra.mxu0 %v2604_v54  ;;  %1879 = vmatpush1.bf16.msra.mxu1 %v2606_v55  ;;  %v78_v54 = vld [vmem:[%s3836_s1 + $0x128] sm:$0xff] }
  0x52   :  { %1839 = vmatprep.subr.bf16.mxu0 %v2573_v56  ;;  %1880 = vmatprep.subr.bf16.mxu1 %v2575_v57  ;;  %v94_v55 = vld [vmem:[%s3836_s1 + $0x1a8] sm:$0xff]  ;;  %v2608_v56 = vcombine.low %v109_v44, %v125_v45  ;;  %v2610_v57 = vcombine.low %v110_v46, %v126_v47  ;;  %v2645_v44 = vcombine.high %v143_v38, %v159_v39  ;;  %v111_v46 = vld [vmem:[%s3836_s1 + $0x230] sm:$0xff] }
  0x53   :  { %v2579_v59 = vcombine.high %v78_v54, %v94_v55  ;;  %v127_v47 = vld [vmem:[%s3836_s1 + $0x2b0] sm:$0xff] }
  0x55   :  { %1840 = vmatpush1.bf16.msra.mxu0 %v2572_v62  ;;  %1881 = vmatpush1.bf16.msra.mxu1 %v2574_v63  ;;  %v46_v62 = vld [vmem:[%s3836_s1 + $0x28] sm:$0xff] }
  0x56   :  { %1841 = vmatprep.subr.bf16.mxu0 %v2541_v1  ;;  %1882 = vmatprep.subr.bf16.mxu1 %v2543_v2  ;;  %v62_v63 = vld [vmem:[%s3836_s1 + $0xa8] sm:$0xff]  ;;  %v2576_v1 = vcombine.low %v77_v52, %v93_v53  ;;  %v2578_v2 = vcombine.low %v78_v54, %v94_v55  ;;  %v2613_v52 = vcombine.high %v111_v46, %v127_v47  ;;  %v79_v54 = vld [vmem:[%s3836_s1 + $0x130] sm:$0xff] }
  0x57   :  { %v2547_v4 = vcombine.high %v46_v62, %v62_v63  ;;  %v95_v55 = vld [vmem:[%s3836_s1 + $0x1b0] sm:$0xff] }
  0x59   :  { %1842 = vmatpush1.bf16.msra.mxu0 %v2540_v7  ;;  %1883 = vmatpush1.bf16.msra.mxu1 %v2542_v8  ;;  %v272_v7 = vld [vmem:[%s3836_s1 + $0x738] sm:$0xff] }
  0x5a   :  { %1909 = vmatprep.subr.bf16.mxu0 %v2769_v9  ;;  %1950 = vmatprep.subr.bf16.mxu1 %v2771_v10  ;;  %v288_v8 = vld [vmem:[%s3836_s1 + $0x7b8] sm:$0xff]  ;;  %v2544_v9 = vcombine.low %v45_v60, %v61_v61  ;;  %v2546_v10 = vcombine.low %v46_v62, %v62_v63  ;;  %v2581_v60 = vcombine.high %v79_v54, %v95_v55  ;;  %v47_v62 = vld [vmem:[%s3836_s1 + $0x30] sm:$0xff] }
  0x5b   :  { %v2775_v13 = vcombine.high %v272_v7, %v288_v8  ;;  %v63_v63 = vld [vmem:[%s3836_s1 + $0xb0] sm:$0xff] }
  0x5c   :  { %1860 = vmatmul.mubr.bf16.vlgmr.msra.gmra.mxu0 %v2984_v11  ;;  %1901 = vmatmul.mubr.bf16.vlgmr.msra.gmra.mxu1 %v2984_v11 }
  0x5d   :  { %1910 = vmatpush1.bf16.msra.mxu0 %v2768_v16  ;;  %1951 = vmatpush1.bf16.msra.mxu1 %v2770_v17  ;;  %v240_v16 = vld [vmem:[%s3836_s1 + $0x638] sm:$0xff] }
  0x5e   :  { %1911 = vmatprep.subr.bf16.mxu0 %v2737_v18  ;;  %1952 = vmatprep.subr.bf16.mxu1 %v2739_v19  ;;  %v256_v17 = vld [vmem:[%s3836_s1 + $0x6b8] sm:$0xff]  ;;  %v2772_v18 = vcombine.low %v271_v5, %v287_v6  ;;  %v2774_v19 = vcombine.low %v272_v7, %v288_v8  ;;  %v2549_v5 = vcombine.high %v47_v62, %v63_v63  ;;  %v273_v7 = vld [vmem:[%s3836_s1 + $0x740] sm:$0xff] }
  0x5f   :  { %1941 = vmatprep.mubr.bf16.mxu0 %v2841_v0  ;;  %1982 = vmatprep.mubr.bf16.mxu1 %v2841_v0  ;;  %v2743_v21 = vcombine.high %v240_v16, %v256_v17  ;;  %v289_v8 = vld [vmem:[%s3836_s1 + $0x7c0] sm:$0xff] }
  0x61   :  { %1912 = vmatpush1.bf16.msra.mxu0 %v2736_v24  ;;  %1953 = vmatpush1.bf16.msra.mxu1 %v2738_v25  ;;  %v208_v24 = vld [vmem:[%s3836_s1 + $0x538] sm:$0xff] }
  0x62   :  { %1913 = vmatprep.subr.bf16.mxu0 %v2705_v26  ;;  %1954 = vmatprep.subr.bf16.mxu1 %v2707_v27  ;;  %v224_v25 = vld [vmem:[%s3836_s1 + $0x5b8] sm:$0xff]  ;;  %v2740_v26 = vcombine.low %v239_v14, %v255_v15  ;;  %v2742_v27 = vcombine.low %v240_v16, %v256_v17  ;;  %v2777_v14 = vcombine.high %v273_v7, %v289_v8  ;;  %v241_v16 = vld [vmem:[%s3836_s1 + $0x640] sm:$0xff] }
  0x63   :  { %v2711_v29 = vcombine.high %v208_v24, %v224_v25  ;;  %v257_v17 = vld [vmem:[%s3836_s1 + $0x6c0] sm:$0xff] }
  0x65   :  { %1914 = vmatpush1.bf16.msra.mxu0 %v2704_v32  ;;  %1955 = vmatpush1.bf16.msra.mxu1 %v2706_v33  ;;  %v176_v32 = vld [vmem:[%s3836_s1 + $0x438] sm:$0xff] }
  0x66   :  { %1915 = vmatprep.subr.bf16.mxu0 %v2673_v34  ;;  %1956 = vmatprep.subr.bf16.mxu1 %v2675_v35  ;;  %v192_v33 = vld [vmem:[%s3836_s1 + $0x4b8] sm:$0xff]  ;;  %v2708_v34 = vcombine.low %v207_v22, %v223_v23  ;;  %v2710_v35 = vcombine.low %v208_v24, %v224_v25  ;;  %v2745_v22 = vcombine.high %v241_v16, %v257_v17  ;;  %v209_v24 = vld [vmem:[%s3836_s1 + $0x540] sm:$0xff] }
  0x67   :  { %v2679_v37 = vcombine.high %v176_v32, %v192_v33  ;;  %v225_v25 = vld [vmem:[%s3836_s1 + $0x5c0] sm:$0xff] }
  0x69   :  { %1916 = vmatpush1.bf16.msra.mxu0 %v2672_v40  ;;  %1957 = vmatpush1.bf16.msra.mxu1 %v2674_v41  ;;  %v144_v40 = vld [vmem:[%s3836_s1 + $0x338] sm:$0xff] }
  0x6a   :  { %1917 = vmatprep.subr.bf16.mxu0 %v2641_v42  ;;  %1958 = vmatprep.subr.bf16.mxu1 %v2643_v43  ;;  %v160_v41 = vld [vmem:[%s3836_s1 + $0x3b8] sm:$0xff]  ;;  %v2676_v42 = vcombine.low %v175_v30, %v191_v31  ;;  %v2678_v43 = vcombine.low %v176_v32, %v192_v33  ;;  %v2713_v30 = vcombine.high %v209_v24, %v225_v25  ;;  %v177_v32 = vld [vmem:[%s3836_s1 + $0x440] sm:$0xff] }
  0x6b   :  { %v2647_v45 = vcombine.high %v144_v40, %v160_v41  ;;  %v193_v33 = vld [vmem:[%s3836_s1 + $0x4c0] sm:$0xff] }
  0x6d   :  { %1918 = vmatpush1.bf16.msra.mxu0 %v2640_v48  ;;  %1959 = vmatpush1.bf16.msra.mxu1 %v2642_v49  ;;  %v112_v48 = vld [vmem:[%s3836_s1 + $0x238] sm:$0xff] }
  0x6e   :  { %1919 = vmatprep.subr.bf16.mxu0 %v2609_v50  ;;  %1960 = vmatprep.subr.bf16.mxu1 %v2611_v51  ;;  %v128_v49 = vld [vmem:[%s3836_s1 + $0x2b8] sm:$0xff]  ;;  %v2644_v50 = vcombine.low %v143_v38, %v159_v39  ;;  %v2646_v51 = vcombine.low %v144_v40, %v160_v41  ;;  %v2681_v38 = vcombine.high %v177_v32, %v193_v33  ;;  %v145_v40 = vld [vmem:[%s3836_s1 + $0x340] sm:$0xff] }
  0x6f   :  { %v2615_v53 = vcombine.high %v112_v48, %v128_v49  ;;  %v161_v41 = vld [vmem:[%s3836_s1 + $0x3c0] sm:$0xff] }
  0x71   :  { %1920 = vmatpush1.bf16.msra.mxu0 %v2608_v56  ;;  %1961 = vmatpush1.bf16.msra.mxu1 %v2610_v57  ;;  %v80_v56 = vld [vmem:[%s3836_s1 + $0x138] sm:$0xff] }
  0x72   :  { %1921 = vmatprep.subr.bf16.mxu0 %v2577_v58  ;;  %1962 = vmatprep.subr.bf16.mxu1 %v2579_v59  ;;  %v96_v57 = vld [vmem:[%s3836_s1 + $0x1b8] sm:$0xff]  ;;  %v2612_v58 = vcombine.low %v111_v46, %v127_v47  ;;  %v2614_v59 = vcombine.low %v112_v48, %v128_v49  ;;  %v2649_v46 = vcombine.high %v145_v40, %v161_v41  ;;  %v113_v48 = vld [vmem:[%s3836_s1 + $0x240] sm:$0xff] }
  0x73   :  { %v2583_v61 = vcombine.high %v80_v56, %v96_v57  ;;  %v129_v49 = vld [vmem:[%s3836_s1 + $0x2c0] sm:$0xff] }
  0x75   :  { %1922 = vmatpush1.bf16.msra.mxu0 %v2576_v1  ;;  %1963 = vmatpush1.bf16.msra.mxu1 %v2578_v2  ;;  %v48_v1 = vld [vmem:[%s3836_s1 + $0x38] sm:$0xff] }
  0x76   :  { %1923 = vmatprep.subr.bf16.mxu0 %v2545_v3  ;;  %1964 = vmatprep.subr.bf16.mxu1 %v2547_v4  ;;  %v64_v2 = vld [vmem:[%s3836_s1 + $0xb8] sm:$0xff]  ;;  %v2580_v3 = vcombine.low %v79_v54, %v95_v55  ;;  %v2582_v4 = vcombine.low %v80_v56, %v96_v57  ;;  %v2617_v54 = vcombine.high %v113_v48, %v129_v49  ;;  %v81_v56 = vld [vmem:[%s3836_s1 + $0x140] sm:$0xff] }
  0x77   :  { %v2551_v6 = vcombine.high %v48_v1, %v64_v2  ;;  %v97_v57 = vld [vmem:[%s3836_s1 + $0x1c0] sm:$0xff] }
  0x79   :  { %1924 = vmatpush1.bf16.msra.mxu0 %v2544_v9  ;;  %1965 = vmatpush1.bf16.msra.mxu1 %v2546_v10  ;;  %v274_v9 = vld [vmem:[%s3836_s1 + $0x748] sm:$0xff] }
  0x7a   :  { %1991 = vmatprep.subr.bf16.mxu0 %v2773_v12  ;;  %2032 = vmatprep.subr.bf16.mxu1 %v2775_v13  ;;  %v290_v10 = vld [vmem:[%s3836_s1 + $0x7c8] sm:$0xff]  ;;  %v2548_v12 = vcombine.low %v47_v62, %v63_v63  ;;  %v2550_v13 = vcombine.low %v48_v1, %v64_v2  ;;  %v2585_v62 = vcombine.high %v81_v56, %v97_v57  ;;  %v49_v1 = vld [vmem:[%s3836_s1 + $0x40] sm:$0xff] }
  0x7b   :  { %v2779_v15 = vcombine.high %v274_v9, %v290_v10  ;;  %v65_v2 = vld [vmem:[%s3836_s1 + $0xc0] sm:$0xff] }
  0x7c   :  { %1942 = vmatmul.mubr.bf16.vlgmr.msra.gmra.mxu0 %v2984_v11  ;;  %1983 = vmatmul.mubr.bf16.vlgmr.msra.gmra.mxu1 %v2984_v11 }
  0x7d   :  { %1992 = vmatpush1.bf16.msra.mxu0 %v2772_v18  ;;  %2033 = vmatpush1.bf16.msra.mxu1 %v2774_v19  ;;  %v242_v18 = vld [vmem:[%s3836_s1 + $0x648] sm:$0xff] }
  0x7e   :  { %1993 = vmatprep.subr.bf16.mxu0 %v2741_v20  ;;  %2034 = vmatprep.subr.bf16.mxu1 %v2743_v21  ;;  %v258_v19 = vld [vmem:[%s3836_s1 + $0x6c8] sm:$0xff]  ;;  %v2776_v20 = vcombine.low %v273_v7, %v289_v8  ;;  %v2778_v21 = vcombine.low %v274_v9, %v290_v10  ;;  %v2553_v7 = vcombine.high %v49_v1, %v65_v2  ;;  %v275_v9 = vld [vmem:[%s3836_s1 + $0x750] sm:$0xff] }
  0x7f   :  { %2023 = vmatprep.mubr.bf16.mxu0 %v2841_v0  ;;  %2064 = vmatprep.mubr.bf16.mxu1 %v2841_v0  ;;  %v2747_v23 = vcombine.high %v242_v18, %v258_v19  ;;  %v291_v10 = vld [vmem:[%s3836_s1 + $0x7d0] sm:$0xff] }
  0x81   :  { %1994 = vmatpush1.bf16.msra.mxu0 %v2740_v26  ;;  %2035 = vmatpush1.bf16.msra.mxu1 %v2742_v27  ;;  %v210_v26 = vld [vmem:[%s3836_s1 + $0x548] sm:$0xff] }
  0x82   :  { %1995 = vmatprep.subr.bf16.mxu0 %v2709_v28  ;;  %2036 = vmatprep.subr.bf16.mxu1 %v2711_v29  ;;  %v226_v27 = vld [vmem:[%s3836_s1 + $0x5c8] sm:$0xff]  ;;  %v2744_v28 = vcombine.low %v241_v16, %v257_v17  ;;  %v2746_v29 = vcombine.low %v242_v18, %v258_v19  ;;  %v2781_v16 = vcombine.high %v275_v9, %v291_v10  ;;  %v243_v18 = vld [vmem:[%s3836_s1 + $0x650] sm:$0xff] }
  0x83   :  { %v2715_v31 = vcombine.high %v210_v26, %v226_v27  ;;  %v259_v19 = vld [vmem:[%s3836_s1 + $0x6d0] sm:$0xff] }
  0x85   :  { %1996 = vmatpush1.bf16.msra.mxu0 %v2708_v34  ;;  %2037 = vmatpush1.bf16.msra.mxu1 %v2710_v35  ;;  %v178_v34 = vld [vmem:[%s3836_s1 + $0x448] sm:$0xff] }
  0x86   :  { %1997 = vmatprep.subr.bf16.mxu0 %v2677_v36  ;;  %2038 = vmatprep.subr.bf16.mxu1 %v2679_v37  ;;  %v194_v35 = vld [vmem:[%s3836_s1 + $0x4c8] sm:$0xff]  ;;  %v2712_v36 = vcombine.low %v209_v24, %v225_v25  ;;  %v2714_v37 = vcombine.low %v210_v26, %v226_v27  ;;  %v2749_v24 = vcombine.high %v243_v18, %v259_v19  ;;  %v211_v26 = vld [vmem:[%s3836_s1 + $0x550] sm:$0xff] }
  0x87   :  { %v2683_v39 = vcombine.high %v178_v34, %v194_v35  ;;  %v227_v27 = vld [vmem:[%s3836_s1 + $0x5d0] sm:$0xff] }
  0x89   :  { %1998 = vmatpush1.bf16.msra.mxu0 %v2676_v42  ;;  %2039 = vmatpush1.bf16.msra.mxu1 %v2678_v43  ;;  %v146_v42 = vld [vmem:[%s3836_s1 + $0x348] sm:$0xff] }
  0x8a   :  { %1999 = vmatprep.subr.bf16.mxu0 %v2645_v44  ;;  %2040 = vmatprep.subr.bf16.mxu1 %v2647_v45  ;;  %v162_v43 = vld [vmem:[%s3836_s1 + $0x3c8] sm:$0xff]  ;;  %v2680_v44 = vcombine.low %v177_v32, %v193_v33  ;;  %v2682_v45 = vcombine.low %v178_v34, %v194_v35  ;;  %v2717_v32 = vcombine.high %v211_v26, %v227_v27  ;;  %v179_v34 = vld [vmem:[%s3836_s1 + $0x450] sm:$0xff] }
  0x8b   :  { %v2651_v47 = vcombine.high %v146_v42, %v162_v43  ;;  %v195_v35 = vld [vmem:[%s3836_s1 + $0x4d0] sm:$0xff] }
  0x8d   :  { %2000 = vmatpush1.bf16.msra.mxu0 %v2644_v50  ;;  %2041 = vmatpush1.bf16.msra.mxu1 %v2646_v51  ;;  %v114_v50 = vld [vmem:[%s3836_s1 + $0x248] sm:$0xff] }
  0x8e   :  { %2001 = vmatprep.subr.bf16.mxu0 %v2613_v52  ;;  %2042 = vmatprep.subr.bf16.mxu1 %v2615_v53  ;;  %v130_v51 = vld [vmem:[%s3836_s1 + $0x2c8] sm:$0xff]  ;;  %v2648_v52 = vcombine.low %v145_v40, %v161_v41  ;;  %v2650_v53 = vcombine.low %v146_v42, %v162_v43  ;;  %v2685_v40 = vcombine.high %v179_v34, %v195_v35  ;;  %v147_v42 = vld [vmem:[%s3836_s1 + $0x350] sm:$0xff] }
  0x8f   :  { %v2619_v55 = vcombine.high %v114_v50, %v130_v51  ;;  %v163_v43 = vld [vmem:[%s3836_s1 + $0x3d0] sm:$0xff] }
  0x91   :  { %2002 = vmatpush1.bf16.msra.mxu0 %v2612_v58  ;;  %2043 = vmatpush1.bf16.msra.mxu1 %v2614_v59  ;;  %v82_v58 = vld [vmem:[%s3836_s1 + $0x148] sm:$0xff] }
  0x92   :  { %2003 = vmatprep.subr.bf16.mxu0 %v2581_v60  ;;  %2044 = vmatprep.subr.bf16.mxu1 %v2583_v61  ;;  %v98_v59 = vld [vmem:[%s3836_s1 + $0x1c8] sm:$0xff]  ;;  %v2616_v60 = vcombine.low %v113_v48, %v129_v49  ;;  %v2618_v61 = vcombine.low %v114_v50, %v130_v51  ;;  %v2653_v48 = vcombine.high %v147_v42, %v163_v43  ;;  %v115_v50 = vld [vmem:[%s3836_s1 + $0x250] sm:$0xff] }
  0x93   :  { %v2587_v63 = vcombine.high %v82_v58, %v98_v59  ;;  %v131_v51 = vld [vmem:[%s3836_s1 + $0x2d0] sm:$0xff] }
  0x95   :  { %2004 = vmatpush1.bf16.msra.mxu0 %v2580_v3  ;;  %2045 = vmatpush1.bf16.msra.mxu1 %v2582_v4  ;;  %v50_v3 = vld [vmem:[%s3836_s1 + $0x48] sm:$0xff] }
  0x96   :  { %2005 = vmatprep.subr.bf16.mxu0 %v2549_v5  ;;  %2046 = vmatprep.subr.bf16.mxu1 %v2551_v6  ;;  %v66_v4 = vld [vmem:[%s3836_s1 + $0xc8] sm:$0xff]  ;;  %v2584_v5 = vcombine.low %v81_v56, %v97_v57  ;;  %v2586_v6 = vcombine.low %v82_v58, %v98_v59  ;;  %v2621_v56 = vcombine.high %v115_v50, %v131_v51  ;;  %v83_v58 = vld [vmem:[%s3836_s1 + $0x150] sm:$0xff] }
  0x97   :  { %v2555_v8 = vcombine.high %v50_v3, %v66_v4  ;;  %v99_v59 = vld [vmem:[%s3836_s1 + $0x1d0] sm:$0xff] }
  0x99   :  { %2006 = vmatpush1.bf16.msra.mxu0 %v2548_v12  ;;  %2047 = vmatpush1.bf16.msra.mxu1 %v2550_v13  ;;  %v276_v12 = vld [vmem:[%s3836_s1 + $0x758] sm:$0xff] }
  0x9a   :  { %2073 = vmatprep.subr.bf16.mxu0 %v2777_v14  ;;  %2114 = vmatprep.subr.bf16.mxu1 %v2779_v15  ;;  %v292_v13 = vld [vmem:[%s3836_s1 + $0x7d8] sm:$0xff]  ;;  %v2552_v14 = vcombine.low %v49_v1, %v65_v2  ;;  %v2554_v15 = vcombine.low %v50_v3, %v66_v4  ;;  %v2589_v1 = vcombine.high %v83_v58, %v99_v59  ;;  %v51_v3 = vld [vmem:[%s3836_s1 + $0x50] sm:$0xff] }
  0x9b   :  { %v2783_v17 = vcombine.high %v276_v12, %v292_v13  ;;  %v67_v4 = vld [vmem:[%s3836_s1 + $0xd0] sm:$0xff] }
  0x9c   :  { %2024 = vmatmul.mubr.bf16.vlgmr.msra.gmra.mxu0 %v2984_v11  ;;  %2065 = vmatmul.mubr.bf16.vlgmr.msra.gmra.mxu1 %v2984_v11 }
  0x9d   :  { %2074 = vmatpush1.bf16.msra.mxu0 %v2776_v20  ;;  %2115 = vmatpush1.bf16.msra.mxu1 %v2778_v21  ;;  %v244_v20 = vld [vmem:[%s3836_s1 + $0x658] sm:$0xff] }
  0x9e   :  { %2075 = vmatprep.subr.bf16.mxu0 %v2745_v22  ;;  %2116 = vmatprep.subr.bf16.mxu1 %v2747_v23  ;;  %v260_v21 = vld [vmem:[%s3836_s1 + $0x6d8] sm:$0xff]  ;;  %v2780_v22 = vcombine.low %v275_v9, %v291_v10  ;;  %v2782_v23 = vcombine.low %v276_v12, %v292_v13  ;;  %v2557_v9 = vcombine.high %v51_v3, %v67_v4  ;;  %v277_v12 = vld [vmem:[%s3836_s1 + $0x760] sm:$0xff] }
  0x9f   :  { %2105 = vmatprep.mubr.bf16.mxu0 %v2841_v0  ;;  %2146 = vmatprep.mubr.bf16.mxu1 %v2841_v0  ;;  %v2751_v25 = vcombine.high %v244_v20, %v260_v21  ;;  %v293_v13 = vld [vmem:[%s3836_s1 + $0x7e0] sm:$0xff] }
  0xa1   :  { %2076 = vmatpush1.bf16.msra.mxu0 %v2744_v28  ;;  %2117 = vmatpush1.bf16.msra.mxu1 %v2746_v29  ;;  %v212_v28 = vld [vmem:[%s3836_s1 + $0x558] sm:$0xff] }
  0xa2   :  { %2077 = vmatprep.subr.bf16.mxu0 %v2713_v30  ;;  %2118 = vmatprep.subr.bf16.mxu1 %v2715_v31  ;;  %v228_v29 = vld [vmem:[%s3836_s1 + $0x5d8] sm:$0xff]  ;;  %v2748_v30 = vcombine.low %v243_v18, %v259_v19  ;;  %v2750_v31 = vcombine.low %v244_v20, %v260_v21  ;;  %v2785_v18 = vcombine.high %v277_v12, %v293_v13  ;;  %v245_v20 = vld [vmem:[%s3836_s1 + $0x660] sm:$0xff] }
  0xa3   :  { %v2719_v33 = vcombine.high %v212_v28, %v228_v29  ;;  %v261_v21 = vld [vmem:[%s3836_s1 + $0x6e0] sm:$0xff] }
  0xa5   :  { %2078 = vmatpush1.bf16.msra.mxu0 %v2712_v36  ;;  %2119 = vmatpush1.bf16.msra.mxu1 %v2714_v37  ;;  %v180_v36 = vld [vmem:[%s3836_s1 + $0x458] sm:$0xff] }
  0xa6   :  { %2079 = vmatprep.subr.bf16.mxu0 %v2681_v38  ;;  %2120 = vmatprep.subr.bf16.mxu1 %v2683_v39  ;;  %v196_v37 = vld [vmem:[%s3836_s1 + $0x4d8] sm:$0xff]  ;;  %v2716_v38 = vcombine.low %v211_v26, %v227_v27  ;;  %v2718_v39 = vcombine.low %v212_v28, %v228_v29  ;;  %v2753_v26 = vcombine.high %v245_v20, %v261_v21  ;;  %v213_v28 = vld [vmem:[%s3836_s1 + $0x560] sm:$0xff] }
  0xa7   :  { %v2687_v41 = vcombine.high %v180_v36, %v196_v37  ;;  %v229_v29 = vld [vmem:[%s3836_s1 + $0x5e0] sm:$0xff] }
  0xa9   :  { %2080 = vmatpush1.bf16.msra.mxu0 %v2680_v44  ;;  %2121 = vmatpush1.bf16.msra.mxu1 %v2682_v45  ;;  %v148_v44 = vld [vmem:[%s3836_s1 + $0x358] sm:$0xff] }
  0xaa   :  { %2081 = vmatprep.subr.bf16.mxu0 %v2649_v46  ;;  %2122 = vmatprep.subr.bf16.mxu1 %v2651_v47  ;;  %v164_v45 = vld [vmem:[%s3836_s1 + $0x3d8] sm:$0xff]  ;;  %v2684_v46 = vcombine.low %v179_v34, %v195_v35  ;;  %v2686_v47 = vcombine.low %v180_v36, %v196_v37  ;;  %v2721_v34 = vcombine.high %v213_v28, %v229_v29  ;;  %v181_v36 = vld [vmem:[%s3836_s1 + $0x460] sm:$0xff] }
  0xab   :  { %v2655_v49 = vcombine.high %v148_v44, %v164_v45  ;;  %v197_v37 = vld [vmem:[%s3836_s1 + $0x4e0] sm:$0xff] }
  0xad   :  { %2082 = vmatpush1.bf16.msra.mxu0 %v2648_v52  ;;  %2123 = vmatpush1.bf16.msra.mxu1 %v2650_v53  ;;  %v116_v52 = vld [vmem:[%s3836_s1 + $0x258] sm:$0xff] }
  0xae   :  { %2083 = vmatprep.subr.bf16.mxu0 %v2617_v54  ;;  %2124 = vmatprep.subr.bf16.mxu1 %v2619_v55  ;;  %v132_v53 = vld [vmem:[%s3836_s1 + $0x2d8] sm:$0xff]  ;;  %v2652_v54 = vcombine.low %v147_v42, %v163_v43  ;;  %v2654_v55 = vcombine.low %v148_v44, %v164_v45  ;;  %v2689_v42 = vcombine.high %v181_v36, %v197_v37  ;;  %v149_v44 = vld [vmem:[%s3836_s1 + $0x360] sm:$0xff] }
  0xaf   :  { %v2623_v57 = vcombine.high %v116_v52, %v132_v53  ;;  %v165_v45 = vld [vmem:[%s3836_s1 + $0x3e0] sm:$0xff] }
  0xb1   :  { %2084 = vmatpush1.bf16.msra.mxu0 %v2616_v60  ;;  %2125 = vmatpush1.bf16.msra.mxu1 %v2618_v61  ;;  %v84_v60 = vld [vmem:[%s3836_s1 + $0x158] sm:$0xff] }
  0xb2   :  { %2085 = vmatprep.subr.bf16.mxu0 %v2585_v62  ;;  %2126 = vmatprep.subr.bf16.mxu1 %v2587_v63  ;;  %v100_v61 = vld [vmem:[%s3836_s1 + $0x1d8] sm:$0xff]  ;;  %v2620_v62 = vcombine.low %v115_v50, %v131_v51  ;;  %v2622_v63 = vcombine.low %v116_v52, %v132_v53  ;;  %v2657_v50 = vcombine.high %v149_v44, %v165_v45  ;;  %v117_v52 = vld [vmem:[%s3836_s1 + $0x260] sm:$0xff] }
  0xb3   :  { %v2591_v2 = vcombine.high %v84_v60, %v100_v61  ;;  %v133_v53 = vld [vmem:[%s3836_s1 + $0x2e0] sm:$0xff] }
  0xb5   :  { %2086 = vmatpush1.bf16.msra.mxu0 %v2584_v5  ;;  %2127 = vmatpush1.bf16.msra.mxu1 %v2586_v6  ;;  %v52_v5 = vld [vmem:[%s3836_s1 + $0x58] sm:$0xff] }
  0xb6   :  { %2087 = vmatprep.subr.bf16.mxu0 %v2553_v7  ;;  %2128 = vmatprep.subr.bf16.mxu1 %v2555_v8  ;;  %v68_v6 = vld [vmem:[%s3836_s1 + $0xd8] sm:$0xff]  ;;  %v2588_v7 = vcombine.low %v83_v58, %v99_v59  ;;  %v2590_v8 = vcombine.low %v84_v60, %v100_v61  ;;  %v2625_v58 = vcombine.high %v117_v52, %v133_v53  ;;  %v85_v60 = vld [vmem:[%s3836_s1 + $0x160] sm:$0xff] }
  0xb7   :  { %v2559_v10 = vcombine.high %v52_v5, %v68_v6  ;;  %v101_v61 = vld [vmem:[%s3836_s1 + $0x1e0] sm:$0xff] }
  0xb9   :  { %2088 = vmatpush1.bf16.msra.mxu0 %v2552_v14  ;;  %2129 = vmatpush1.bf16.msra.mxu1 %v2554_v15  ;;  %v278_v14 = vld [vmem:[%s3836_s1 + $0x768] sm:$0xff] }
  0xba   :  { %2155 = vmatprep.subr.bf16.mxu0 %v2781_v16  ;;  %2196 = vmatprep.subr.bf16.mxu1 %v2783_v17  ;;  %v294_v15 = vld [vmem:[%s3836_s1 + $0x7e8] sm:$0xff]  ;;  %v2556_v16 = vcombine.low %v51_v3, %v67_v4  ;;  %v2558_v17 = vcombine.low %v52_v5, %v68_v6  ;;  %v2593_v4 = vcombine.high %v85_v60, %v101_v61  ;;  %v53_v6 = vld [vmem:[%s3836_s1 + $0x60] sm:$0xff] }
  0xbb   :  { %v2787_v19 = vcombine.high %v278_v14, %v294_v15 }
  0xbc   :  { %2106 = vmatmul.mubr.bf16.vlgmr.msra.gmra.mxu0 %v2984_v11  ;;  %2147 = vmatmul.mubr.bf16.vlgmr.msra.gmra.mxu1 %v2984_v11 }
  0xbd   :  { %2156 = vmatpush1.bf16.msra.mxu0 %v2780_v22  ;;  %2197 = vmatpush1.bf16.msra.mxu1 %v2782_v23  ;;  %v246_v22 = vld [vmem:[%s3836_s1 + $0x668] sm:$0xff] }
  0xbe   :  { %2157 = vmatprep.subr.bf16.mxu0 %v2749_v24  ;;  %2198 = vmatprep.subr.bf16.mxu1 %v2751_v25  ;;  %v262_v23 = vld [vmem:[%s3836_s1 + $0x6e8] sm:$0xff]  ;;  %v2784_v24 = vcombine.low %v277_v12, %v293_v13  ;;  %v2786_v25 = vcombine.low %v278_v14, %v294_v15 }
  0xbf   :  { %2187 = vmatprep.mubr.bf16.mxu0 %v2841_v0  ;;  %2228 = vmatprep.mubr.bf16.mxu1 %v2841_v0  ;;  %v2755_v27 = vcombine.high %v246_v22, %v262_v23 }
  0xc1   :  { %2158 = vmatpush1.bf16.msra.mxu0 %v2748_v30  ;;  %2199 = vmatpush1.bf16.msra.mxu1 %v2750_v31  ;;  %v214_v30 = vld [vmem:[%s3836_s1 + $0x568] sm:$0xff] }
  0xc2   :  { %2159 = vmatprep.subr.bf16.mxu0 %v2717_v32  ;;  %2200 = vmatprep.subr.bf16.mxu1 %v2719_v33  ;;  %v230_v31 = vld [vmem:[%s3836_s1 + $0x5e8] sm:$0xff]  ;;  %v2752_v32 = vcombine.low %v245_v20, %v261_v21  ;;  %v2754_v33 = vcombine.low %v246_v22, %v262_v23 }
  0xc3   :  { %v2723_v35 = vcombine.high %v214_v30, %v230_v31  ;;  %v3585_v23 = vld [vmem:[#allocation4] sm:$0xff] }
  0xc5   :  { %2160 = vmatpush1.bf16.msra.mxu0 %v2716_v38  ;;  %2201 = vmatpush1.bf16.msra.mxu1 %v2718_v39  ;;  %v182_v38 = vld [vmem:[%s3836_s1 + $0x468] sm:$0xff] }
  0xc6   :  { %2161 = vmatprep.subr.bf16.mxu0 %v2685_v40  ;;  %2202 = vmatprep.subr.bf16.mxu1 %v2687_v41  ;;  %v198_v39 = vld [vmem:[%s3836_s1 + $0x4e8] sm:$0xff]  ;;  %v2720_v40 = vcombine.low %v213_v28, %v229_v29  ;;  %v2722_v41 = vcombine.low %v214_v30, %v230_v31  ;;  %v247_v28 = vld [vmem:[%s3836_s1 + $0x670] sm:$0xff]  ;;  %v248_v31 = vld [vmem:[%s3836_s1 + $0x678] sm:$0xff] }
  0xc7   :  { %v2691_v43 = vcombine.high %v182_v38, %v198_v39  ;;  %v263_v29 = vld [vmem:[%s3836_s1 + $0x6f0] sm:$0xff] }
  0xc9   :  { %2162 = vmatpush1.bf16.msra.mxu0 %v2684_v46  ;;  %2203 = vmatpush1.bf16.msra.mxu1 %v2686_v47  ;;  %v150_v46 = vld [vmem:[%s3836_s1 + $0x368] sm:$0xff] }
  0xca   :  { %2163 = vmatprep.subr.bf16.mxu0 %v2653_v48  ;;  %2204 = vmatprep.subr.bf16.mxu1 %v2655_v49  ;;  %v166_v47 = vld [vmem:[%s3836_s1 + $0x3e8] sm:$0xff]  ;;  %v2688_v48 = vcombine.low %v181_v36, %v197_v37  ;;  %v2690_v49 = vcombine.low %v182_v38, %v198_v39  ;;  %v2757_v37 = vcombine.high %v247_v28, %v263_v29 }
  0xcb   :  { %v2659_v51 = vcombine.high %v150_v46, %v166_v47 }
  0xcd   :  { %2164 = vmatpush1.bf16.msra.mxu0 %v2652_v54  ;;  %2205 = vmatpush1.bf16.msra.mxu1 %v2654_v55  ;;  %v118_v54 = vld [vmem:[%s3836_s1 + $0x268] sm:$0xff] }
  0xce   :  { %2165 = vmatprep.subr.bf16.mxu0 %v2621_v56  ;;  %2206 = vmatprep.subr.bf16.mxu1 %v2623_v57  ;;  %v134_v55 = vld [vmem:[%s3836_s1 + $0x2e8] sm:$0xff]  ;;  %v2656_v56 = vcombine.low %v149_v44, %v165_v45  ;;  %v2658_v57 = vcombine.low %v150_v46, %v166_v47  ;;  %v216_v44 = vld [vmem:[%s3836_s1 + $0x578] sm:$0xff] }
  0xcf   :  { %v2627_v59 = vcombine.high %v118_v54, %v134_v55  ;;  %v2626_v3 = vcombine.low %v118_v54, %v134_v55  ;;  %v232_v45 = vld [vmem:[%s3836_s1 + $0x5f8] sm:$0xff] }
  0xd1   :  { %2166 = vmatpush1.bf16.msra.mxu0 %v2620_v62  ;;  %2207 = vmatpush1.bf16.msra.mxu1 %v2622_v63  ;;  %v86_v62 = vld [vmem:[%s3836_s1 + $0x168] sm:$0xff] }
  0xd2   :  { %2167 = vmatprep.subr.bf16.mxu0 %v2589_v1  ;;  %2208 = vmatprep.subr.bf16.mxu1 %v2591_v2  ;;  %v102_v63 = vld [vmem:[%s3836_s1 + $0x1e8] sm:$0xff]  ;;  %v2624_v1 = vcombine.low %v117_v52, %v133_v53  ;;  %v305_v2 = vlaneseq }
  0xd3   :  { %v2595_v5 = vcombine.high %v86_v62, %v102_v63  ;;  %v2594_v13 = vcombine.low %v86_v62, %v102_v63  ;;  %v184_v63 = vld [vmem:[%s3836_s1 + $0x478] sm:$0xff] }
  0xd4   :  { %v3568_v12 = vshrl.u32 %v305_v2, 7 }
  0xd5   :  { %2168 = vmatpush1.bf16.msra.mxu0 %v2588_v7  ;;  %2209 = vmatpush1.bf16.msra.mxu1 %v2590_v8  ;;  %v69_v7 = vld [vmem:[%s3836_s1 + $0xe0] sm:$0xff]  ;;  %v54_v8 = vld [vmem:[%s3836_s1 + $0x68] sm:$0xff] }
  0xd6   :  { %2169 = vmatprep.subr.bf16.mxu0 %v2557_v9  ;;  %2210 = vmatprep.subr.bf16.mxu1 %v2559_v10  ;;  %v70_v9 = vld [vmem:[%s3836_s1 + $0xe8] sm:$0xff]  ;;  %v2592_v10 = vcombine.low %v85_v60, %v101_v61  ;;  %v2561_v14 = vcombine.high %v53_v6, %v69_v7  ;;  %v2560_v20 = vcombine.low %v53_v6, %v69_v7  ;;  %v3583_v21 = vsub.s32 0, %v3568_v12 }
  0xd7   :  { %v2563_v15 = vcombine.high %v54_v8, %v70_v9  ;;  %v2562_v22 = vcombine.low %v54_v8, %v70_v9  ;;  %v3600_v30 = vsub.s32 3, %v3568_v12 }
  0xd9   :  { %2170 = vmatpush1.bf16.msra.mxu0 %v2556_v16  ;;  %2211 = vmatpush1.bf16.msra.mxu1 %v2558_v17  ;;  %v279_v16 = vld [vmem:[%s3836_s1 + $0x770] sm:$0xff] }
  0xda   :  { %2237 = vmatprep.subr.bf16.mxu0 %v2785_v18  ;;  %2278 = vmatprep.subr.bf16.mxu1 %v2787_v19  ;;  %v295_v17 = vld [vmem:[%s3836_s1 + $0x7f0] sm:$0xff]  ;;  %v280_v18 = vld [vmem:[%s3836_s1 + $0x778] sm:$0xff] }
  0xdb   :  { %v296_v19 = vld [vmem:[%s3836_s1 + $0x7f8] sm:$0xff] }
  0xdc   :  { %2188 = vmatmul.mubr.bf16.vlgmr.msra.gmra.mxu0 %v2984_v11  ;;  %2229 = vmatmul.mubr.bf16.vlgmr.msra.gmra.mxu1 %v2984_v11  ;;  %v2790_v36 = vcombine.low %v280_v18, %v296_v19 }
  0xdd   :  { %2238 = vmatpush1.bf16.msra.mxu0 %v2784_v24  ;;  %2279 = vmatpush1.bf16.msra.mxu1 %v2786_v25  ;;  %v3588_v24 = vsub.s32 2, %v3568_v12  ;;  %v2789_v25 = vcombine.high %v279_v16, %v295_v17 }
  0xde   :  { %2239 = vmatprep.subr.bf16.mxu0 %v2753_v26  ;;  %2280 = vmatprep.subr.bf16.mxu1 %v2755_v27  ;;  %v2791_v26 = vcombine.high %v280_v18, %v296_v19  ;;  %v3591_v27 = vsub.s32 1, %v3568_v12  ;;  %v168_v18 = vld [vmem:[%s3836_s1 + $0x3f8] sm:$0xff] }
  0xdf   :  { %2269 = vmatprep.mubr.bf16.mxu0 %v2841_v0  ;;  %2310 = vmatprep.mubr.bf16.mxu1 %v2841_v0 }
  0xe0   :  { %v312_v38 = vrot.slane %v3585_v23, %v3591_v27 }
  0xe1   :  { %2240 = vmatpush1.bf16.msra.mxu0 %v2752_v32  ;;  %2281 = vmatpush1.bf16.msra.mxu1 %v2754_v33  ;;  %v264_v32 = vld [vmem:[%s3836_s1 + $0x6f8] sm:$0xff]  ;;  %v308_v33 = vrot.slane %v3585_v23, %v3583_v21 }
  0xe2   :  { %2241 = vmatprep.subr.bf16.mxu0 %v2721_v34  ;;  %2282 = vmatprep.subr.bf16.mxu1 %v2723_v35  ;;  %v2788_v34 = vcombine.low %v279_v16, %v295_v17  ;;  %v316_v35 = vrot.slane %v3585_v23, %v3588_v24  ;;  %v2759_v39 = vcombine.high %v248_v31, %v264_v32  ;;  %v152_v17 = vld [vmem:[%s3836_s1 + $0x378] sm:$0xff] }
  0xe5   :  { %2242 = vmatpush1.bf16.msra.mxu0 %v2720_v40  ;;  %2283 = vmatpush1.bf16.msra.mxu1 %v2722_v41  ;;  %v215_v40 = vld [vmem:[%s3836_s1 + $0x570] sm:$0xff] }
  0xe6   :  { %2243 = vmatprep.subr.bf16.mxu0 %v2689_v42  ;;  %2284 = vmatprep.subr.bf16.mxu1 %v2691_v43  ;;  %v231_v41 = vld [vmem:[%s3836_s1 + $0x5f0] sm:$0xff]  ;;  %v320_v43 = vrot.slane %v3585_v23, %v3600_v30 }
  0xe7   :  { %v2725_v52 = vcombine.high %v215_v40, %v231_v41  ;;  %v2724_v62 = vcombine.low %v215_v40, %v231_v41 }
  0xe9   :  { %2244 = vmatpush1.bf16.msra.mxu0 %v2688_v48  ;;  %2285 = vmatpush1.bf16.msra.mxu1 %v2690_v49  ;;  %v2756_v48 = vcombine.low %v247_v28, %v263_v29  ;;  %v135_v28 = vld [vmem:[%s3836_s1 + $0x2f0] sm:$0xff]  ;;  %v120_v29 = vld [vmem:[%s3836_s1 + $0x278] sm:$0xff] }
  0xea   :  { %2245 = vmatprep.subr.bf16.mxu0 %v2657_v50  ;;  %2286 = vmatprep.subr.bf16.mxu1 %v2659_v51  ;;  %v2758_v51 = vcombine.low %v248_v31, %v264_v32  ;;  %v136_v31 = vld [vmem:[%s3836_s1 + $0x2f8] sm:$0xff] }
  0xeb   :  { %v2630_v41 = vcombine.low %v120_v29, %v136_v31 }
  0xed   :  { %2246 = vmatpush1.bf16.msra.mxu0 %v2656_v56  ;;  %2287 = vmatpush1.bf16.msra.mxu1 %v2658_v57  ;;  %v2727_v56 = vcombine.high %v216_v44, %v232_v45  ;;  %v183_v57 = vld [vmem:[%s3836_s1 + $0x470] sm:$0xff] }
  0xee   :  { %2247 = vmatprep.subr.bf16.mxu0 %v2625_v58  ;;  %2288 = vmatprep.subr.bf16.mxu1 %v2627_v59  ;;  %v199_v58 = vld [vmem:[%s3836_s1 + $0x4f0] sm:$0xff] }
  0xef   :  { %v2693_v9 = vcombine.high %v183_v57, %v199_v58  ;;  %v2692_v19 = vcombine.low %v183_v57, %v199_v58  ;;  %v3715_v57 = vsub.s32 7, %v3568_v12 }
  0xf1   :  { %2248 = vmatpush1.bf16.msra.mxu0 %v2624_v1  ;;  %2289 = vmatpush1.bf16.msra.mxu1 %v2626_v3  ;;  %v200_v1 = vld [vmem:[%s3836_s1 + $0x4f8] sm:$0xff] }
  0xf2   :  { %2249 = vmatprep.subr.bf16.mxu0 %v2593_v4  ;;  %2290 = vmatprep.subr.bf16.mxu1 %v2595_v5  ;;  %v2726_v5 = vcombine.low %v216_v44, %v232_v45  ;;  %v55_v44 = vld [vmem:[%s3836_s1 + $0x70] sm:$0xff] }
  0xf3   :  { %v71_v45 = vld [vmem:[%s3836_s1 + $0xf0] sm:$0xff] }
  0xf5   :  { %2250 = vmatpush1.bf16.msra.mxu0 %v2592_v10  ;;  %2291 = vmatpush1.bf16.msra.mxu1 %v2594_v13  ;;  %v2695_v13 = vcombine.high %v184_v63, %v200_v1 }
  0xf6   :  { %2251 = vmatprep.subr.bf16.mxu0 %v2561_v14  ;;  %2292 = vmatprep.subr.bf16.mxu1 %v2563_v15  ;;  %v151_v14 = vld [vmem:[%s3836_s1 + $0x370] sm:$0xff] }
  0xf7   :  { %v167_v15 = vld [vmem:[%s3836_s1 + $0x3f0] sm:$0xff] }
  0xf8   :  { %v2660_v32 = vcombine.low %v151_v14, %v167_v15 }
  0xf9   :  { %2252 = vmatpush1.bf16.msra.mxu0 %v2560_v20  ;;  %2293 = vmatpush1.bf16.msra.mxu1 %v2562_v22  ;;  %v2694_v20 = vcombine.low %v184_v63, %v200_v1  ;;  %v2661_v22 = vcombine.high %v151_v14, %v167_v15 }
  0xfa   :  { %2319 = vmatprep.subr.bf16.mxu0 %v2789_v25  ;;  %2360 = vmatprep.subr.bf16.mxu1 %v2791_v26  ;;  %v2663_v25 = vcombine.high %v152_v17, %v168_v18  ;;  %v119_v26 = vld [vmem:[%s3836_s1 + $0x270] sm:$0xff] }
  0xfb   :  { %v2628_v40 = vcombine.low %v119_v26, %v135_v28 }
  0xfc   :  { %v1779_v42 = vpop.f32.mrf.mxu0  ;;  %2270 = vmatmul.mubr.bf16.vlgmr.msra.gmra.mxu0 %v2984_v11  ;;  %v1820_v47 = vpop.f32.mrf.mxu1  ;;  %2311 = vmatmul.mubr.bf16.vlgmr.msra.gmra.mxu1 %v2984_v11 }
  0xfd   :  { %v1780_v46 = vadd.f32 %v1779_v42, %v308_v33  ;;  %2320 = vmatpush1.bf16.msra.mxu0 %v2788_v34  ;;  %v1821_v49 = vadd.f32 %v1820_v47, %v316_v35  ;;  %2361 = vmatpush1.bf16.msra.mxu1 %v2790_v36  ;;  %v2662_v33 = vcombine.low %v152_v17, %v168_v18  ;;  %v87_v36 = vld [vmem:[%s3836_s1 + $0x170] sm:$0xff]  ;;  %v72_v47 = vld [vmem:[%s3836_s1 + $0xf8] sm:$0xff] }
  0xfe   :  { %v1781_v50 = vpop.f32.mrf.mxu0  ;;  %2321 = vmatprep.subr.bf16.mxu0 %v2757_v37  ;;  %v1822_v55 = vpop.f32.mrf.mxu1  ;;  %2362 = vmatprep.subr.bf16.mxu1 %v2759_v39  ;;  %v2629_v34 = vcombine.high %v119_v26, %v135_v28  ;;  %v2631_v35 = vcombine.high %v120_v29, %v136_v31  ;;  %v103_v37 = vld [vmem:[%s3836_s1 + $0x1f0] sm:$0xff]  ;;  %v104_v39 = vld [vmem:[%s3836_s1 + $0x1f8] sm:$0xff] }
  0xff   :  { %vm2401_vm0 = vcmp.gt.f32.partialorder %v1780_v46, 0.0  ;;  %v2433_v53 = vmul.f32 0.2, %v1780_v46  ;;  %v1782_v54 = vadd.f32 %v1781_v50, %v312_v38  ;;  %2351 = vmatprep.mubr.bf16.mxu0 %v2841_v0  ;;  %vm2403_vm1 = vcmp.gt.f32.partialorder %v1821_v49, 0.0  ;;  %2392 = vmatprep.mubr.bf16.mxu1 %v2841_v0  ;;  %v88_v38 = vld [vmem:[%s3836_s1 + $0x178] sm:$0xff]  ;;  %v298_v17 = vld [vmem:[#allocation4 + $0x8] sm:$0xff] }
 0x100   :  { %v2435_v59 = vmul.f32 0.2, %v1821_v49  ;;  %v1823_v60 = vadd.f32 %v1822_v55, %v320_v43  ;;  %v1783_v61 = vpop.f32.mrf.mxu0  ;;  %v1824_v4 = vpop.f32.mrf.mxu1  ;;  %v2597_v42 = vcombine.high %v87_v36, %v103_v37  ;;  %v2599_v43 = vcombine.high %v88_v38, %v104_v39 }
 0x101   :  { %v2465_v2 = vsel %vm2401_vm0, %v1780_v46, %v2433_v53  ;;  %vm2402_vm2 = vcmp.gt.f32.partialorder %v1782_v54, 0.0  ;;  %v2434_v3 = vmul.f32 0.2, %v1782_v54  ;;  %2322 = vmatpush1.bf16.msra.mxu0 %v2756_v48  ;;  %2363 = vmatpush1.bf16.msra.mxu1 %v2758_v51  ;;  %v56_v46 = vld [vmem:[%s3836_s1 + $0x78] sm:$0xff]  ;;  %v2596_v48 = vcombine.low %v87_v36, %v103_v37 }
 0x102   :  { %2497 = vst [vmem:[%s3838_s3] sm:$0xff] %v2465_v2  ;;  %v2467_v6 = vsel %vm2403_vm1, %v1821_v49, %v2435_v59  ;;  %vm2404_vm3 = vcmp.gt.f32.partialorder %v1823_v60, 0.0  ;;  %v2436_v7 = vmul.f32 0.2, %v1823_v60  ;;  %v1784_v8 = vpop.f32.mrf.mxu0  ;;  %2323 = vmatprep.subr.bf16.mxu0 %v2725_v52  ;;  %v1825_v10 = vpop.f32.mrf.mxu1  ;;  %2364 = vmatprep.subr.bf16.mxu1 %v2727_v56  ;;  %v2598_v49 = vcombine.low %v88_v38, %v104_v39 }
 0x103   :  { %2499 = vst [vmem:[%s3838_s3 + $0x10] sm:$0xff] %v2467_v6  ;;  %v2466_v0 = vsel %vm2402_vm2, %v1782_v54, %v2434_v3  ;;  %v2565_v50 = vcombine.high %v55_v44, %v71_v45  ;;  %v2567_v51 = vcombine.high %v56_v46, %v72_v47  ;;  %v2564_v52 = vcombine.low %v55_v44, %v71_v45 }
 0x104   :  { %2498 = vst [vmem:[%s3838_s3 + $0x8] sm:$0xff] %v2466_v0  ;;  %v2468_v16 = vsel %vm2404_vm3, %v1823_v60, %v2436_v7  ;;  %v3706_v53 = vsub.s32 4, %v3568_v12  ;;  %v2566_v54 = vcombine.low %v56_v46, %v72_v47  ;;  %v3709_v55 = vsub.s32 6, %v3568_v12 }
 0x105   :  { %2500 = vst [vmem:[%s3838_s3 + $0x18] sm:$0xff] %v2468_v16  ;;  %2324 = vmatpush1.bf16.msra.mxu0 %v2724_v62  ;;  %2365 = vmatpush1.bf16.msra.mxu1 %v2726_v5  ;;  %v3712_v56 = vsub.s32 5, %v3568_v12  ;;  %v336_v62 = vrot.slane %v3585_v23, %v3715_v57  ;;  %v340_v18 = vrot.slane %v298_v17, %v3583_v21 }
 0x106   :  { %2325 = vmatprep.subr.bf16.mxu0 %v2693_v9  ;;  %2366 = vmatprep.subr.bf16.mxu1 %v2695_v13  ;;  %v324_v58 = vrot.slane %v3585_v23, %v3706_v53  ;;  %v332_v59 = vrot.slane %v3585_v23, %v3709_v55  ;;  %v356_v47 = vrot.slane %v298_v17, %v3706_v53 }
 0x107   :  { %v328_v60 = vrot.slane %v3585_v23, %v3712_v56 }
 0x109   :  { %2326 = vmatpush1.bf16.msra.mxu0 %v2692_v19  ;;  %2367 = vmatpush1.bf16.msra.mxu1 %v2694_v20  ;;  %v348_v19 = vrot.slane %v298_v17, %v3588_v24  ;;  %v344_v20 = vrot.slane %v298_v17, %v3591_v27 }
 0x10a   :  { %2327 = vmatprep.subr.bf16.mxu0 %v2661_v22  ;;  %2368 = vmatprep.subr.bf16.mxu1 %v2663_v25  ;;  %v352_v25 = vrot.slane %v298_v17, %v3600_v30 }
 0x10d   :  { %2328 = vmatpush1.bf16.msra.mxu0 %v2660_v32  ;;  %2369 = vmatpush1.bf16.msra.mxu1 %v2662_v33 }
 0x10e   :  { %2329 = vmatprep.subr.bf16.mxu0 %v2629_v34  ;;  %2370 = vmatprep.subr.bf16.mxu1 %v2631_v35 }
 0x111   :  { %2330 = vmatpush1.bf16.msra.mxu0 %v2628_v40  ;;  %2371 = vmatpush1.bf16.msra.mxu1 %v2630_v41 }
 0x112   :  { %2331 = vmatprep.subr.bf16.mxu0 %v2597_v42  ;;  %2372 = vmatprep.subr.bf16.mxu1 %v2599_v43 }
 0x115   :  { %2332 = vmatpush1.bf16.msra.mxu0 %v2596_v48  ;;  %2373 = vmatpush1.bf16.msra.mxu1 %v2598_v49  ;;  %v364_v48 = vrot.slane %v298_v17, %v3709_v55  ;;  %v360_v49 = vrot.slane %v298_v17, %v3712_v56 }
 0x116   :  { %2333 = vmatprep.subr.bf16.mxu0 %v2565_v50  ;;  %2374 = vmatprep.subr.bf16.mxu1 %v2567_v51  ;;  %v368_v51 = vrot.slane %v298_v17, %v3715_v57 }
 0x119   :  { %2334 = vmatpush1.bf16.msra.mxu0 %v2564_v52  ;;  %2375 = vmatpush1.bf16.msra.mxu1 %v2566_v54 }
 0x11c   :  { %v1861_v61 = vpop.f32.mrf.mxu0  ;;  %2352 = vmatmul.mubr.bf16.vlgmr.msra.gmra.mxu0 %v2984_v11  ;;  %v1902_v12 = vpop.f32.mrf.mxu1  ;;  %2393 = vmatmul.mubr.bf16.vlgmr.msra.gmra.mxu1 %v2984_v11 }
 0x11d   :  { %v1862_v63 = vadd.f32 %v1861_v61, %v324_v58  ;;  %v1903_v1 = vadd.f32 %v1902_v12, %v332_v59 }
 0x11e   :  { %v1863_v2 = vpop.f32.mrf.mxu0  ;;  %v1904_v5 = vpop.f32.mrf.mxu1 }
 0x11f   :  { %vm2405_vm4 = vcmp.gt.f32.partialorder %v1862_v63, 0.0  ;;  %v2437_v3 = vmul.f32 0.2, %v1862_v63  ;;  %v1864_v4 = vadd.f32 %v1863_v2, %v328_v60  ;;  %vm2407_vm5 = vcmp.gt.f32.partialorder %v1903_v1, 0.0 }
 0x120   :  { %v2439_v6 = vmul.f32 0.2, %v1903_v1  ;;  %v1905_v7 = vadd.f32 %v1904_v5, %v336_v62  ;;  %v1865_v8 = vpop.f32.mrf.mxu0  ;;  %v1906_v10 = vpop.f32.mrf.mxu1 }
 0x121   :  { %v2469_v9 = vsel %vm2405_vm4, %v1862_v63, %v2437_v3  ;;  %vm2406_vm6 = vcmp.gt.f32.partialorder %v1864_v4, 0.0  ;;  %v2438_v0 = vmul.f32 0.2, %v1864_v4  ;;  %v299_v10 = vld [vmem:[#allocation4 + $0x10] sm:$0xff] }
 0x122   :  { %2501 = vst [vmem:[%s3838_s3 + $0x20] sm:$0xff] %v2469_v9  ;;  %v2471_v23 = vsel %vm2407_vm5, %v1903_v1, %v2439_v6  ;;  %vm2408_vm7 = vcmp.gt.f32.partialorder %v1905_v7, 0.0  ;;  %v2440_v11 = vmul.f32 0.2, %v1905_v7  ;;  %v1866_v13 = vpop.f32.mrf.mxu0  ;;  %v1907_v15 = vpop.f32.mrf.mxu1 }
 0x123   :  { %2503 = vst [vmem:[%s3838_s3 + $0x30] sm:$0xff] %v2471_v23  ;;  %v2470_v14 = vsel %vm2406_vm6, %v1864_v4, %v2438_v0  ;;  %v372_v23 = vrot.slane %v299_v10, %v3583_v21  ;;  %v376_v13 = vrot.slane %v299_v10, %v3591_v27  ;;  %v384_v15 = vrot.slane %v299_v10, %v3600_v30 }
 0x124   :  { %2502 = vst [vmem:[%s3838_s3 + $0x28] sm:$0xff] %v2470_v14  ;;  %v2472_v16 = vsel %vm2408_vm7, %v1905_v7, %v2440_v11  ;;  %v380_v11 = vrot.slane %v299_v10, %v3588_v24 }
 0x125   :  { %2504 = vst [vmem:[%s3838_s3 + $0x38] sm:$0xff] %v2472_v16 }
 0x13c   :  { %v1943_v22 = vpop.f32.mrf.mxu0  ;;  %v1984_v28 = vpop.f32.mrf.mxu1 }
 0x13d   :  { %v1944_v26 = vadd.f32 %v1943_v22, %v340_v18  ;;  %v1985_v29 = vadd.f32 %v1984_v28, %v348_v19 }
 0x13e   :  { %v1945_v31 = vpop.f32.mrf.mxu0  ;;  %v1986_v34 = vpop.f32.mrf.mxu1 }
 0x13f   :  { %vm2409_vm8 = vcmp.gt.f32.partialorder %v1944_v26, 0.0  ;;  %v2441_v32 = vmul.f32 0.2, %v1944_v26  ;;  %v1946_v33 = vadd.f32 %v1945_v31, %v344_v20  ;;  %vm2411_vm9 = vcmp.gt.f32.partialorder %v1985_v29, 0.0 }
 0x140   :  { %v2443_v35 = vmul.f32 0.2, %v1985_v29  ;;  %v1987_v36 = vadd.f32 %v1986_v34, %v352_v25  ;;  %v1947_v37 = vpop.f32.mrf.mxu0  ;;  %v1988_v40 = vpop.f32.mrf.mxu1 }
 0x141   :  { %v2473_v38 = vsel %vm2409_vm8, %v1944_v26, %v2441_v32  ;;  %vm2410_vm10 = vcmp.gt.f32.partialorder %v1946_v33, 0.0  ;;  %v2442_v39 = vmul.f32 0.2, %v1946_v33  ;;  %v388_v40 = vrot.slane %v299_v10, %v3706_v53 }
 0x142   :  { %2505 = vst [vmem:[%s3838_s3 + $0x40] sm:$0xff] %v2473_v38  ;;  %v2475_v41 = vsel %vm2411_vm9, %v1985_v29, %v2443_v35  ;;  %vm2412_vm11 = vcmp.gt.f32.partialorder %v1987_v36, 0.0  ;;  %v2444_v42 = vmul.f32 0.2, %v1987_v36  ;;  %v1948_v43 = vpop.f32.mrf.mxu0  ;;  %v1989_v45 = vpop.f32.mrf.mxu1 }
 0x143   :  { %2507 = vst [vmem:[%s3838_s3 + $0x50] sm:$0xff] %v2475_v41  ;;  %v2474_v44 = vsel %vm2410_vm10, %v1946_v33, %v2442_v39  ;;  %v396_v41 = vrot.slane %v299_v10, %v3709_v55 }
 0x144   :  { %2506 = vst [vmem:[%s3838_s3 + $0x48] sm:$0xff] %v2474_v44  ;;  %v2476_v46 = vsel %vm2412_vm11, %v1987_v36, %v2444_v42  ;;  %v392_v42 = vrot.slane %v299_v10, %v3712_v56  ;;  %v400_v44 = vrot.slane %v299_v10, %v3715_v57 }
 0x145   :  { %2508 = vst [vmem:[%s3838_s3 + $0x58] sm:$0xff] %v2476_v46 }
 0x15c   :  { %v2025_v50 = vpop.f32.mrf.mxu0  ;;  %v2066_v54 = vpop.f32.mrf.mxu1 }
 0x15d   :  { %v2026_v52 = vadd.f32 %v2025_v50, %v356_v47  ;;  %v2067_v58 = vadd.f32 %v2066_v54, %v364_v48 }
 0x15e   :  { %v2027_v59 = vpop.f32.mrf.mxu0  ;;  %v2068_v62 = vpop.f32.mrf.mxu1 }
 0x15f   :  { %vm2413_vm12 = vcmp.gt.f32.partialorder %v2026_v52, 0.0  ;;  %v2445_v60 = vmul.f32 0.2, %v2026_v52  ;;  %v2028_v61 = vadd.f32 %v2027_v59, %v360_v49  ;;  %vm2415_vm13 = vcmp.gt.f32.partialorder %v2067_v58, 0.0 }
 0x160   :  { %v2447_v63 = vmul.f32 0.2, %v2067_v58  ;;  %v2069_v12 = vadd.f32 %v2068_v62, %v368_v51  ;;  %v2029_v1 = vpop.f32.mrf.mxu0  ;;  %v2070_v4 = vpop.f32.mrf.mxu1 }
 0x161   :  { %v2477_v2 = vsel %vm2413_vm12, %v2026_v52, %v2445_v60  ;;  %vm2414_vm14 = vcmp.gt.f32.partialorder %v2028_v61, 0.0  ;;  %v2446_v3 = vmul.f32 0.2, %v2028_v61  ;;  %v300_v4 = vld [vmem:[#allocation4 + $0x18] sm:$0xff] }
 0x162   :  { %2509 = vst [vmem:[%s3838_s3 + $0x60] sm:$0xff] %v2477_v2  ;;  %v2479_v5 = vsel %vm2415_vm13, %v2067_v58, %v2447_v63  ;;  %vm2416_vm15 = vcmp.gt.f32.partialorder %v2069_v12, 0.0  ;;  %v2448_v6 = vmul.f32 0.2, %v2069_v12  ;;  %v2030_v7 = vpop.f32.mrf.mxu0  ;;  %v2071_v9 = vpop.f32.mrf.mxu1 }
 0x163   :  { %2511 = vst [vmem:[%s3838_s3 + $0x70] sm:$0xff] %v2479_v5  ;;  %v2478_v8 = vsel %vm2414_vm14, %v2028_v61, %v2446_v3  ;;  %v404_v5 = vrot.slane %v300_v4, %v3583_v21  ;;  %v408_v7 = vrot.slane %v300_v4, %v3591_v27  ;;  %v416_v9 = vrot.slane %v300_v4, %v3600_v30 }
 0x164   :  { %2510 = vst [vmem:[%s3838_s3 + $0x68] sm:$0xff] %v2478_v8  ;;  %v2480_v0 = vsel %vm2416_vm15, %v2069_v12, %v2448_v6  ;;  %v412_v6 = vrot.slane %v300_v4, %v3588_v24 }
 0x165   :  { %2512 = vst [vmem:[%s3838_s3 + $0x78] sm:$0xff] %v2480_v0 }
 0x17c   :  { %v2107_v14 = vpop.f32.mrf.mxu0  ;;  %v2148_v17 = vpop.f32.mrf.mxu1 }
 0x17d   :  { %v2108_v16 = vadd.f32 %v2107_v14, %v372_v23  ;;  %v2149_v18 = vadd.f32 %v2148_v17, %v380_v11 }
 0x17e   :  { %v2109_v19 = vpop.f32.mrf.mxu0  ;;  %v2150_v25 = vpop.f32.mrf.mxu1 }
 0x17f   :  { %vm2417_vm0 = vcmp.gt.f32.partialorder %v2108_v16, 0.0  ;;  %v2449_v20 = vmul.f32 0.2, %v2108_v16  ;;  %v2110_v22 = vadd.f32 %v2109_v19, %v376_v13  ;;  %vm2419_vm1 = vcmp.gt.f32.partialorder %v2149_v18, 0.0 }
 0x180   :  { %v2451_v26 = vmul.f32 0.2, %v2149_v18  ;;  %v2151_v28 = vadd.f32 %v2150_v25, %v384_v15  ;;  %v2111_v29 = vpop.f32.mrf.mxu0  ;;  %v2152_v33 = vpop.f32.mrf.mxu1 }
 0x181   :  { %v2481_v31 = vsel %vm2417_vm0, %v2108_v16, %v2449_v20  ;;  %vm2418_vm2 = vcmp.gt.f32.partialorder %v2110_v22, 0.0  ;;  %v2450_v32 = vmul.f32 0.2, %v2110_v22  ;;  %v428_v29 = vrot.slane %v300_v4, %v3709_v55 }
 0x182   :  { %2513 = vst [vmem:[%s3838_s3 + $0x80] sm:$0xff] %v2481_v31  ;;  %v2483_v34 = vsel %vm2419_vm1, %v2149_v18, %v2451_v26  ;;  %vm2420_vm3 = vcmp.gt.f32.partialorder %v2151_v28, 0.0  ;;  %v2452_v35 = vmul.f32 0.2, %v2151_v28  ;;  %v2112_v36 = vpop.f32.mrf.mxu0  ;;  %v2153_v38 = vpop.f32.mrf.mxu1  ;;  %v424_v31 = vrot.slane %v300_v4, %v3712_v56 }
 0x183   :  { %2515 = vst [vmem:[%s3838_s3 + $0x90] sm:$0xff] %v2483_v34  ;;  %v2482_v37 = vsel %vm2418_vm2, %v2110_v22, %v2450_v32  ;;  %v432_v33 = vrot.slane %v300_v4, %v3715_v57  ;;  %vm2528_vm0 = vcmask 719872  }
 0x184   :  { %2514 = vst [vmem:[%s3838_s3 + $0x88] sm:$0xff] %v2482_v37  ;;  %v2484_v39 = vsel %vm2420_vm3, %v2151_v28, %v2452_v35  ;;  %v420_v28 = vrot.slane %v300_v4, %v3706_v53 }
 0x185   :  { %2516 = vst [vmem:[%s3838_s3 + $0x98] sm:$0xff] %v2484_v39 }
 0x19c   :  { %v2189_v43 = vpop.f32.mrf.mxu0  ;;  %v2230_v46 = vpop.f32.mrf.mxu1 }
 0x19d   :  { %v2190_v45 = vadd.f32 %v2189_v43, %v388_v40  ;;  %v2231_v47 = vadd.f32 %v2230_v46, %v396_v41 }
 0x19e   :  { %v2191_v48 = vpop.f32.mrf.mxu0  ;;  %v2232_v51 = vpop.f32.mrf.mxu1 }
 0x19f   :  { %vm2421_vm4 = vcmp.gt.f32.partialorder %v2190_v45, 0.0  ;;  %v2453_v49 = vmul.f32 0.2, %v2190_v45  ;;  %v2192_v50 = vadd.f32 %v2191_v48, %v392_v42  ;;  %vm2423_vm5 = vcmp.gt.f32.partialorder %v2231_v47, 0.0 }
 0x1a0   :  { %v2455_v52 = vmul.f32 0.2, %v2231_v47  ;;  %v2233_v54 = vadd.f32 %v2232_v51, %v400_v44  ;;  %v2193_v58 = vpop.f32.mrf.mxu0  ;;  %v2234_v61 = vpop.f32.mrf.mxu1 }
 0x1a1   :  { %v2485_v59 = vsel %vm2421_vm4, %v2190_v45, %v2453_v49  ;;  %vm2422_vm6 = vcmp.gt.f32.partialorder %v2192_v50, 0.0  ;;  %v2454_v60 = vmul.f32 0.2, %v2192_v50 }
 0x1a2   :  { %2517 = vst [vmem:[%s3838_s3 + $0xa0] sm:$0xff] %v2485_v59  ;;  %v2487_v62 = vsel %vm2423_vm5, %v2231_v47, %v2455_v52  ;;  %vm2424_vm7 = vcmp.gt.f32.partialorder %v2233_v54, 0.0  ;;  %v2456_v63 = vmul.f32 0.2, %v2233_v54  ;;  %v2194_v12 = vpop.f32.mrf.mxu0  ;;  %v2235_v2 = vpop.f32.mrf.mxu1 }
 0x1a3   :  { %2519 = vst [vmem:[%s3838_s3 + $0xb0] sm:$0xff] %v2487_v62  ;;  %v2486_v1 = vsel %vm2422_vm6, %v2192_v50, %v2454_v60 }
 0x1a4   :  { %2518 = vst [vmem:[%s3838_s3 + $0xa8] sm:$0xff] %v2486_v1  ;;  %v2488_v3 = vsel %vm2424_vm7, %v2233_v54, %v2456_v63 }
 0x1a5   :  { %2520 = vst [vmem:[%s3838_s3 + $0xb8] sm:$0xff] %v2488_v3 }
 0x1bc   :  { %v2271_v8 = vpop.f32.mrf.mxu0  ;;  %v2312_v10 = vpop.f32.mrf.mxu1 }
 0x1bd   :  { %v2272_v0 = vadd.f32 %v2271_v8, %v404_v5  ;;  %v2313_v23 = vadd.f32 %v2312_v10, %v412_v6 }
 0x1be   :  { %v2273_v11 = vpop.f32.mrf.mxu0  ;;  %v2314_v15 = vpop.f32.mrf.mxu1 }
 0x1bf   :  { %vm2425_vm8 = vcmp.gt.f32.partialorder %v2272_v0, 0.0  ;;  %v2457_v13 = vmul.f32 0.2, %v2272_v0  ;;  %v2274_v14 = vadd.f32 %v2273_v11, %v408_v7  ;;  %vm2427_vm9 = vcmp.gt.f32.partialorder %v2313_v23, 0.0 }
 0x1c0   :  { %v2459_v16 = vmul.f32 0.2, %v2313_v23  ;;  %v2315_v17 = vadd.f32 %v2314_v15, %v416_v9  ;;  %v2275_v18 = vpop.f32.mrf.mxu0  ;;  %v2316_v19 = vpop.f32.mrf.mxu1 }
 0x1c1   :  { %v2489_v21 = vsel %vm2425_vm8, %v2272_v0, %v2457_v13  ;;  %vm2426_vm10 = vcmp.gt.f32.partialorder %v2274_v14, 0.0  ;;  %v2458_v24 = vmul.f32 0.2, %v2274_v14 }
 0x1c2   :  { %2521 = vst [vmem:[%s3838_s3 + $0xc0] sm:$0xff] %v2489_v21  ;;  %v2491_v27 = vsel %vm2427_vm9, %v2313_v23, %v2459_v16  ;;  %vm2428_vm11 = vcmp.gt.f32.partialorder %v2315_v17, 0.0  ;;  %v2460_v30 = vmul.f32 0.2, %v2315_v17  ;;  %v2276_v20 = vpop.f32.mrf.mxu0  ;;  %v2317_v25 = vpop.f32.mrf.mxu1 }
 0x1c3   :  { %2523 = vst [vmem:[%s3838_s3 + $0xd0] sm:$0xff] %v2491_v27  ;;  %v2490_v22 = vsel %vm2426_vm10, %v2274_v14, %v2458_v24 }
 0x1c4   :  { %2522 = vst [vmem:[%s3838_s3 + $0xc8] sm:$0xff] %v2490_v22  ;;  %v2492_v26 = vsel %vm2428_vm11, %v2315_v17, %v2460_v30 }
 0x1c5   :  { %2524 = vst [vmem:[%s3838_s3 + $0xd8] sm:$0xff] %v2492_v26 }
 0x1dc   :  { %v2353_v32 = vpop.f32.mrf.mxu0  ;;  %v2394_v35 = vpop.f32.mrf.mxu1 }
 0x1dd   :  { %v2354_v34 = vadd.f32 %v2353_v32, %v420_v28  ;;  %v2395_v36 = vadd.f32 %v2394_v35, %v428_v29 }
 0x1de   :  { %v2355_v37 = vpop.f32.mrf.mxu0  ;;  %v2396_v40 = vpop.f32.mrf.mxu1 }
 0x1df   :  { %vm2429_vm12 = vcmp.gt.f32.partialorder %v2354_v34, 0.0  ;;  %v2461_v38 = vmul.f32 0.2, %v2354_v34  ;;  %v2356_v39 = vadd.f32 %v2355_v37, %v424_v31  ;;  %vm2431_vm13 = vcmp.gt.f32.partialorder %v2395_v36, 0.0 }
 0x1e0   :  { %v2463_v41 = vmul.f32 0.2, %v2395_v36  ;;  %v2397_v42 = vadd.f32 %v2396_v40, %v432_v33  ;;  %v2357_v43 = vpop.f32.mrf.mxu0  ;;  %v2398_v44 = vpop.f32.mrf.mxu1 }
 0x1e1   :  { %v2493_v53 = vsel %vm2429_vm12, %v2354_v34, %v2461_v38  ;;  %vm2430_vm14 = vcmp.gt.f32.partialorder %v2356_v39, 0.0  ;;  %v2462_v55 = vmul.f32 0.2, %v2356_v39 }
 0x1e2   :  { %2525 = vst [vmem:[%s3838_s3 + $0xe0] sm:$0xff] %v2493_v53  ;;  %v2495_v56 = vsel %vm2431_vm13, %v2395_v36, %v2463_v41  ;;  %vm2432_vm15 = vcmp.gt.f32.partialorder %v2397_v42, 0.0  ;;  %v2464_v57 = vmul.f32 0.2, %v2397_v42  ;;  %v2358_v45 = vpop.f32.mrf.mxu0  ;;  %v2399_v47 = vpop.f32.mrf.mxu1 }
 0x1e3   :  { %2527 = vst [vmem:[%s3838_s3 + $0xf0] sm:$0xff] %v2495_v56  ;;  %v2494_v46 = vsel %vm2430_vm14, %v2356_v39, %v2462_v55 }
 0x1e4   :  { %2526 = vst [vmem:[%s3838_s3 + $0xe8] sm:$0xff] %v2494_v46  ;;  %v2496_v48 = vsel %vm2432_vm15, %v2397_v42, %v2464_v57 }
 0x1e5   :  { %2529 = vst.msk [vmem:[%s3838_s3 + $0xf8] sm:$0xff] %vm2528_vm0, %v2496_v48 }
 0x1e6   :  { %2534 = vsyncpa [#allocation3], 1 }
 0x1e7   :  { %2535 = vsyncpa [#allocation5], 1 }

// kernel: ae_forward.13
= control target key start
LH: loop header
LB: loop body
LE: loop exit
PB: predicated region body
PF: predicated region fallthrough
CT: control target
= control target key end

     0   :  { %s1605_s1 = inlined_call_operand.vmem [shape: bf16[256,1024], index: 1, kind: input, shape index: {}]   ;;  %s1606_s0 = inlined_call_operand.vmem [shape: f32[8,256], index: 0, kind: input, shape index: {}]   ;;  %s1607_s2 = inlined_call_operand.vmem [shape: f32[1,1024], index: 2, kind: input, shape index: {}]   ;;  %s1608_s3 = inlined_call_operand.vmem [shape: f32[8,1024], index: 3, kind: output, shape index: {}]  }
   0x1   :  { %v74_v0 = vld [vmem:[%s1605_s1 + $0x1c0] sm:$0xff]  ;;  %v75_v2 = vld [vmem:[%s1605_s1 + $0x1c8] sm:$0xff] }
   0x2   :  { %v78_v1 = vld [vmem:[%s1605_s1 + $0x1e0] sm:$0xff]  ;;  %v79_v4 = vld [vmem:[%s1605_s1 + $0x1e8] sm:$0xff] }
   0x3   :  { %v1085_v3 = vcombine.high %v74_v0, %v78_v1  ;;  %v1084_v5 = vcombine.low %v74_v0, %v78_v1  ;;  %v66_v6 = vld [vmem:[%s1605_s1 + $0x180] sm:$0xff]  ;;  %v1087_v8 = vcombine.high %v75_v2, %v79_v4  ;;  %v1086_v9 = vcombine.low %v75_v2, %v79_v4  ;;  %v67_v11 = vld [vmem:[%s1605_s1 + $0x188] sm:$0xff] }
   0x4   :  { %v70_v7 = vld [vmem:[%s1605_s1 + $0x1a0] sm:$0xff]  ;;  %v71_v12 = vld [vmem:[%s1605_s1 + $0x1a8] sm:$0xff] }
   0x5   :  { %v1077_v10 = vcombine.high %v66_v6, %v70_v7  ;;  %v58_v13 = vld [vmem:[%s1605_s1 + $0x140] sm:$0xff]  ;;  %828 = vmatprep.subr.bf16.mxu0 %v1085_v3  ;;  %v1079_v14 = vcombine.high %v67_v11, %v71_v12  ;;  %v59_v16 = vld [vmem:[%s1605_s1 + $0x148] sm:$0xff]  ;;  %869 = vmatprep.subr.bf16.mxu1 %v1087_v8  ;;  %v1076_v18 = vcombine.low %v66_v6, %v70_v7 }
   0x6   :  { %v62_v15 = vld [vmem:[%s1605_s1 + $0x160] sm:$0xff]  ;;  %v63_v17 = vld [vmem:[%s1605_s1 + $0x168] sm:$0xff]  ;;  %829 = vmatpush1.bf16.msra.mxu0 %v1084_v5  ;;  %870 = vmatpush1.bf16.msra.mxu1 %v1086_v9  ;;  %v1078_v19 = vcombine.low %v67_v11, %v71_v12 }
   0x7   :  { %830 = vmatprep.subr.bf16.mxu0 %v1077_v10  ;;  %v1069_v20 = vcombine.high %v58_v13, %v62_v15  ;;  %871 = vmatprep.subr.bf16.mxu1 %v1079_v14  ;;  %v1071_v21 = vcombine.high %v59_v16, %v63_v17  ;;  %v50_v22 = vld [vmem:[%s1605_s1 + $0x100] sm:$0xff]  ;;  %v51_v24 = vld [vmem:[%s1605_s1 + $0x108] sm:$0xff]  ;;  %v1068_v26 = vcombine.low %v58_v13, %v62_v15 }
   0x8   :  { %v54_v23 = vld [vmem:[%s1605_s1 + $0x120] sm:$0xff]  ;;  %v55_v25 = vld [vmem:[%s1605_s1 + $0x128] sm:$0xff]  ;;  %v1070_v27 = vcombine.low %v59_v16, %v63_v17 }
   0x9   :  { %v1061_v28 = vcombine.high %v50_v22, %v54_v23  ;;  %v1063_v29 = vcombine.high %v51_v24, %v55_v25  ;;  %v42_v30 = vld [vmem:[%s1605_s1 + $0xc0] sm:$0xff]  ;;  %v43_v32 = vld [vmem:[%s1605_s1 + $0xc8] sm:$0xff]  ;;  %v1060_v34 = vcombine.low %v50_v22, %v54_v23  ;;  %v1062_v35 = vcombine.low %v51_v24, %v55_v25 }
   0xa   :  { %831 = vmatpush1.bf16.msra.mxu0 %v1076_v18  ;;  %872 = vmatpush1.bf16.msra.mxu1 %v1078_v19  ;;  %v46_v31 = vld [vmem:[%s1605_s1 + $0xe0] sm:$0xff]  ;;  %v47_v33 = vld [vmem:[%s1605_s1 + $0xe8] sm:$0xff] }
   0xb   :  { %832 = vmatprep.subr.bf16.mxu0 %v1069_v20  ;;  %873 = vmatprep.subr.bf16.mxu1 %v1071_v21  ;;  %v1053_v36 = vcombine.high %v42_v30, %v46_v31  ;;  %v1055_v37 = vcombine.high %v43_v32, %v47_v33  ;;  %v34_v38 = vld [vmem:[%s1605_s1 + $0x80] sm:$0xff]  ;;  %v35_v40 = vld [vmem:[%s1605_s1 + $0x88] sm:$0xff]  ;;  %v1052_v42 = vcombine.low %v42_v30, %v46_v31 }
   0xc   :  { %v38_v39 = vld [vmem:[%s1605_s1 + $0xa0] sm:$0xff]  ;;  %v39_v41 = vld [vmem:[%s1605_s1 + $0xa8] sm:$0xff]  ;;  %v1054_v43 = vcombine.low %v43_v32, %v47_v33 }
   0xd   :  { %v1045_v44 = vcombine.high %v34_v38, %v38_v39  ;;  %v1047_v45 = vcombine.high %v35_v40, %v39_v41  ;;  %v26_v46 = vld [vmem:[%s1605_s1 + $0x40] sm:$0xff]  ;;  %v27_v48 = vld [vmem:[%s1605_s1 + $0x48] sm:$0xff]  ;;  %v1044_v50 = vcombine.low %v34_v38, %v38_v39  ;;  %v1046_v51 = vcombine.low %v35_v40, %v39_v41 }
   0xe   :  { %833 = vmatpush1.bf16.msra.mxu0 %v1068_v26  ;;  %874 = vmatpush1.bf16.msra.mxu1 %v1070_v27  ;;  %v30_v47 = vld [vmem:[%s1605_s1 + $0x60] sm:$0xff]  ;;  %v31_v49 = vld [vmem:[%s1605_s1 + $0x68] sm:$0xff] }
   0xf   :  { %834 = vmatprep.subr.bf16.mxu0 %v1061_v28  ;;  %875 = vmatprep.subr.bf16.mxu1 %v1063_v29  ;;  %v1037_v52 = vcombine.high %v26_v46, %v30_v47  ;;  %v15_v53 = vld [vmem:[%s1606_s0 + $0x8] sm:$0xff]  ;;  %v1039_v54 = vcombine.high %v27_v48, %v31_v49  ;;  %v18_v55 = vld [vmem:[%s1605_s1] sm:$0xff]  ;;  %v1036_v60 = vcombine.low %v26_v46, %v30_v47 }
  0x10   :  { %v22_v56 = vld [vmem:[%s1605_s1 + $0x20] sm:$0xff]  ;;  %v1269_v57 = vpack.c.bf16 %v15_v53, %v15_v53  ;;  %v19_v58 = vld [vmem:[%s1605_s1 + $0x8] sm:$0xff]  ;;  %v1038_v61 = vcombine.low %v27_v48, %v31_v49 }
  0x11   :  { %v23_v59 = vld [vmem:[%s1605_s1 + $0x28] sm:$0xff]  ;;  %v1029_v62 = vcombine.high %v18_v55, %v22_v56  ;;  %v138_v0 = vld [vmem:[%s1605_s1 + $0x3c0] sm:$0xff]  ;;  %v1028_v4 = vcombine.low %v18_v55, %v22_v56 }
  0x12   :  { %835 = vmatpush1.bf16.msra.mxu0 %v1060_v34  ;;  %876 = vmatpush1.bf16.msra.mxu1 %v1062_v35  ;;  %v1031_v63 = vcombine.high %v19_v58, %v23_v59  ;;  %v142_v1 = vld [vmem:[%s1605_s1 + $0x3e0] sm:$0xff]  ;;  %v139_v2 = vld [vmem:[%s1605_s1 + $0x3c8] sm:$0xff]  ;;  %v1030_v5 = vcombine.low %v19_v58, %v23_v59 }
  0x13   :  { %836 = vmatprep.subr.bf16.mxu0 %v1053_v36  ;;  %877 = vmatprep.subr.bf16.mxu1 %v1055_v37  ;;  %v143_v3 = vld [vmem:[%s1605_s1 + $0x3e8] sm:$0xff]  ;;  %v1149_v6 = vcombine.high %v138_v0, %v142_v1  ;;  %v130_v8 = vld [vmem:[%s1605_s1 + $0x380] sm:$0xff]  ;;  %v1148_v12 = vcombine.low %v138_v0, %v142_v1  ;;  %v76_v1 = vld [vmem:[%s1605_s1 + $0x1d0] sm:$0xff] }
  0x14   :  { %860 = vmatprep.mubr.bf16.mxu0 %v1269_v57  ;;  %901 = vmatprep.mubr.bf16.mxu1 %v1269_v57  ;;  %v1151_v7 = vcombine.high %v139_v2, %v143_v3  ;;  %v134_v9 = vld [vmem:[%s1605_s1 + $0x3a0] sm:$0xff]  ;;  %v131_v10 = vld [vmem:[%s1605_s1 + $0x388] sm:$0xff]  ;;  %v1150_v13 = vcombine.low %v139_v2, %v143_v3  ;;  %v80_v2 = vld [vmem:[%s1605_s1 + $0x1f0] sm:$0xff] }
  0x15   :  { %v135_v11 = vld [vmem:[%s1605_s1 + $0x3a8] sm:$0xff]  ;;  %v1141_v14 = vcombine.high %v130_v8, %v134_v9  ;;  %v122_v16 = vld [vmem:[%s1605_s1 + $0x340] sm:$0xff]  ;;  %v1140_v20 = vcombine.low %v130_v8, %v134_v9  ;;  %v77_v3 = vld [vmem:[%s1605_s1 + $0x1d8] sm:$0xff]  ;;  %v1089_v8 = vcombine.high %v76_v1, %v80_v2 }
  0x16   :  { %837 = vmatpush1.bf16.msra.mxu0 %v1052_v42  ;;  %878 = vmatpush1.bf16.msra.mxu1 %v1054_v43  ;;  %v1143_v15 = vcombine.high %v131_v10, %v135_v11  ;;  %v126_v17 = vld [vmem:[%s1605_s1 + $0x360] sm:$0xff]  ;;  %v123_v18 = vld [vmem:[%s1605_s1 + $0x348] sm:$0xff]  ;;  %v1142_v21 = vcombine.low %v131_v10, %v135_v11  ;;  %v68_v10 = vld [vmem:[%s1605_s1 + $0x190] sm:$0xff] }
  0x17   :  { %838 = vmatprep.subr.bf16.mxu0 %v1045_v44  ;;  %879 = vmatprep.subr.bf16.mxu1 %v1047_v45  ;;  %v127_v19 = vld [vmem:[%s1605_s1 + $0x368] sm:$0xff]  ;;  %v1133_v22 = vcombine.high %v122_v16, %v126_v17  ;;  %v114_v24 = vld [vmem:[%s1605_s1 + $0x300] sm:$0xff]  ;;  %v1132_v28 = vcombine.low %v122_v16, %v126_v17  ;;  %v72_v11 = vld [vmem:[%s1605_s1 + $0x1b0] sm:$0xff] }
  0x18   :  { %v1135_v23 = vcombine.high %v123_v18, %v127_v19  ;;  %v118_v25 = vld [vmem:[%s1605_s1 + $0x320] sm:$0xff]  ;;  %v115_v26 = vld [vmem:[%s1605_s1 + $0x308] sm:$0xff]  ;;  %v1134_v29 = vcombine.low %v123_v18, %v127_v19  ;;  %v1081_v17 = vcombine.high %v68_v10, %v72_v11  ;;  %v60_v19 = vld [vmem:[%s1605_s1 + $0x150] sm:$0xff] }
  0x19   :  { %v119_v27 = vld [vmem:[%s1605_s1 + $0x328] sm:$0xff]  ;;  %v1125_v30 = vcombine.high %v114_v24, %v118_v25  ;;  %v106_v32 = vld [vmem:[%s1605_s1 + $0x2c0] sm:$0xff]  ;;  %v1124_v36 = vcombine.low %v114_v24, %v118_v25 }
  0x1a   :  { %839 = vmatpush1.bf16.msra.mxu0 %v1044_v50  ;;  %880 = vmatpush1.bf16.msra.mxu1 %v1046_v51  ;;  %v1127_v31 = vcombine.high %v115_v26, %v119_v27  ;;  %v110_v33 = vld [vmem:[%s1605_s1 + $0x2e0] sm:$0xff]  ;;  %v107_v34 = vld [vmem:[%s1605_s1 + $0x2c8] sm:$0xff]  ;;  %v1126_v37 = vcombine.low %v115_v26, %v119_v27  ;;  %v52_v27 = vld [vmem:[%s1605_s1 + $0x110] sm:$0xff] }
  0x1b   :  { %840 = vmatprep.subr.bf16.mxu0 %v1037_v52  ;;  %881 = vmatprep.subr.bf16.mxu1 %v1039_v54  ;;  %v111_v35 = vld [vmem:[%s1605_s1 + $0x2e8] sm:$0xff]  ;;  %v1117_v38 = vcombine.high %v106_v32, %v110_v33  ;;  %v98_v40 = vld [vmem:[%s1605_s1 + $0x280] sm:$0xff]  ;;  %v1116_v44 = vcombine.low %v106_v32, %v110_v33 }
  0x1c   :  { %v1119_v39 = vcombine.high %v107_v34, %v111_v35  ;;  %v102_v41 = vld [vmem:[%s1605_s1 + $0x2a0] sm:$0xff]  ;;  %v99_v42 = vld [vmem:[%s1605_s1 + $0x288] sm:$0xff]  ;;  %v1118_v45 = vcombine.low %v107_v34, %v111_v35  ;;  %v44_v35 = vld [vmem:[%s1605_s1 + $0xd0] sm:$0xff] }
  0x1d   :  { %v103_v43 = vld [vmem:[%s1605_s1 + $0x2a8] sm:$0xff]  ;;  %v1109_v46 = vcombine.high %v98_v40, %v102_v41  ;;  %v90_v48 = vld [vmem:[%s1605_s1 + $0x240] sm:$0xff]  ;;  %v1108_v52 = vcombine.low %v98_v40, %v102_v41 }
  0x1e   :  { %841 = vmatpush1.bf16.msra.mxu0 %v1036_v60  ;;  %882 = vmatpush1.bf16.msra.mxu1 %v1038_v61  ;;  %v1111_v47 = vcombine.high %v99_v42, %v103_v43  ;;  %v94_v49 = vld [vmem:[%s1605_s1 + $0x260] sm:$0xff]  ;;  %v91_v50 = vld [vmem:[%s1605_s1 + $0x248] sm:$0xff]  ;;  %v1110_v53 = vcombine.low %v99_v42, %v103_v43  ;;  %v36_v42 = vld [vmem:[%s1605_s1 + $0x90] sm:$0xff] }
  0x1f   :  { %842 = vmatprep.subr.bf16.mxu0 %v1029_v62  ;;  %883 = vmatprep.subr.bf16.mxu1 %v1031_v63  ;;  %v95_v51 = vld [vmem:[%s1605_s1 + $0x268] sm:$0xff]  ;;  %v1101_v54 = vcombine.high %v90_v48, %v94_v49  ;;  %v82_v56 = vld [vmem:[%s1605_s1 + $0x200] sm:$0xff]  ;;  %v1100_v61 = vcombine.low %v90_v48, %v94_v49  ;;  %v40_v43 = vld [vmem:[%s1605_s1 + $0xb0] sm:$0xff] }
  0x20   :  { %v1103_v55 = vcombine.high %v91_v50, %v95_v51  ;;  %v86_v58 = vld [vmem:[%s1605_s1 + $0x220] sm:$0xff]  ;;  %v83_v59 = vld [vmem:[%s1605_s1 + $0x208] sm:$0xff]  ;;  %v1102_v62 = vcombine.low %v91_v50, %v95_v51  ;;  %v1049_v48 = vcombine.high %v36_v42, %v40_v43  ;;  %v28_v50 = vld [vmem:[%s1605_s1 + $0x50] sm:$0xff] }
  0x21   :  { %v87_v60 = vld [vmem:[%s1605_s1 + $0x228] sm:$0xff]  ;;  %v1093_v63 = vcombine.high %v82_v56, %v86_v58  ;;  %v32_v51 = vld [vmem:[%s1605_s1 + $0x70] sm:$0xff] }
  0x22   :  { %843 = vmatpush1.bf16.msra.mxu0 %v1028_v4  ;;  %884 = vmatpush1.bf16.msra.mxu1 %v1030_v5  ;;  %v1095_v0 = vcombine.high %v83_v59, %v87_v60  ;;  %v81_v4 = vld [vmem:[%s1605_s1 + $0x1f8] sm:$0xff]  ;;  %v1092_v5 = vcombine.low %v82_v56, %v86_v58  ;;  %v1041_v56 = vcombine.high %v28_v50, %v32_v51 }
  0x23   :  { %844 = vmatprep.subr.bf16.mxu0 %v1149_v6  ;;  %885 = vmatprep.subr.bf16.mxu1 %v1151_v7  ;;  %v14_v6 = vld [vmem:[%s1606_s0] sm:$0xff]  ;;  %v1094_v7 = vcombine.low %v83_v59, %v87_v60  ;;  %v1091_v9 = vcombine.high %v77_v3, %v81_v4  ;;  %v1090_v16 = vcombine.low %v77_v3, %v81_v4  ;;  %v20_v59 = vld [vmem:[%s1605_s1 + $0x10] sm:$0xff] }
  0x24   :  { %v24_v60 = vld [vmem:[%s1605_s1 + $0x30] sm:$0xff] }
  0x25   :  { %v140_v3 = vld [vmem:[%s1605_s1 + $0x3d0] sm:$0xff] }
  0x26   :  { %845 = vmatpush2.bf16.msra.mxu0 %v1148_v12  ;;  %886 = vmatpush2.bf16.msra.mxu1 %v1150_v13  ;;  %v1396_v12 = vpack.c.bf16 %v14_v6, %v14_v6  ;;  %v69_v13 = vld [vmem:[%s1605_s1 + $0x198] sm:$0xff]  ;;  %v144_v4 = vld [vmem:[%s1605_s1 + $0x3f0] sm:$0xff] }
  0x27   :  { %846 = vmatprep.subr.bf16.mxu0 %v1141_v14  ;;  %887 = vmatprep.subr.bf16.mxu1 %v1143_v15  ;;  %v73_v14 = vld [vmem:[%s1605_s1 + $0x1b8] sm:$0xff]  ;;  %v1088_v15 = vcombine.low %v76_v1, %v80_v2  ;;  %v1033_v1 = vcombine.high %v20_v59, %v24_v60 }
  0x28   :  { %v1083_v18 = vcombine.high %v69_v13, %v73_v14  ;;  %v1082_v24 = vcombine.low %v69_v13, %v73_v14  ;;  %v145_v6 = vld [vmem:[%s1605_s1 + $0x3f8] sm:$0xff]  ;;  %v136_v13 = vld [vmem:[%s1605_s1 + $0x3b0] sm:$0xff] }
  0x29   :  { %v133_v14 = vld [vmem:[%s1605_s1 + $0x398] sm:$0xff] }
  0x2a   :  { %847 = vmatpush2.bf16.msra.mxu0 %v1140_v20  ;;  %888 = vmatpush2.bf16.msra.mxu1 %v1142_v21  ;;  %v64_v20 = vld [vmem:[%s1605_s1 + $0x170] sm:$0xff]  ;;  %v61_v21 = vld [vmem:[%s1605_s1 + $0x158] sm:$0xff] }
  0x2b   :  { %848 = vmatprep.subr.bf16.mxu0 %v1133_v22  ;;  %889 = vmatprep.subr.bf16.mxu1 %v1135_v23  ;;  %v65_v22 = vld [vmem:[%s1605_s1 + $0x178] sm:$0xff]  ;;  %v1080_v23 = vcombine.low %v68_v10, %v72_v11  ;;  %v1073_v25 = vcombine.high %v60_v19, %v64_v20  ;;  %v132_v11 = vld [vmem:[%s1605_s1 + $0x390] sm:$0xff] }
  0x2c   :  { %v1075_v26 = vcombine.high %v61_v21, %v65_v22  ;;  %v1074_v32 = vcombine.low %v61_v21, %v65_v22  ;;  %v128_v21 = vld [vmem:[%s1605_s1 + $0x370] sm:$0xff]  ;;  %v125_v22 = vld [vmem:[%s1605_s1 + $0x358] sm:$0xff] }
  0x2e   :  { %849 = vmatpush2.bf16.msra.mxu0 %v1132_v28  ;;  %890 = vmatpush2.bf16.msra.mxu1 %v1134_v29  ;;  %v56_v28 = vld [vmem:[%s1605_s1 + $0x130] sm:$0xff]  ;;  %v53_v29 = vld [vmem:[%s1605_s1 + $0x118] sm:$0xff] }
  0x2f   :  { %850 = vmatprep.subr.bf16.mxu0 %v1125_v30  ;;  %891 = vmatprep.subr.bf16.mxu1 %v1127_v31  ;;  %v57_v30 = vld [vmem:[%s1605_s1 + $0x138] sm:$0xff]  ;;  %v1072_v31 = vcombine.low %v60_v19, %v64_v20  ;;  %v1065_v33 = vcombine.high %v52_v27, %v56_v28  ;;  %v124_v20 = vld [vmem:[%s1605_s1 + $0x350] sm:$0xff] }
  0x30   :  { %v1067_v34 = vcombine.high %v53_v29, %v57_v30 }
  0x32   :  { %851 = vmatpush2.bf16.msra.mxu0 %v1124_v36  ;;  %892 = vmatpush2.bf16.msra.mxu1 %v1126_v37  ;;  %v48_v36 = vld [vmem:[%s1605_s1 + $0xf0] sm:$0xff]  ;;  %v49_v37 = vld [vmem:[%s1605_s1 + $0xf8] sm:$0xff] }
  0x33   :  { %852 = vmatprep.subr.bf16.mxu0 %v1117_v38  ;;  %893 = vmatprep.subr.bf16.mxu1 %v1119_v39  ;;  %v1064_v38 = vcombine.low %v52_v27, %v56_v28  ;;  %v1066_v39 = vcombine.low %v53_v29, %v57_v30  ;;  %v1057_v40 = vcombine.high %v44_v35, %v48_v36  ;;  %v116_v28 = vld [vmem:[%s1605_s1 + $0x310] sm:$0xff]  ;;  %v117_v30 = vld [vmem:[%s1605_s1 + $0x318] sm:$0xff] }
  0x34   :  { %v120_v29 = vld [vmem:[%s1605_s1 + $0x330] sm:$0xff] }
  0x36   :  { %853 = vmatpush2.bf16.msra.mxu0 %v1116_v44  ;;  %894 = vmatpush2.bf16.msra.mxu1 %v1118_v45  ;;  %v37_v44 = vld [vmem:[%s1605_s1 + $0x98] sm:$0xff] }
  0x37   :  { %854 = vmatprep.subr.bf16.mxu0 %v1109_v46  ;;  %895 = vmatprep.subr.bf16.mxu1 %v1111_v47  ;;  %v41_v45 = vld [vmem:[%s1605_s1 + $0xb8] sm:$0xff]  ;;  %v1056_v46 = vcombine.low %v44_v35, %v48_v36  ;;  %v108_v36 = vld [vmem:[%s1605_s1 + $0x2d0] sm:$0xff] }
  0x38   :  { %v1051_v49 = vcombine.high %v37_v44, %v41_v45 }
  0x3a   :  { %855 = vmatpush2.bf16.msra.mxu0 %v1108_v52  ;;  %896 = vmatpush2.bf16.msra.mxu1 %v1110_v53  ;;  %v29_v52 = vld [vmem:[%s1605_s1 + $0x58] sm:$0xff] }
  0x3b   :  { %856 = vmatprep.subr.bf16.mxu0 %v1101_v54  ;;  %897 = vmatprep.subr.bf16.mxu1 %v1103_v55  ;;  %v33_v53 = vld [vmem:[%s1605_s1 + $0x78] sm:$0xff]  ;;  %v1048_v54 = vcombine.low %v36_v42, %v40_v43  ;;  %v1050_v55 = vcombine.low %v37_v44, %v41_v45  ;;  %v100_v43 = vld [vmem:[%s1605_s1 + $0x290] sm:$0xff] }
  0x3c   :  { %v1043_v58 = vcombine.high %v29_v52, %v33_v53  ;;  %v104_v44 = vld [vmem:[%s1605_s1 + $0x2b0] sm:$0xff]  ;;  %v101_v45 = vld [vmem:[%s1605_s1 + $0x298] sm:$0xff] }
  0x3e   :  { %857 = vmatpush2.bf16.msra.mxu0 %v1100_v61  ;;  %898 = vmatpush2.bf16.msra.mxu1 %v1102_v62  ;;  %v21_v61 = vld [vmem:[%s1605_s1 + $0x18] sm:$0xff] }
  0x3f   :  { %858 = vmatprep.subr.bf16.mxu0 %v1093_v63  ;;  %899 = vmatprep.subr.bf16.mxu1 %v1095_v0  ;;  %v25_v62 = vld [vmem:[%s1605_s1 + $0x38] sm:$0xff]  ;;  %v1040_v63 = vcombine.low %v28_v50, %v32_v51  ;;  %v1042_v0 = vcombine.low %v29_v52, %v33_v53  ;;  %v92_v51 = vld [vmem:[%s1605_s1 + $0x250] sm:$0xff] }
  0x40   :  { %v1035_v2 = vcombine.high %v21_v61, %v25_v62  ;;  %v96_v52 = vld [vmem:[%s1605_s1 + $0x270] sm:$0xff]  ;;  %v93_v53 = vld [vmem:[%s1605_s1 + $0x258] sm:$0xff] }
  0x42   :  { %859 = vmatpush2.bf16.msra.mxu0 %v1092_v5  ;;  %900 = vmatpush2.bf16.msra.mxu1 %v1094_v7  ;;  %v141_v5 = vld [vmem:[%s1605_s1 + $0x3d8] sm:$0xff]  ;;  %v1032_v7 = vcombine.low %v20_v59, %v24_v60  ;;  %v84_v60 = vld [vmem:[%s1605_s1 + $0x210] sm:$0xff] }
  0x43   :  { %910 = vmatprep.subr.bf16.mxu0 %v1089_v8  ;;  %951 = vmatprep.subr.bf16.mxu1 %v1091_v9  ;;  %v1034_v8 = vcombine.low %v21_v61, %v25_v62  ;;  %v1153_v9 = vcombine.high %v140_v3, %v144_v4  ;;  %v1155_v10 = vcombine.high %v141_v5, %v145_v6  ;;  %v88_v61 = vld [vmem:[%s1605_s1 + $0x230] sm:$0xff]  ;;  %v85_v62 = vld [vmem:[%s1605_s1 + $0x218] sm:$0xff] }
  0x45   :  { %861 = vmatmul.mubr.bf16.vlgmr.msra.gmra.mxu0 %v1396_v12  ;;  %902 = vmatmul.mubr.bf16.vlgmr.msra.gmra.mxu1 %v1396_v12 }
  0x46   :  { %911 = vmatpush1.bf16.msra.mxu0 %v1088_v15  ;;  %952 = vmatpush1.bf16.msra.mxu1 %v1090_v16  ;;  %v137_v15 = vld [vmem:[%s1605_s1 + $0x3b8] sm:$0xff]  ;;  %v1152_v16 = vcombine.low %v140_v3, %v144_v4  ;;  %v1096_v4 = vcombine.low %v84_v60, %v88_v61 }
  0x47   :  { %912 = vmatprep.subr.bf16.mxu0 %v1081_v17  ;;  %953 = vmatprep.subr.bf16.mxu1 %v1083_v18  ;;  %v1154_v17 = vcombine.low %v141_v5, %v145_v6  ;;  %v1145_v18 = vcombine.high %v132_v11, %v136_v13  ;;  %v1147_v19 = vcombine.high %v133_v14, %v137_v15  ;;  %v148_v6 = vlaneseq }
  0x48   :  { %942 = vmatprep.mubr.bf16.mxu0 %v1269_v57  ;;  %983 = vmatprep.mubr.bf16.mxu1 %v1269_v57  ;;  %v45_v57 = vld [vmem:[%s1605_s1 + $0xd8] sm:$0xff] }
  0x49   :  { %v1059_v41 = vcombine.high %v45_v57, %v49_v37  ;;  %v1058_v47 = vcombine.low %v45_v57, %v49_v37  ;;  %v112_v57 = vld [vmem:[%s1605_s1 + $0x2f0] sm:$0xff]  ;;  %v109_v37 = vld [vmem:[%s1605_s1 + $0x2d8] sm:$0xff] }
  0x4a   :  { %913 = vmatpush1.bf16.msra.mxu0 %v1080_v23  ;;  %954 = vmatpush1.bf16.msra.mxu1 %v1082_v24  ;;  %v129_v23 = vld [vmem:[%s1605_s1 + $0x378] sm:$0xff]  ;;  %v1144_v24 = vcombine.low %v132_v11, %v136_v13 }
  0x4b   :  { %914 = vmatprep.subr.bf16.mxu0 %v1073_v25  ;;  %955 = vmatprep.subr.bf16.mxu1 %v1075_v26  ;;  %v1146_v25 = vcombine.low %v133_v14, %v137_v15  ;;  %v1137_v26 = vcombine.high %v124_v20, %v128_v21  ;;  %v1139_v27 = vcombine.high %v125_v22, %v129_v23 }
  0x4e   :  { %915 = vmatpush1.bf16.msra.mxu0 %v1072_v31  ;;  %956 = vmatpush1.bf16.msra.mxu1 %v1074_v32  ;;  %v121_v31 = vld [vmem:[%s1605_s1 + $0x338] sm:$0xff]  ;;  %v1136_v32 = vcombine.low %v124_v20, %v128_v21 }
  0x4f   :  { %916 = vmatprep.subr.bf16.mxu0 %v1065_v33  ;;  %957 = vmatprep.subr.bf16.mxu1 %v1067_v34  ;;  %v1138_v33 = vcombine.low %v125_v22, %v129_v23  ;;  %v1129_v34 = vcombine.high %v116_v28, %v120_v29  ;;  %v1131_v35 = vcombine.high %v117_v30, %v121_v31 }
  0x52   :  { %917 = vmatpush1.bf16.msra.mxu0 %v1064_v38  ;;  %958 = vmatpush1.bf16.msra.mxu1 %v1066_v39  ;;  %v113_v38 = vld [vmem:[%s1605_s1 + $0x2f8] sm:$0xff]  ;;  %v1128_v39 = vcombine.low %v116_v28, %v120_v29 }
  0x53   :  { %918 = vmatprep.subr.bf16.mxu0 %v1057_v40  ;;  %959 = vmatprep.subr.bf16.mxu1 %v1059_v41  ;;  %v1130_v40 = vcombine.low %v117_v30, %v121_v31  ;;  %v1121_v41 = vcombine.high %v108_v36, %v112_v57  ;;  %v1123_v42 = vcombine.high %v109_v37, %v113_v38 }
  0x56   :  { %919 = vmatpush1.bf16.msra.mxu0 %v1056_v46  ;;  %960 = vmatpush1.bf16.msra.mxu1 %v1058_v47  ;;  %v105_v46 = vld [vmem:[%s1605_s1 + $0x2b8] sm:$0xff]  ;;  %v1120_v47 = vcombine.low %v108_v36, %v112_v57 }
  0x57   :  { %920 = vmatprep.subr.bf16.mxu0 %v1049_v48  ;;  %961 = vmatprep.subr.bf16.mxu1 %v1051_v49  ;;  %v1122_v48 = vcombine.low %v109_v37, %v113_v38  ;;  %v1113_v49 = vcombine.high %v100_v43, %v104_v44  ;;  %v1115_v50 = vcombine.high %v101_v45, %v105_v46 }
  0x5a   :  { %921 = vmatpush1.bf16.msra.mxu0 %v1048_v54  ;;  %962 = vmatpush1.bf16.msra.mxu1 %v1050_v55  ;;  %v97_v54 = vld [vmem:[%s1605_s1 + $0x278] sm:$0xff]  ;;  %v1112_v55 = vcombine.low %v100_v43, %v104_v44 }
  0x5b   :  { %922 = vmatprep.subr.bf16.mxu0 %v1041_v56  ;;  %963 = vmatprep.subr.bf16.mxu1 %v1043_v58  ;;  %v1114_v56 = vcombine.low %v101_v45, %v105_v46  ;;  %v1105_v58 = vcombine.high %v92_v51, %v96_v52  ;;  %v1107_v59 = vcombine.high %v93_v53, %v97_v54 }
  0x5e   :  { %923 = vmatpush1.bf16.msra.mxu0 %v1040_v63  ;;  %964 = vmatpush1.bf16.msra.mxu1 %v1042_v0  ;;  %v89_v63 = vld [vmem:[%s1605_s1 + $0x238] sm:$0xff]  ;;  %v1104_v0 = vcombine.low %v92_v51, %v96_v52 }
  0x5f   :  { %924 = vmatprep.subr.bf16.mxu0 %v1033_v1  ;;  %965 = vmatprep.subr.bf16.mxu1 %v1035_v2  ;;  %v1106_v1 = vcombine.low %v93_v53, %v97_v54  ;;  %v1097_v2 = vcombine.high %v84_v60, %v88_v61  ;;  %v1099_v3 = vcombine.high %v85_v62, %v89_v63 }
  0x60   :  { %v1098_v5 = vcombine.low %v85_v62, %v89_v63 }
  0x62   :  { %925 = vmatpush1.bf16.msra.mxu0 %v1032_v7  ;;  %966 = vmatpush1.bf16.msra.mxu1 %v1034_v8  ;;  %v149_v7 = vshrl.u32 %v148_v6, 7 }
  0x63   :  { %926 = vmatprep.subr.bf16.mxu0 %v1153_v9  ;;  %967 = vmatprep.subr.bf16.mxu1 %v1155_v10  ;;  %v146_v9 = vld [vmem:[%s1607_s2] sm:$0xff] }
  0x64   :  { %v150_v8 = vsub.s32 0, %v149_v7  ;;  %v158_v10 = vsub.s32 2, %v149_v7  ;;  %v154_v11 = vsub.s32 1, %v149_v7  ;;  %v162_v13 = vsub.s32 3, %v149_v7 }
  0x65   :  { %v166_v57 = vsub.s32 4, %v149_v7  ;;  %v174_v37 = vsub.s32 6, %v149_v7  ;;  %v170_v38 = vsub.s32 5, %v149_v7 }
  0x66   :  { %927 = vmatpush2.bf16.msra.mxu0 %v1152_v16  ;;  %968 = vmatpush2.bf16.msra.mxu1 %v1154_v17  ;;  %v151_v14 = vrot.slane %v146_v9, %v150_v8  ;;  %v159_v15 = vrot.slane %v146_v9, %v158_v10  ;;  %v155_v16 = vrot.slane %v146_v9, %v154_v11 }
  0x67   :  { %928 = vmatprep.subr.bf16.mxu0 %v1145_v18  ;;  %969 = vmatprep.subr.bf16.mxu1 %v1147_v19  ;;  %v163_v18 = vrot.slane %v146_v9, %v162_v13 }
  0x6a   :  { %929 = vmatpush2.bf16.msra.mxu0 %v1144_v24  ;;  %970 = vmatpush2.bf16.msra.mxu1 %v1146_v25 }
  0x6b   :  { %930 = vmatprep.subr.bf16.mxu0 %v1137_v26  ;;  %971 = vmatprep.subr.bf16.mxu1 %v1139_v27 }
  0x6e   :  { %931 = vmatpush2.bf16.msra.mxu0 %v1136_v32  ;;  %972 = vmatpush2.bf16.msra.mxu1 %v1138_v33 }
  0x6f   :  { %932 = vmatprep.subr.bf16.mxu0 %v1129_v34  ;;  %973 = vmatprep.subr.bf16.mxu1 %v1131_v35 }
  0x72   :  { %933 = vmatpush2.bf16.msra.mxu0 %v1128_v39  ;;  %974 = vmatpush2.bf16.msra.mxu1 %v1130_v40  ;;  %v178_v39 = vsub.s32 7, %v149_v7  ;;  %v167_v40 = vrot.slane %v146_v9, %v166_v57 }
  0x73   :  { %934 = vmatprep.subr.bf16.mxu0 %v1121_v41  ;;  %975 = vmatprep.subr.bf16.mxu1 %v1123_v42  ;;  %v175_v41 = vrot.slane %v146_v9, %v174_v37  ;;  %v171_v42 = vrot.slane %v146_v9, %v170_v38 }
  0x74   :  { %v179_v44 = vrot.slane %v146_v9, %v178_v39 }
  0x76   :  { %935 = vmatpush2.bf16.msra.mxu0 %v1120_v47  ;;  %976 = vmatpush2.bf16.msra.mxu1 %v1122_v48 }
  0x77   :  { %936 = vmatprep.subr.bf16.mxu0 %v1113_v49  ;;  %977 = vmatprep.subr.bf16.mxu1 %v1115_v50 }
  0x7a   :  { %937 = vmatpush2.bf16.msra.mxu0 %v1112_v55  ;;  %978 = vmatpush2.bf16.msra.mxu1 %v1114_v56 }
  0x7b   :  { %938 = vmatprep.subr.bf16.mxu0 %v1105_v58  ;;  %979 = vmatprep.subr.bf16.mxu1 %v1107_v59 }
  0x7e   :  { %939 = vmatpush2.bf16.msra.mxu0 %v1104_v0  ;;  %980 = vmatpush2.bf16.msra.mxu1 %v1106_v1 }
  0x7f   :  { %940 = vmatprep.subr.bf16.mxu0 %v1097_v2  ;;  %981 = vmatprep.subr.bf16.mxu1 %v1099_v3 }
  0x82   :  { %941 = vmatpush2.bf16.msra.mxu0 %v1096_v4  ;;  %982 = vmatpush2.bf16.msra.mxu1 %v1098_v5 }
  0x85   :  { %943 = vmatmul.mubr.bf16.vlgmr.msra.gmra.mxu0 %v1396_v12  ;;  %984 = vmatmul.mubr.bf16.vlgmr.msra.gmra.mxu1 %v1396_v12 }
 0x105   :  { %v862_v17 = vpop.f32.mrf.mxu0  ;;  %v903_v20 = vpop.f32.mrf.mxu1 }
 0x106   :  { %v863_v19 = vadd.f32 %v862_v17, %v151_v14  ;;  %v904_v21 = vadd.f32 %v903_v20, %v159_v15 }
 0x107   :  { %v864_v22 = vpop.f32.mrf.mxu0  ;;  %v905_v24 = vpop.f32.mrf.mxu1 }
 0x108   :  { %vm992_vm0 = vcmp.gt.f32.partialorder %v863_v19, 0.0  ;;  %v1000_v12 = vmul.f32 0.2, %v863_v19  ;;  %v865_v23 = vadd.f32 %v864_v22, %v155_v16  ;;  %vm994_vm1 = vcmp.gt.f32.partialorder %v904_v21, 0.0 }
 0x109   :  { %v1002_v25 = vmul.f32 0.2, %v904_v21  ;;  %v906_v26 = vadd.f32 %v905_v24, %v163_v18  ;;  %v866_v27 = vpop.f32.mrf.mxu0  ;;  %v907_v30 = vpop.f32.mrf.mxu1 }
 0x10a   :  { %v1008_v28 = vsel %vm992_vm0, %v863_v19, %v1000_v12  ;;  %vm993_vm2 = vcmp.gt.f32.partialorder %v865_v23, 0.0  ;;  %v1001_v29 = vmul.f32 0.2, %v865_v23 }
 0x10b   :  { %1016 = vst [vmem:[%s1608_s3] sm:$0xff] %v1008_v28  ;;  %v1010_v31 = vsel %vm994_vm1, %v904_v21, %v1002_v25  ;;  %vm995_vm3 = vcmp.gt.f32.partialorder %v906_v26, 0.0  ;;  %v1003_v32 = vmul.f32 0.2, %v906_v26  ;;  %v867_v33 = vpop.f32.mrf.mxu0  ;;  %v908_v35 = vpop.f32.mrf.mxu1 }
 0x10c   :  { %1018 = vst [vmem:[%s1608_s3 + $0x10] sm:$0xff] %v1010_v31  ;;  %v1009_v34 = vsel %vm993_vm2, %v865_v23, %v1001_v29 }
 0x10d   :  { %1017 = vst [vmem:[%s1608_s3 + $0x8] sm:$0xff] %v1009_v34  ;;  %v1011_v36 = vsel %vm995_vm3, %v906_v26, %v1003_v32 }
 0x10e   :  { %1019 = vst [vmem:[%s1608_s3 + $0x18] sm:$0xff] %v1011_v36 }
 0x145   :  { %v944_v43 = vpop.f32.mrf.mxu0  ;;  %v985_v46 = vpop.f32.mrf.mxu1 }
 0x146   :  { %v945_v45 = vadd.f32 %v944_v43, %v167_v40  ;;  %v986_v47 = vadd.f32 %v985_v46, %v175_v41 }
 0x147   :  { %v946_v48 = vpop.f32.mrf.mxu0  ;;  %v987_v51 = vpop.f32.mrf.mxu1 }
 0x148   :  { %vm996_vm4 = vcmp.gt.f32.partialorder %v945_v45, 0.0  ;;  %v1004_v49 = vmul.f32 0.2, %v945_v45  ;;  %v947_v50 = vadd.f32 %v946_v48, %v171_v42  ;;  %vm998_vm5 = vcmp.gt.f32.partialorder %v986_v47, 0.0 }
 0x149   :  { %v1006_v52 = vmul.f32 0.2, %v986_v47  ;;  %v988_v53 = vadd.f32 %v987_v51, %v179_v44  ;;  %v948_v54 = vpop.f32.mrf.mxu0  ;;  %v989_v58 = vpop.f32.mrf.mxu1 }
 0x14a   :  { %v1012_v55 = vsel %vm996_vm4, %v945_v45, %v1004_v49  ;;  %vm997_vm6 = vcmp.gt.f32.partialorder %v947_v50, 0.0  ;;  %v1005_v56 = vmul.f32 0.2, %v947_v50 }
 0x14b   :  { %1020 = vst [vmem:[%s1608_s3 + $0x20] sm:$0xff] %v1012_v55  ;;  %v1014_v59 = vsel %vm998_vm5, %v986_v47, %v1006_v52  ;;  %vm999_vm7 = vcmp.gt.f32.partialorder %v988_v53, 0.0  ;;  %v1007_v60 = vmul.f32 0.2, %v988_v53  ;;  %v949_v61 = vpop.f32.mrf.mxu0  ;;  %v990_v63 = vpop.f32.mrf.mxu1 }
 0x14c   :  { %1022 = vst [vmem:[%s1608_s3 + $0x30] sm:$0xff] %v1014_v59  ;;  %v1013_v62 = vsel %vm997_vm6, %v947_v50, %v1005_v56 }
 0x14d   :  { %1021 = vst [vmem:[%s1608_s3 + $0x28] sm:$0xff] %v1013_v62  ;;  %v1015_v0 = vsel %vm999_vm7, %v988_v53, %v1007_v60 }
 0x14e   :  { %1023 = vst [vmem:[%s1608_s3 + $0x38] sm:$0xff] %v1015_v0 }

// kernel: ae_forward.9
= control target key start
LH: loop header
LB: loop body
LE: loop exit
PB: predicated region body
PF: predicated region fallthrough
CT: control target
= control target key end

     0   :  { %8 = vsyncpa [#allocation3], 0  ;;  %s6343_s0 = inlined_call_operand.vmem [shape: f32[8,4056], index: 0, kind: input, shape index: {}]   ;;  %s6344_s1 = inlined_call_operand.hbm [shape: bf16[4056,1024], index: 1, kind: input, shape index: {}]   ;;  %s6345_s2 = inlined_call_operand.hbm [shape: f32[1,1024], index: 2, kind: input, shape index: {}]   ;;  %s6346_s3 = inlined_call_operand.vmem [shape: f32[8,1024], index: 3, kind: output, shape index: {}]  }
   0x1   :  { %10 = vsyncpa [#allocation3 + $0x1], 0 }
   0x2   :  { %11 = vsyncpa [#allocation5], 0 }
   0x3   :  { %13 = vsyncpa [#allocation5 + $0x1], 0  ;;  %s5574_s12 = smov 0   ;;  %s5576_s13 = smov 0  }
   0x4   :  { %s5578_s14 = smov 0   ;;  %s5580_s15 = smov 0  }
   0x5 LB: > { %s4116_s16 = sadd.s32 4294967295, %s5547_s15   ;;  %s5594_s17 = sadd.s32 1, %s5547_s15   ;;  %s5547_s15 = sphi %s5580_s15, %s6356_s15   ;;  %s5543_s14 = sphi %s5578_s14, %s6355_s14   ;;  %s5539_s13 = sphi %s5576_s13, %s6354_s13   ;;  %s5535_s12 = sphi %s5574_s12, %s6353_s12  }
   0x6   : > { %s44_s18 = ssub.s32 %s5547_s15, %s5594_s17  ;;  %s47_s19 = sadd.s32 1, %s5543_s14 }
   0x7   : > { %p45_p0 = scmp.eq.s32.totalorder %s44_s18, 0  ;;  %p54_p1 = scmp.ne.s32.totalorder %s5543_s14, %s5539_s13 }
   0x8   : > { %p55_p2 = scmp.eq.s32.totalorder %s5547_s15, 0  ;;  %p60_p3 = scmp.ne.s32.totalorder %s5539_s13, %s5535_s12 }
   0x9   : > { %s5604_s20 = scalar_select %p45_p0, %s5543_s14, %s47_s19  }
   0xa   : > { %p56_p4 = por %p55_p2, %p54_p1  ;;  %p61_p5 = scmp.eq.s32.totalorder %s4116_s16, 0 }
   0xb   : > { %p4656_p6 = scmp.lt.s32.totalorder %s5547_s15, 4  ;;  %s5614_s22 = sand.u32 1, %s5543_s14  }
   0xc   : > { %p5609_p7 = por %p61_p5, %p60_p3  ;;  %s4643_s23 = smul.u32 4056, %s5614_s22 }
   0xd   : > { %s4641_s24 = sshll.u32 %s5547_s15, 7  ;;  %p5618_p8 = pnand %p4656_p6, %p56_p4 }
   0xe   : > { %s6348_s21 = scalar_select %p5609_p7, 1, 0 }
   0xf   : > { %s5625_s28 = scalar_lea.hbm %s6344_s1, %s4641_s24  ;;  %s143_s29 = scalar_lea.vmem [#allocation2], %s4643_s23 }
  0x10   : > { %s150_s30 = sshll.u32 %s143_s29, 4  ;;  %s140_s4 = scalar_lea.sflag [#allocation3], %s5614_s22  ;;  %s5627_s30 = int_to_ptr.vmem [resolvable:$true] %s150_s30 }
  0x11   : > { %s5453_s5 = scalar_lea.hbm %s5625_s28, 64896  ;;  %p5455_p10 = pneg %p5618_p8 }
  0x12   : > { %p5454_p9 = scmp.ne.s32.totalorder %s5625_s28, %s5453_s5  ;;  %s5458_s8 = scalar_lea.hbm %s6344_s1, 259584 }
  0x13   : > { %p5459_p13 = scmp.lt.s32.totalorder %s5625_s28, %s6344_s1  ;;  %p5460_p0 = scmp.lt.s32.totalorder %s5458_s8, %s5453_s5 }
  0x14   : > { %p5456_p11 = pnand %p5455_p10, %p5454_p9 }
  0x15   : > { %p5461_p1 = por %p5460_p0, %p5459_p13 }
  0x16   : > { %p5457_p12 = pneg %p5456_p11 }
  0x18   : > { %p5462_p2 = pnand %p5461_p1, %p5457_p12 }
  0x1a   : > { %5465 = shalt.err (!%p5462_p2)
}
  0x1b   : > { %s5466_s11 = scalar_lea.vmem %s5627_s30, 64896  ;;  %s5549_s12 = smov [#allocation2]  }
  0x1c   : > { %p5467_p3 = scmp.ne.s32.totalorder %s5627_s30, %s5466_s11  ;;  %s5471_s18 = sshll.u32 %s5549_s12, 4  ;;  %s5472_s18 = int_to_ptr.vmem [resolvable:$false] %s5471_s18 }
  0x1d   : > { %s5473_s19 = scalar_lea.vmem %s5472_s18, 129792  ;;  %p5474_p6 = scmp.lt.s32.totalorder %s5627_s30, %s5472_s18 }
  0x1e   : > { %p5469_p4 = pnand %p5467_p3, %p5455_p10  ;;  %p5475_p9 = scmp.lt.s32.totalorder %s5473_s19, %s5466_s11 }
  0x20   : > { %p5470_p5 = pneg %p5469_p4  ;;  %p5476_p11 = por %p5475_p9, %p5474_p6 }
  0x22   : > { %p5477_p13 = pnand %p5476_p11, %p5470_p5 }
  0x24   : > { %5480 = shalt.err (!%p5477_p13)
}
  0x25   : > { %s5550_s23 = smov 512   ;;  %s5551_s24 = smov 128  }
  0x26   : > { %s5552_s26 = smov 8   ;;  %p4125_p12 = scmp.ge.s32.totalorder %s5547_s15, 1 }
  0x27   : > { %4652 = dma.hbm_to_vmem [thread:$0]  (!%p5618_p8), %s5625_s28, 64896, %s5627_s30, %s140_s4, %s5550_s23, %s5551_s24, %s5552_s26  }
  0x28   : > { %p177_p0 = scmp.lt.s32.totalorder %s5547_s15, 5  ;;  %s4122_s27 = sshll.u32 %s5614_s22, 1 }
  0x29   : > { %s4642_s5 = sshll.u32 %s5547_s15, 5  ;;  %s164_s6 = scalar_lea.vmem [#allocation4], %s4122_s27 }
  0x2a   : > { %p5659_p1 = pnand %p4125_p12, %p177_p0  ;;  %s172_s7 = sshll.u32 %s164_s6, 4  ;;  %s173_s7 = int_to_ptr.vmem [resolvable:$true] %s172_s7 }
  0x2b   : > { %s170_s10 = scalar_lea.hbm %s6345_s2, %s4642_s5  ;;  %s161_s11 = scalar_lea.sflag [#allocation5], %s5614_s22 }
  0x2c   : > { %s6350_s29 = scalar_select %p5659_p1, 1, 0 }
  0x2d   : > { %s5481_s12 = scalar_lea.hbm %s170_s10, 32  ;;  %s5486_s4 = scalar_lea.hbm %s6345_s2, 128 }
  0x2e   : > { %p5482_p2 = scmp.ne.s32.totalorder %s170_s10, %s5481_s12  ;;  %p5487_p5 = scmp.lt.s32.totalorder %s170_s10, %s6345_s2 }
  0x2f   : > { %p5488_p6 = scmp.lt.s32.totalorder %s5486_s4, %s5481_s12 }
  0x30   : > { %p5484_p3 = pnand %p5482_p2, %p5455_p10 }
  0x31   : > { %p5489_p9 = por %p5488_p6, %p5487_p5 }
  0x32   : > { %p5485_p4 = pneg %p5484_p3 }
  0x34   : > { %p5490_p11 = pnand %p5489_p9, %p5485_p4 }
  0x36   : > { %5493 = shalt.err (!%p5490_p11)
}
  0x37   : > { %s5494_s23 = scalar_lea.vmem %s173_s7, 32  ;;  %s5553_s22 = smov [#allocation4]  }
  0x38   : > { %p5495_p13 = scmp.ne.s32.totalorder %s173_s7, %s5494_s23  ;;  %s5499_s24 = sshll.u32 %s5553_s22, 4  ;;  %s5500_s24 = int_to_ptr.vmem [resolvable:$false] %s5499_s24 }
  0x39   : > { %s5501_s26 = scalar_lea.vmem %s5500_s24, 64  ;;  %p5502_p2 = scmp.lt.s32.totalorder %s173_s7, %s5500_s24 }
  0x3a   : > { %p5497_p12 = pnand %p5495_p13, %p5455_p10  ;;  %p5503_p3 = scmp.lt.s32.totalorder %s5501_s26, %s5494_s23 }
  0x3c   : > { %p5498_p0 = pneg %p5497_p12  ;;  %p5504_p7 = por %p5503_p3, %p5502_p2 }
  0x3e   : > { %p5505_p1 = pnand %p5504_p7, %p5498_p0 }
  0x40   : > { %5508 = shalt.err (!%p5505_p1)
}
  0x41   : > { %4655 = dma.hbm_to_vmem [thread:$0]  (!%p5618_p8), %s170_s10, 32, %s173_s7, %s161_s11  }
  0x42   : > { %p6351_p4 = scmp.ne.s32.totalorder %s6350_s29, 0 }
  0x43   : > { %s183_s27 = sand.u32 (!%p6351_p4), 1, %s5539_s13   ;;  %p6352_p10 = scmp.ne.s32.totalorder (!%p6351_p4), %s6348_s21, 0 }
  0x44   : > { %181 = sbr.rel (%p6351_p4) target bundleno = 793 (0x319), region = 32  ;;  %s184_s6 = scalar_lea.sflag (!%p6351_p4), [#allocation3], %s183_s27 }
  0x45   : > { %s4644_s5 = smul.u32 (!%p6351_p4), 4056, %s183_s27 }
  0x47   : > { %s5685_s8 = scalar_lea.vmem (!%p6351_p4), [#allocation2], %s4644_s5 }
  0x49   : > { %5526 = dma.done.wait (%p6352_p10), %s184_s6, 64896  }
  0x4a   : > { %5528 = vsyncadd (%p6352_p10), %s184_s6, 4294902400  ;;  %s4126_s9 = sshll.u32 %s183_s27, 1  ;;  %s193_s12 = scalar_lea.sflag [#allocation5], %s183_s27 }
  0x4b   : > { %s5691_s25 = scalar_lea.vmem [#allocation4], %s4126_s9 }
  0x4c   : > { %5530 = dma.done.wait (%p6352_p10), %s193_s12, 32  }
  0x4d   : > { %5532 = vsyncadd (%p6352_p10), %s193_s12, 4294967264  ;;  %v4692_v0 = vld [vmem:[%s5685_s8 + $0x74] ss:$8 sps:$4 sm:$0xff]   ;;  %v4694_v1 = vld [vmem:[%s5685_s8 + $0x70] ss:$8 sps:$4 sm:$0xff]   ;;  %vm3351_vm0 = vcmask 719872  }
  0x4e   : > { %3362 = vmatprep.subr.bf16.mxu0 %v4692_v0  ;;  %v4695_v2 = vld [vmem:[%s5685_s8 + $0x174] ss:$8 sps:$4 sm:$0xff]   ;;  %v4697_v3 = vld [vmem:[%s5685_s8 + $0x170] ss:$8 sps:$4 sm:$0xff]   ;;  %v4698_v4 = vld [vmem:[%s5685_s8 + $0x64] ss:$8 sps:$4 sm:$0xff]  }
  0x4f   : > { %3363 = vmatpush1.bf16.msra.mxu0 %v4694_v1  ;;  %v4700_v5 = vld [vmem:[%s5685_s8 + $0x60] ss:$8 sps:$4 sm:$0xff]   ;;  %3403 = vmatprep.subr.bf16.mxu1 %v4695_v2  ;;  %v4701_v6 = vld [vmem:[%s5685_s8 + $0x164] ss:$8 sps:$4 sm:$0xff]   ;;  %v4704_v8 = vld [vmem:[%s5685_s8 + $0x54] ss:$8 sps:$4 sm:$0xff]  }
  0x50   : > { %3404 = vmatpush1.bf16.msra.mxu1 %v4697_v3  ;;  %3364 = vmatprep.subr.bf16.mxu0 %v4698_v4  ;;  %v4703_v7 = vld [vmem:[%s5685_s8 + $0x160] ss:$8 sps:$4 sm:$0xff]   ;;  %v4706_v9 = vld [vmem:[%s5685_s8 + $0x50] ss:$8 sps:$4 sm:$0xff]   ;;  %v4707_v10 = vld [vmem:[%s5685_s8 + $0x154] ss:$8 sps:$4 sm:$0xff]  }
  0x51   : > { %3405 = vmatprep.subr.bf16.mxu1 %v4701_v6  ;;  %v4710_v11 = vld [vmem:[%s5685_s8 + $0x44] ss:$8 sps:$4 sm:$0xff]   ;;  %v4709_v12 = vld [vmem:[%s5685_s8 + $0x150] ss:$8 sps:$4 sm:$0xff]   ;;  %v4712_v14 = vld [vmem:[%s5685_s8 + $0x40] ss:$8 sps:$4 sm:$0xff]  }
  0x52   : > { %v4713_v13 = vld [vmem:[%s5685_s8 + $0x144] ss:$8 sps:$4 sm:$0xff]   ;;  %v4716_v15 = vld [vmem:[%s5685_s8 + $0x34] ss:$8 sps:$4 sm:$0xff]   ;;  %v4715_v16 = vld [vmem:[%s5685_s8 + $0x140] ss:$8 sps:$4 sm:$0xff]  }
  0x53   : > { %3365 = vmatpush1.bf16.msra.mxu0 %v4700_v5  ;;  %v4719_v17 = vld [vmem:[%s5685_s8 + $0x134] ss:$8 sps:$4 sm:$0xff]   ;;  %v4718_v18 = vld [vmem:[%s5685_s8 + $0x30] ss:$8 sps:$4 sm:$0xff]   ;;  %v4722_v19 = vld [vmem:[%s5685_s8 + $0x24] ss:$8 sps:$4 sm:$0xff]  }
  0x54   : > { %3366 = vmatprep.subr.bf16.mxu0 %v4704_v8  ;;  %3406 = vmatpush1.bf16.msra.mxu1 %v4703_v7  ;;  %v4721_v20 = vld [vmem:[%s5685_s8 + $0x130] ss:$8 sps:$4 sm:$0xff]   ;;  %v4725_v21 = vld [vmem:[%s5685_s8 + $0x124] ss:$8 sps:$4 sm:$0xff]   ;;  %v4724_v22 = vld [vmem:[%s5685_s8 + $0x20] ss:$8 sps:$4 sm:$0xff]  }
  0x55   : > { %3407 = vmatprep.subr.bf16.mxu1 %v4707_v10  ;;  %v4728_v23 = vld [vmem:[%s5685_s8 + $0x14] ss:$8 sps:$4 sm:$0xff]   ;;  %v4727_v24 = vld [vmem:[%s5685_s8 + $0x120] ss:$8 sps:$4 sm:$0xff]   ;;  %v4730_v26 = vld [vmem:[%s5685_s8 + $0x10] ss:$8 sps:$4 sm:$0xff]  }
  0x56   : > { %v4731_v25 = vld [vmem:[%s5685_s8 + $0x114] ss:$8 sps:$4 sm:$0xff]   ;;  %v4734_v27 = vld [vmem:[%s5685_s8 + $0x4] ss:$8 sps:$4 sm:$0xff]   ;;  %v4733_v28 = vld [vmem:[%s5685_s8 + $0x110] ss:$8 sps:$4 sm:$0xff]  }
  0x57   : > { %3367 = vmatpush1.bf16.msra.mxu0 %v4706_v9  ;;  %v4737_v29 = vld [vmem:[%s5685_s8 + $0x104] ss:$8 sps:$4 sm:$0xff]   ;;  %v4736_v30 = vld [vmem:[%s5685_s8] ss:$8 sps:$4 sm:$0xff]   ;;  %v4740_v31 = vld [vmem:[%s5685_s8 + $0xf4] ss:$8 sps:$4 sm:$0xff]  }
  0x58   : > { %3368 = vmatprep.subr.bf16.mxu0 %v4710_v11  ;;  %3408 = vmatpush1.bf16.msra.mxu1 %v4709_v12  ;;  %v4739_v32 = vld [vmem:[%s5685_s8 + $0x100] ss:$8 sps:$4 sm:$0xff]   ;;  %v4743_v33 = vld [vmem:[%s5685_s8 + $0x1f4] ss:$8 sps:$4 sm:$0xff]   ;;  %v4742_v34 = vld [vmem:[%s5685_s8 + $0xf0] ss:$8 sps:$4 sm:$0xff]  }
  0x59   : > { %3409 = vmatprep.subr.bf16.mxu1 %v4713_v13  ;;  %v4746_v35 = vld [vmem:[%s5685_s8 + $0xe4] ss:$8 sps:$4 sm:$0xff]   ;;  %v4745_v36 = vld [vmem:[%s5685_s8 + $0x1f0] ss:$8 sps:$4 sm:$0xff]   ;;  %v4748_v38 = vld [vmem:[%s5685_s8 + $0xe0] ss:$8 sps:$4 sm:$0xff]  }
  0x5a   : > { %v4749_v37 = vld [vmem:[%s5685_s8 + $0x1e4] ss:$8 sps:$4 sm:$0xff]   ;;  %v4752_v39 = vld [vmem:[%s5685_s8 + $0xd4] ss:$8 sps:$4 sm:$0xff]   ;;  %v4751_v40 = vld [vmem:[%s5685_s8 + $0x1e0] ss:$8 sps:$4 sm:$0xff]  }
  0x5b   : > { %3369 = vmatpush1.bf16.msra.mxu0 %v4712_v14  ;;  %v4755_v41 = vld [vmem:[%s5685_s8 + $0x1d4] ss:$8 sps:$4 sm:$0xff]   ;;  %v4754_v42 = vld [vmem:[%s5685_s8 + $0xd0] ss:$8 sps:$4 sm:$0xff]   ;;  %v4758_v43 = vld [vmem:[%s5685_s8 + $0xc4] ss:$8 sps:$4 sm:$0xff]  }
  0x5c   : > { %3370 = vmatprep.subr.bf16.mxu0 %v4716_v15  ;;  %3410 = vmatpush1.bf16.msra.mxu1 %v4715_v16  ;;  %v4757_v44 = vld [vmem:[%s5685_s8 + $0x1d0] ss:$8 sps:$4 sm:$0xff]   ;;  %v4761_v45 = vld [vmem:[%s5685_s8 + $0x1c4] ss:$8 sps:$4 sm:$0xff]   ;;  %v4760_v47 = vld [vmem:[%s5685_s8 + $0xc0] ss:$8 sps:$4 sm:$0xff]  }
  0x5d   : > { %3411 = vmatprep.subr.bf16.mxu1 %v4719_v17  ;;  %v234_v46 = vld [vmem:[%s6343_s0 + $0x8] sm:$0xff]  ;;  %v236_v50 = vld [vmem:[%s6343_s0 + $0x18] sm:$0xff]  ;;  %v233_v4 = vld [vmem:[%s6343_s0] sm:$0xff]  ;;  %vm3355_vm1 = vcmask 1043456  }
  0x5e   : > { %v266_v48 = vpack.c.bf16 %v234_v46, %v234_v46  ;;  %v4764_v49 = vld [vmem:[%s5685_s8 + $0xb4] ss:$8 sps:$4 sm:$0xff]   ;;  %v4763_v51 = vld [vmem:[%s5685_s8 + $0x1c0] ss:$8 sps:$4 sm:$0xff]   ;;  %v268_v52 = vpack.c.bf16 %v236_v50, %v236_v50  ;;  %v4766_v54 = vld [vmem:[%s5685_s8 + $0xb0] ss:$8 sps:$4 sm:$0xff]   ;;  %v265_v7 = vpack.c.bf16 %v233_v4, %v233_v4 }
  0x5f   : > { %3371 = vmatpush1.bf16.msra.mxu0 %v4718_v18  ;;  %v4767_v53 = vld [vmem:[%s5685_s8 + $0x1b4] ss:$8 sps:$4 sm:$0xff]   ;;  %v4770_v55 = vld [vmem:[%s5685_s8 + $0xa4] ss:$8 sps:$4 sm:$0xff]   ;;  %v4769_v56 = vld [vmem:[%s5685_s8 + $0x1b0] ss:$8 sps:$4 sm:$0xff]  }
  0x60   : > { %3372 = vmatprep.subr.bf16.mxu0 %v4722_v19  ;;  %3412 = vmatpush1.bf16.msra.mxu1 %v4721_v20  ;;  %v4773_v57 = vld [vmem:[%s5685_s8 + $0x1a4] ss:$8 sps:$4 sm:$0xff]   ;;  %v4772_v58 = vld [vmem:[%s5685_s8 + $0xa0] ss:$8 sps:$4 sm:$0xff]   ;;  %v4776_v59 = vld [vmem:[%s5685_s8 + $0x94] ss:$8 sps:$4 sm:$0xff]  }
  0x61   : > { %3413 = vmatprep.subr.bf16.mxu1 %v4725_v21  ;;  %3394 = vmatprep.mubr.bf16.mxu0 %v266_v48  ;;  %v4775_v60 = vld [vmem:[%s5685_s8 + $0x1a0] ss:$8 sps:$4 sm:$0xff]   ;;  %v4779_v61 = vld [vmem:[%s5685_s8 + $0x194] ss:$8 sps:$4 sm:$0xff]   ;;  %v4778_v62 = vld [vmem:[%s5685_s8 + $0x90] ss:$8 sps:$4 sm:$0xff]  }
  0x62   : > { %3435 = vmatprep.mubr.bf16.mxu1 %v268_v52  ;;  %v4782_v63 = vld [vmem:[%s5685_s8 + $0x84] ss:$8 sps:$4 sm:$0xff]   ;;  %v4781_v0 = vld [vmem:[%s5685_s8 + $0x190] ss:$8 sps:$4 sm:$0xff]   ;;  %v4784_v1 = vld [vmem:[%s5685_s8 + $0x80] ss:$8 sps:$4 sm:$0xff]  }
  0x63   : > { %3373 = vmatpush1.bf16.msra.mxu0 %v4724_v22  ;;  %v4785_v2 = vld [vmem:[%s5685_s8 + $0x184] ss:$8 sps:$4 sm:$0xff]   ;;  %v4787_v3 = vld [vmem:[%s5685_s8 + $0x180] ss:$8 sps:$4 sm:$0xff]   ;;  %v4790_v5 = vld [vmem:[%s5685_s8 + $0x274] ss:$8 sps:$4 sm:$0xff]  }
  0x64   : > { %3374 = vmatprep.subr.bf16.mxu0 %v4728_v23  ;;  %3414 = vmatpush1.bf16.msra.mxu1 %v4727_v24  ;;  %v235_v6 = vld [vmem:[%s6343_s0 + $0x10] sm:$0xff]  ;;  %v4796_v11 = vld [vmem:[%s5685_s8 + $0x264] ss:$8 sps:$4 sm:$0xff]   ;;  %v4794_v14 = vld [vmem:[%s5685_s8 + $0x260] ss:$8 sps:$4 sm:$0xff]  }
  0x65   : > { %3415 = vmatprep.subr.bf16.mxu1 %v4731_v25  ;;  %v4793_v8 = vld [vmem:[%s5685_s8 + $0x374] ss:$8 sps:$4 sm:$0xff]   ;;  %v4788_v9 = vld [vmem:[%s5685_s8 + $0x270] ss:$8 sps:$4 sm:$0xff]   ;;  %v267_v10 = vpack.c.bf16 %v235_v6, %v235_v6  ;;  %v4799_v13 = vld [vmem:[%s5685_s8 + $0x364] ss:$8 sps:$4 sm:$0xff]  }
  0x66   : > { %v4791_v12 = vld [vmem:[%s5685_s8 + $0x370] ss:$8 sps:$4 sm:$0xff]   ;;  %v4802_v15 = vld [vmem:[%s5685_s8 + $0x254] ss:$8 sps:$4 sm:$0xff]   ;;  %v4797_v16 = vld [vmem:[%s5685_s8 + $0x360] ss:$8 sps:$4 sm:$0xff]  }
  0x67   : > { %3375 = vmatpush1.bf16.msra.mxu0 %v4730_v26  ;;  %v4805_v17 = vld [vmem:[%s5685_s8 + $0x354] ss:$8 sps:$4 sm:$0xff]   ;;  %v4800_v18 = vld [vmem:[%s5685_s8 + $0x250] ss:$8 sps:$4 sm:$0xff]   ;;  %v4808_v19 = vld [vmem:[%s5685_s8 + $0x244] ss:$8 sps:$4 sm:$0xff]  }
  0x68   : > { %3376 = vmatprep.subr.bf16.mxu0 %v4734_v27  ;;  %3416 = vmatpush1.bf16.msra.mxu1 %v4733_v28  ;;  %v4803_v20 = vld [vmem:[%s5685_s8 + $0x350] ss:$8 sps:$4 sm:$0xff]   ;;  %v4811_v21 = vld [vmem:[%s5685_s8 + $0x344] ss:$8 sps:$4 sm:$0xff]   ;;  %v4806_v22 = vld [vmem:[%s5685_s8 + $0x240] ss:$8 sps:$4 sm:$0xff]  }
  0x69   : > { %3417 = vmatprep.subr.bf16.mxu1 %v4737_v29  ;;  %v4814_v23 = vld [vmem:[%s5685_s8 + $0x234] ss:$8 sps:$4 sm:$0xff]   ;;  %v4809_v24 = vld [vmem:[%s5685_s8 + $0x340] ss:$8 sps:$4 sm:$0xff]   ;;  %v4812_v26 = vld [vmem:[%s5685_s8 + $0x230] ss:$8 sps:$4 sm:$0xff]  }
  0x6a   : > { %v4817_v25 = vld [vmem:[%s5685_s8 + $0x334] ss:$8 sps:$4 sm:$0xff]   ;;  %v4820_v27 = vld [vmem:[%s5685_s8 + $0x224] ss:$8 sps:$4 sm:$0xff]   ;;  %v4815_v28 = vld [vmem:[%s5685_s8 + $0x330] ss:$8 sps:$4 sm:$0xff]  }
  0x6b   : > { %3377 = vmatpush1.bf16.msra.mxu0 %v4736_v30  ;;  %v4823_v29 = vld [vmem:[%s5685_s8 + $0x324] ss:$8 sps:$4 sm:$0xff]   ;;  %v4818_v30 = vld [vmem:[%s5685_s8 + $0x220] ss:$8 sps:$4 sm:$0xff]   ;;  %v4836_v46 = vld [vmem:[%s5685_s8 + $0x2f0] ss:$8 sps:$4 sm:$0xff]  }
  0x6c   : > { %3378 = vmatprep.subr.bf16.mxu0 %v4740_v31  ;;  %3418 = vmatpush1.bf16.msra.mxu1 %v4739_v32  ;;  %v4826_v31 = vld [vmem:[%s5685_s8 + $0x214] ss:$8 sps:$4 sm:$0xff]   ;;  %v4821_v32 = vld [vmem:[%s5685_s8 + $0x320] ss:$8 sps:$4 sm:$0xff]   ;;  %v4839_v48 = vld [vmem:[%s5685_s8 + $0x3f0] ss:$8 sps:$4 sm:$0xff]  }
  0x6d   : > { %3419 = vmatprep.subr.bf16.mxu1 %v4743_v33  ;;  %v4829_v33 = vld [vmem:[%s5685_s8 + $0x314] ss:$8 sps:$4 sm:$0xff]   ;;  %v4842_v50 = vld [vmem:[%s5685_s8 + $0x2e0] ss:$8 sps:$4 sm:$0xff]   ;;  %v4872_v6 = vld [vmem:[%s5685_s8 + $0x290] ss:$8 sps:$4 sm:$0xff]  }
  0x6e   : > { %v4845_v52 = vld [vmem:[%s5685_s8 + $0x3e0] ss:$8 sps:$4 sm:$0xff]  }
  0x6f   : > { %3379 = vmatpush2.bf16.msra.mxu0 %v4742_v34  ;;  %v238_v34 = vld [vmem:[%s6343_s0 + $0x28] sm:$0xff] }
  0x70   : > { %3380 = vmatprep.subr.bf16.mxu0 %v4746_v35  ;;  %3420 = vmatpush2.bf16.msra.mxu1 %v4745_v36  ;;  %v4824_v35 = vld [vmem:[%s5685_s8 + $0x210] ss:$8 sps:$4 sm:$0xff]   ;;  %v270_v36 = vpack.c.bf16 %v238_v34, %v238_v34  ;;  %v4869_v4 = vld [vmem:[%s5685_s8 + $0x3a0] ss:$8 sps:$4 sm:$0xff]  }
  0x71   : > { %3421 = vmatprep.subr.bf16.mxu1 %v4749_v37  ;;  %v4832_v37 = vld [vmem:[%s5685_s8 + $0x204] ss:$8 sps:$4 sm:$0xff]   ;;  %v4902_v34 = vld [vmem:[%s5685_s8 + $0x440] ss:$8 sps:$4 sm:$0xff]  }
  0x73   : > { %3381 = vmatpush2.bf16.msra.mxu0 %v4748_v38  ;;  %v240_v38 = vld [vmem:[%s6343_s0 + $0x38] sm:$0xff] }
  0x74   : > { %3382 = vmatprep.subr.bf16.mxu0 %v4752_v39  ;;  %3422 = vmatpush2.bf16.msra.mxu1 %v4751_v40  ;;  %v4827_v39 = vld [vmem:[%s5685_s8 + $0x310] ss:$8 sps:$4 sm:$0xff]   ;;  %v272_v40 = vpack.c.bf16 %v240_v38, %v240_v38 }
  0x75   : > { %3423 = vmatprep.subr.bf16.mxu1 %v4755_v41  ;;  %v4835_v41 = vld [vmem:[%s5685_s8 + $0x304] ss:$8 sps:$4 sm:$0xff]   ;;  %v4908_v38 = vld [vmem:[%s5685_s8 + $0x430] ss:$8 sps:$4 sm:$0xff]  }
  0x77   : > { %3383 = vmatpush2.bf16.msra.mxu0 %v4754_v42  ;;  %v4830_v42 = vld [vmem:[%s5685_s8 + $0x200] ss:$8 sps:$4 sm:$0xff]  }
  0x78   : > { %3384 = vmatprep.subr.bf16.mxu0 %v4758_v43  ;;  %3424 = vmatpush2.bf16.msra.mxu1 %v4757_v44  ;;  %v4838_v43 = vld [vmem:[%s5685_s8 + $0x2f4] ss:$8 sps:$4 sm:$0xff]   ;;  %v4833_v44 = vld [vmem:[%s5685_s8 + $0x300] ss:$8 sps:$4 sm:$0xff]  }
  0x79   : > { %3425 = vmatprep.subr.bf16.mxu1 %v4761_v45  ;;  %v4841_v45 = vld [vmem:[%s5685_s8 + $0x3f4] ss:$8 sps:$4 sm:$0xff]  }
  0x7b   : > { %3385 = vmatpush2.bf16.msra.mxu0 %v4760_v47  ;;  %v4844_v47 = vld [vmem:[%s5685_s8 + $0x2e4] ss:$8 sps:$4 sm:$0xff]  }
  0x7c   : > { %3386 = vmatprep.subr.bf16.mxu0 %v4764_v49  ;;  %3426 = vmatpush2.bf16.msra.mxu1 %v4763_v51  ;;  %v4847_v49 = vld [vmem:[%s5685_s8 + $0x3e4] ss:$8 sps:$4 sm:$0xff]   ;;  %v4850_v51 = vld [vmem:[%s5685_s8 + $0x2d4] ss:$8 sps:$4 sm:$0xff]  }
  0x7d   : > { %3427 = vmatprep.subr.bf16.mxu1 %v4767_v53  ;;  %v4853_v53 = vld [vmem:[%s5685_s8 + $0x3d4] ss:$8 sps:$4 sm:$0xff]  }
  0x7f   : > { %3387 = vmatpush2.bf16.msra.mxu0 %v4766_v54  ;;  %v4848_v54 = vld [vmem:[%s5685_s8 + $0x2d0] ss:$8 sps:$4 sm:$0xff]  }
  0x80   : > { %3388 = vmatprep.subr.bf16.mxu0 %v4770_v55  ;;  %3428 = vmatpush2.bf16.msra.mxu1 %v4769_v56  ;;  %v4856_v55 = vld [vmem:[%s5685_s8 + $0x2c4] ss:$8 sps:$4 sm:$0xff]   ;;  %v4851_v56 = vld [vmem:[%s5685_s8 + $0x3d0] ss:$8 sps:$4 sm:$0xff]  }
  0x81   : > { %3429 = vmatprep.subr.bf16.mxu1 %v4773_v57  ;;  %v4859_v57 = vld [vmem:[%s5685_s8 + $0x3c4] ss:$8 sps:$4 sm:$0xff]  }
  0x83   : > { %3389 = vmatpush2.bf16.msra.mxu0 %v4772_v58  ;;  %v4854_v58 = vld [vmem:[%s5685_s8 + $0x2c0] ss:$8 sps:$4 sm:$0xff]  }
  0x84   : > { %3390 = vmatprep.subr.bf16.mxu0 %v4776_v59  ;;  %3430 = vmatpush2.bf16.msra.mxu1 %v4775_v60  ;;  %v4862_v59 = vld [vmem:[%s5685_s8 + $0x2b4] ss:$8 sps:$4 sm:$0xff]   ;;  %v4857_v60 = vld [vmem:[%s5685_s8 + $0x3c0] ss:$8 sps:$4 sm:$0xff]  }
  0x85   : > { %3431 = vmatprep.subr.bf16.mxu1 %v4779_v61  ;;  %v4865_v61 = vld [vmem:[%s5685_s8 + $0x3b4] ss:$8 sps:$4 sm:$0xff]  }
  0x87   : > { %3391 = vmatpush2.bf16.msra.mxu0 %v4778_v62  ;;  %v4860_v62 = vld [vmem:[%s5685_s8 + $0x2b0] ss:$8 sps:$4 sm:$0xff]  }
  0x88   : > { %3392 = vmatprep.subr.bf16.mxu0 %v4782_v63  ;;  %3432 = vmatpush2.bf16.msra.mxu1 %v4781_v0  ;;  %v4868_v63 = vld [vmem:[%s5685_s8 + $0x2a4] ss:$8 sps:$4 sm:$0xff]   ;;  %v4863_v0 = vld [vmem:[%s5685_s8 + $0x3b0] ss:$8 sps:$4 sm:$0xff]  }
  0x89   : > { %3433 = vmatprep.subr.bf16.mxu1 %v4785_v2  ;;  %v4866_v2 = vld [vmem:[%s5685_s8 + $0x2a0] ss:$8 sps:$4 sm:$0xff]  }
  0x8b   : > { %3393 = vmatpush2.bf16.msra.mxu0 %v4784_v1  ;;  %v4871_v1 = vld [vmem:[%s5685_s8 + $0x3a4] ss:$8 sps:$4 sm:$0xff]  }
  0x8c   : > { %3444 = vmatprep.subr.bf16.mxu0 %v4790_v5  ;;  %3434 = vmatpush2.bf16.msra.mxu1 %v4787_v3  ;;  %v4874_v3 = vld [vmem:[%s5685_s8 + $0x294] ss:$8 sps:$4 sm:$0xff]  }
  0x8d   : > { %3485 = vmatprep.subr.bf16.mxu1 %v4793_v8  ;;  %v4877_v5 = vld [vmem:[%s5685_s8 + $0x394] ss:$8 sps:$4 sm:$0xff]   ;;  %v4875_v8 = vld [vmem:[%s5685_s8 + $0x390] ss:$8 sps:$4 sm:$0xff]  }
  0x8e   : > { %3395 = vmatmul.mubr.bf16.vlgmr.msra.gmra.mxu0 %v265_v7  ;;  %v4880_v7 = vld [vmem:[%s5685_s8 + $0x284] ss:$8 sps:$4 sm:$0xff]  }
  0x8f   : > { %3445 = vmatpush1.bf16.msra.mxu0 %v4788_v9  ;;  %3436 = vmatmul.mubr.bf16.vlgmr.msra.gmra.mxu1 %v267_v10  ;;  %v4878_v9 = vld [vmem:[%s5685_s8 + $0x280] ss:$8 sps:$4 sm:$0xff]   ;;  %v4883_v10 = vld [vmem:[%s5685_s8 + $0x384] ss:$8 sps:$4 sm:$0xff]  }
  0x90   : > { %3446 = vmatprep.subr.bf16.mxu0 %v4796_v11  ;;  %3486 = vmatpush1.bf16.msra.mxu1 %v4791_v12  ;;  %v4881_v11 = vld [vmem:[%s5685_s8 + $0x380] ss:$8 sps:$4 sm:$0xff]  }
  0x91   : > { %3487 = vmatprep.subr.bf16.mxu1 %v4799_v13  ;;  %3476 = vmatprep.mubr.bf16.mxu0 %v270_v36  ;;  %v237_v12 = vld [vmem:[%s6343_s0 + $0x20] sm:$0xff]  ;;  %v4886_v13 = vld [vmem:[%s5685_s8 + $0x474] ss:$8 sps:$4 sm:$0xff]  }
  0x92   : > { %3517 = vmatprep.mubr.bf16.mxu1 %v272_v40  ;;  %v4905_v36 = vld [vmem:[%s5685_s8 + $0x540] ss:$8 sps:$4 sm:$0xff]   ;;  %v4911_v40 = vld [vmem:[%s5685_s8 + $0x530] ss:$8 sps:$4 sm:$0xff]  }
  0x93   : > { %3447 = vmatpush1.bf16.msra.mxu0 %v4794_v14  ;;  %v239_v14 = vld [vmem:[%s6343_s0 + $0x30] sm:$0xff] }
  0x94   : > { %3448 = vmatprep.subr.bf16.mxu0 %v4802_v15  ;;  %3488 = vmatpush1.bf16.msra.mxu1 %v4797_v16  ;;  %v269_v15 = vpack.c.bf16 %v237_v12, %v237_v12  ;;  %v4889_v16 = vld [vmem:[%s5685_s8 + $0x574] ss:$8 sps:$4 sm:$0xff]   ;;  %v4965_v12 = vld [vmem:[%s5685_s8 + $0x5a0] ss:$8 sps:$4 sm:$0xff]  }
  0x95   : > { %3489 = vmatprep.subr.bf16.mxu1 %v4805_v17  ;;  %v4884_v17 = vld [vmem:[%s5685_s8 + $0x470] ss:$8 sps:$4 sm:$0xff]  }
  0x97   : > { %3449 = vmatpush1.bf16.msra.mxu0 %v4800_v18  ;;  %v271_v18 = vpack.c.bf16 %v239_v14, %v239_v14  ;;  %v4968_v14 = vld [vmem:[%s5685_s8 + $0x490] ss:$8 sps:$4 sm:$0xff]  }
  0x98   : > { %3450 = vmatprep.subr.bf16.mxu0 %v4808_v19  ;;  %3490 = vmatpush1.bf16.msra.mxu1 %v4803_v20  ;;  %v4892_v19 = vld [vmem:[%s5685_s8 + $0x464] ss:$8 sps:$4 sm:$0xff]   ;;  %v4887_v20 = vld [vmem:[%s5685_s8 + $0x570] ss:$8 sps:$4 sm:$0xff]  }
  0x99   : > { %3491 = vmatprep.subr.bf16.mxu1 %v4811_v21  ;;  %v4895_v21 = vld [vmem:[%s5685_s8 + $0x564] ss:$8 sps:$4 sm:$0xff]  }
  0x9b   : > { %3451 = vmatpush1.bf16.msra.mxu0 %v4806_v22  ;;  %v242_v22 = vld [vmem:[%s6343_s0 + $0x48] sm:$0xff] }
  0x9c   : > { %3452 = vmatprep.subr.bf16.mxu0 %v4814_v23  ;;  %3492 = vmatpush1.bf16.msra.mxu1 %v4809_v24  ;;  %v4890_v23 = vld [vmem:[%s5685_s8 + $0x460] ss:$8 sps:$4 sm:$0xff]   ;;  %v274_v24 = vpack.c.bf16 %v242_v22, %v242_v22 }
  0x9d   : > { %3493 = vmatprep.subr.bf16.mxu1 %v4817_v25  ;;  %v4898_v25 = vld [vmem:[%s5685_s8 + $0x454] ss:$8 sps:$4 sm:$0xff]   ;;  %v4977_v22 = vld [vmem:[%s5685_s8 + $0x580] ss:$8 sps:$4 sm:$0xff]  }
  0x9f   : > { %3453 = vmatpush1.bf16.msra.mxu0 %v4812_v26  ;;  %v244_v26 = vld [vmem:[%s6343_s0 + $0x58] sm:$0xff] }
  0xa0   : > { %3454 = vmatprep.subr.bf16.mxu0 %v4820_v27  ;;  %3494 = vmatpush1.bf16.msra.mxu1 %v4815_v28  ;;  %v4893_v27 = vld [vmem:[%s5685_s8 + $0x560] ss:$8 sps:$4 sm:$0xff]   ;;  %v276_v28 = vpack.c.bf16 %v244_v26, %v244_v26 }
  0xa1   : > { %3495 = vmatprep.subr.bf16.mxu1 %v4823_v29  ;;  %v4901_v29 = vld [vmem:[%s5685_s8 + $0x554] ss:$8 sps:$4 sm:$0xff]  }
  0xa2   : > { %v248_v26 = vld [vmem:[%s6343_s0 + $0x78] sm:$0xff] }
  0xa3   : > { %3455 = vmatpush1.bf16.msra.mxu0 %v4818_v30  ;;  %v4896_v30 = vld [vmem:[%s5685_s8 + $0x450] ss:$8 sps:$4 sm:$0xff]  }
  0xa4   : > { %3456 = vmatprep.subr.bf16.mxu0 %v4826_v31  ;;  %3496 = vmatpush1.bf16.msra.mxu1 %v4821_v32  ;;  %v4904_v31 = vld [vmem:[%s5685_s8 + $0x444] ss:$8 sps:$4 sm:$0xff]   ;;  %v4899_v32 = vld [vmem:[%s5685_s8 + $0x550] ss:$8 sps:$4 sm:$0xff]  }
  0xa5   : > { %3497 = vmatprep.subr.bf16.mxu1 %v4829_v33  ;;  %v4907_v33 = vld [vmem:[%s5685_s8 + $0x544] ss:$8 sps:$4 sm:$0xff]  }
  0xa7   : > { %3457 = vmatpush1.bf16.msra.mxu0 %v4824_v35  ;;  %v4910_v35 = vld [vmem:[%s5685_s8 + $0x434] ss:$8 sps:$4 sm:$0xff]  }
  0xa8   : > { %3458 = vmatprep.subr.bf16.mxu0 %v4832_v37  ;;  %3498 = vmatpush1.bf16.msra.mxu1 %v4827_v39  ;;  %v4913_v37 = vld [vmem:[%s5685_s8 + $0x534] ss:$8 sps:$4 sm:$0xff]   ;;  %v4916_v39 = vld [vmem:[%s5685_s8 + $0x424] ss:$8 sps:$4 sm:$0xff]  }
  0xa9   : > { %3499 = vmatprep.subr.bf16.mxu1 %v4835_v41  ;;  %v4919_v41 = vld [vmem:[%s5685_s8 + $0x524] ss:$8 sps:$4 sm:$0xff]  }
  0xab   : > { %3459 = vmatpush1.bf16.msra.mxu0 %v4830_v42  ;;  %v4914_v42 = vld [vmem:[%s5685_s8 + $0x420] ss:$8 sps:$4 sm:$0xff]  }
  0xac   : > { %3460 = vmatprep.subr.bf16.mxu0 %v4838_v43  ;;  %3500 = vmatpush1.bf16.msra.mxu1 %v4833_v44  ;;  %v4922_v43 = vld [vmem:[%s5685_s8 + $0x414] ss:$8 sps:$4 sm:$0xff]   ;;  %v4917_v44 = vld [vmem:[%s5685_s8 + $0x520] ss:$8 sps:$4 sm:$0xff]  }
  0xad   : > { %3501 = vmatprep.subr.bf16.mxu1 %v4841_v45  ;;  %v4925_v45 = vld [vmem:[%s5685_s8 + $0x514] ss:$8 sps:$4 sm:$0xff]  }
  0xaf   : > { %3461 = vmatpush2.bf16.msra.mxu0 %v4836_v46  ;;  %v4920_v46 = vld [vmem:[%s5685_s8 + $0x410] ss:$8 sps:$4 sm:$0xff]  }
  0xb0   : > { %3462 = vmatprep.subr.bf16.mxu0 %v4844_v47  ;;  %3502 = vmatpush2.bf16.msra.mxu1 %v4839_v48  ;;  %v4928_v47 = vld [vmem:[%s5685_s8 + $0x404] ss:$8 sps:$4 sm:$0xff]   ;;  %v4923_v48 = vld [vmem:[%s5685_s8 + $0x510] ss:$8 sps:$4 sm:$0xff]  }
  0xb1   : > { %3503 = vmatprep.subr.bf16.mxu1 %v4847_v49  ;;  %v4931_v49 = vld [vmem:[%s5685_s8 + $0x504] ss:$8 sps:$4 sm:$0xff]  }
  0xb3   : > { %3463 = vmatpush2.bf16.msra.mxu0 %v4842_v50  ;;  %v4926_v50 = vld [vmem:[%s5685_s8 + $0x400] ss:$8 sps:$4 sm:$0xff]  }
  0xb4   : > { %3464 = vmatprep.subr.bf16.mxu0 %v4850_v51  ;;  %3504 = vmatpush2.bf16.msra.mxu1 %v4845_v52  ;;  %v4934_v51 = vld [vmem:[%s5685_s8 + $0x4f4] ss:$8 sps:$4 sm:$0xff]   ;;  %v4929_v52 = vld [vmem:[%s5685_s8 + $0x500] ss:$8 sps:$4 sm:$0xff]  }
  0xb5   : > { %3505 = vmatprep.subr.bf16.mxu1 %v4853_v53  ;;  %v4937_v53 = vld [vmem:[%s5685_s8 + $0x5f4] ss:$8 sps:$4 sm:$0xff]  }
  0xb7   : > { %3465 = vmatpush2.bf16.msra.mxu0 %v4848_v54  ;;  %v4932_v54 = vld [vmem:[%s5685_s8 + $0x4f0] ss:$8 sps:$4 sm:$0xff]  }
  0xb8   : > { %3466 = vmatprep.subr.bf16.mxu0 %v4856_v55  ;;  %3506 = vmatpush2.bf16.msra.mxu1 %v4851_v56  ;;  %v4940_v55 = vld [vmem:[%s5685_s8 + $0x4e4] ss:$8 sps:$4 sm:$0xff]   ;;  %v4935_v56 = vld [vmem:[%s5685_s8 + $0x5f0] ss:$8 sps:$4 sm:$0xff]  }
  0xb9   : > { %3507 = vmatprep.subr.bf16.mxu1 %v4859_v57  ;;  %v4943_v57 = vld [vmem:[%s5685_s8 + $0x5e4] ss:$8 sps:$4 sm:$0xff]  }
  0xbb   : > { %3467 = vmatpush2.bf16.msra.mxu0 %v4854_v58  ;;  %v4938_v58 = vld [vmem:[%s5685_s8 + $0x4e0] ss:$8 sps:$4 sm:$0xff]  }
  0xbc   : > { %3468 = vmatprep.subr.bf16.mxu0 %v4862_v59  ;;  %3508 = vmatpush2.bf16.msra.mxu1 %v4857_v60  ;;  %v4946_v59 = vld [vmem:[%s5685_s8 + $0x4d4] ss:$8 sps:$4 sm:$0xff]   ;;  %v4941_v60 = vld [vmem:[%s5685_s8 + $0x5e0] ss:$8 sps:$4 sm:$0xff]  }
  0xbd   : > { %3509 = vmatprep.subr.bf16.mxu1 %v4865_v61  ;;  %v4949_v61 = vld [vmem:[%s5685_s8 + $0x5d4] ss:$8 sps:$4 sm:$0xff]  }
  0xbf   : > { %3469 = vmatpush2.bf16.msra.mxu0 %v4860_v62  ;;  %v4944_v62 = vld [vmem:[%s5685_s8 + $0x4d0] ss:$8 sps:$4 sm:$0xff]  }
  0xc0   : > { %3470 = vmatprep.subr.bf16.mxu0 %v4868_v63  ;;  %3510 = vmatpush2.bf16.msra.mxu1 %v4863_v0  ;;  %v4952_v63 = vld [vmem:[%s5685_s8 + $0x4c4] ss:$8 sps:$4 sm:$0xff]   ;;  %v4947_v0 = vld [vmem:[%s5685_s8 + $0x5d0] ss:$8 sps:$4 sm:$0xff]  }
  0xc1   : > { %3511 = vmatprep.subr.bf16.mxu1 %v4871_v1  ;;  %v4955_v1 = vld [vmem:[%s5685_s8 + $0x5c4] ss:$8 sps:$4 sm:$0xff]  }
  0xc3   : > { %3471 = vmatpush2.bf16.msra.mxu0 %v4866_v2  ;;  %v4950_v2 = vld [vmem:[%s5685_s8 + $0x4c0] ss:$8 sps:$4 sm:$0xff]  }
  0xc4   : > { %3472 = vmatprep.subr.bf16.mxu0 %v4874_v3  ;;  %3512 = vmatpush2.bf16.msra.mxu1 %v4869_v4  ;;  %v4958_v3 = vld [vmem:[%s5685_s8 + $0x4b4] ss:$8 sps:$4 sm:$0xff]   ;;  %v4953_v4 = vld [vmem:[%s5685_s8 + $0x5c0] ss:$8 sps:$4 sm:$0xff]  }
  0xc5   : > { %3513 = vmatprep.subr.bf16.mxu1 %v4877_v5  ;;  %v4961_v5 = vld [vmem:[%s5685_s8 + $0x5b4] ss:$8 sps:$4 sm:$0xff]  }
  0xc7   : > { %3473 = vmatpush2.bf16.msra.mxu0 %v4872_v6  ;;  %v4956_v6 = vld [vmem:[%s5685_s8 + $0x4b0] ss:$8 sps:$4 sm:$0xff]  }
  0xc8   : > { %3474 = vmatprep.subr.bf16.mxu0 %v4880_v7  ;;  %3514 = vmatpush2.bf16.msra.mxu1 %v4875_v8  ;;  %v4964_v7 = vld [vmem:[%s5685_s8 + $0x4a4] ss:$8 sps:$4 sm:$0xff]   ;;  %v4959_v8 = vld [vmem:[%s5685_s8 + $0x5b0] ss:$8 sps:$4 sm:$0xff]  }
  0xc9   : > { %3515 = vmatprep.subr.bf16.mxu1 %v4883_v10  ;;  %v4962_v10 = vld [vmem:[%s5685_s8 + $0x4a0] ss:$8 sps:$4 sm:$0xff]  }
  0xcb   : > { %3475 = vmatpush2.bf16.msra.mxu0 %v4878_v9  ;;  %v4967_v9 = vld [vmem:[%s5685_s8 + $0x5a4] ss:$8 sps:$4 sm:$0xff]  }
  0xcc   : > { %3526 = vmatprep.subr.bf16.mxu0 %v4886_v13  ;;  %3516 = vmatpush2.bf16.msra.mxu1 %v4881_v11  ;;  %v4970_v11 = vld [vmem:[%s5685_s8 + $0x494] ss:$8 sps:$4 sm:$0xff]  }
  0xcd   : > { %3567 = vmatprep.subr.bf16.mxu1 %v4889_v16  ;;  %v4973_v13 = vld [vmem:[%s5685_s8 + $0x594] ss:$8 sps:$4 sm:$0xff]   ;;  %v4971_v16 = vld [vmem:[%s5685_s8 + $0x590] ss:$8 sps:$4 sm:$0xff]  }
  0xce   : > { %3477 = vmatmul.mubr.bf16.vlgmr.msra.gmra.mxu0 %v269_v15  ;;  %v4976_v15 = vld [vmem:[%s5685_s8 + $0x484] ss:$8 sps:$4 sm:$0xff]  }
  0xcf   : > { %3527 = vmatpush1.bf16.msra.mxu0 %v4884_v17  ;;  %3518 = vmatmul.mubr.bf16.vlgmr.msra.gmra.mxu1 %v271_v18  ;;  %v4974_v17 = vld [vmem:[%s5685_s8 + $0x480] ss:$8 sps:$4 sm:$0xff]   ;;  %v4979_v18 = vld [vmem:[%s5685_s8 + $0x584] ss:$8 sps:$4 sm:$0xff]  }
  0xd0   : > { %3528 = vmatprep.subr.bf16.mxu0 %v4892_v19  ;;  %3568 = vmatpush1.bf16.msra.mxu1 %v4887_v20  ;;  %v241_v19 = vld [vmem:[%s6343_s0 + $0x40] sm:$0xff]  ;;  %v4982_v20 = vld [vmem:[%s5685_s8 + $0x674] ss:$8 sps:$4 sm:$0xff]  }
  0xd1   : > { %3558 = vmatprep.mubr.bf16.mxu0 %v274_v24  ;;  %3569 = vmatprep.subr.bf16.mxu1 %v4895_v21  ;;  %v246_v21 = vld [vmem:[%s6343_s0 + $0x68] sm:$0xff]  ;;  %v273_v24 = vpack.c.bf16 %v241_v19, %v241_v19  ;;  %v806_v19 = vlaneseq }
  0xd2   : > { %3599 = vmatprep.mubr.bf16.mxu1 %v276_v28  ;;  %v278_v28 = vpack.c.bf16 %v246_v21, %v246_v21  ;;  %v5061_v21 = vld [vmem:[%s5685_s8 + $0x7a0] ss:$8 sps:$4 sm:$0xff]  }
  0xd3   : > { %3529 = vmatpush1.bf16.msra.mxu0 %v4890_v23  ;;  %v243_v23 = vld [vmem:[%s6343_s0 + $0x50] sm:$0xff] }
  0xd4   : > { %3530 = vmatprep.subr.bf16.mxu0 %v4898_v25  ;;  %3570 = vmatpush1.bf16.msra.mxu1 %v4893_v27  ;;  %v4985_v25 = vld [vmem:[%s5685_s8 + $0x774] ss:$8 sps:$4 sm:$0xff]   ;;  %v4980_v27 = vld [vmem:[%s5685_s8 + $0x670] ss:$8 sps:$4 sm:$0xff]  }
  0xd5   : > { %3571 = vmatprep.subr.bf16.mxu1 %v4901_v29  ;;  %v275_v29 = vpack.c.bf16 %v243_v23, %v243_v23  ;;  %v5069_v23 = vld [vmem:[%s5685_s8 + $0x794] ss:$8 sps:$4 sm:$0xff]  }
  0xd7   : > { %3531 = vmatpush1.bf16.msra.mxu0 %v4896_v30  ;;  %v4988_v30 = vld [vmem:[%s5685_s8 + $0x664] ss:$8 sps:$4 sm:$0xff]  }
  0xd8   : > { %3532 = vmatprep.subr.bf16.mxu0 %v4904_v31  ;;  %3572 = vmatpush1.bf16.msra.mxu1 %v4899_v32  ;;  %v4983_v31 = vld [vmem:[%s5685_s8 + $0x770] ss:$8 sps:$4 sm:$0xff]   ;;  %v280_v32 = vpack.c.bf16 %v248_v26, %v248_v26  ;;  %v5072_v26 = vld [vmem:[%s5685_s8 + $0x684] ss:$8 sps:$4 sm:$0xff]  }
  0xd9   : > { %3573 = vmatprep.subr.bf16.mxu1 %v4907_v33  ;;  %v4991_v33 = vld [vmem:[%s5685_s8 + $0x764] ss:$8 sps:$4 sm:$0xff]  }
  0xdb   : > { %3533 = vmatpush1.bf16.msra.mxu0 %v4902_v34  ;;  %v4986_v34 = vld [vmem:[%s5685_s8 + $0x660] ss:$8 sps:$4 sm:$0xff]  }
  0xdc   : > { %3534 = vmatprep.subr.bf16.mxu0 %v4910_v35  ;;  %3574 = vmatpush1.bf16.msra.mxu1 %v4905_v36  ;;  %v4994_v35 = vld [vmem:[%s5685_s8 + $0x654] ss:$8 sps:$4 sm:$0xff]   ;;  %v4989_v36 = vld [vmem:[%s5685_s8 + $0x760] ss:$8 sps:$4 sm:$0xff]  }
  0xdd   : > { %3575 = vmatprep.subr.bf16.mxu1 %v4913_v37  ;;  %v4997_v37 = vld [vmem:[%s5685_s8 + $0x754] ss:$8 sps:$4 sm:$0xff]  }
  0xdf   : > { %3535 = vmatpush1.bf16.msra.mxu0 %v4908_v38  ;;  %v4992_v38 = vld [vmem:[%s5685_s8 + $0x650] ss:$8 sps:$4 sm:$0xff]  }
  0xe0   : > { %3536 = vmatprep.subr.bf16.mxu0 %v4916_v39  ;;  %3576 = vmatpush1.bf16.msra.mxu1 %v4911_v40  ;;  %v5000_v39 = vld [vmem:[%s5685_s8 + $0x644] ss:$8 sps:$4 sm:$0xff]   ;;  %v4995_v40 = vld [vmem:[%s5685_s8 + $0x750] ss:$8 sps:$4 sm:$0xff]  }
  0xe1   : > { %3577 = vmatprep.subr.bf16.mxu1 %v4919_v41  ;;  %v5003_v41 = vld [vmem:[%s5685_s8 + $0x744] ss:$8 sps:$4 sm:$0xff]  }
  0xe3   : > { %3537 = vmatpush1.bf16.msra.mxu0 %v4914_v42  ;;  %v4998_v42 = vld [vmem:[%s5685_s8 + $0x640] ss:$8 sps:$4 sm:$0xff]  }
  0xe4   : > { %3538 = vmatprep.subr.bf16.mxu0 %v4922_v43  ;;  %3578 = vmatpush1.bf16.msra.mxu1 %v4917_v44  ;;  %v5006_v43 = vld [vmem:[%s5685_s8 + $0x634] ss:$8 sps:$4 sm:$0xff]   ;;  %v5001_v44 = vld [vmem:[%s5685_s8 + $0x740] ss:$8 sps:$4 sm:$0xff]  }
  0xe5   : > { %3579 = vmatprep.subr.bf16.mxu1 %v4925_v45  ;;  %v5009_v45 = vld [vmem:[%s5685_s8 + $0x734] ss:$8 sps:$4 sm:$0xff]  }
  0xe7   : > { %3539 = vmatpush1.bf16.msra.mxu0 %v4920_v46  ;;  %v5004_v46 = vld [vmem:[%s5685_s8 + $0x630] ss:$8 sps:$4 sm:$0xff]  }
  0xe8   : > { %3540 = vmatprep.subr.bf16.mxu0 %v4928_v47  ;;  %3580 = vmatpush1.bf16.msra.mxu1 %v4923_v48  ;;  %v5012_v47 = vld [vmem:[%s5685_s8 + $0x624] ss:$8 sps:$4 sm:$0xff]   ;;  %v5007_v48 = vld [vmem:[%s5685_s8 + $0x730] ss:$8 sps:$4 sm:$0xff]  }
  0xe9   : > { %3581 = vmatprep.subr.bf16.mxu1 %v4931_v49  ;;  %v5015_v49 = vld [vmem:[%s5685_s8 + $0x724] ss:$8 sps:$4 sm:$0xff]  }
  0xeb   : > { %3541 = vmatpush1.bf16.msra.mxu0 %v4926_v50  ;;  %v5010_v50 = vld [vmem:[%s5685_s8 + $0x620] ss:$8 sps:$4 sm:$0xff]  }
  0xec   : > { %3542 = vmatprep.subr.bf16.mxu0 %v4934_v51  ;;  %3582 = vmatpush1.bf16.msra.mxu1 %v4929_v52  ;;  %v5018_v51 = vld [vmem:[%s5685_s8 + $0x614] ss:$8 sps:$4 sm:$0xff]   ;;  %v5013_v52 = vld [vmem:[%s5685_s8 + $0x720] ss:$8 sps:$4 sm:$0xff]  }
  0xed   : > { %3583 = vmatprep.subr.bf16.mxu1 %v4937_v53  ;;  %v5021_v53 = vld [vmem:[%s5685_s8 + $0x714] ss:$8 sps:$4 sm:$0xff]  }
  0xef   : > { %3543 = vmatpush2.bf16.msra.mxu0 %v4932_v54  ;;  %v5016_v54 = vld [vmem:[%s5685_s8 + $0x610] ss:$8 sps:$4 sm:$0xff]  }
  0xf0   : > { %3544 = vmatprep.subr.bf16.mxu0 %v4940_v55  ;;  %3584 = vmatpush2.bf16.msra.mxu1 %v4935_v56  ;;  %v5024_v55 = vld [vmem:[%s5685_s8 + $0x604] ss:$8 sps:$4 sm:$0xff]   ;;  %v5019_v56 = vld [vmem:[%s5685_s8 + $0x710] ss:$8 sps:$4 sm:$0xff]  }
  0xf1   : > { %3585 = vmatprep.subr.bf16.mxu1 %v4943_v57  ;;  %v5027_v57 = vld [vmem:[%s5685_s8 + $0x704] ss:$8 sps:$4 sm:$0xff]  }
  0xf3   : > { %3545 = vmatpush2.bf16.msra.mxu0 %v4938_v58  ;;  %v5022_v58 = vld [vmem:[%s5685_s8 + $0x600] ss:$8 sps:$4 sm:$0xff]  }
  0xf4   : > { %3546 = vmatprep.subr.bf16.mxu0 %v4946_v59  ;;  %3586 = vmatpush2.bf16.msra.mxu1 %v4941_v60  ;;  %v5030_v59 = vld [vmem:[%s5685_s8 + $0x6f4] ss:$8 sps:$4 sm:$0xff]   ;;  %v5025_v60 = vld [vmem:[%s5685_s8 + $0x700] ss:$8 sps:$4 sm:$0xff]  }
  0xf5   : > { %3587 = vmatprep.subr.bf16.mxu1 %v4949_v61  ;;  %v5033_v61 = vld [vmem:[%s5685_s8 + $0x7f4] ss:$8 sps:$4 sm:$0xff]  }
  0xf7   : > { %3547 = vmatpush2.bf16.msra.mxu0 %v4944_v62  ;;  %v5028_v62 = vld [vmem:[%s5685_s8 + $0x6f0] ss:$8 sps:$4 sm:$0xff]  }
  0xf8   : > { %3548 = vmatprep.subr.bf16.mxu0 %v4952_v63  ;;  %3588 = vmatpush2.bf16.msra.mxu1 %v4947_v0  ;;  %v5036_v63 = vld [vmem:[%s5685_s8 + $0x6e4] ss:$8 sps:$4 sm:$0xff]   ;;  %v5031_v0 = vld [vmem:[%s5685_s8 + $0x7f0] ss:$8 sps:$4 sm:$0xff]  }
  0xf9   : > { %3589 = vmatprep.subr.bf16.mxu1 %v4955_v1  ;;  %v5039_v1 = vld [vmem:[%s5685_s8 + $0x7e4] ss:$8 sps:$4 sm:$0xff]  }
  0xfb   : > { %3549 = vmatpush2.bf16.msra.mxu0 %v4950_v2  ;;  %v5034_v2 = vld [vmem:[%s5685_s8 + $0x6e0] ss:$8 sps:$4 sm:$0xff]  }
  0xfc   : > { %3550 = vmatprep.subr.bf16.mxu0 %v4958_v3  ;;  %3590 = vmatpush2.bf16.msra.mxu1 %v4953_v4  ;;  %v5042_v3 = vld [vmem:[%s5685_s8 + $0x6d4] ss:$8 sps:$4 sm:$0xff]   ;;  %v5037_v4 = vld [vmem:[%s5685_s8 + $0x7e0] ss:$8 sps:$4 sm:$0xff]  }
  0xfd   : > { %3591 = vmatprep.subr.bf16.mxu1 %v4961_v5  ;;  %v5045_v5 = vld [vmem:[%s5685_s8 + $0x7d4] ss:$8 sps:$4 sm:$0xff]  }
  0xff   : > { %3551 = vmatpush2.bf16.msra.mxu0 %v4956_v6  ;;  %v5040_v6 = vld [vmem:[%s5685_s8 + $0x6d0] ss:$8 sps:$4 sm:$0xff]  }
 0x100   : > { %3552 = vmatprep.subr.bf16.mxu0 %v4964_v7  ;;  %3592 = vmatpush2.bf16.msra.mxu1 %v4959_v8  ;;  %v5048_v7 = vld [vmem:[%s5685_s8 + $0x6c4] ss:$8 sps:$4 sm:$0xff]   ;;  %v5043_v8 = vld [vmem:[%s5685_s8 + $0x7d0] ss:$8 sps:$4 sm:$0xff]  }
 0x101   : > { %3593 = vmatprep.subr.bf16.mxu1 %v4967_v9  ;;  %v5051_v9 = vld [vmem:[%s5685_s8 + $0x7c4] ss:$8 sps:$4 sm:$0xff]  }
 0x103   : > { %3553 = vmatpush2.bf16.msra.mxu0 %v4962_v10  ;;  %v5046_v10 = vld [vmem:[%s5685_s8 + $0x6c0] ss:$8 sps:$4 sm:$0xff]  }
 0x104   : > { %3554 = vmatprep.subr.bf16.mxu0 %v4970_v11  ;;  %3594 = vmatpush2.bf16.msra.mxu1 %v4965_v12  ;;  %v5054_v11 = vld [vmem:[%s5685_s8 + $0x6b4] ss:$8 sps:$4 sm:$0xff]   ;;  %v5049_v12 = vld [vmem:[%s5685_s8 + $0x7c0] ss:$8 sps:$4 sm:$0xff]  }
 0x105   : > { %3595 = vmatprep.subr.bf16.mxu1 %v4973_v13  ;;  %v5057_v13 = vld [vmem:[%s5685_s8 + $0x7b4] ss:$8 sps:$4 sm:$0xff]  }
 0x107   : > { %3555 = vmatpush2.bf16.msra.mxu0 %v4968_v14  ;;  %v5052_v14 = vld [vmem:[%s5685_s8 + $0x6b0] ss:$8 sps:$4 sm:$0xff]  }
 0x108   : > { %3556 = vmatprep.subr.bf16.mxu0 %v4976_v15  ;;  %3596 = vmatpush2.bf16.msra.mxu1 %v4971_v16  ;;  %v5060_v15 = vld [vmem:[%s5685_s8 + $0x6a4] ss:$8 sps:$4 sm:$0xff]   ;;  %v5055_v16 = vld [vmem:[%s5685_s8 + $0x7b0] ss:$8 sps:$4 sm:$0xff]  }
 0x109   : > { %3597 = vmatprep.subr.bf16.mxu1 %v4979_v18  ;;  %v5058_v18 = vld [vmem:[%s5685_s8 + $0x6a0] ss:$8 sps:$4 sm:$0xff]  }
 0x10b   : > { %3557 = vmatpush2.bf16.msra.mxu0 %v4974_v17  ;;  %v5063_v17 = vld [vmem:[%s5685_s8 + $0x7a4] ss:$8 sps:$4 sm:$0xff]  }
 0x10c   : > { %3608 = vmatprep.subr.bf16.mxu0 %v4982_v20  ;;  %3598 = vmatpush2.bf16.msra.mxu1 %v4977_v22  ;;  %v5066_v20 = vld [vmem:[%s5685_s8 + $0x694] ss:$8 sps:$4 sm:$0xff]   ;;  %v5064_v22 = vld [vmem:[%s5685_s8 + $0x690] ss:$8 sps:$4 sm:$0xff]  }
 0x10d   : > { %3649 = vmatprep.subr.bf16.mxu1 %v4985_v25  ;;  %v807_v25 = vshrl.u32 %v806_v19, 7  ;;  %v5115_v19 = vld [vmem:[%s5685_s8 + $0x910] ss:$8 sps:$4 sm:$0xff]  }
 0x10e   : > { %3559 = vmatmul.mubr.bf16.vlgmr.msra.gmra.mxu0 %v273_v24  ;;  %v5067_v24 = vld [vmem:[%s5685_s8 + $0x790] ss:$8 sps:$4 sm:$0xff]  }
 0x10f   : > { %3609 = vmatpush1.bf16.msra.mxu0 %v4980_v27  ;;  %3640 = vmatprep.mubr.bf16.mxu0 %v278_v28  ;;  %v5070_v27 = vld [vmem:[%s5685_s8 + $0x680] ss:$8 sps:$4 sm:$0xff]   ;;  %v5075_v28 = vld [vmem:[%s5685_s8 + $0x784] ss:$8 sps:$4 sm:$0xff]  }
 0x110   : > { %3600 = vmatmul.mubr.bf16.vlgmr.msra.gmra.mxu1 %v275_v29  ;;  %3610 = vmatprep.subr.bf16.mxu0 %v4988_v30  ;;  %v804_v29 = vld [vmem:[%s5691_s25] sm:$0x3]  ;;  %v245_v30 = vld [vmem:[%s6343_s0 + $0x60] sm:$0xff] }
 0x111   : > { %3650 = vmatpush1.bf16.msra.mxu1 %v4983_v31  ;;  %3681 = vmatprep.mubr.bf16.mxu1 %v280_v32  ;;  %v808_v31 = vsub.s32 0, %v807_v25  ;;  %v5078_v32 = vld [vmem:[%s5685_s8 + $0x874] ss:$8 sps:$4 sm:$0xff]  }
 0x112   : > { %3651 = vmatprep.subr.bf16.mxu1 %v4991_v33  ;;  %v250_v33 = vld [vmem:[%s6343_s0 + $0x88] sm:$0xff] }
 0x113   : > { %3611 = vmatpush1.bf16.msra.mxu0 %v4986_v34  ;;  %v5073_v34 = vld [vmem:[%s5685_s8 + $0x780] ss:$8 sps:$4 sm:$0xff]  }
 0x114   : > { %3612 = vmatprep.subr.bf16.mxu0 %v4994_v35  ;;  %v812_v35 = vsub.s32 1, %v807_v25  ;;  %v5129_v25 = vld [vmem:[%s5685_s8 + $0x9f4] ss:$8 sps:$4 sm:$0xff]  }
 0x115   : > { %3652 = vmatpush1.bf16.msra.mxu1 %v4989_v36  ;;  %v247_v36 = vld [vmem:[%s6343_s0 + $0x70] sm:$0xff] }
 0x116   : > { %3653 = vmatprep.subr.bf16.mxu1 %v4997_v37  ;;  %v277_v37 = vpack.c.bf16 %v245_v30, %v245_v30  ;;  %v5133_v30 = vld [vmem:[%s5685_s8 + $0x9e0] ss:$8 sps:$4 sm:$0xff]  }
 0x117   : > { %3613 = vmatpush1.bf16.msra.mxu0 %v4992_v38  ;;  %v5081_v38 = vld [vmem:[%s5685_s8 + $0x974] ss:$8 sps:$4 sm:$0xff]  }
 0x118   : > { %3614 = vmatprep.subr.bf16.mxu0 %v5000_v39  ;;  %v252_v39 = vld [vmem:[%s6343_s0 + $0x98] sm:$0xff] }
 0x119   : > { %3654 = vmatpush1.bf16.msra.mxu1 %v4995_v40  ;;  %v809_v40 = vrot.slane %v804_v29, %v808_v31  ;;  %v5138_v31 = vld [vmem:[%s5685_s8 + $0x8d4] ss:$8 sps:$4 sm:$0xff]  }
 0x11a   : > { %3655 = vmatprep.subr.bf16.mxu1 %v5003_v41  ;;  %v5076_v41 = vld [vmem:[%s5685_s8 + $0x870] ss:$8 sps:$4 sm:$0xff]  }
 0x11b   : > { %3615 = vmatpush1.bf16.msra.mxu0 %v4998_v42  ;;  %v282_v42 = vpack.c.bf16 %v250_v33, %v250_v33  ;;  %v5141_v33 = vld [vmem:[%s5685_s8 + $0x9d4] ss:$8 sps:$4 sm:$0xff]  }
 0x11c   : > { %3616 = vmatprep.subr.bf16.mxu0 %v5006_v43  ;;  %v279_v43 = vpack.c.bf16 %v247_v36, %v247_v36  ;;  %v5142_v36 = vld [vmem:[%s5685_s8 + $0x8c0] ss:$8 sps:$4 sm:$0xff]  }
 0x11d   : > { %3656 = vmatpush1.bf16.msra.mxu1 %v5001_v44  ;;  %v5084_v44 = vld [vmem:[%s5685_s8 + $0x864] ss:$8 sps:$4 sm:$0xff]  }
 0x11e   : > { %3657 = vmatprep.subr.bf16.mxu1 %v5009_v45  ;;  %v813_v45 = vrot.slane %v804_v29, %v812_v35  ;;  %v5135_v29 = vld [vmem:[%s5685_s8 + $0x9e4] ss:$8 sps:$4 sm:$0xff]  }
 0x11f   : > { %3617 = vmatpush1.bf16.msra.mxu0 %v5004_v46  ;;  %v5079_v46 = vld [vmem:[%s5685_s8 + $0x970] ss:$8 sps:$4 sm:$0xff]   ;;  %v5144_v35 = vld [vmem:[%s5685_s8 + $0x8c4] ss:$8 sps:$4 sm:$0xff]  }
 0x120   : > { %3618 = vmatprep.subr.bf16.mxu0 %v5012_v47  ;;  %v284_v47 = vpack.c.bf16 %v252_v39, %v252_v39  ;;  %v5150_v39 = vld [vmem:[%s5685_s8 + $0x8b4] ss:$8 sps:$4 sm:$0xff]  }
 0x121   : > { %3658 = vmatpush1.bf16.msra.mxu1 %v5007_v48 }
 0x122   : > { %3659 = vmatprep.subr.bf16.mxu1 %v5015_v49  ;;  %v5087_v49 = vld [vmem:[%s5685_s8 + $0x964] ss:$8 sps:$4 sm:$0xff]  }
 0x123   : > { %3619 = vmatpush1.bf16.msra.mxu0 %v5010_v50 }
 0x124   : > { %3620 = vmatprep.subr.bf16.mxu0 %v5018_v51  ;;  %v5082_v51 = vld [vmem:[%s5685_s8 + $0x860] ss:$8 sps:$4 sm:$0xff]  }
 0x125   : > { %3660 = vmatpush1.bf16.msra.mxu1 %v5013_v52 }
 0x126   : > { %3661 = vmatprep.subr.bf16.mxu1 %v5021_v53 }
 0x127   : > { %3621 = vmatpush1.bf16.msra.mxu0 %v5016_v54  ;;  %v5090_v54 = vld [vmem:[%s5685_s8 + $0x854] ss:$8 sps:$4 sm:$0xff]  }
 0x128   : > { %3622 = vmatprep.subr.bf16.mxu0 %v5024_v55 }
 0x129   : > { %3662 = vmatpush1.bf16.msra.mxu1 %v5019_v56 }
 0x12a   : > { %3663 = vmatprep.subr.bf16.mxu1 %v5027_v57  ;;  %v5085_v57 = vld [vmem:[%s5685_s8 + $0x960] ss:$8 sps:$4 sm:$0xff]  }
 0x12b   : > { %3623 = vmatpush1.bf16.msra.mxu0 %v5022_v58 }
 0x12c   : > { %3624 = vmatprep.subr.bf16.mxu0 %v5030_v59 }
 0x12d   : > { %3664 = vmatpush1.bf16.msra.mxu1 %v5025_v60  ;;  %v5093_v60 = vld [vmem:[%s5685_s8 + $0x954] ss:$8 sps:$4 sm:$0xff]  }
 0x12e   : > { %3665 = vmatprep.subr.bf16.mxu1 %v5033_v61 }
 0x12f   : > { %3625 = vmatpush2.bf16.msra.mxu0 %v5028_v62  ;;  %v5088_v62 = vld [vmem:[%s5685_s8 + $0x850] ss:$8 sps:$4 sm:$0xff]  }
 0x130   : > { %3626 = vmatprep.subr.bf16.mxu0 %v5036_v63 }
 0x131   : > { %3666 = vmatpush2.bf16.msra.mxu1 %v5031_v0 }
 0x132   : > { %3667 = vmatprep.subr.bf16.mxu1 %v5039_v1  ;;  %v5096_v1 = vld [vmem:[%s5685_s8 + $0x844] ss:$8 sps:$4 sm:$0xff]  }
 0x133   : > { %3627 = vmatpush2.bf16.msra.mxu0 %v5034_v2  ;;  %v5091_v2 = vld [vmem:[%s5685_s8 + $0x950] ss:$8 sps:$4 sm:$0xff]  }
 0x134   : > { %3628 = vmatprep.subr.bf16.mxu0 %v5042_v3 }
 0x135   : > { %3668 = vmatpush2.bf16.msra.mxu1 %v5037_v4  ;;  %v5099_v4 = vld [vmem:[%s5685_s8 + $0x944] ss:$8 sps:$4 sm:$0xff]  }
 0x136   : > { %3669 = vmatprep.subr.bf16.mxu1 %v5045_v5  ;;  %v5094_v5 = vld [vmem:[%s5685_s8 + $0x840] ss:$8 sps:$4 sm:$0xff]  }
 0x137   : > { %3629 = vmatpush2.bf16.msra.mxu0 %v5040_v6  ;;  %v5102_v6 = vld [vmem:[%s5685_s8 + $0x834] ss:$8 sps:$4 sm:$0xff]  }
 0x138   : > { %3630 = vmatprep.subr.bf16.mxu0 %v5048_v7  ;;  %v5097_v7 = vld [vmem:[%s5685_s8 + $0x940] ss:$8 sps:$4 sm:$0xff]  }
 0x139   : > { %3670 = vmatpush2.bf16.msra.mxu1 %v5043_v8  ;;  %v5105_v8 = vld [vmem:[%s5685_s8 + $0x934] ss:$8 sps:$4 sm:$0xff]  }
 0x13a   : > { %3671 = vmatprep.subr.bf16.mxu1 %v5051_v9  ;;  %v5100_v9 = vld [vmem:[%s5685_s8 + $0x830] ss:$8 sps:$4 sm:$0xff]  }
 0x13b   : > { %3631 = vmatpush2.bf16.msra.mxu0 %v5046_v10  ;;  %v5108_v10 = vld [vmem:[%s5685_s8 + $0x824] ss:$8 sps:$4 sm:$0xff]  }
 0x13c   : > { %3632 = vmatprep.subr.bf16.mxu0 %v5054_v11  ;;  %v5103_v11 = vld [vmem:[%s5685_s8 + $0x930] ss:$8 sps:$4 sm:$0xff]  }
 0x13d   : > { %3672 = vmatpush2.bf16.msra.mxu1 %v5049_v12  ;;  %v5111_v12 = vld [vmem:[%s5685_s8 + $0x924] ss:$8 sps:$4 sm:$0xff]  }
 0x13e   : > { %3673 = vmatprep.subr.bf16.mxu1 %v5057_v13  ;;  %v5106_v13 = vld [vmem:[%s5685_s8 + $0x820] ss:$8 sps:$4 sm:$0xff]  }
 0x13f   : > { %3633 = vmatpush2.bf16.msra.mxu0 %v5052_v14  ;;  %v5114_v14 = vld [vmem:[%s5685_s8 + $0x814] ss:$8 sps:$4 sm:$0xff]  }
 0x140   : > { %3634 = vmatprep.subr.bf16.mxu0 %v5060_v15  ;;  %v5109_v15 = vld [vmem:[%s5685_s8 + $0x920] ss:$8 sps:$4 sm:$0xff]  }
 0x141   : > { %3674 = vmatpush2.bf16.msra.mxu1 %v5055_v16  ;;  %v5117_v16 = vld [vmem:[%s5685_s8 + $0x914] ss:$8 sps:$4 sm:$0xff]  }
 0x142   : > { %3675 = vmatprep.subr.bf16.mxu1 %v5063_v17  ;;  %v5112_v17 = vld [vmem:[%s5685_s8 + $0x810] ss:$8 sps:$4 sm:$0xff]  }
 0x143   : > { %3635 = vmatpush2.bf16.msra.mxu0 %v5058_v18  ;;  %v5120_v18 = vld [vmem:[%s5685_s8 + $0x804] ss:$8 sps:$4 sm:$0xff]  }
 0x144   : > { %3636 = vmatprep.subr.bf16.mxu0 %v5066_v20  ;;  %v5118_v20 = vld [vmem:[%s5685_s8 + $0x800] ss:$8 sps:$4 sm:$0xff]  }
 0x145   : > { %3676 = vmatpush2.bf16.msra.mxu1 %v5061_v21  ;;  %v5123_v21 = vld [vmem:[%s5685_s8 + $0x904] ss:$8 sps:$4 sm:$0xff]  }
 0x146   : > { %3677 = vmatprep.subr.bf16.mxu1 %v5069_v23  ;;  %v5126_v23 = vld [vmem:[%s5685_s8 + $0x8f4] ss:$8 sps:$4 sm:$0xff]  }
 0x147   : > { %3637 = vmatpush2.bf16.msra.mxu0 %v5064_v22  ;;  %v5121_v22 = vld [vmem:[%s5685_s8 + $0x900] ss:$8 sps:$4 sm:$0xff]  }
 0x148   : > { %3638 = vmatprep.subr.bf16.mxu0 %v5072_v26  ;;  %v5127_v26 = vld [vmem:[%s5685_s8 + $0x9f0] ss:$8 sps:$4 sm:$0xff]  }
 0x149   : > { %3678 = vmatpush2.bf16.msra.mxu1 %v5067_v24  ;;  %v5124_v24 = vld [vmem:[%s5685_s8 + $0x8f0] ss:$8 sps:$4 sm:$0xff]  }
 0x14a   : > { %3679 = vmatprep.subr.bf16.mxu1 %v5075_v28  ;;  %v5130_v28 = vld [vmem:[%s5685_s8 + $0x8e0] ss:$8 sps:$4 sm:$0xff]  }
 0x14b   : > { %3639 = vmatpush2.bf16.msra.mxu0 %v5070_v27  ;;  %v5132_v27 = vld [vmem:[%s5685_s8 + $0x8e4] ss:$8 sps:$4 sm:$0xff]  }
 0x14c   : > { %3690 = vmatprep.subr.bf16.mxu0 %v5078_v32  ;;  %v5136_v32 = vld [vmem:[%s5685_s8 + $0x8d0] ss:$8 sps:$4 sm:$0xff]  }
 0x14d   : > { %3680 = vmatpush2.bf16.msra.mxu1 %v5073_v34  ;;  %v5139_v34 = vld [vmem:[%s5685_s8 + $0x9d0] ss:$8 sps:$4 sm:$0xff]  }
 0x14e   : > { %v3396_v48 = vpop.f32.mrf.mxu0  ;;  %3641 = vmatmul.mubr.bf16.vlgmr.msra.gmra.mxu0 %v277_v37  ;;  %3731 = vmatprep.subr.bf16.mxu1 %v5081_v38  ;;  %v5147_v37 = vld [vmem:[%s5685_s8 + $0x9c4] ss:$8 sps:$4 sm:$0xff]   ;;  %v5145_v38 = vld [vmem:[%s5685_s8 + $0x9c0] ss:$8 sps:$4 sm:$0xff]  }
 0x14f   : > { %v3397_v50 = vadd.f32 %v3396_v48, %v809_v40  ;;  %3691 = vmatpush1.bf16.msra.mxu0 %v5076_v41  ;;  %3722 = vmatprep.mubr.bf16.mxu0 %v282_v42  ;;  %v3437_v53 = vpop.f32.mrf.mxu1  ;;  %v5148_v40 = vld [vmem:[%s5685_s8 + $0x8b0] ss:$8 sps:$4 sm:$0xff]   ;;  %v5153_v41 = vld [vmem:[%s5685_s8 + $0x9b4] ss:$8 sps:$4 sm:$0xff]  }
 0x150   : > { %v3398_v52 = vpop.f32.mrf.mxu0  ;;  %3682 = vmatmul.mubr.bf16.vlgmr.msra.gmra.mxu1 %v279_v43  ;;  %3692 = vmatprep.subr.bf16.mxu0 %v5084_v44  ;;  %v5151_v42 = vld [vmem:[%s5685_s8 + $0x9b0] ss:$8 sps:$4 sm:$0xff]   ;;  %v5156_v43 = vld [vmem:[%s5685_s8 + $0x8a4] ss:$8 sps:$4 sm:$0xff]   ;;  %v5154_v44 = vld [vmem:[%s5685_s8 + $0x8a0] ss:$8 sps:$4 sm:$0xff]  }
 0x151   : > { %v3399_v55 = vadd.f32 %v3398_v52, %v813_v45  ;;  %v6016_v56 = vadd.f32 %v3437_v53, %v3397_v50  ;;  %3732 = vmatpush1.bf16.msra.mxu1 %v5079_v46  ;;  %3763 = vmatprep.mubr.bf16.mxu1 %v284_v47  ;;  %v3439_v59 = vpop.f32.mrf.mxu1  ;;  %v5159_v45 = vld [vmem:[%s5685_s8 + $0x9a4] ss:$8 sps:$4 sm:$0xff]   ;;  %v5157_v46 = vld [vmem:[%s5685_s8 + $0x9a0] ss:$8 sps:$4 sm:$0xff]   ;;  %v5162_v47 = vld [vmem:[%s5685_s8 + $0x894] ss:$8 sps:$4 sm:$0xff]  }
 0x152   : > { %v3400_v58 = vpop.f32.mrf.mxu0  ;;  %3733 = vmatprep.subr.bf16.mxu1 %v5087_v49  ;;  %v5160_v48 = vld [vmem:[%s5685_s8 + $0x890] ss:$8 sps:$4 sm:$0xff]   ;;  %v5165_v49 = vld [vmem:[%s5685_s8 + $0x994] ss:$8 sps:$4 sm:$0xff]   ;;  %v5166_v52 = vld [vmem:[%s5685_s8 + $0x880] ss:$8 sps:$4 sm:$0xff]  }
 0x153   : > { %v6020_v61 = vadd.f32 %v3439_v59, %v3399_v55  ;;  %3693 = vmatpush1.bf16.msra.mxu0 %v5082_v51  ;;  %v3441_v0 = vpop.f32.mrf.mxu1  ;;  %v5163_v50 = vld [vmem:[%s5685_s8 + $0x990] ss:$8 sps:$4 sm:$0xff]   ;;  %v5168_v51 = vld [vmem:[%s5685_s8 + $0x884] ss:$8 sps:$4 sm:$0xff]   ;;  %v5169_v55 = vld [vmem:[%s5685_s8 + $0x980] ss:$8 sps:$4 sm:$0xff]  }
 0x154   : > { %v3401_v63 = vpop.f32.mrf.mxu0  ;;  %3694 = vmatprep.subr.bf16.mxu0 %v5090_v54  ;;  %v5171_v53 = vld [vmem:[%s5685_s8 + $0x984] ss:$8 sps:$4 sm:$0xff]   ;;  %v251_v59 = vld [vmem:[%s6343_s0 + $0x90] sm:$0xff] }
 0x155   : > { %3734 = vmatpush1.bf16.msra.mxu1 %v5085_v57  ;;  %v3442_v3 = vpop.f32.mrf.mxu1  ;;  %v249_v54 = vld [vmem:[%s6343_s0 + $0x80] sm:$0xff]  ;;  %v5174_v57 = vld [vmem:[%s5685_s8 + $0xa74] ss:$8 sps:$4 sm:$0xff]   ;;  %v5172_v0 = vld [vmem:[%s5685_s8 + $0xa70] ss:$8 sps:$4 sm:$0xff]  }
 0x156   : > { %3735 = vmatprep.subr.bf16.mxu1 %v5093_v60  ;;  %v254_v58 = vld [vmem:[%s6343_s0 + $0xa8] sm:$0xff]  ;;  %v281_v60 = vpack.c.bf16 %v249_v54, %v249_v54  ;;  %v256_v63 = vld [vmem:[%s6343_s0 + $0xb8] sm:$0xff] }
 0x157   : > { %3695 = vmatpush1.bf16.msra.mxu0 %v5088_v62  ;;  %v5177_v62 = vld [vmem:[%s5685_s8 + $0xb74] ss:$8 sps:$4 sm:$0xff]   ;;  %v5175_v3 = vld [vmem:[%s5685_s8 + $0xb70] ss:$8 sps:$4 sm:$0xff]   ;;  %v5240_v54 = vld [vmem:[%s5685_s8 + $0xac4] ss:$8 sps:$4 sm:$0xff]  }
 0x158   : > { %3696 = vmatprep.subr.bf16.mxu0 %v5096_v1  ;;  %v286_v1 = vpack.c.bf16 %v254_v58, %v254_v58  ;;  %v5238_v58 = vld [vmem:[%s5685_s8 + $0xac0] ss:$8 sps:$4 sm:$0xff]  }
 0x159   : > { %3736 = vmatpush1.bf16.msra.mxu1 %v5091_v2  ;;  %v283_v2 = vpack.c.bf16 %v251_v59, %v251_v59  ;;  %v5246_v59 = vld [vmem:[%s5685_s8 + $0xab4] ss:$8 sps:$4 sm:$0xff]  }
 0x15a   : > { %3737 = vmatprep.subr.bf16.mxu1 %v5099_v4  ;;  %v5180_v4 = vld [vmem:[%s5685_s8 + $0xa64] ss:$8 sps:$4 sm:$0xff]  }
 0x15b   : > { %3697 = vmatpush1.bf16.msra.mxu0 %v5094_v5  ;;  %v5178_v5 = vld [vmem:[%s5685_s8 + $0xa60] ss:$8 sps:$4 sm:$0xff]  }
 0x15c   : > { %3698 = vmatprep.subr.bf16.mxu0 %v5102_v6  ;;  %v5183_v6 = vld [vmem:[%s5685_s8 + $0xb64] ss:$8 sps:$4 sm:$0xff]  }
 0x15d   : > { %3738 = vmatpush1.bf16.msra.mxu1 %v5097_v7  ;;  %v288_v7 = vpack.c.bf16 %v256_v63, %v256_v63  ;;  %v5244_v63 = vld [vmem:[%s5685_s8 + $0xab0] ss:$8 sps:$4 sm:$0xff]  }
 0x15e   : > { %3739 = vmatprep.subr.bf16.mxu1 %v5105_v8 }
 0x15f   : > { %3699 = vmatpush1.bf16.msra.mxu0 %v5100_v9 }
 0x160   : > { %3700 = vmatprep.subr.bf16.mxu0 %v5108_v10 }
 0x161   : > { %3740 = vmatpush1.bf16.msra.mxu1 %v5103_v11 }
 0x162   : > { %3741 = vmatprep.subr.bf16.mxu1 %v5111_v12  ;;  %v5181_v12 = vld [vmem:[%s5685_s8 + $0xb60] ss:$8 sps:$4 sm:$0xff]  }
 0x163   : > { %3701 = vmatpush1.bf16.msra.mxu0 %v5106_v13  ;;  %v5186_v13 = vld [vmem:[%s5685_s8 + $0xa54] ss:$8 sps:$4 sm:$0xff]  }
 0x164   : > { %3702 = vmatprep.subr.bf16.mxu0 %v5114_v14 }
 0x165   : > { %3742 = vmatpush1.bf16.msra.mxu1 %v5109_v15 }
 0x166   : > { %3743 = vmatprep.subr.bf16.mxu1 %v5117_v16  ;;  %v5184_v16 = vld [vmem:[%s5685_s8 + $0xa50] ss:$8 sps:$4 sm:$0xff]  }
 0x167   : > { %3703 = vmatpush1.bf16.msra.mxu0 %v5112_v17  ;;  %v5189_v17 = vld [vmem:[%s5685_s8 + $0xb54] ss:$8 sps:$4 sm:$0xff]  }
 0x168   : > { %3704 = vmatprep.subr.bf16.mxu0 %v5120_v18 }
 0x169   : > { %3744 = vmatpush1.bf16.msra.mxu1 %v5115_v19 }
 0x16a   : > { %3745 = vmatprep.subr.bf16.mxu1 %v5123_v21  ;;  %v5187_v21 = vld [vmem:[%s5685_s8 + $0xb50] ss:$8 sps:$4 sm:$0xff]  }
 0x16b   : > { %3705 = vmatpush1.bf16.msra.mxu0 %v5118_v20 }
 0x16c   : > { %3706 = vmatprep.subr.bf16.mxu0 %v5126_v23  ;;  %v5195_v23 = vld [vmem:[%s5685_s8 + $0xb44] ss:$8 sps:$4 sm:$0xff]  }
 0x16d   : > { %3746 = vmatpush1.bf16.msra.mxu1 %v5121_v22  ;;  %v5192_v22 = vld [vmem:[%s5685_s8 + $0xa44] ss:$8 sps:$4 sm:$0xff]  }
 0x16e   : > { %3747 = vmatprep.subr.bf16.mxu1 %v5129_v25  ;;  %v5190_v25 = vld [vmem:[%s5685_s8 + $0xa40] ss:$8 sps:$4 sm:$0xff]  }
 0x16f   : > { %3707 = vmatpush2.bf16.msra.mxu0 %v5124_v24 }
 0x170   : > { %3708 = vmatprep.subr.bf16.mxu0 %v5132_v27  ;;  %v5193_v27 = vld [vmem:[%s5685_s8 + $0xb40] ss:$8 sps:$4 sm:$0xff]  }
 0x171   : > { %3748 = vmatpush2.bf16.msra.mxu1 %v5127_v26  ;;  %v5198_v26 = vld [vmem:[%s5685_s8 + $0xa34] ss:$8 sps:$4 sm:$0xff]  }
 0x172   : > { %3749 = vmatprep.subr.bf16.mxu1 %v5135_v29  ;;  %v5196_v29 = vld [vmem:[%s5685_s8 + $0xa30] ss:$8 sps:$4 sm:$0xff]  }
 0x173   : > { %3709 = vmatpush2.bf16.msra.mxu0 %v5130_v28  ;;  %v5201_v28 = vld [vmem:[%s5685_s8 + $0xb34] ss:$8 sps:$4 sm:$0xff]  }
 0x174   : > { %3710 = vmatprep.subr.bf16.mxu0 %v5138_v31  ;;  %v5199_v31 = vld [vmem:[%s5685_s8 + $0xb30] ss:$8 sps:$4 sm:$0xff]  }
 0x175   : > { %3750 = vmatpush2.bf16.msra.mxu1 %v5133_v30  ;;  %v5204_v30 = vld [vmem:[%s5685_s8 + $0xa24] ss:$8 sps:$4 sm:$0xff]  }
 0x176   : > { %3751 = vmatprep.subr.bf16.mxu1 %v5141_v33  ;;  %v5202_v33 = vld [vmem:[%s5685_s8 + $0xa20] ss:$8 sps:$4 sm:$0xff]  }
 0x177   : > { %3711 = vmatpush2.bf16.msra.mxu0 %v5136_v32  ;;  %v5207_v32 = vld [vmem:[%s5685_s8 + $0xb24] ss:$8 sps:$4 sm:$0xff]  }
 0x178   : > { %3712 = vmatprep.subr.bf16.mxu0 %v5144_v35  ;;  %v5205_v35 = vld [vmem:[%s5685_s8 + $0xb20] ss:$8 sps:$4 sm:$0xff]  }
 0x179   : > { %3752 = vmatpush2.bf16.msra.mxu1 %v5139_v34  ;;  %v5210_v34 = vld [vmem:[%s5685_s8 + $0xa14] ss:$8 sps:$4 sm:$0xff]  }
 0x17a   : > { %3753 = vmatprep.subr.bf16.mxu1 %v5147_v37  ;;  %v5208_v37 = vld [vmem:[%s5685_s8 + $0xa10] ss:$8 sps:$4 sm:$0xff]  }
 0x17b   : > { %3713 = vmatpush2.bf16.msra.mxu0 %v5142_v36  ;;  %v5213_v36 = vld [vmem:[%s5685_s8 + $0xb14] ss:$8 sps:$4 sm:$0xff]  }
 0x17c   : > { %3714 = vmatprep.subr.bf16.mxu0 %v5150_v39  ;;  %v5211_v39 = vld [vmem:[%s5685_s8 + $0xb10] ss:$8 sps:$4 sm:$0xff]  }
 0x17d   : > { %3754 = vmatpush2.bf16.msra.mxu1 %v5145_v38  ;;  %v5216_v38 = vld [vmem:[%s5685_s8 + $0xa04] ss:$8 sps:$4 sm:$0xff]  }
 0x17e   : > { %3755 = vmatprep.subr.bf16.mxu1 %v5153_v41  ;;  %v5214_v41 = vld [vmem:[%s5685_s8 + $0xa00] ss:$8 sps:$4 sm:$0xff]  }
 0x17f   : > { %3715 = vmatpush2.bf16.msra.mxu0 %v5148_v40  ;;  %v5219_v40 = vld [vmem:[%s5685_s8 + $0xb04] ss:$8 sps:$4 sm:$0xff]  }
 0x180   : > { %3716 = vmatprep.subr.bf16.mxu0 %v5156_v43  ;;  %v5217_v43 = vld [vmem:[%s5685_s8 + $0xb00] ss:$8 sps:$4 sm:$0xff]  }
 0x181   : > { %3756 = vmatpush2.bf16.msra.mxu1 %v5151_v42  ;;  %v5222_v42 = vld [vmem:[%s5685_s8 + $0xaf4] ss:$8 sps:$4 sm:$0xff]  }
 0x182   : > { %3757 = vmatprep.subr.bf16.mxu1 %v5159_v45  ;;  %v5220_v45 = vld [vmem:[%s5685_s8 + $0xaf0] ss:$8 sps:$4 sm:$0xff]  }
 0x183   : > { %3717 = vmatpush2.bf16.msra.mxu0 %v5154_v44  ;;  %v5225_v44 = vld [vmem:[%s5685_s8 + $0xbf4] ss:$8 sps:$4 sm:$0xff]  }
 0x184   : > { %3718 = vmatprep.subr.bf16.mxu0 %v5162_v47  ;;  %v5223_v47 = vld [vmem:[%s5685_s8 + $0xbf0] ss:$8 sps:$4 sm:$0xff]  }
 0x185   : > { %3758 = vmatpush2.bf16.msra.mxu1 %v5157_v46  ;;  %v5228_v46 = vld [vmem:[%s5685_s8 + $0xae4] ss:$8 sps:$4 sm:$0xff]  }
 0x186   : > { %3759 = vmatprep.subr.bf16.mxu1 %v5165_v49  ;;  %v5226_v49 = vld [vmem:[%s5685_s8 + $0xae0] ss:$8 sps:$4 sm:$0xff]  }
 0x187   : > { %3719 = vmatpush2.bf16.msra.mxu0 %v5160_v48  ;;  %v5231_v48 = vld [vmem:[%s5685_s8 + $0xbe4] ss:$8 sps:$4 sm:$0xff]  }
 0x188   : > { %3720 = vmatprep.subr.bf16.mxu0 %v5168_v51  ;;  %v5229_v51 = vld [vmem:[%s5685_s8 + $0xbe0] ss:$8 sps:$4 sm:$0xff]  }
 0x189   : > { %3760 = vmatpush2.bf16.msra.mxu1 %v5163_v50  ;;  %v5234_v50 = vld [vmem:[%s5685_s8 + $0xad4] ss:$8 sps:$4 sm:$0xff]  }
 0x18a   : > { %3761 = vmatprep.subr.bf16.mxu1 %v5171_v53  ;;  %v5232_v53 = vld [vmem:[%s5685_s8 + $0xad0] ss:$8 sps:$4 sm:$0xff]  }
 0x18b   : > { %3721 = vmatpush2.bf16.msra.mxu0 %v5166_v52  ;;  %v5237_v52 = vld [vmem:[%s5685_s8 + $0xbd4] ss:$8 sps:$4 sm:$0xff]  }
 0x18c   : > { %3772 = vmatprep.subr.bf16.mxu0 %v5174_v57  ;;  %v5243_v57 = vld [vmem:[%s5685_s8 + $0xbc4] ss:$8 sps:$4 sm:$0xff]  }
 0x18d   : > { %3762 = vmatpush2.bf16.msra.mxu1 %v5169_v55  ;;  %v5235_v55 = vld [vmem:[%s5685_s8 + $0xbd0] ss:$8 sps:$4 sm:$0xff]  }
 0x18e   : > { %v3478_v8 = vpop.f32.mrf.mxu0  ;;  %3723 = vmatmul.mubr.bf16.vlgmr.msra.gmra.mxu0 %v281_v60  ;;  %3813 = vmatprep.subr.bf16.mxu1 %v5177_v62  ;;  %v5241_v60 = vld [vmem:[%s5685_s8 + $0xbc0] ss:$8 sps:$4 sm:$0xff]   ;;  %v5249_v62 = vld [vmem:[%s5685_s8 + $0xbb4] ss:$8 sps:$4 sm:$0xff]  }
 0x18f   : > { %v3479_v9 = vadd.f32 %v3478_v8, %v6016_v56  ;;  %3773 = vmatpush1.bf16.msra.mxu0 %v5172_v0  ;;  %3804 = vmatprep.mubr.bf16.mxu0 %v286_v1  ;;  %v3519_v11 = vpop.f32.mrf.mxu1  ;;  %v5252_v0 = vld [vmem:[%s5685_s8 + $0xaa4] ss:$8 sps:$4 sm:$0xff]   ;;  %v5247_v1 = vld [vmem:[%s5685_s8 + $0xbb0] ss:$8 sps:$4 sm:$0xff]  }
 0x190   : > { %v3480_v10 = vpop.f32.mrf.mxu0  ;;  %3764 = vmatmul.mubr.bf16.vlgmr.msra.gmra.mxu1 %v283_v2  ;;  %3774 = vmatprep.subr.bf16.mxu0 %v5180_v4  ;;  %v5255_v2 = vld [vmem:[%s5685_s8 + $0xba4] ss:$8 sps:$4 sm:$0xff]   ;;  %v5258_v4 = vld [vmem:[%s5685_s8 + $0xa94] ss:$8 sps:$4 sm:$0xff]  }
 0x191   : > { %v3481_v14 = vadd.f32 %v3480_v10, %v6020_v61  ;;  %v6099_v15 = vadd.f32 %v3519_v11, %v3479_v9  ;;  %3814 = vmatpush1.bf16.msra.mxu1 %v5175_v3  ;;  %3845 = vmatprep.mubr.bf16.mxu1 %v288_v7  ;;  %v3521_v18 = vpop.f32.mrf.mxu1  ;;  %v5250_v3 = vld [vmem:[%s5685_s8 + $0xaa0] ss:$8 sps:$4 sm:$0xff]   ;;  %v5256_v7 = vld [vmem:[%s5685_s8 + $0xa90] ss:$8 sps:$4 sm:$0xff]   ;;  %v5264_v8 = vld [vmem:[%s5685_s8 + $0xa84] ss:$8 sps:$4 sm:$0xff]  }
 0x192   : > { %v3482_v56 = vpop.f32.mrf.mxu0  ;;  %3815 = vmatprep.subr.bf16.mxu1 %v5183_v6  ;;  %v5261_v6 = vld [vmem:[%s5685_s8 + $0xb94] ss:$8 sps:$4 sm:$0xff]   ;;  %v5259_v9 = vld [vmem:[%s5685_s8 + $0xb90] ss:$8 sps:$4 sm:$0xff]   ;;  %v5267_v10 = vld [vmem:[%s5685_s8 + $0xb84] ss:$8 sps:$4 sm:$0xff]  }
 0x193   : > { %v6103_v19 = vadd.f32 %v3521_v18, %v3481_v14  ;;  %3775 = vmatpush1.bf16.msra.mxu0 %v5178_v5  ;;  %v3523_v61 = vpop.f32.mrf.mxu1  ;;  %v5253_v5 = vld [vmem:[%s5685_s8 + $0xba0] ss:$8 sps:$4 sm:$0xff]   ;;  %v5273_v18 = vld [vmem:[%s5685_s8 + $0xd74] ss:$8 sps:$4 sm:$0xff]  }
 0x194   : > { %v3483_v20 = vpop.f32.mrf.mxu0  ;;  %3776 = vmatprep.subr.bf16.mxu0 %v5186_v13  ;;  %v5262_v11 = vld [vmem:[%s5685_s8 + $0xa80] ss:$8 sps:$4 sm:$0xff]   ;;  %v5270_v13 = vld [vmem:[%s5685_s8 + $0xc74] ss:$8 sps:$4 sm:$0xff]   ;;  %v5268_v61 = vld [vmem:[%s5685_s8 + $0xc70] ss:$8 sps:$4 sm:$0xff]  }
 0x195   : > { %3816 = vmatpush1.bf16.msra.mxu1 %v5181_v12  ;;  %v3524_v24 = vpop.f32.mrf.mxu1  ;;  %v253_v12 = vld [vmem:[%s6343_s0 + $0xa0] sm:$0xff]  ;;  %v258_v14 = vld [vmem:[%s6343_s0 + $0xc8] sm:$0xff]  ;;  %v260_v20 = vld [vmem:[%s6343_s0 + $0xd8] sm:$0xff] }
 0x196   : > { %3817 = vmatprep.subr.bf16.mxu1 %v5189_v17  ;;  %v255_v17 = vld [vmem:[%s6343_s0 + $0xb0] sm:$0xff]  ;;  %v285_v56 = vpack.c.bf16 %v253_v12, %v253_v12  ;;  %v5336_v12 = vld [vmem:[%s5685_s8 + $0xcc4] ss:$8 sps:$4 sm:$0xff]  }
 0x197   : > { %3777 = vmatpush1.bf16.msra.mxu0 %v5184_v16  ;;  %v5265_v16 = vld [vmem:[%s5685_s8 + $0xb80] ss:$8 sps:$4 sm:$0xff]   ;;  %v5271_v24 = vld [vmem:[%s5685_s8 + $0xd70] ss:$8 sps:$4 sm:$0xff]  }
 0x198   : > { %3778 = vmatprep.subr.bf16.mxu0 %v5192_v22  ;;  %v287_v22 = vpack.c.bf16 %v255_v17, %v255_v17  ;;  %v5342_v17 = vld [vmem:[%s5685_s8 + $0xcb4] ss:$8 sps:$4 sm:$0xff]  }
 0x199   : > { %3818 = vmatpush1.bf16.msra.mxu1 %v5187_v21  ;;  %v290_v21 = vpack.c.bf16 %v258_v14, %v258_v14  ;;  %v5339_v14 = vld [vmem:[%s5685_s8 + $0xdc4] ss:$8 sps:$4 sm:$0xff]  }
 0x19a   : > { %3819 = vmatprep.subr.bf16.mxu1 %v5195_v23  ;;  %v5276_v23 = vld [vmem:[%s5685_s8 + $0xc64] ss:$8 sps:$4 sm:$0xff]  }
 0x19b   : > { %3779 = vmatpush1.bf16.msra.mxu0 %v5190_v25  ;;  %v292_v25 = vpack.c.bf16 %v260_v20, %v260_v20  ;;  %v5340_v20 = vld [vmem:[%s5685_s8 + $0xcb0] ss:$8 sps:$4 sm:$0xff]  }
 0x19c   : > { %3780 = vmatprep.subr.bf16.mxu0 %v5198_v26 }
 0x19d   : > { %3820 = vmatpush1.bf16.msra.mxu1 %v5193_v27  ;;  %v5279_v27 = vld [vmem:[%s5685_s8 + $0xd64] ss:$8 sps:$4 sm:$0xff]  }
 0x19e   : > { %3821 = vmatprep.subr.bf16.mxu1 %v5201_v28 }
 0x19f   : > { %3781 = vmatpush1.bf16.msra.mxu0 %v5196_v29  ;;  %v5274_v29 = vld [vmem:[%s5685_s8 + $0xc60] ss:$8 sps:$4 sm:$0xff]  }
 0x1a0   : > { %3782 = vmatprep.subr.bf16.mxu0 %v5204_v30 }
 0x1a1   : > { %3822 = vmatpush1.bf16.msra.mxu1 %v5199_v31 }
 0x1a2   : > { %3823 = vmatprep.subr.bf16.mxu1 %v5207_v32  ;;  %v5282_v32 = vld [vmem:[%s5685_s8 + $0xc54] ss:$8 sps:$4 sm:$0xff]  }
 0x1a3   : > { %3783 = vmatpush1.bf16.msra.mxu0 %v5202_v33 }
 0x1a4   : > { %3784 = vmatprep.subr.bf16.mxu0 %v5210_v34 }
 0x1a5   : > { %3824 = vmatpush1.bf16.msra.mxu1 %v5205_v35  ;;  %v5277_v35 = vld [vmem:[%s5685_s8 + $0xd60] ss:$8 sps:$4 sm:$0xff]  }
 0x1a6   : > { %3825 = vmatprep.subr.bf16.mxu1 %v5213_v36 }
 0x1a7   : > { %3785 = vmatpush1.bf16.msra.mxu0 %v5208_v37  ;;  %v5285_v37 = vld [vmem:[%s5685_s8 + $0xd54] ss:$8 sps:$4 sm:$0xff]  }
 0x1a8   : > { %3786 = vmatprep.subr.bf16.mxu0 %v5216_v38 }
 0x1a9   : > { %3826 = vmatpush1.bf16.msra.mxu1 %v5211_v39  ;;  %v5280_v39 = vld [vmem:[%s5685_s8 + $0xc50] ss:$8 sps:$4 sm:$0xff]  }
 0x1aa   : > { %3827 = vmatprep.subr.bf16.mxu1 %v5219_v40 }
 0x1ab   : > { %3787 = vmatpush1.bf16.msra.mxu0 %v5214_v41  ;;  %v5288_v41 = vld [vmem:[%s5685_s8 + $0xc44] ss:$8 sps:$4 sm:$0xff]  }
 0x1ac   : > { %3788 = vmatprep.subr.bf16.mxu0 %v5222_v42  ;;  %v5283_v42 = vld [vmem:[%s5685_s8 + $0xd50] ss:$8 sps:$4 sm:$0xff]  }
 0x1ad   : > { %3828 = vmatpush1.bf16.msra.mxu1 %v5217_v43 }
 0x1ae   : > { %3829 = vmatprep.subr.bf16.mxu1 %v5225_v44  ;;  %v5291_v44 = vld [vmem:[%s5685_s8 + $0xd44] ss:$8 sps:$4 sm:$0xff]  }
 0x1af   : > { %3789 = vmatpush2.bf16.msra.mxu0 %v5220_v45  ;;  %v5286_v45 = vld [vmem:[%s5685_s8 + $0xc40] ss:$8 sps:$4 sm:$0xff]  }
 0x1b0   : > { %3790 = vmatprep.subr.bf16.mxu0 %v5228_v46  ;;  %v5294_v46 = vld [vmem:[%s5685_s8 + $0xc34] ss:$8 sps:$4 sm:$0xff]  }
 0x1b1   : > { %3830 = vmatpush2.bf16.msra.mxu1 %v5223_v47  ;;  %v5289_v47 = vld [vmem:[%s5685_s8 + $0xd40] ss:$8 sps:$4 sm:$0xff]  }
 0x1b2   : > { %3831 = vmatprep.subr.bf16.mxu1 %v5231_v48  ;;  %v5297_v48 = vld [vmem:[%s5685_s8 + $0xd34] ss:$8 sps:$4 sm:$0xff]  }
 0x1b3   : > { %3791 = vmatpush2.bf16.msra.mxu0 %v5226_v49  ;;  %v5292_v49 = vld [vmem:[%s5685_s8 + $0xc30] ss:$8 sps:$4 sm:$0xff]  }
 0x1b4   : > { %3792 = vmatprep.subr.bf16.mxu0 %v5234_v50  ;;  %v5300_v50 = vld [vmem:[%s5685_s8 + $0xc24] ss:$8 sps:$4 sm:$0xff]  }
 0x1b5   : > { %3832 = vmatpush2.bf16.msra.mxu1 %v5229_v51  ;;  %v5295_v51 = vld [vmem:[%s5685_s8 + $0xd30] ss:$8 sps:$4 sm:$0xff]  }
 0x1b6   : > { %3833 = vmatprep.subr.bf16.mxu1 %v5237_v52  ;;  %v5303_v52 = vld [vmem:[%s5685_s8 + $0xd24] ss:$8 sps:$4 sm:$0xff]  }
 0x1b7   : > { %3793 = vmatpush2.bf16.msra.mxu0 %v5232_v53  ;;  %v5298_v53 = vld [vmem:[%s5685_s8 + $0xc20] ss:$8 sps:$4 sm:$0xff]  }
 0x1b8   : > { %3794 = vmatprep.subr.bf16.mxu0 %v5240_v54  ;;  %v5306_v54 = vld [vmem:[%s5685_s8 + $0xc14] ss:$8 sps:$4 sm:$0xff]  }
 0x1b9   : > { %3834 = vmatpush2.bf16.msra.mxu1 %v5235_v55  ;;  %v5301_v55 = vld [vmem:[%s5685_s8 + $0xd20] ss:$8 sps:$4 sm:$0xff]  }
 0x1ba   : > { %3835 = vmatprep.subr.bf16.mxu1 %v5243_v57  ;;  %v5309_v57 = vld [vmem:[%s5685_s8 + $0xd14] ss:$8 sps:$4 sm:$0xff]  }
 0x1bb   : > { %3795 = vmatpush2.bf16.msra.mxu0 %v5238_v58  ;;  %v5304_v58 = vld [vmem:[%s5685_s8 + $0xc10] ss:$8 sps:$4 sm:$0xff]  }
 0x1bc   : > { %3796 = vmatprep.subr.bf16.mxu0 %v5246_v59  ;;  %v5312_v59 = vld [vmem:[%s5685_s8 + $0xc04] ss:$8 sps:$4 sm:$0xff]  }
 0x1bd   : > { %3836 = vmatpush2.bf16.msra.mxu1 %v5241_v60  ;;  %v5307_v60 = vld [vmem:[%s5685_s8 + $0xd10] ss:$8 sps:$4 sm:$0xff]  }
 0x1be   : > { %3837 = vmatprep.subr.bf16.mxu1 %v5249_v62  ;;  %v5315_v62 = vld [vmem:[%s5685_s8 + $0xd04] ss:$8 sps:$4 sm:$0xff]  }
 0x1bf   : > { %3797 = vmatpush2.bf16.msra.mxu0 %v5244_v63  ;;  %v5310_v63 = vld [vmem:[%s5685_s8 + $0xc00] ss:$8 sps:$4 sm:$0xff]  }
 0x1c0   : > { %3798 = vmatprep.subr.bf16.mxu0 %v5252_v0  ;;  %v5318_v0 = vld [vmem:[%s5685_s8 + $0xcf4] ss:$8 sps:$4 sm:$0xff]  }
 0x1c1   : > { %3838 = vmatpush2.bf16.msra.mxu1 %v5247_v1  ;;  %v5313_v1 = vld [vmem:[%s5685_s8 + $0xd00] ss:$8 sps:$4 sm:$0xff]  }
 0x1c2   : > { %3839 = vmatprep.subr.bf16.mxu1 %v5255_v2  ;;  %v5321_v2 = vld [vmem:[%s5685_s8 + $0xdf4] ss:$8 sps:$4 sm:$0xff]  }
 0x1c3   : > { %3799 = vmatpush2.bf16.msra.mxu0 %v5250_v3  ;;  %v5316_v3 = vld [vmem:[%s5685_s8 + $0xcf0] ss:$8 sps:$4 sm:$0xff]  }
 0x1c4   : > { %3800 = vmatprep.subr.bf16.mxu0 %v5258_v4  ;;  %v5324_v4 = vld [vmem:[%s5685_s8 + $0xce4] ss:$8 sps:$4 sm:$0xff]  }
 0x1c5   : > { %3840 = vmatpush2.bf16.msra.mxu1 %v5253_v5  ;;  %v5319_v5 = vld [vmem:[%s5685_s8 + $0xdf0] ss:$8 sps:$4 sm:$0xff]  }
 0x1c6   : > { %3841 = vmatprep.subr.bf16.mxu1 %v5261_v6  ;;  %v5327_v6 = vld [vmem:[%s5685_s8 + $0xde4] ss:$8 sps:$4 sm:$0xff]  }
 0x1c7   : > { %3801 = vmatpush2.bf16.msra.mxu0 %v5256_v7  ;;  %v5322_v7 = vld [vmem:[%s5685_s8 + $0xce0] ss:$8 sps:$4 sm:$0xff]  }
 0x1c8   : > { %3802 = vmatprep.subr.bf16.mxu0 %v5264_v8  ;;  %v5330_v8 = vld [vmem:[%s5685_s8 + $0xcd4] ss:$8 sps:$4 sm:$0xff]  }
 0x1c9   : > { %3842 = vmatpush2.bf16.msra.mxu1 %v5259_v9  ;;  %v5325_v9 = vld [vmem:[%s5685_s8 + $0xde0] ss:$8 sps:$4 sm:$0xff]  }
 0x1ca   : > { %3843 = vmatprep.subr.bf16.mxu1 %v5267_v10  ;;  %v5333_v10 = vld [vmem:[%s5685_s8 + $0xdd4] ss:$8 sps:$4 sm:$0xff]  }
 0x1cb   : > { %3803 = vmatpush2.bf16.msra.mxu0 %v5262_v11  ;;  %v5328_v11 = vld [vmem:[%s5685_s8 + $0xcd0] ss:$8 sps:$4 sm:$0xff]  }
 0x1cc   : > { %3854 = vmatprep.subr.bf16.mxu0 %v5270_v13  ;;  %v5331_v13 = vld [vmem:[%s5685_s8 + $0xdd0] ss:$8 sps:$4 sm:$0xff]  }
 0x1cd   : > { %3844 = vmatpush2.bf16.msra.mxu1 %v5265_v16  ;;  %v5334_v16 = vld [vmem:[%s5685_s8 + $0xcc0] ss:$8 sps:$4 sm:$0xff]  }
 0x1ce   : > { %v3560_v26 = vpop.f32.mrf.mxu0  ;;  %3805 = vmatmul.mubr.bf16.vlgmr.msra.gmra.mxu0 %v285_v56  ;;  %3895 = vmatprep.subr.bf16.mxu1 %v5273_v18  ;;  %v5337_v56 = vld [vmem:[%s5685_s8 + $0xdc0] ss:$8 sps:$4 sm:$0xff]   ;;  %v5345_v18 = vld [vmem:[%s5685_s8 + $0xdb4] ss:$8 sps:$4 sm:$0xff]  }
 0x1cf   : > { %v3561_v28 = vadd.f32 %v3560_v26, %v6099_v15  ;;  %3855 = vmatpush1.bf16.msra.mxu0 %v5268_v61  ;;  %3886 = vmatprep.mubr.bf16.mxu0 %v290_v21  ;;  %v5348_v61 = vld [vmem:[%s5685_s8 + $0xca4] ss:$8 sps:$4 sm:$0xff]   ;;  %v5343_v21 = vld [vmem:[%s5685_s8 + $0xdb0] ss:$8 sps:$4 sm:$0xff]   ;;  %v5357_v26 = vld [vmem:[%s5685_s8 + $0xd94] ss:$8 sps:$4 sm:$0xff]  }
 0x1d0   : > { %v3562_v30 = vpop.f32.mrf.mxu0  ;;  %v3601_v31 = vpop.f32.mrf.mxu1  ;;  %3846 = vmatmul.mubr.bf16.vlgmr.msra.gmra.mxu1 %v287_v22  ;;  %3856 = vmatprep.subr.bf16.mxu0 %v5276_v23  ;;  %v5351_v22 = vld [vmem:[%s5685_s8 + $0xda4] ss:$8 sps:$4 sm:$0xff]   ;;  %v5346_v23 = vld [vmem:[%s5685_s8 + $0xca0] ss:$8 sps:$4 sm:$0xff]  }
 0x1d1   : > { %v3563_v33 = vadd.f32 %v3562_v30, %v6103_v19  ;;  %v6180_v34 = vadd.f32 %v3601_v31, %v3561_v28  ;;  %3896 = vmatpush1.bf16.msra.mxu1 %v5271_v24  ;;  %3927 = vmatprep.mubr.bf16.mxu1 %v292_v25  ;;  %v5354_v24 = vld [vmem:[%s5685_s8 + $0xc94] ss:$8 sps:$4 sm:$0xff]   ;;  %v5349_v25 = vld [vmem:[%s5685_s8 + $0xda0] ss:$8 sps:$4 sm:$0xff]   ;;  %v5360_v28 = vld [vmem:[%s5685_s8 + $0xc84] ss:$8 sps:$4 sm:$0xff]  }
 0x1d2   : > { %v3564_v15 = vpop.f32.mrf.mxu0  ;;  %v3603_v36 = vpop.f32.mrf.mxu1  ;;  %3897 = vmatprep.subr.bf16.mxu1 %v5279_v27  ;;  %v5352_v27 = vld [vmem:[%s5685_s8 + $0xc90] ss:$8 sps:$4 sm:$0xff]   ;;  %v5363_v30 = vld [vmem:[%s5685_s8 + $0xd84] ss:$8 sps:$4 sm:$0xff]   ;;  %v5358_v31 = vld [vmem:[%s5685_s8 + $0xc80] ss:$8 sps:$4 sm:$0xff]  }
 0x1d3   : > { %v6184_v38 = vadd.f32 %v3603_v36, %v3563_v33  ;;  %3857 = vmatpush1.bf16.msra.mxu0 %v5274_v29  ;;  %v5355_v29 = vld [vmem:[%s5685_s8 + $0xd90] ss:$8 sps:$4 sm:$0xff]   ;;  %v5366_v33 = vld [vmem:[%s5685_s8 + $0xe74] ss:$8 sps:$4 sm:$0xff]   ;;  %v5361_v15 = vld [vmem:[%s5685_s8 + $0xd80] ss:$8 sps:$4 sm:$0xff]  }
 0x1d4   : > { %v3565_v40 = vpop.f32.mrf.mxu0  ;;  %3858 = vmatprep.subr.bf16.mxu0 %v5282_v32  ;;  %v3605_v19 = vpop.f32.mrf.mxu1  ;;  %v257_v32 = vld [vmem:[%s6343_s0 + $0xc0] sm:$0xff]  ;;  %v259_v36 = vld [vmem:[%s6343_s0 + $0xd0] sm:$0xff] }
 0x1d5   : > { %3898 = vmatpush1.bf16.msra.mxu1 %v5277_v35  ;;  %v262_v35 = vld [vmem:[%s6343_s0 + $0xe8] sm:$0xff]  ;;  %v264_v40 = vld [vmem:[%s6343_s0 + $0xf8] sm:$0xff] }
 0x1d6   : > { %3899 = vmatprep.subr.bf16.mxu1 %v5285_v37  ;;  %v3606_v43 = vpop.f32.mrf.mxu1  ;;  %v289_v37 = vpack.c.bf16 %v257_v32, %v257_v32  ;;  %v5364_v19 = vld [vmem:[%s5685_s8 + $0xe70] ss:$8 sps:$4 sm:$0xff]   ;;  %v5431_v32 = vld [vmem:[%s5685_s8 + $0xfb4] ss:$8 sps:$4 sm:$0xff]  }
 0x1d7   : > { %3859 = vmatpush1.bf16.msra.mxu0 %v5280_v39  ;;  %v5372_v39 = vld [vmem:[%s5685_s8 + $0xf74] ss:$8 sps:$4 sm:$0xff]   ;;  %v5369_v43 = vld [vmem:[%s5685_s8 + $0xe64] ss:$8 sps:$4 sm:$0xff]  }
 0x1d8   : > { %3860 = vmatprep.subr.bf16.mxu0 %v5288_v41  ;;  %v294_v41 = vpack.c.bf16 %v262_v35, %v262_v35  ;;  %v5428_v35 = vld [vmem:[%s5685_s8 + $0xec4] ss:$8 sps:$4 sm:$0xff]  }
 0x1d9   : > { %3900 = vmatpush1.bf16.msra.mxu1 %v5283_v42  ;;  %v291_v42 = vpack.c.bf16 %v259_v36, %v259_v36  ;;  %v5437_v36 = vld [vmem:[%s5685_s8 + $0xfa4] ss:$8 sps:$4 sm:$0xff]  }
 0x1da   : > { %3901 = vmatprep.subr.bf16.mxu1 %v5291_v44  ;;  %v5370_v44 = vld [vmem:[%s5685_s8 + $0xf70] ss:$8 sps:$4 sm:$0xff]  }
 0x1db   : > { %3861 = vmatpush1.bf16.msra.mxu0 %v5286_v45  ;;  %v296_v45 = vpack.c.bf16 %v264_v40, %v264_v40  ;;  %v5435_v40 = vld [vmem:[%s5685_s8 + $0xfa0] ss:$8 sps:$4 sm:$0xff]  }
 0x1dc   : > { %3862 = vmatprep.subr.bf16.mxu0 %v5294_v46 }
 0x1dd   : > { %3902 = vmatpush1.bf16.msra.mxu1 %v5289_v47  ;;  %v5378_v47 = vld [vmem:[%s5685_s8 + $0xf64] ss:$8 sps:$4 sm:$0xff]  }
 0x1de   : > { %3903 = vmatprep.subr.bf16.mxu1 %v5297_v48 }
 0x1df   : > { %3863 = vmatpush1.bf16.msra.mxu0 %v5292_v49  ;;  %v5367_v49 = vld [vmem:[%s5685_s8 + $0xe60] ss:$8 sps:$4 sm:$0xff]  }
 0x1e0   : > { %3864 = vmatprep.subr.bf16.mxu0 %v5300_v50 }
 0x1e1   : > { %3904 = vmatpush1.bf16.msra.mxu1 %v5295_v51 }
 0x1e2   : > { %3905 = vmatprep.subr.bf16.mxu1 %v5303_v52  ;;  %v5375_v52 = vld [vmem:[%s5685_s8 + $0xe54] ss:$8 sps:$4 sm:$0xff]  }
 0x1e3   : > { %3865 = vmatpush1.bf16.msra.mxu0 %v5298_v53 }
 0x1e4   : > { %3866 = vmatprep.subr.bf16.mxu0 %v5306_v54 }
 0x1e5   : > { %3906 = vmatpush1.bf16.msra.mxu1 %v5301_v55  ;;  %v5376_v55 = vld [vmem:[%s5685_s8 + $0xf60] ss:$8 sps:$4 sm:$0xff]  }
 0x1e6   : > { %3907 = vmatprep.subr.bf16.mxu1 %v5309_v57 }
 0x1e7   : > { %3867 = vmatpush1.bf16.msra.mxu0 %v5304_v58  ;;  %v5384_v58 = vld [vmem:[%s5685_s8 + $0xf54] ss:$8 sps:$4 sm:$0xff]  }
 0x1e8   : > { %3868 = vmatprep.subr.bf16.mxu0 %v5312_v59 }
 0x1e9   : > { %3908 = vmatpush1.bf16.msra.mxu1 %v5307_v60  ;;  %v5373_v60 = vld [vmem:[%s5685_s8 + $0xe50] ss:$8 sps:$4 sm:$0xff]  }
 0x1ea   : > { %3909 = vmatprep.subr.bf16.mxu1 %v5315_v62 }
 0x1eb   : > { %3869 = vmatpush1.bf16.msra.mxu0 %v5310_v63  ;;  %v5381_v63 = vld [vmem:[%s5685_s8 + $0xe44] ss:$8 sps:$4 sm:$0xff]  }
 0x1ec   : > { %3870 = vmatprep.subr.bf16.mxu0 %v5318_v0  ;;  %v5382_v0 = vld [vmem:[%s5685_s8 + $0xf50] ss:$8 sps:$4 sm:$0xff]  }
 0x1ed   : > { %3910 = vmatpush1.bf16.msra.mxu1 %v5313_v1 }
 0x1ee   : > { %3911 = vmatprep.subr.bf16.mxu1 %v5321_v2  ;;  %v5390_v2 = vld [vmem:[%s5685_s8 + $0xf44] ss:$8 sps:$4 sm:$0xff]  }
 0x1ef   : > { %3871 = vmatpush2.bf16.msra.mxu0 %v5316_v3  ;;  %v5379_v3 = vld [vmem:[%s5685_s8 + $0xe40] ss:$8 sps:$4 sm:$0xff]  }
 0x1f0   : > { %3872 = vmatprep.subr.bf16.mxu0 %v5324_v4  ;;  %v5387_v4 = vld [vmem:[%s5685_s8 + $0xe34] ss:$8 sps:$4 sm:$0xff]  }
 0x1f1   : > { %3912 = vmatpush2.bf16.msra.mxu1 %v5319_v5  ;;  %v5388_v5 = vld [vmem:[%s5685_s8 + $0xf40] ss:$8 sps:$4 sm:$0xff]  }
 0x1f2   : > { %3913 = vmatprep.subr.bf16.mxu1 %v5327_v6  ;;  %v5396_v6 = vld [vmem:[%s5685_s8 + $0xf34] ss:$8 sps:$4 sm:$0xff]  }
 0x1f3   : > { %3873 = vmatpush2.bf16.msra.mxu0 %v5322_v7  ;;  %v5385_v7 = vld [vmem:[%s5685_s8 + $0xe30] ss:$8 sps:$4 sm:$0xff]  }
 0x1f4   : > { %3874 = vmatprep.subr.bf16.mxu0 %v5330_v8  ;;  %v5393_v8 = vld [vmem:[%s5685_s8 + $0xe24] ss:$8 sps:$4 sm:$0xff]  }
 0x1f5   : > { %3914 = vmatpush2.bf16.msra.mxu1 %v5325_v9  ;;  %v5394_v9 = vld [vmem:[%s5685_s8 + $0xf30] ss:$8 sps:$4 sm:$0xff]  }
 0x1f6   : > { %3915 = vmatprep.subr.bf16.mxu1 %v5333_v10  ;;  %v5402_v10 = vld [vmem:[%s5685_s8 + $0xf24] ss:$8 sps:$4 sm:$0xff]  }
 0x1f7   : > { %3875 = vmatpush2.bf16.msra.mxu0 %v5328_v11  ;;  %v5391_v11 = vld [vmem:[%s5685_s8 + $0xe20] ss:$8 sps:$4 sm:$0xff]  }
 0x1f8   : > { %3876 = vmatprep.subr.bf16.mxu0 %v5336_v12  ;;  %v5399_v12 = vld [vmem:[%s5685_s8 + $0xe14] ss:$8 sps:$4 sm:$0xff]  }
 0x1f9   : > { %3916 = vmatpush2.bf16.msra.mxu1 %v5331_v13  ;;  %v5400_v13 = vld [vmem:[%s5685_s8 + $0xf20] ss:$8 sps:$4 sm:$0xff]  }
 0x1fa   : > { %3917 = vmatprep.subr.bf16.mxu1 %v5339_v14  ;;  %v5408_v14 = vld [vmem:[%s5685_s8 + $0xf14] ss:$8 sps:$4 sm:$0xff]  }
 0x1fb   : > { %3877 = vmatpush2.bf16.msra.mxu0 %v5334_v16  ;;  %v5397_v16 = vld [vmem:[%s5685_s8 + $0xe10] ss:$8 sps:$4 sm:$0xff]  }
 0x1fc   : > { %3878 = vmatprep.subr.bf16.mxu0 %v5342_v17  ;;  %v5405_v17 = vld [vmem:[%s5685_s8 + $0xe04] ss:$8 sps:$4 sm:$0xff]  }
 0x1fd   : > { %3918 = vmatpush2.bf16.msra.mxu1 %v5337_v56  ;;  %v5406_v56 = vld [vmem:[%s5685_s8 + $0xf10] ss:$8 sps:$4 sm:$0xff]  }
 0x1fe   : > { %3919 = vmatprep.subr.bf16.mxu1 %v5345_v18  ;;  %v5414_v18 = vld [vmem:[%s5685_s8 + $0xf04] ss:$8 sps:$4 sm:$0xff]  }
 0x1ff   : > { %3879 = vmatpush2.bf16.msra.mxu0 %v5340_v20  ;;  %v5403_v20 = vld [vmem:[%s5685_s8 + $0xe00] ss:$8 sps:$4 sm:$0xff]  }
 0x200   : > { %3880 = vmatprep.subr.bf16.mxu0 %v5348_v61  ;;  %v803_v61 = vld [vmem:[%s5685_s8 + $0xfd0] sm:$0xff] }
 0x201   : > { %3920 = vmatpush2.bf16.msra.mxu1 %v5343_v21  ;;  %v5411_v21 = vld [vmem:[%s5685_s8 + $0xef4] ss:$8 sps:$4 sm:$0xff]  }
 0x202   : > { %3921 = vmatprep.subr.bf16.mxu1 %v5351_v22  ;;  %v5412_v22 = vld [vmem:[%s5685_s8 + $0xf00] ss:$8 sps:$4 sm:$0xff]  }
 0x203   : > { %3881 = vmatpush2.bf16.msra.mxu0 %v5346_v23  ;;  %v4636_v23 = vcombine.high %v803_v61, %v803_v61 }
 0x204   : > { %3882 = vmatprep.subr.bf16.mxu0 %v5354_v24  ;;  %v4635_v24 = vcombine.low %v803_v61, %v803_v61 }
 0x205   : > { %3922 = vmatpush2.bf16.msra.mxu1 %v5349_v25  ;;  %v5409_v25 = vld [vmem:[%s5685_s8 + $0xef0] ss:$8 sps:$4 sm:$0xff]  }
 0x206   : > { %3923 = vmatprep.subr.bf16.mxu1 %v5357_v26  ;;  %v5417_v26 = vld [vmem:[%s5685_s8 + $0xee4] ss:$8 sps:$4 sm:$0xff]  }
 0x207   : > { %3883 = vmatpush2.bf16.msra.mxu0 %v5352_v27  ;;  %v3357_v27 = vsel %vm3355_vm1, %v4635_v24, 0 }
 0x208   : > { %3884 = vmatprep.subr.bf16.mxu0 %v5360_v28  ;;  %v5425_v28 = vld [vmem:[%s5685_s8 + $0xfc4] ss:$8 sps:$4 sm:$0xff]  }
 0x209   : > { %3924 = vmatpush2.bf16.msra.mxu1 %v5355_v29  ;;  %v5415_v29 = vld [vmem:[%s5685_s8 + $0xee0] ss:$8 sps:$4 sm:$0xff]  }
 0x20a   : > { %3925 = vmatprep.subr.bf16.mxu1 %v5363_v30  ;;  %v5422_v30 = vld [vmem:[%s5685_s8 + $0xed4] ss:$8 sps:$4 sm:$0xff]  }
 0x20b   : > { %3885 = vmatpush2.bf16.msra.mxu0 %v5358_v31  ;;  %v5423_v31 = vld [vmem:[%s5685_s8 + $0xfc0] ss:$8 sps:$4 sm:$0xff]  }
 0x20c   : > { %3936 = vmatprep.subr.bf16.mxu0 %v5366_v33  ;;  %v5420_v33 = vld [vmem:[%s5685_s8 + $0xed0] ss:$8 sps:$4 sm:$0xff]  }
 0x20d   : > { %3926 = vmatpush2.bf16.msra.mxu1 %v5361_v15  ;;  %v5429_v15 = vld [vmem:[%s5685_s8 + $0xfb0] ss:$8 sps:$4 sm:$0xff]  }
 0x20e   : > { %v3642_v46 = vpop.f32.mrf.mxu0  ;;  %3887 = vmatmul.mubr.bf16.vlgmr.msra.gmra.mxu0 %v289_v37  ;;  %3977 = vmatprep.subr.bf16.mxu1 %v5372_v39  ;;  %v5426_v37 = vld [vmem:[%s5685_s8 + $0xec0] ss:$8 sps:$4 sm:$0xff]   ;;  %v5434_v39 = vld [vmem:[%s5685_s8 + $0xeb4] ss:$8 sps:$4 sm:$0xff]  }
 0x20f   : > { %v3643_v48 = vadd.f32 %v3642_v46, %v6180_v34  ;;  %3937 = vmatpush1.bf16.msra.mxu0 %v5364_v19  ;;  %3968 = vmatprep.mubr.bf16.mxu0 %v294_v41  ;;  %v5443_v19 = vld [vmem:[%s5685_s8 + $0xf94] ss:$8 sps:$4 sm:$0xff]   ;;  %v5432_v41 = vld [vmem:[%s5685_s8 + $0xeb0] ss:$8 sps:$4 sm:$0xff]  }
 0x210   : > { %v3644_v50 = vpop.f32.mrf.mxu0  ;;  %v3683_v51 = vpop.f32.mrf.mxu1  ;;  %3928 = vmatmul.mubr.bf16.vlgmr.msra.gmra.mxu1 %v291_v42  ;;  %3938 = vmatprep.subr.bf16.mxu0 %v5369_v43  ;;  %v5440_v42 = vld [vmem:[%s5685_s8 + $0xea4] ss:$8 sps:$4 sm:$0xff]   ;;  %v5441_v43 = vld [vmem:[%s5685_s8 + $0xf90] ss:$8 sps:$4 sm:$0xff]   ;;  %v5446_v46 = vld [vmem:[%s5685_s8 + $0xe94] ss:$8 sps:$4 sm:$0xff]  }
 0x211   : > { %v3645_v53 = vadd.f32 %v3644_v50, %v6184_v38  ;;  %v6262_v54 = vadd.f32 %v3683_v51, %v3643_v48  ;;  %3978 = vmatpush1.bf16.msra.mxu1 %v5370_v44  ;;  %4638 = vmatprep.mubr.msk.bf16.mxu1 %vm3351_vm0, %v296_v45  ;;  %v5449_v44 = vld [vmem:[%s5685_s8 + $0xf84] ss:$8 sps:$4 sm:$0xff]   ;;  %v5438_v45 = vld [vmem:[%s5685_s8 + $0xea0] ss:$8 sps:$4 sm:$0xff]   ;;  %v263_v48 = vld [vmem:[%s6343_s0 + $0xf0] sm:$0xff] }
 0x212   : > { %v3646_v34 = vpop.f32.mrf.mxu0  ;;  %v3685_v57 = vpop.f32.mrf.mxu1  ;;  %3979 = vmatprep.subr.bf16.mxu1 %v5378_v47  ;;  %v5447_v47 = vld [vmem:[%s5685_s8 + $0xf80] ss:$8 sps:$4 sm:$0xff]   ;;  %v5452_v50 = vld [vmem:[%s5685_s8 + $0xe84] ss:$8 sps:$4 sm:$0xff]   ;;  %v295_v51 = vpack.c.bf16 %v263_v48, %v263_v48 }
 0x213   : > { %v6266_v59 = vadd.f32 %v3685_v57, %v3645_v53  ;;  %3939 = vmatpush1.bf16.msra.mxu0 %v5367_v49  ;;  %v5444_v49 = vld [vmem:[%s5685_s8 + $0xe90] ss:$8 sps:$4 sm:$0xff]   ;;  %v261_v53 = vld [vmem:[%s6343_s0 + $0xe0] sm:$0xff] }
 0x214   : > { %v3647_v62 = vpop.f32.mrf.mxu0  ;;  %3940 = vmatprep.subr.bf16.mxu0 %v5375_v52  ;;  %v3687_v38 = vpop.f32.mrf.mxu1  ;;  %v5450_v52 = vld [vmem:[%s5685_s8 + $0xe80] ss:$8 sps:$4 sm:$0xff]   ;;  %s4127_s8 = sshll.u32 %s4116_s16, 1 }
 0x215   : > { %3980 = vmatpush1.bf16.msra.mxu1 %v5376_v55  ;;  %v293_v55 = vpack.c.bf16 %v261_v53, %v261_v53  ;;  %p227_p7 = scmp.lt.s32.totalorder %s4127_s8, 7 }
 0x216   : > { %v3688_v1 = vpop.f32.mrf.mxu1  ;;  %3981 = vmatprep.subr.bf16.mxu1 %v5384_v58 }
 0x217   : > { %3941 = vmatpush1.bf16.msra.mxu0 %v5373_v60  ;;  %s6358_s8 = smov (!%p227_p7, %s4127_s8), 7 }
 0x218   : > { %3942 = vmatprep.subr.bf16.mxu0 %v5381_v63  ;;  %s4128_s28 = sshll.u32 %s6358_s8, 3 }
 0x219   : > { %3982 = vmatpush1.bf16.msra.mxu1 %v5382_v0  ;;  %s230_s16 = scalar_lea.vmem %s6346_s3, %s4128_s28 }
 0x21a   : > { %3983 = vmatprep.subr.bf16.mxu1 %v5390_v2 }
 0x21b   : > { %3943 = vmatpush1.bf16.msra.mxu0 %v5379_v3 }
 0x21c   : > { %3944 = vmatprep.subr.bf16.mxu0 %v5387_v4 }
 0x21d   : > { %3984 = vmatpush1.bf16.msra.mxu1 %v5388_v5 }
 0x21e   : > { %3985 = vmatprep.subr.bf16.mxu1 %v5396_v6 }
 0x21f   : > { %3945 = vmatpush1.bf16.msra.mxu0 %v5385_v7 }
 0x220   : > { %3946 = vmatprep.subr.bf16.mxu0 %v5393_v8 }
 0x221   : > { %3986 = vmatpush1.bf16.msra.mxu1 %v5394_v9 }
 0x222   : > { %3987 = vmatprep.subr.bf16.mxu1 %v5402_v10 }
 0x223   : > { %3947 = vmatpush1.bf16.msra.mxu0 %v5391_v11 }
 0x224   : > { %3948 = vmatprep.subr.bf16.mxu0 %v5399_v12 }
 0x225   : > { %3988 = vmatpush1.bf16.msra.mxu1 %v5400_v13 }
 0x226   : > { %3989 = vmatprep.subr.bf16.mxu1 %v5408_v14 }
 0x227   : > { %3949 = vmatpush1.bf16.msra.mxu0 %v5397_v16 }
 0x228   : > { %3950 = vmatprep.subr.bf16.mxu0 %v5405_v17 }
 0x229   : > { %3990 = vmatpush1.bf16.msra.mxu1 %v5406_v56 }
 0x22a   : > { %3991 = vmatprep.subr.bf16.mxu1 %v5414_v18 }
 0x22b   : > { %3951 = vmatpush1.bf16.msra.mxu0 %v5403_v20 }
 0x22c   : > { %3952 = vmatprep.subr.bf16.mxu0 %v5411_v21 }
 0x22d   : > { %3992 = vmatpush1.bf16.msra.mxu1 %v5412_v22 }
 0x22e   : > { %4637 = vmatprep.subr.msk.bf16.mxu1 %vm3355_vm1, %v4636_v23 }
 0x22f   : > { %3953 = vmatpush2.bf16.msra.mxu0 %v5409_v25 }
 0x230   : > { %3954 = vmatprep.subr.bf16.mxu0 %v5417_v26 }
 0x231   : > { %3998 = vmatpush2.bf16.msra.mxu1 %v3357_v27 }
 0x232   : > { %3999 = vmatprep.subr.bf16.mxu1 %v5425_v28 }
 0x233   : > { %3955 = vmatpush2.bf16.msra.mxu0 %v5415_v29 }
 0x234   : > { %3956 = vmatprep.subr.bf16.mxu0 %v5422_v30 }
 0x235   : > { %4000 = vmatpush2.bf16.msra.mxu1 %v5423_v31 }
 0x236   : > { %4001 = vmatprep.subr.bf16.mxu1 %v5431_v32 }
 0x237   : > { %3957 = vmatpush2.bf16.msra.mxu0 %v5420_v33 }
 0x238   : > { %3958 = vmatprep.subr.bf16.mxu0 %v5428_v35 }
 0x239   : > { %4002 = vmatpush2.bf16.msra.mxu1 %v5429_v15 }
 0x23a   : > { %4003 = vmatprep.subr.bf16.mxu1 %v5437_v36 }
 0x23b   : > { %3959 = vmatpush2.bf16.msra.mxu0 %v5426_v37 }
 0x23c   : > { %3960 = vmatprep.subr.bf16.mxu0 %v5434_v39 }
 0x23d   : > { %4004 = vmatpush2.bf16.msra.mxu1 %v5435_v40 }
 0x23e   : > { %4005 = vmatprep.subr.bf16.mxu1 %v5443_v19 }
 0x23f   : > { %3961 = vmatpush2.bf16.msra.mxu0 %v5432_v41 }
 0x240   : > { %3962 = vmatprep.subr.bf16.mxu0 %v5440_v42 }
 0x241   : > { %4006 = vmatpush2.bf16.msra.mxu1 %v5441_v43 }
 0x242   : > { %4007 = vmatprep.subr.bf16.mxu1 %v5449_v44 }
 0x243   : > { %3963 = vmatpush2.bf16.msra.mxu0 %v5438_v45 }
 0x244   : > { %3964 = vmatprep.subr.bf16.mxu0 %v5446_v46 }
 0x245   : > { %4008 = vmatpush2.bf16.msra.mxu1 %v5447_v47 }
 0x247   : > { %3965 = vmatpush2.bf16.msra.mxu0 %v5444_v49 }
 0x248   : > { %3966 = vmatprep.subr.bf16.mxu0 %v5452_v50  ;;  %4010 = vmatmul.mubr.bf16.vlgmr.msra.gmra.mxu1 %v295_v51 }
 0x24b   : > { %3967 = vmatpush2.bf16.msra.mxu0 %v5450_v52 }
 0x24e   : > { %v3724_v34 = vpop.f32.mrf.mxu0  ;;  %3969 = vmatmul.mubr.bf16.vlgmr.msra.gmra.mxu0 %v293_v55 }
 0x24f   : > { %v3725_v57 = vadd.f32 %v3724_v34, %v6262_v54 }
 0x250   : > { %v3726_v58 = vpop.f32.mrf.mxu0  ;;  %v3765_v60 = vpop.f32.mrf.mxu1 }
 0x251   : > { %v3727_v62 = vadd.f32 %v3726_v58, %v6266_v59  ;;  %v3766_v38 = vadd.f32 %v3765_v60, %v3725_v57 }
 0x252   : > { %v3728_v63 = vpop.f32.mrf.mxu0  ;;  %v3767_v0 = vpop.f32.mrf.mxu1 }
 0x253   : > { %v3768_v1 = vadd.f32 %v3767_v0, %v3727_v62 }
 0x254   : > { %v3729_v2 = vpop.f32.mrf.mxu0  ;;  %v3769_v3 = vpop.f32.mrf.mxu1 }
 0x256   : > { %v3770_v4 = vpop.f32.mrf.mxu1 }
 0x28e   : > { %v3806_v5 = vpop.f32.mrf.mxu0 }
 0x28f   : > { %v3807_v6 = vadd.f32 %v3806_v5, %v3766_v38 }
 0x290   : > { %v3808_v7 = vpop.f32.mrf.mxu0  ;;  %v3847_v8 = vpop.f32.mrf.mxu1 }
 0x291   : > { %v3809_v9 = vadd.f32 %v3808_v7, %v3768_v1  ;;  %v3848_v10 = vadd.f32 %v3847_v8, %v3807_v6 }
 0x292   : > { %v3810_v11 = vpop.f32.mrf.mxu0  ;;  %v3849_v54 = vpop.f32.mrf.mxu1 }
 0x293   : > { %v3850_v12 = vadd.f32 %v3849_v54, %v3809_v9 }
 0x294   : > { %v3811_v13 = vpop.f32.mrf.mxu0  ;;  %v3851_v14 = vpop.f32.mrf.mxu1 }
 0x296   : > { %v3852_v59 = vpop.f32.mrf.mxu1 }
 0x2ce   : > { %v3888_v16 = vpop.f32.mrf.mxu0 }
 0x2cf   : > { %v3889_v24 = vadd.f32 %v3888_v16, %v3848_v10 }
 0x2d0   : > { %v3890_v17 = vpop.f32.mrf.mxu0  ;;  %v3929_v56 = vpop.f32.mrf.mxu1 }
 0x2d1   : > { %v3891_v26 = vadd.f32 %v3890_v17, %v3850_v12  ;;  %v3930_v28 = vadd.f32 %v3929_v56, %v3889_v24 }
 0x2d2   : > { %v3892_v18 = vpop.f32.mrf.mxu0  ;;  %v3931_v20 = vpop.f32.mrf.mxu1 }
 0x2d3   : > { %v3932_v31 = vadd.f32 %v3931_v20, %v3891_v26 }
 0x2d4   : > { %v3893_v61 = vpop.f32.mrf.mxu0  ;;  %v3933_v21 = vpop.f32.mrf.mxu1 }
 0x2d6   : > { %v3934_v22 = vpop.f32.mrf.mxu1 }
 0x308   : > { %v4011_v23 = vpop.f32.mrf.mxu1 }
 0x30a   : > { %v4013_v25 = vpop.f32.mrf.mxu1 }
 0x30c   : > { %v4015_v27 = vpop.f32.mrf.mxu1 }
 0x30e   : > { %v3970_v29 = vpop.f32.mrf.mxu0  ;;  %v4016_v30 = vpop.f32.mrf.mxu1 }
 0x30f   : > { %v3971_v32 = vadd.f32 %v3970_v29, %v3930_v28 }
 0x310   : > { %v3972_v33 = vpop.f32.mrf.mxu0 }
 0x311   : > { %v4012_v35 = vadd.f32 %v4011_v23, %v3971_v32  ;;  %v3973_v15 = vadd.f32 %v3972_v33, %v3932_v31 }
 0x312   : > { %v3974_v36 = vpop.f32.mrf.mxu0 }
 0x313   : > { %vm4018_vm2 = vcmp.gt.f32.partialorder %v4012_v35, 0.0  ;;  %v4020_v37 = vmul.f32 0.2, %v4012_v35  ;;  %v4014_v39 = vadd.f32 %v4013_v25, %v3973_v15 }
 0x314   : > { %v3975_v40 = vpop.f32.mrf.mxu0 }
 0x315   : > { %v4022_v19 = vsel %vm4018_vm2, %v4012_v35, %v4020_v37  ;;  %vm4019_vm3 = vcmp.gt.f32.partialorder %v4014_v39, 0.0  ;;  %v4021_v41 = vmul.f32 0.2, %v4014_v39 }
 0x316   : > { %4024 = vst [vmem:[%s230_s16] sm:$0xff] %v4022_v19 }
 0x317   : > { %v4023_v42 = vsel %vm4019_vm3, %v4014_v39, %v4021_v41 }
 0x318   : > { %4025 = vst [vmem:[%s230_s16 + $0x8] sm:$0xff] %v4023_v42 }
 0x319 PF: > { %p16_p8 = scmp.ge.s32.totalorder %s5594_s17, 6   ;;  %s6353_s12 = smov %s5539_s13 }
 0x31a   : > { %s6354_s13 = smov %s5543_s14  ;;  %s6355_s14 = smov %s5604_s20 }
 0x31b   : > { %s6356_s15 = smov %s5594_s17  ;;  %18 = sbr.rel (!%p16_p8) target bundleno = 5 (0x5), region = 85 }
 0x320   :  { %4048 = vsyncpa [#allocation3], 1 }
 0x321   :  { %4050 = vsyncpa [#allocation3 + $0x1], 1 }
 0x322   :  { %4051 = vsyncpa [#allocation5], 1 }
 0x323   :  { %4053 = vsyncpa [#allocation5 + $0x1], 1 }

// kernel: ae_forward.15
= control target key start
LH: loop header
LB: loop body
LE: loop exit
PB: predicated region body
PF: predicated region fallthrough
CT: control target
= control target key end

     0   :  { %vm2119_vm0 = vcmask 1043456   ;;  %vm2115_vm1 = vcmask 719872   ;;  %s4548_s0 = inlined_call_operand.vmem [shape: f32[8,4056], index: 0, kind: input, shape index: {}]   ;;  %s4549_s1 = inlined_call_operand.vmem [shape: bf16[4056,128], index: 1, kind: input, shape index: {}]   ;;  %s4550_s2 = inlined_call_operand.vmem [shape: f32[1,128], index: 2, kind: input, shape index: {}]   ;;  %s4551_s3 = inlined_call_operand.hbm [shape: f32[8,128], index: 3, kind: output, shape index: {}]  }
   0x1   :  { %v3367_v0 = vld [vmem:[%s4549_s1 + $0x78] sm:$0xff]   ;;  %v3371_v4 = vld [vmem:[%s4549_s1 + $0x70] sm:$0xff]   ;;  %v3375_v8 = vld [vmem:[%s4549_s1 + $0x68] sm:$0xff]  }
   0x2   :  { %v3368_v1 = vld [vmem:[%s4549_s1 + $0xf8] sm:$0xff]   ;;  %3035 = vmatprep.subr.bf16.mxu0 %v3367_v0  ;;  %v3372_v5 = vld [vmem:[%s4549_s1 + $0xf0] sm:$0xff]   ;;  %v3376_v9 = vld [vmem:[%s4549_s1 + $0xe8] sm:$0xff]  }
   0x3   :  { %v3369_v2 = vld [vmem:[%s4549_s1 + $0x38] sm:$0xff]   ;;  %3057 = vmatprep.subr.bf16.mxu1 %v3368_v1  ;;  %v3373_v6 = vld [vmem:[%s4549_s1 + $0x30] sm:$0xff]   ;;  %v3377_v10 = vld [vmem:[%s4549_s1 + $0x28] sm:$0xff]  }
   0x4   :  { %v3370_v3 = vld [vmem:[%s4549_s1 + $0xb8] sm:$0xff]   ;;  %3036 = vmatpush3.bf16.msra.mxu0 %v3369_v2  ;;  %v3374_v7 = vld [vmem:[%s4549_s1 + $0xb0] sm:$0xff]   ;;  %v3378_v11 = vld [vmem:[%s4549_s1 + $0xa8] sm:$0xff]  }
   0x5   :  { %3058 = vmatpush3.bf16.msra.mxu1 %v3370_v3  ;;  %3037 = vmatprep.subr.bf16.mxu0 %v3371_v4  ;;  %v3379_v12 = vld [vmem:[%s4549_s1 + $0x60] sm:$0xff]   ;;  %v3383_v16 = vld [vmem:[%s4549_s1 + $0x58] sm:$0xff]   ;;  %v3387_v20 = vld [vmem:[%s4549_s1 + $0x50] sm:$0xff]  }
   0x6   :  { %3059 = vmatprep.subr.bf16.mxu1 %v3372_v5  ;;  %v3380_v13 = vld [vmem:[%s4549_s1 + $0xe0] sm:$0xff]   ;;  %v3384_v17 = vld [vmem:[%s4549_s1 + $0xd8] sm:$0xff]   ;;  %v3388_v21 = vld [vmem:[%s4549_s1 + $0xd0] sm:$0xff]  }
   0x7   :  { %v3381_v14 = vld [vmem:[%s4549_s1 + $0x20] sm:$0xff]   ;;  %v3385_v18 = vld [vmem:[%s4549_s1 + $0x18] sm:$0xff]   ;;  %v3389_v22 = vld [vmem:[%s4549_s1 + $0x10] sm:$0xff]  }
   0x8   :  { %3038 = vmatpush3.bf16.msra.mxu0 %v3373_v6  ;;  %v3382_v15 = vld [vmem:[%s4549_s1 + $0xa0] sm:$0xff]   ;;  %v3386_v19 = vld [vmem:[%s4549_s1 + $0x98] sm:$0xff]   ;;  %v3390_v23 = vld [vmem:[%s4549_s1 + $0x90] sm:$0xff]  }
   0x9   :  { %3060 = vmatpush3.bf16.msra.mxu1 %v3374_v7  ;;  %3039 = vmatprep.subr.bf16.mxu0 %v3375_v8  ;;  %v3391_v24 = vld [vmem:[%s4549_s1 + $0x48] sm:$0xff]   ;;  %v3395_v28 = vld [vmem:[%s4549_s1 + $0x40] sm:$0xff]   ;;  %v19_v33 = vld [vmem:[%s4548_s0 + $0x18] sm:$0xff] }
   0xa   :  { %3061 = vmatprep.subr.bf16.mxu1 %v3376_v9  ;;  %v3392_v25 = vld [vmem:[%s4549_s1 + $0xc8] sm:$0xff]   ;;  %v3396_v29 = vld [vmem:[%s4549_s1 + $0xc0] sm:$0xff]   ;;  %v51_v36 = vpack.c.bf16 %v19_v33, %v19_v33  ;;  %v18_v38 = vld [vmem:[%s4548_s0 + $0x10] sm:$0xff] }
   0xb   :  { %v3393_v26 = vld [vmem:[%s4549_s1 + $0x8] sm:$0xff]   ;;  %v3397_v30 = vld [vmem:[%s4549_s1] sm:$0xff]   ;;  %v50_v39 = vpack.c.bf16 %v18_v38, %v18_v38  ;;  %v3399_v40 = vld [vmem:[%s4549_s1 + $0x178] sm:$0xff]  }
   0xc   :  { %3040 = vmatpush3.bf16.msra.mxu0 %v3377_v10  ;;  %v3394_v27 = vld [vmem:[%s4549_s1 + $0x88] sm:$0xff]   ;;  %v3398_v31 = vld [vmem:[%s4549_s1 + $0x80] sm:$0xff]   ;;  %2195 = vmatprep.mubr.bf16.mxu1 %v51_v36  ;;  %v3400_v41 = vld [vmem:[%s4549_s1 + $0x1f8] sm:$0xff]  }
   0xd   :  { %3062 = vmatpush3.bf16.msra.mxu1 %v3378_v11  ;;  %3041 = vmatprep.subr.bf16.mxu0 %v3379_v12  ;;  %v17_v32 = vld [vmem:[%s4548_s0 + $0x8] sm:$0xff]  ;;  %v16_v34 = vld [vmem:[%s4548_s0] sm:$0xff]  ;;  %v3401_v42 = vld [vmem:[%s4549_s1 + $0x138] sm:$0xff]  }
   0xe   :  { %3063 = vmatprep.subr.bf16.mxu1 %v3380_v13  ;;  %v49_v35 = vpack.c.bf16 %v17_v32, %v17_v32  ;;  %v48_v37 = vpack.c.bf16 %v16_v34, %v16_v34  ;;  %v3402_v43 = vld [vmem:[%s4549_s1 + $0x1b8] sm:$0xff]   ;;  %v3403_v44 = vld [vmem:[%s4549_s1 + $0x170] sm:$0xff]   ;;  %v3407_v48 = vld [vmem:[%s4549_s1 + $0x168] sm:$0xff]  }
   0xf   :  { %v3404_v45 = vld [vmem:[%s4549_s1 + $0x1f0] sm:$0xff]   ;;  %v3408_v49 = vld [vmem:[%s4549_s1 + $0x1e8] sm:$0xff]   ;;  %v3411_v52 = vld [vmem:[%s4549_s1 + $0x160] sm:$0xff]  }
  0x10   :  { %3042 = vmatpush3.bf16.msra.mxu0 %v3381_v14  ;;  %2155 = vmatprep.mubr.bf16.mxu0 %v49_v35  ;;  %v3405_v46 = vld [vmem:[%s4549_s1 + $0x130] sm:$0xff]   ;;  %v3409_v50 = vld [vmem:[%s4549_s1 + $0x128] sm:$0xff]   ;;  %v3412_v53 = vld [vmem:[%s4549_s1 + $0x1e0] sm:$0xff]  }
  0x11   :  { %3064 = vmatpush3.bf16.msra.mxu1 %v3382_v15  ;;  %3043 = vmatprep.subr.bf16.mxu0 %v3383_v16  ;;  %v3406_v47 = vld [vmem:[%s4549_s1 + $0x1b0] sm:$0xff]   ;;  %v3410_v51 = vld [vmem:[%s4549_s1 + $0x1a8] sm:$0xff]   ;;  %v3413_v54 = vld [vmem:[%s4549_s1 + $0x120] sm:$0xff]  }
  0x12   :  { %3065 = vmatprep.subr.bf16.mxu1 %v3384_v17  ;;  %v3414_v55 = vld [vmem:[%s4549_s1 + $0x1a0] sm:$0xff]   ;;  %v3415_v56 = vld [vmem:[%s4549_s1 + $0x158] sm:$0xff]   ;;  %v3419_v60 = vld [vmem:[%s4549_s1 + $0x150] sm:$0xff]  }
  0x13   :  { %v3416_v57 = vld [vmem:[%s4549_s1 + $0x1d8] sm:$0xff]   ;;  %v3420_v61 = vld [vmem:[%s4549_s1 + $0x1d0] sm:$0xff]   ;;  %v3423_v0 = vld [vmem:[%s4549_s1 + $0x148] sm:$0xff]  }
  0x14   :  { %3044 = vmatpush3.bf16.msra.mxu0 %v3385_v18  ;;  %v3417_v58 = vld [vmem:[%s4549_s1 + $0x118] sm:$0xff]   ;;  %v3421_v62 = vld [vmem:[%s4549_s1 + $0x110] sm:$0xff]   ;;  %v3424_v1 = vld [vmem:[%s4549_s1 + $0x1c8] sm:$0xff]  }
  0x15   :  { %3066 = vmatpush3.bf16.msra.mxu1 %v3386_v19  ;;  %3045 = vmatprep.subr.bf16.mxu0 %v3387_v20  ;;  %v3418_v59 = vld [vmem:[%s4549_s1 + $0x198] sm:$0xff]   ;;  %v3422_v63 = vld [vmem:[%s4549_s1 + $0x190] sm:$0xff]   ;;  %v3425_v2 = vld [vmem:[%s4549_s1 + $0x108] sm:$0xff]  }
  0x16   :  { %3067 = vmatprep.subr.bf16.mxu1 %v3388_v21  ;;  %v3426_v3 = vld [vmem:[%s4549_s1 + $0x188] sm:$0xff]   ;;  %v3427_v4 = vld [vmem:[%s4549_s1 + $0x140] sm:$0xff]   ;;  %v23_v9 = vld [vmem:[%s4548_s0 + $0x38] sm:$0xff] }
  0x17   :  { %v3428_v5 = vld [vmem:[%s4549_s1 + $0x1c0] sm:$0xff]   ;;  %v21_v8 = vld [vmem:[%s4548_s0 + $0x28] sm:$0xff]  ;;  %v55_v11 = vpack.c.bf16 %v23_v9, %v23_v9  ;;  %v22_v13 = vld [vmem:[%s4548_s0 + $0x30] sm:$0xff] }
  0x18   :  { %3046 = vmatpush3.bf16.msra.mxu0 %v3389_v22  ;;  %v3429_v6 = vld [vmem:[%s4549_s1 + $0x100] sm:$0xff]   ;;  %v53_v10 = vpack.c.bf16 %v21_v8, %v21_v8  ;;  %v54_v15 = vpack.c.bf16 %v22_v13, %v22_v13  ;;  %v3431_v16 = vld [vmem:[%s4549_s1 + $0x278] sm:$0xff]   ;;  %v3435_v20 = vld [vmem:[%s4549_s1 + $0x270] sm:$0xff]  }
  0x19   :  { %3068 = vmatpush3.bf16.msra.mxu1 %v3390_v23  ;;  %3047 = vmatprep.subr.bf16.mxu0 %v3391_v24  ;;  %v3430_v7 = vld [vmem:[%s4549_s1 + $0x180] sm:$0xff]   ;;  %v3432_v17 = vld [vmem:[%s4549_s1 + $0x2f8] sm:$0xff]   ;;  %v3436_v21 = vld [vmem:[%s4549_s1 + $0x2f0] sm:$0xff]  }
  0x1a   :  { %3069 = vmatprep.subr.bf16.mxu1 %v3392_v25  ;;  %v20_v12 = vld [vmem:[%s4548_s0 + $0x20] sm:$0xff]  ;;  %v3433_v18 = vld [vmem:[%s4549_s1 + $0x238] sm:$0xff]   ;;  %v3437_v22 = vld [vmem:[%s4549_s1 + $0x230] sm:$0xff]  }
  0x1b   :  { %v52_v14 = vpack.c.bf16 %v20_v12, %v20_v12  ;;  %v3434_v19 = vld [vmem:[%s4549_s1 + $0x2b8] sm:$0xff]   ;;  %v3438_v23 = vld [vmem:[%s4549_s1 + $0x2b0] sm:$0xff]   ;;  %v3439_v24 = vld [vmem:[%s4549_s1 + $0x268] sm:$0xff]  }
  0x1c   :  { %3048 = vmatpush3.bf16.msra.mxu0 %v3393_v26  ;;  %v3440_v25 = vld [vmem:[%s4549_s1 + $0x2e8] sm:$0xff]   ;;  %v3447_v32 = vld [vmem:[%s4549_s1 + $0x258] sm:$0xff]   ;;  %v3451_v36 = vld [vmem:[%s4549_s1 + $0x250] sm:$0xff]  }
  0x1d   :  { %3070 = vmatpush3.bf16.msra.mxu1 %v3394_v27  ;;  %3049 = vmatprep.subr.bf16.mxu0 %v3395_v28  ;;  %v3441_v26 = vld [vmem:[%s4549_s1 + $0x228] sm:$0xff]   ;;  %v3443_v28 = vld [vmem:[%s4549_s1 + $0x260] sm:$0xff]   ;;  %v3448_v33 = vld [vmem:[%s4549_s1 + $0x2d8] sm:$0xff]  }
  0x1e   :  { %3071 = vmatprep.subr.bf16.mxu1 %v3396_v29  ;;  %v3442_v27 = vld [vmem:[%s4549_s1 + $0x2a8] sm:$0xff]   ;;  %v3444_v29 = vld [vmem:[%s4549_s1 + $0x2e0] sm:$0xff]   ;;  %v3449_v34 = vld [vmem:[%s4549_s1 + $0x218] sm:$0xff]  }
  0x1f   :  { %v3450_v35 = vld [vmem:[%s4549_s1 + $0x298] sm:$0xff]   ;;  %v3453_v38 = vld [vmem:[%s4549_s1 + $0x210] sm:$0xff]  }
  0x20   :  { %3050 = vmatpush3.bf16.msra.mxu0 %v3397_v30  ;;  %v3445_v30 = vld [vmem:[%s4549_s1 + $0x220] sm:$0xff]   ;;  %v3479_v8 = vld [vmem:[%s4549_s1 + $0x358] sm:$0xff]   ;;  %v3483_v12 = vld [vmem:[%s4549_s1 + $0x350] sm:$0xff]  }
  0x21   :  { %3072 = vmatpush3.bf16.msra.mxu1 %v3398_v31  ;;  %3079 = vmatprep.subr.bf16.mxu0 %v3399_v40  ;;  %v3446_v31 = vld [vmem:[%s4549_s1 + $0x2a0] sm:$0xff]   ;;  %v3455_v40 = vld [vmem:[%s4549_s1 + $0x248] sm:$0xff]   ;;  %v3480_v9 = vld [vmem:[%s4549_s1 + $0x3d8] sm:$0xff]  }
  0x22   :  { %3101 = vmatprep.subr.bf16.mxu1 %v3400_v41  ;;  %v3456_v41 = vld [vmem:[%s4549_s1 + $0x2c8] sm:$0xff]   ;;  %v3484_v13 = vld [vmem:[%s4549_s1 + $0x3d0] sm:$0xff]  }
  0x23   :  { %2156 = vmatmul.mubr.bf16.vlgmr.msra.gmra.mxu0 %v48_v37  ;;  %v3452_v37 = vld [vmem:[%s4549_s1 + $0x2d0] sm:$0xff]  }
  0x24   :  { %2196 = vmatmul.mubr.bf16.vlgmr.msra.gmra.mxu1 %v50_v39  ;;  %3080 = vmatpush3.bf16.msra.mxu0 %v3401_v42  ;;  %v3454_v39 = vld [vmem:[%s4549_s1 + $0x290] sm:$0xff]   ;;  %v3457_v42 = vld [vmem:[%s4549_s1 + $0x208] sm:$0xff]  }
  0x25   :  { %3102 = vmatpush3.bf16.msra.mxu1 %v3402_v43  ;;  %3081 = vmatprep.subr.bf16.mxu0 %v3403_v44  ;;  %v3458_v43 = vld [vmem:[%s4549_s1 + $0x288] sm:$0xff]   ;;  %v3459_v44 = vld [vmem:[%s4549_s1 + $0x240] sm:$0xff]  }
  0x26   :  { %3103 = vmatprep.subr.bf16.mxu1 %v3404_v45  ;;  %2235 = vmatprep.mubr.bf16.mxu0 %v53_v10  ;;  %v3460_v45 = vld [vmem:[%s4549_s1 + $0x2c0] sm:$0xff]   ;;  %v3481_v10 = vld [vmem:[%s4549_s1 + $0x318] sm:$0xff]  }
  0x27   :  { %2275 = vmatprep.mubr.bf16.mxu1 %v55_v11  ;;  %v3482_v11 = vld [vmem:[%s4549_s1 + $0x398] sm:$0xff]  }
  0x28   :  { %3082 = vmatpush3.bf16.msra.mxu0 %v3405_v46  ;;  %v3461_v46 = vld [vmem:[%s4549_s1 + $0x200] sm:$0xff]  }
  0x29   :  { %3104 = vmatpush3.bf16.msra.mxu1 %v3406_v47  ;;  %3083 = vmatprep.subr.bf16.mxu0 %v3407_v48  ;;  %v3462_v47 = vld [vmem:[%s4549_s1 + $0x280] sm:$0xff]   ;;  %v25_v48 = vld [vmem:[%s4548_s0 + $0x48] sm:$0xff] }
  0x2a   :  { %3105 = vmatprep.subr.bf16.mxu1 %v3408_v49  ;;  %v57_v49 = vpack.c.bf16 %v25_v48, %v25_v48  ;;  %v3511_v48 = vld [vmem:[%s4549_s1 + $0x458] sm:$0xff]  }
  0x2c   :  { %3084 = vmatpush3.bf16.msra.mxu0 %v3409_v50  ;;  %v27_v50 = vld [vmem:[%s4548_s0 + $0x58] sm:$0xff] }
  0x2d   :  { %3106 = vmatpush3.bf16.msra.mxu1 %v3410_v51  ;;  %3085 = vmatprep.subr.bf16.mxu0 %v3411_v52  ;;  %v24_v51 = vld [vmem:[%s4548_s0 + $0x40] sm:$0xff]  ;;  %v26_v52 = vld [vmem:[%s4548_s0 + $0x50] sm:$0xff] }
  0x2e   :  { %3107 = vmatprep.subr.bf16.mxu1 %v3412_v53  ;;  %v59_v53 = vpack.c.bf16 %v27_v50, %v27_v50  ;;  %v3513_v50 = vld [vmem:[%s4549_s1 + $0x418] sm:$0xff]  }
  0x30   :  { %3086 = vmatpush3.bf16.msra.mxu0 %v3413_v54  ;;  %v56_v54 = vpack.c.bf16 %v24_v51, %v24_v51  ;;  %v3514_v51 = vld [vmem:[%s4549_s1 + $0x498] sm:$0xff]  }
  0x31   :  { %3108 = vmatpush3.bf16.msra.mxu1 %v3414_v55  ;;  %3087 = vmatprep.subr.bf16.mxu0 %v3415_v56  ;;  %v58_v55 = vpack.c.bf16 %v26_v52, %v26_v52  ;;  %v3463_v56 = vld [vmem:[%s4549_s1 + $0x378] sm:$0xff]   ;;  %v3515_v52 = vld [vmem:[%s4549_s1 + $0x450] sm:$0xff]  }
  0x32   :  { %3109 = vmatprep.subr.bf16.mxu1 %v3416_v57  ;;  %v3464_v57 = vld [vmem:[%s4549_s1 + $0x3f8] sm:$0xff]  }
  0x34   :  { %3088 = vmatpush3.bf16.msra.mxu0 %v3417_v58  ;;  %v3465_v58 = vld [vmem:[%s4549_s1 + $0x338] sm:$0xff]  }
  0x35   :  { %3110 = vmatpush3.bf16.msra.mxu1 %v3418_v59  ;;  %3089 = vmatprep.subr.bf16.mxu0 %v3419_v60  ;;  %v3466_v59 = vld [vmem:[%s4549_s1 + $0x3b8] sm:$0xff]   ;;  %v3467_v60 = vld [vmem:[%s4549_s1 + $0x370] sm:$0xff]  }
  0x36   :  { %3111 = vmatprep.subr.bf16.mxu1 %v3420_v61  ;;  %v3468_v61 = vld [vmem:[%s4549_s1 + $0x3f0] sm:$0xff]  }
  0x38   :  { %3090 = vmatpush3.bf16.msra.mxu0 %v3421_v62  ;;  %v3469_v62 = vld [vmem:[%s4549_s1 + $0x330] sm:$0xff]  }
  0x39   :  { %3112 = vmatpush3.bf16.msra.mxu1 %v3422_v63  ;;  %3091 = vmatprep.subr.bf16.mxu0 %v3423_v0  ;;  %v3470_v63 = vld [vmem:[%s4549_s1 + $0x3b0] sm:$0xff]   ;;  %v3471_v0 = vld [vmem:[%s4549_s1 + $0x368] sm:$0xff]  }
  0x3a   :  { %3113 = vmatprep.subr.bf16.mxu1 %v3424_v1  ;;  %v3472_v1 = vld [vmem:[%s4549_s1 + $0x3e8] sm:$0xff]  }
  0x3c   :  { %3092 = vmatpush3.bf16.msra.mxu0 %v3425_v2  ;;  %v3473_v2 = vld [vmem:[%s4549_s1 + $0x328] sm:$0xff]  }
  0x3d   :  { %3114 = vmatpush3.bf16.msra.mxu1 %v3426_v3  ;;  %3093 = vmatprep.subr.bf16.mxu0 %v3427_v4  ;;  %v3474_v3 = vld [vmem:[%s4549_s1 + $0x3a8] sm:$0xff]   ;;  %v3475_v4 = vld [vmem:[%s4549_s1 + $0x360] sm:$0xff]  }
  0x3e   :  { %3115 = vmatprep.subr.bf16.mxu1 %v3428_v5  ;;  %v3476_v5 = vld [vmem:[%s4549_s1 + $0x3e0] sm:$0xff]  }
  0x40   :  { %3094 = vmatpush3.bf16.msra.mxu0 %v3429_v6  ;;  %v3477_v6 = vld [vmem:[%s4549_s1 + $0x320] sm:$0xff]  }
  0x41   :  { %3116 = vmatpush3.bf16.msra.mxu1 %v3430_v7  ;;  %3123 = vmatprep.subr.bf16.mxu0 %v3431_v16  ;;  %v3478_v7 = vld [vmem:[%s4549_s1 + $0x3a0] sm:$0xff]   ;;  %v3487_v16 = vld [vmem:[%s4549_s1 + $0x348] sm:$0xff]  }
  0x42   :  { %3145 = vmatprep.subr.bf16.mxu1 %v3432_v17  ;;  %v3488_v17 = vld [vmem:[%s4549_s1 + $0x3c8] sm:$0xff]  }
  0x43   :  { %2236 = vmatmul.mubr.bf16.vlgmr.msra.gmra.mxu0 %v52_v14  ;;  %v3485_v14 = vld [vmem:[%s4549_s1 + $0x310] sm:$0xff]  }
  0x44   :  { %2276 = vmatmul.mubr.bf16.vlgmr.msra.gmra.mxu1 %v54_v15  ;;  %3124 = vmatpush3.bf16.msra.mxu0 %v3433_v18  ;;  %v3486_v15 = vld [vmem:[%s4549_s1 + $0x390] sm:$0xff]   ;;  %v3489_v18 = vld [vmem:[%s4549_s1 + $0x308] sm:$0xff]  }
  0x45   :  { %3146 = vmatpush3.bf16.msra.mxu1 %v3434_v19  ;;  %3125 = vmatprep.subr.bf16.mxu0 %v3435_v20  ;;  %v3490_v19 = vld [vmem:[%s4549_s1 + $0x388] sm:$0xff]   ;;  %v3491_v20 = vld [vmem:[%s4549_s1 + $0x340] sm:$0xff]  }
  0x46   :  { %3147 = vmatprep.subr.bf16.mxu1 %v3436_v21  ;;  %2315 = vmatprep.mubr.bf16.mxu0 %v57_v49  ;;  %v3492_v21 = vld [vmem:[%s4549_s1 + $0x3c0] sm:$0xff]   ;;  %v3512_v49 = vld [vmem:[%s4549_s1 + $0x4d8] sm:$0xff]  }
  0x47   :  { %2355 = vmatprep.mubr.bf16.mxu1 %v59_v53  ;;  %v3516_v53 = vld [vmem:[%s4549_s1 + $0x4d0] sm:$0xff]  }
  0x48   :  { %3126 = vmatpush3.bf16.msra.mxu0 %v3437_v22  ;;  %v3493_v22 = vld [vmem:[%s4549_s1 + $0x300] sm:$0xff]  }
  0x49   :  { %3148 = vmatpush3.bf16.msra.mxu1 %v3438_v23  ;;  %3127 = vmatprep.subr.bf16.mxu0 %v3439_v24  ;;  %v3494_v23 = vld [vmem:[%s4549_s1 + $0x380] sm:$0xff]   ;;  %v29_v24 = vld [vmem:[%s4548_s0 + $0x68] sm:$0xff] }
  0x4a   :  { %3149 = vmatprep.subr.bf16.mxu1 %v3440_v25  ;;  %v31_v25 = vld [vmem:[%s4548_s0 + $0x78] sm:$0xff] }
  0x4c   :  { %3128 = vmatpush3.bf16.msra.mxu0 %v3441_v26  ;;  %v28_v26 = vld [vmem:[%s4548_s0 + $0x60] sm:$0xff] }
  0x4d   :  { %3150 = vmatpush3.bf16.msra.mxu1 %v3442_v27  ;;  %3129 = vmatprep.subr.bf16.mxu0 %v3443_v28  ;;  %v61_v27 = vpack.c.bf16 %v29_v24, %v29_v24  ;;  %v63_v28 = vpack.c.bf16 %v31_v25, %v31_v25  ;;  %v3543_v24 = vld [vmem:[%s4549_s1 + $0x558] sm:$0xff]  }
  0x4e   :  { %3151 = vmatprep.subr.bf16.mxu1 %v3444_v29  ;;  %v60_v29 = vpack.c.bf16 %v28_v26, %v28_v26  ;;  %v3544_v25 = vld [vmem:[%s4549_s1 + $0x5d8] sm:$0xff]  }
  0x4f   :  { %v3545_v26 = vld [vmem:[%s4549_s1 + $0x518] sm:$0xff]  }
  0x50   :  { %3130 = vmatpush3.bf16.msra.mxu0 %v3445_v30  ;;  %v30_v30 = vld [vmem:[%s4548_s0 + $0x70] sm:$0xff] }
  0x51   :  { %3152 = vmatpush3.bf16.msra.mxu1 %v3446_v31  ;;  %3131 = vmatprep.subr.bf16.mxu0 %v3447_v32  ;;  %v62_v31 = vpack.c.bf16 %v30_v30, %v30_v30  ;;  %v3495_v32 = vld [vmem:[%s4549_s1 + $0x478] sm:$0xff]   ;;  %v3549_v30 = vld [vmem:[%s4549_s1 + $0x510] sm:$0xff]  }
  0x52   :  { %3153 = vmatprep.subr.bf16.mxu1 %v3448_v33  ;;  %v3496_v33 = vld [vmem:[%s4549_s1 + $0x4f8] sm:$0xff]  }
  0x54   :  { %3132 = vmatpush3.bf16.msra.mxu0 %v3449_v34  ;;  %v3497_v34 = vld [vmem:[%s4549_s1 + $0x438] sm:$0xff]  }
  0x55   :  { %3154 = vmatpush3.bf16.msra.mxu1 %v3450_v35  ;;  %3133 = vmatprep.subr.bf16.mxu0 %v3451_v36  ;;  %v3498_v35 = vld [vmem:[%s4549_s1 + $0x4b8] sm:$0xff]   ;;  %v3499_v36 = vld [vmem:[%s4549_s1 + $0x470] sm:$0xff]  }
  0x56   :  { %3155 = vmatprep.subr.bf16.mxu1 %v3452_v37  ;;  %v3500_v37 = vld [vmem:[%s4549_s1 + $0x4f0] sm:$0xff]  }
  0x58   :  { %3134 = vmatpush3.bf16.msra.mxu0 %v3453_v38  ;;  %v3501_v38 = vld [vmem:[%s4549_s1 + $0x430] sm:$0xff]  }
  0x59   :  { %3156 = vmatpush3.bf16.msra.mxu1 %v3454_v39  ;;  %3135 = vmatprep.subr.bf16.mxu0 %v3455_v40  ;;  %v3502_v39 = vld [vmem:[%s4549_s1 + $0x4b0] sm:$0xff]   ;;  %v3503_v40 = vld [vmem:[%s4549_s1 + $0x468] sm:$0xff]  }
  0x5a   :  { %3157 = vmatprep.subr.bf16.mxu1 %v3456_v41  ;;  %v3504_v41 = vld [vmem:[%s4549_s1 + $0x4e8] sm:$0xff]  }
  0x5c   :  { %3136 = vmatpush3.bf16.msra.mxu0 %v3457_v42  ;;  %v3505_v42 = vld [vmem:[%s4549_s1 + $0x428] sm:$0xff]  }
  0x5d   :  { %3158 = vmatpush3.bf16.msra.mxu1 %v3458_v43  ;;  %3137 = vmatprep.subr.bf16.mxu0 %v3459_v44  ;;  %v3506_v43 = vld [vmem:[%s4549_s1 + $0x4a8] sm:$0xff]   ;;  %v3507_v44 = vld [vmem:[%s4549_s1 + $0x460] sm:$0xff]  }
  0x5e   :  { %3159 = vmatprep.subr.bf16.mxu1 %v3460_v45  ;;  %v3508_v45 = vld [vmem:[%s4549_s1 + $0x4e0] sm:$0xff]  }
  0x60   :  { %3138 = vmatpush3.bf16.msra.mxu0 %v3461_v46  ;;  %v3509_v46 = vld [vmem:[%s4549_s1 + $0x420] sm:$0xff]  }
  0x61   :  { %3160 = vmatpush3.bf16.msra.mxu1 %v3462_v47  ;;  %3167 = vmatprep.subr.bf16.mxu0 %v3463_v56  ;;  %v3510_v47 = vld [vmem:[%s4549_s1 + $0x4a0] sm:$0xff]   ;;  %v3519_v56 = vld [vmem:[%s4549_s1 + $0x448] sm:$0xff]  }
  0x62   :  { %3189 = vmatprep.subr.bf16.mxu1 %v3464_v57  ;;  %v3520_v57 = vld [vmem:[%s4549_s1 + $0x4c8] sm:$0xff]  }
  0x63   :  { %2316 = vmatmul.mubr.bf16.vlgmr.msra.gmra.mxu0 %v56_v54  ;;  %v3517_v54 = vld [vmem:[%s4549_s1 + $0x410] sm:$0xff]  }
  0x64   :  { %2356 = vmatmul.mubr.bf16.vlgmr.msra.gmra.mxu1 %v58_v55  ;;  %3168 = vmatpush3.bf16.msra.mxu0 %v3465_v58  ;;  %v3518_v55 = vld [vmem:[%s4549_s1 + $0x490] sm:$0xff]   ;;  %v3521_v58 = vld [vmem:[%s4549_s1 + $0x408] sm:$0xff]  }
  0x65   :  { %3190 = vmatpush3.bf16.msra.mxu1 %v3466_v59  ;;  %3169 = vmatprep.subr.bf16.mxu0 %v3467_v60  ;;  %v3522_v59 = vld [vmem:[%s4549_s1 + $0x488] sm:$0xff]   ;;  %v3523_v60 = vld [vmem:[%s4549_s1 + $0x440] sm:$0xff]  }
  0x66   :  { %3191 = vmatprep.subr.bf16.mxu1 %v3468_v61  ;;  %2395 = vmatprep.mubr.bf16.mxu0 %v61_v27  ;;  %v3524_v61 = vld [vmem:[%s4549_s1 + $0x4c0] sm:$0xff]   ;;  %v3546_v27 = vld [vmem:[%s4549_s1 + $0x598] sm:$0xff]  }
  0x67   :  { %2435 = vmatprep.mubr.bf16.mxu1 %v63_v28  ;;  %v3547_v28 = vld [vmem:[%s4549_s1 + $0x550] sm:$0xff]  }
  0x68   :  { %3170 = vmatpush3.bf16.msra.mxu0 %v3469_v62  ;;  %v3525_v62 = vld [vmem:[%s4549_s1 + $0x400] sm:$0xff]  }
  0x69   :  { %3192 = vmatpush3.bf16.msra.mxu1 %v3470_v63  ;;  %3171 = vmatprep.subr.bf16.mxu0 %v3471_v0  ;;  %v3526_v63 = vld [vmem:[%s4549_s1 + $0x480] sm:$0xff]   ;;  %v33_v0 = vld [vmem:[%s4548_s0 + $0x88] sm:$0xff] }
  0x6a   :  { %3193 = vmatprep.subr.bf16.mxu1 %v3472_v1  ;;  %v35_v1 = vld [vmem:[%s4548_s0 + $0x98] sm:$0xff] }
  0x6c   :  { %3172 = vmatpush3.bf16.msra.mxu0 %v3473_v2  ;;  %v65_v2 = vpack.c.bf16 %v33_v0, %v33_v0  ;;  %v3575_v0 = vld [vmem:[%s4549_s1 + $0x658] sm:$0xff]  }
  0x6d   :  { %3194 = vmatpush3.bf16.msra.mxu1 %v3474_v3  ;;  %3173 = vmatprep.subr.bf16.mxu0 %v3475_v4  ;;  %v67_v3 = vpack.c.bf16 %v35_v1, %v35_v1  ;;  %v32_v4 = vld [vmem:[%s4548_s0 + $0x80] sm:$0xff]  ;;  %v3576_v1 = vld [vmem:[%s4549_s1 + $0x6d8] sm:$0xff]  }
  0x6e   :  { %3195 = vmatprep.subr.bf16.mxu1 %v3476_v5  ;;  %v34_v5 = vld [vmem:[%s4548_s0 + $0x90] sm:$0xff] }
  0x70   :  { %3174 = vmatpush3.bf16.msra.mxu0 %v3477_v6  ;;  %v64_v6 = vpack.c.bf16 %v32_v4, %v32_v4  ;;  %v3579_v4 = vld [vmem:[%s4549_s1 + $0x650] sm:$0xff]  }
  0x71   :  { %3196 = vmatpush3.bf16.msra.mxu1 %v3478_v7  ;;  %3175 = vmatprep.subr.bf16.mxu0 %v3479_v8  ;;  %v66_v7 = vpack.c.bf16 %v34_v5, %v34_v5  ;;  %v3527_v8 = vld [vmem:[%s4549_s1 + $0x578] sm:$0xff]   ;;  %v3580_v5 = vld [vmem:[%s4549_s1 + $0x6d0] sm:$0xff]  }
  0x72   :  { %3197 = vmatprep.subr.bf16.mxu1 %v3480_v9  ;;  %v3528_v9 = vld [vmem:[%s4549_s1 + $0x5f8] sm:$0xff]  }
  0x74   :  { %3176 = vmatpush3.bf16.msra.mxu0 %v3481_v10  ;;  %v3529_v10 = vld [vmem:[%s4549_s1 + $0x538] sm:$0xff]  }
  0x75   :  { %3198 = vmatpush3.bf16.msra.mxu1 %v3482_v11  ;;  %3177 = vmatprep.subr.bf16.mxu0 %v3483_v12  ;;  %v3530_v11 = vld [vmem:[%s4549_s1 + $0x5b8] sm:$0xff]   ;;  %v3531_v12 = vld [vmem:[%s4549_s1 + $0x570] sm:$0xff]  }
  0x76   :  { %3199 = vmatprep.subr.bf16.mxu1 %v3484_v13  ;;  %v3532_v13 = vld [vmem:[%s4549_s1 + $0x5f0] sm:$0xff]  }
  0x78   :  { %3178 = vmatpush3.bf16.msra.mxu0 %v3485_v14  ;;  %v3533_v14 = vld [vmem:[%s4549_s1 + $0x530] sm:$0xff]  }
  0x79   :  { %3200 = vmatpush3.bf16.msra.mxu1 %v3486_v15  ;;  %3179 = vmatprep.subr.bf16.mxu0 %v3487_v16  ;;  %v3534_v15 = vld [vmem:[%s4549_s1 + $0x5b0] sm:$0xff]   ;;  %v3535_v16 = vld [vmem:[%s4549_s1 + $0x568] sm:$0xff]  }
  0x7a   :  { %3201 = vmatprep.subr.bf16.mxu1 %v3488_v17  ;;  %v3536_v17 = vld [vmem:[%s4549_s1 + $0x5e8] sm:$0xff]  }
  0x7c   :  { %3180 = vmatpush3.bf16.msra.mxu0 %v3489_v18  ;;  %v3537_v18 = vld [vmem:[%s4549_s1 + $0x528] sm:$0xff]  }
  0x7d   :  { %3202 = vmatpush3.bf16.msra.mxu1 %v3490_v19  ;;  %3181 = vmatprep.subr.bf16.mxu0 %v3491_v20  ;;  %v3538_v19 = vld [vmem:[%s4549_s1 + $0x5a8] sm:$0xff]   ;;  %v3539_v20 = vld [vmem:[%s4549_s1 + $0x560] sm:$0xff]  }
  0x7e   :  { %3203 = vmatprep.subr.bf16.mxu1 %v3492_v21  ;;  %v3540_v21 = vld [vmem:[%s4549_s1 + $0x5e0] sm:$0xff]  }
  0x80   :  { %3182 = vmatpush3.bf16.msra.mxu0 %v3493_v22  ;;  %v3541_v22 = vld [vmem:[%s4549_s1 + $0x520] sm:$0xff]  }
  0x81   :  { %3204 = vmatpush3.bf16.msra.mxu1 %v3494_v23  ;;  %3211 = vmatprep.subr.bf16.mxu0 %v3495_v32  ;;  %v3542_v23 = vld [vmem:[%s4549_s1 + $0x5a0] sm:$0xff]   ;;  %v3551_v32 = vld [vmem:[%s4549_s1 + $0x548] sm:$0xff]  }
  0x82   :  { %3233 = vmatprep.subr.bf16.mxu1 %v3496_v33  ;;  %v3552_v33 = vld [vmem:[%s4549_s1 + $0x5c8] sm:$0xff]  }
  0x83   :  { %2396 = vmatmul.mubr.bf16.vlgmr.msra.gmra.mxu0 %v60_v29  ;;  %v3548_v29 = vld [vmem:[%s4549_s1 + $0x5d0] sm:$0xff]  }
  0x84   :  { %2436 = vmatmul.mubr.bf16.vlgmr.msra.gmra.mxu1 %v62_v31  ;;  %3212 = vmatpush3.bf16.msra.mxu0 %v3497_v34  ;;  %v3550_v31 = vld [vmem:[%s4549_s1 + $0x590] sm:$0xff]   ;;  %v3553_v34 = vld [vmem:[%s4549_s1 + $0x508] sm:$0xff]  }
  0x85   :  { %3234 = vmatpush3.bf16.msra.mxu1 %v3498_v35  ;;  %3213 = vmatprep.subr.bf16.mxu0 %v3499_v36  ;;  %v3554_v35 = vld [vmem:[%s4549_s1 + $0x588] sm:$0xff]   ;;  %v3555_v36 = vld [vmem:[%s4549_s1 + $0x540] sm:$0xff]  }
  0x86   :  { %3235 = vmatprep.subr.bf16.mxu1 %v3500_v37  ;;  %2475 = vmatprep.mubr.bf16.mxu0 %v65_v2  ;;  %v3556_v37 = vld [vmem:[%s4549_s1 + $0x5c0] sm:$0xff]   ;;  %v3577_v2 = vld [vmem:[%s4549_s1 + $0x618] sm:$0xff]  }
  0x87   :  { %2515 = vmatprep.mubr.bf16.mxu1 %v67_v3  ;;  %v3578_v3 = vld [vmem:[%s4549_s1 + $0x698] sm:$0xff]  }
  0x88   :  { %3214 = vmatpush3.bf16.msra.mxu0 %v3501_v38  ;;  %v3557_v38 = vld [vmem:[%s4549_s1 + $0x500] sm:$0xff]  }
  0x89   :  { %3236 = vmatpush3.bf16.msra.mxu1 %v3502_v39  ;;  %3215 = vmatprep.subr.bf16.mxu0 %v3503_v40  ;;  %v3558_v39 = vld [vmem:[%s4549_s1 + $0x580] sm:$0xff]   ;;  %v37_v40 = vld [vmem:[%s4548_s0 + $0xa8] sm:$0xff] }
  0x8a   :  { %3237 = vmatprep.subr.bf16.mxu1 %v3504_v41  ;;  %v69_v41 = vpack.c.bf16 %v37_v40, %v37_v40  ;;  %v3594_v40 = vld [vmem:[%s4549_s1 + $0x770] sm:$0xff]  }
  0x8c   :  { %3216 = vmatpush3.bf16.msra.mxu0 %v3505_v42  ;;  %v39_v42 = vld [vmem:[%s4548_s0 + $0xb8] sm:$0xff] }
  0x8d   :  { %3238 = vmatpush3.bf16.msra.mxu1 %v3506_v43  ;;  %3217 = vmatprep.subr.bf16.mxu0 %v3507_v44  ;;  %v36_v43 = vld [vmem:[%s4548_s0 + $0xa0] sm:$0xff]  ;;  %v38_v44 = vld [vmem:[%s4548_s0 + $0xb0] sm:$0xff] }
  0x8e   :  { %3239 = vmatprep.subr.bf16.mxu1 %v3508_v45  ;;  %v71_v45 = vpack.c.bf16 %v39_v42, %v39_v42 }
  0x90   :  { %3218 = vmatpush3.bf16.msra.mxu0 %v3509_v46  ;;  %v68_v46 = vpack.c.bf16 %v36_v43, %v36_v43  ;;  %v3596_v43 = vld [vmem:[%s4549_s1 + $0x7b0] sm:$0xff]  }
  0x91   :  { %3240 = vmatpush3.bf16.msra.mxu1 %v3510_v47  ;;  %3219 = vmatprep.subr.bf16.mxu0 %v3511_v48  ;;  %v70_v47 = vpack.c.bf16 %v38_v44, %v38_v44  ;;  %v3559_v48 = vld [vmem:[%s4549_s1 + $0x678] sm:$0xff]   ;;  %v3597_v44 = vld [vmem:[%s4549_s1 + $0x768] sm:$0xff]  }
  0x92   :  { %3241 = vmatprep.subr.bf16.mxu1 %v3512_v49  ;;  %v3560_v49 = vld [vmem:[%s4549_s1 + $0x6f8] sm:$0xff]  }
  0x94   :  { %3220 = vmatpush3.bf16.msra.mxu0 %v3513_v50  ;;  %v3561_v50 = vld [vmem:[%s4549_s1 + $0x638] sm:$0xff]  }
  0x95   :  { %3242 = vmatpush3.bf16.msra.mxu1 %v3514_v51  ;;  %3221 = vmatprep.subr.bf16.mxu0 %v3515_v52  ;;  %v3562_v51 = vld [vmem:[%s4549_s1 + $0x6b8] sm:$0xff]   ;;  %v3563_v52 = vld [vmem:[%s4549_s1 + $0x670] sm:$0xff]  }
  0x96   :  { %3243 = vmatprep.subr.bf16.mxu1 %v3516_v53  ;;  %v3564_v53 = vld [vmem:[%s4549_s1 + $0x6f0] sm:$0xff]  }
  0x98   :  { %3222 = vmatpush3.bf16.msra.mxu0 %v3517_v54  ;;  %v3565_v54 = vld [vmem:[%s4549_s1 + $0x630] sm:$0xff]  }
  0x99   :  { %3244 = vmatpush3.bf16.msra.mxu1 %v3518_v55  ;;  %3223 = vmatprep.subr.bf16.mxu0 %v3519_v56  ;;  %v3566_v55 = vld [vmem:[%s4549_s1 + $0x6b0] sm:$0xff]   ;;  %v3567_v56 = vld [vmem:[%s4549_s1 + $0x668] sm:$0xff]  }
  0x9a   :  { %3245 = vmatprep.subr.bf16.mxu1 %v3520_v57  ;;  %v3568_v57 = vld [vmem:[%s4549_s1 + $0x6e8] sm:$0xff]  }
  0x9c   :  { %3224 = vmatpush3.bf16.msra.mxu0 %v3521_v58  ;;  %v3569_v58 = vld [vmem:[%s4549_s1 + $0x628] sm:$0xff]  }
  0x9d   :  { %3246 = vmatpush3.bf16.msra.mxu1 %v3522_v59  ;;  %3225 = vmatprep.subr.bf16.mxu0 %v3523_v60  ;;  %v3570_v59 = vld [vmem:[%s4549_s1 + $0x6a8] sm:$0xff]   ;;  %v3571_v60 = vld [vmem:[%s4549_s1 + $0x660] sm:$0xff]  }
  0x9e   :  { %3247 = vmatprep.subr.bf16.mxu1 %v3524_v61  ;;  %v3572_v61 = vld [vmem:[%s4549_s1 + $0x6e0] sm:$0xff]  }
  0xa0   :  { %3226 = vmatpush3.bf16.msra.mxu0 %v3525_v62  ;;  %v3573_v62 = vld [vmem:[%s4549_s1 + $0x620] sm:$0xff]  }
  0xa1   :  { %3248 = vmatpush3.bf16.msra.mxu1 %v3526_v63  ;;  %3255 = vmatprep.subr.bf16.mxu0 %v3527_v8  ;;  %v3574_v63 = vld [vmem:[%s4549_s1 + $0x6a0] sm:$0xff]   ;;  %v3583_v8 = vld [vmem:[%s4549_s1 + $0x648] sm:$0xff]  }
  0xa2   :  { %3277 = vmatprep.subr.bf16.mxu1 %v3528_v9  ;;  %v3584_v9 = vld [vmem:[%s4549_s1 + $0x6c8] sm:$0xff]  }
  0xa3   :  { %2476 = vmatmul.mubr.bf16.vlgmr.msra.gmra.mxu0 %v64_v6  ;;  %v3581_v6 = vld [vmem:[%s4549_s1 + $0x610] sm:$0xff]  }
  0xa4   :  { %2516 = vmatmul.mubr.bf16.vlgmr.msra.gmra.mxu1 %v66_v7  ;;  %3256 = vmatpush3.bf16.msra.mxu0 %v3529_v10  ;;  %v3582_v7 = vld [vmem:[%s4549_s1 + $0x690] sm:$0xff]   ;;  %v3585_v10 = vld [vmem:[%s4549_s1 + $0x608] sm:$0xff]  }
  0xa5   :  { %3278 = vmatpush3.bf16.msra.mxu1 %v3530_v11  ;;  %3257 = vmatprep.subr.bf16.mxu0 %v3531_v12  ;;  %v3586_v11 = vld [vmem:[%s4549_s1 + $0x688] sm:$0xff]   ;;  %v3587_v12 = vld [vmem:[%s4549_s1 + $0x640] sm:$0xff]  }
  0xa6   :  { %3279 = vmatprep.subr.bf16.mxu1 %v3532_v13  ;;  %2555 = vmatprep.mubr.bf16.mxu0 %v69_v41  ;;  %v3595_v41 = vld [vmem:[%s4549_s1 + $0x730] sm:$0xff]  }
  0xa7   :  { %2595 = vmatprep.mubr.bf16.mxu1 %v71_v45  ;;  %v3598_v45 = vld [vmem:[%s4549_s1 + $0x728] sm:$0xff]  }
  0xa8   :  { %3258 = vmatpush3.bf16.msra.mxu0 %v3533_v14 }
  0xa9   :  { %3280 = vmatpush3.bf16.msra.mxu1 %v3534_v15  ;;  %3259 = vmatprep.subr.bf16.mxu0 %v3535_v16  ;;  %v3588_v15 = vld [vmem:[%s4549_s1 + $0x6c0] sm:$0xff]  }
  0xaa   :  { %3281 = vmatprep.subr.bf16.mxu1 %v3536_v17  ;;  %v3589_v16 = vld [vmem:[%s4549_s1 + $0x600] sm:$0xff]  }
  0xac   :  { %3260 = vmatpush3.bf16.msra.mxu0 %v3537_v18 }
  0xad   :  { %3282 = vmatpush3.bf16.msra.mxu1 %v3538_v19  ;;  %3261 = vmatprep.subr.bf16.mxu0 %v3539_v20  ;;  %v3590_v19 = vld [vmem:[%s4549_s1 + $0x680] sm:$0xff]  }
  0xae   :  { %3283 = vmatprep.subr.bf16.mxu1 %v3540_v21 }
  0xb0   :  { %3262 = vmatpush3.bf16.msra.mxu0 %v3541_v22  ;;  %v41_v22 = vld [vmem:[%s4548_s0 + $0xc8] sm:$0xff] }
  0xb1   :  { %3284 = vmatpush3.bf16.msra.mxu1 %v3542_v23  ;;  %3263 = vmatprep.subr.bf16.mxu0 %v3543_v24  ;;  %v43_v23 = vld [vmem:[%s4548_s0 + $0xd8] sm:$0xff]  ;;  %v40_v24 = vld [vmem:[%s4548_s0 + $0xc0] sm:$0xff] }
  0xb2   :  { %3285 = vmatprep.subr.bf16.mxu1 %v3544_v25 }
  0xb4   :  { %3264 = vmatpush3.bf16.msra.mxu0 %v3545_v26 }
  0xb5   :  { %3286 = vmatpush3.bf16.msra.mxu1 %v3546_v27  ;;  %3265 = vmatprep.subr.bf16.mxu0 %v3547_v28  ;;  %v73_v27 = vpack.c.bf16 %v41_v22, %v41_v22  ;;  %v75_v28 = vpack.c.bf16 %v43_v23, %v43_v23 }
  0xb6   :  { %3287 = vmatprep.subr.bf16.mxu1 %v3548_v29  ;;  %v72_v29 = vpack.c.bf16 %v40_v24, %v40_v24 }
  0xb8   :  { %3266 = vmatpush3.bf16.msra.mxu0 %v3549_v30  ;;  %v42_v30 = vld [vmem:[%s4548_s0 + $0xd0] sm:$0xff] }
  0xb9   :  { %3288 = vmatpush3.bf16.msra.mxu1 %v3550_v31  ;;  %3267 = vmatprep.subr.bf16.mxu0 %v3551_v32  ;;  %v74_v31 = vpack.c.bf16 %v42_v30, %v42_v30  ;;  %v3591_v32 = vld [vmem:[%s4549_s1 + $0x778] sm:$0xff]  }
  0xba   :  { %3289 = vmatprep.subr.bf16.mxu1 %v3552_v33  ;;  %v3645_v33 = vmov 0  }
  0xbc   :  { %3268 = vmatpush3.bf16.msra.mxu0 %v3553_v34 }
  0xbd   :  { %3290 = vmatpush3.bf16.msra.mxu1 %v3554_v35  ;;  %3269 = vmatprep.subr.bf16.mxu0 %v3555_v36  ;;  %v3592_v36 = vld [vmem:[%s4549_s1 + $0x738] sm:$0xff]  }
  0xbe   :  { %3291 = vmatprep.subr.bf16.mxu1 %v3556_v37  ;;  %v3593_v37 = vld [vmem:[%s4549_s1 + $0x7b8] sm:$0xff]  }
  0xc0   :  { %3270 = vmatpush3.bf16.msra.mxu0 %v3557_v38  ;;  %v2779_v38 = vld [vmem:[%s4550_s2] ss:$0 sm:$0xff] }
  0xc1   :  { %3292 = vmatpush3.bf16.msra.mxu1 %v3558_v39  ;;  %3299 = vmatprep.subr.bf16.mxu0 %v3559_v48  ;;  %v3601_v48 = vld [vmem:[%s4549_s1 + $0x720] sm:$0xff]  }
  0xc2   :  { %3321 = vmatprep.subr.bf16.mxu1 %v3560_v49  ;;  %v3602_v49 = vld [vmem:[%s4549_s1 + $0x7a0] sm:$0xff]  }
  0xc3   :  { %2556 = vmatmul.mubr.bf16.vlgmr.msra.gmra.mxu0 %v68_v46  ;;  %v3599_v46 = vld [vmem:[%s4549_s1 + $0x7a8] sm:$0xff]  }
  0xc4   :  { %2596 = vmatmul.mubr.bf16.vlgmr.msra.gmra.mxu1 %v70_v47  ;;  %3300 = vmatpush3.bf16.msra.mxu0 %v3561_v50  ;;  %v3600_v47 = vld [vmem:[%s4549_s1 + $0x760] sm:$0xff]   ;;  %v3603_v50 = vld [vmem:[%s4549_s1 + $0x758] sm:$0xff]  }
  0xc5   :  { %3322 = vmatpush3.bf16.msra.mxu1 %v3562_v51  ;;  %3301 = vmatprep.subr.bf16.mxu0 %v3563_v52  ;;  %v3604_v51 = vld [vmem:[%s4549_s1 + $0x718] sm:$0xff]  }
  0xc6   :  { %3323 = vmatprep.subr.bf16.mxu1 %v3564_v53  ;;  %2635 = vmatprep.mubr.bf16.mxu0 %v73_v27  ;;  %v3605_v52 = vld [vmem:[%s4549_s1 + $0x798] sm:$0xff]   ;;  %v3606_v53 = vld [vmem:[%s4549_s1 + $0x750] sm:$0xff]  }
  0xc7   :  { %2675 = vmatprep.mubr.bf16.mxu1 %v75_v28 }
  0xc8   :  { %3302 = vmatpush3.bf16.msra.mxu0 %v3565_v54  ;;  %v3607_v54 = vld [vmem:[%s4549_s1 + $0x710] sm:$0xff]  }
  0xc9   :  { %3324 = vmatpush3.bf16.msra.mxu1 %v3566_v55  ;;  %3303 = vmatprep.subr.bf16.mxu0 %v3567_v56  ;;  %v3608_v55 = vld [vmem:[%s4549_s1 + $0x790] sm:$0xff]   ;;  %v3609_v56 = vld [vmem:[%s4549_s1 + $0x748] sm:$0xff]  }
  0xca   :  { %3325 = vmatprep.subr.bf16.mxu1 %v3568_v57  ;;  %v45_v57 = vld [vmem:[%s4548_s0 + $0xe8] sm:$0xff] }
  0xcc   :  { %3304 = vmatpush3.bf16.msra.mxu0 %v3569_v58  ;;  %v3610_v58 = vld [vmem:[%s4549_s1 + $0x708] sm:$0xff]  }
  0xcd   :  { %3326 = vmatpush3.bf16.msra.mxu1 %v3570_v59  ;;  %3305 = vmatprep.subr.bf16.mxu0 %v3571_v60  ;;  %v3611_v59 = vld [vmem:[%s4549_s1 + $0x788] sm:$0xff]   ;;  %v77_v60 = vpack.c.bf16 %v45_v57, %v45_v57 }
  0xce   :  { %3327 = vmatprep.subr.bf16.mxu1 %v3572_v61  ;;  %v3612_v61 = vld [vmem:[%s4549_s1 + $0x740] sm:$0xff]  }
  0xd0   :  { %3306 = vmatpush3.bf16.msra.mxu0 %v3573_v62  ;;  %v3613_v62 = vld [vmem:[%s4549_s1 + $0x700] sm:$0xff]  }
  0xd1   :  { %3328 = vmatpush3.bf16.msra.mxu1 %v3574_v63  ;;  %3307 = vmatprep.subr.bf16.mxu0 %v3575_v0  ;;  %v3614_v63 = vld [vmem:[%s4549_s1 + $0x780] sm:$0xff]  }
  0xd2   :  { %3329 = vmatprep.subr.bf16.mxu1 %v3576_v1 }
  0xd4   :  { %3308 = vmatpush3.bf16.msra.mxu0 %v3577_v2  ;;  %v44_v2 = vld [vmem:[%s4548_s0 + $0xe0] sm:$0xff] }
  0xd5   :  { %3330 = vmatpush3.bf16.msra.mxu1 %v3578_v3  ;;  %3309 = vmatprep.subr.bf16.mxu0 %v3579_v4  ;;  %v3615_v3 = vld [vmem:[%s4549_s1 + $0x7e8] ss:$0 sps:$4 sm:$0xff]  }
  0xd6   :  { %3331 = vmatprep.subr.bf16.mxu1 %v3580_v5 }
  0xd8   :  { %3310 = vmatpush3.bf16.msra.mxu0 %v3581_v6 }
  0xd9   :  { %3332 = vmatpush3.bf16.msra.mxu1 %v3582_v7  ;;  %3311 = vmatprep.subr.bf16.mxu0 %v3583_v8  ;;  %v47_v7 = vld [vmem:[%s4548_s0 + $0xf8] sm:$0xff] }
  0xda   :  { %3333 = vmatprep.subr.bf16.mxu1 %v3584_v9 }
  0xdc   :  { %3312 = vmatpush3.bf16.msra.mxu0 %v3585_v10 }
  0xdd   :  { %3334 = vmatpush3.bf16.msra.mxu1 %v3586_v11  ;;  %3313 = vmatprep.subr.bf16.mxu0 %v3587_v12 }
  0xde   :  { %3335 = vmatprep.subr.bf16.mxu1 %v3588_v15 }
  0xe0   :  { %3314 = vmatpush3.bf16.msra.mxu0 %v3589_v16 }
  0xe1   :  { %3336 = vmatpush3.bf16.msra.mxu1 %v3590_v19  ;;  %3343 = vmatprep.subr.bf16.mxu0 %v3591_v32 }
  0xe2   :  { %2723 = vmatprep.subr.bf16.mxu1 %v3645_v33 }
  0xe3   :  { %v3051_v13 = vpop.f32.mrf.mxu0  ;;  %2636 = vmatmul.mubr.bf16.vlgmr.msra.gmra.mxu0 %v72_v29 }
  0xe4   :  { %v3073_v14 = vpop.f32.mrf.mxu1  ;;  %2676 = vmatmul.mubr.bf16.vlgmr.msra.gmra.mxu1 %v74_v31  ;;  %3344 = vmatpush3.bf16.msra.mxu0 %v3592_v36 }
  0xe5   :  { %v3052_v17 = vpop.f32.mrf.mxu0  ;;  %2724 = vmatpush1.bf16.msra.mxu1 %v3593_v37  ;;  %3345 = vmatprep.subr.bf16.mxu0 %v3594_v40 }
  0xe6   :  { %v3074_v18 = vpop.f32.mrf.mxu1  ;;  %v3053_v20 = vadd.f32 %v3052_v17, %v3051_v13  ;;  %2725 = vmatprep.subr.bf16.mxu1 %v3645_v33  ;;  %2715 = vmatprep.mubr.bf16.mxu0 %v77_v60 }
  0xe7   :  { %v3075_v21 = vadd.f32 %v3074_v18, %v3073_v14  ;;  %v3054_v26 = vpop.f32.mrf.mxu0 }
  0xe8   :  { %v3076_v25 = vpop.f32.mrf.mxu1  ;;  %v2158_v39 = vadd.f32 %v3053_v20, %v2779_v38  ;;  %3346 = vmatpush3.bf16.msra.mxu0 %v3595_v41 }
  0xe9   :  { %v3055_v35 = vpop.f32.mrf.mxu0  ;;  %2726 = vmatpush1.bf16.msra.mxu1 %v3596_v43  ;;  %3347 = vmatprep.subr.bf16.mxu0 %v3597_v44 }
  0xea   :  { %v3077_v34 = vpop.f32.mrf.mxu1  ;;  %v4442_v42 = vadd.f32 %v3075_v21, %v2158_v39  ;;  %2727 = vmatprep.subr.bf16.mxu1 %v3645_v33 }
  0xec   :  { %3348 = vmatpush3.bf16.msra.mxu0 %v3598_v45 }
  0xed   :  { %2728 = vmatpush1.bf16.msra.mxu1 %v3599_v46  ;;  %3349 = vmatprep.subr.bf16.mxu0 %v3600_v47 }
  0xee   :  { %2729 = vmatprep.subr.bf16.mxu1 %v3645_v33 }
  0xf0   :  { %3350 = vmatpush3.bf16.msra.mxu0 %v3601_v48 }
  0xf1   :  { %2730 = vmatpush1.bf16.msra.mxu1 %v3602_v49  ;;  %3351 = vmatprep.subr.bf16.mxu0 %v3603_v50 }
  0xf2   :  { %2731 = vmatprep.subr.bf16.mxu1 %v3645_v33 }
  0xf4   :  { %3352 = vmatpush3.bf16.msra.mxu0 %v3604_v51 }
  0xf5   :  { %2732 = vmatpush1.bf16.msra.mxu1 %v3605_v52  ;;  %3353 = vmatprep.subr.bf16.mxu0 %v3606_v53 }
  0xf6   :  { %2733 = vmatprep.subr.bf16.mxu1 %v3645_v33 }
  0xf8   :  { %3354 = vmatpush3.bf16.msra.mxu0 %v3607_v54 }
  0xf9   :  { %2734 = vmatpush1.bf16.msra.mxu1 %v3608_v55  ;;  %3355 = vmatprep.subr.bf16.mxu0 %v3609_v56 }
  0xfa   :  { %2735 = vmatprep.subr.bf16.mxu1 %v3645_v33 }
  0xfc   :  { %3356 = vmatpush3.bf16.msra.mxu0 %v3610_v58 }
  0xfd   :  { %2736 = vmatpush1.bf16.msra.mxu1 %v3611_v59  ;;  %3357 = vmatprep.subr.bf16.mxu0 %v3612_v61 }
  0xfe   :  { %2737 = vmatprep.subr.bf16.mxu1 %v3645_v33 }
 0x103   :  { %v3095_v0 = vpop.f32.mrf.mxu0 }
 0x104   :  { %v3117_v1 = vpop.f32.mrf.mxu1 }
 0x105   :  { %v3096_v4 = vpop.f32.mrf.mxu0 }
 0x106   :  { %v3097_v5 = vadd.f32 %v3096_v4, %v3095_v0  ;;  %v3118_v6 = vpop.f32.mrf.mxu1 }
 0x107   :  { %8 = vsyncpa [#allocation3], 0  ;;  %v76_v8 = vpack.c.bf16 %v44_v2, %v44_v2  ;;  %v3119_v9 = vadd.f32 %v3118_v6, %v3117_v1  ;;  %v3098_v10 = vpop.f32.mrf.mxu0  ;;  %v79_v11 = vpack.c.bf16 %v47_v7, %v47_v7  ;;  %3358 = vmatpush3.bf16.msra.mxu0 %v3613_v62  ;;  %2738 = vmatpush1.bf16.msra.mxu1 %v3614_v63  ;;  %v2121_v14 = vsel %vm2119_vm0, %v3615_v3, 0  ;;  %v3616_v18 = vld [vmem:[%s4549_s1 + $0x7e0] sm:$0xff]   ;;  %v3617_v19 = vld [vmem:[%s4549_s1 + $0x7d8] sm:$0xff]  }
 0x108   :  { %v2238_v12 = vadd.f32 %v3097_v5, %v4442_v42  ;;  %v3120_v13 = vpop.f32.mrf.mxu1  ;;  %2743 = vmatprep.subr.bf16.mxu1 %v3645_v33  ;;  %v3618_v20 = vld [vmem:[%s4549_s1 + $0x7d0] sm:$0xff]   ;;  %v3619_v21 = vld [vmem:[%s4549_s1 + $0x7c8] sm:$0xff]   ;;  %v3620_v22 = vld [vmem:[%s4549_s1 + $0x7c0] sm:$0xff]  }
 0x109   :  { %v3099_v15 = vpop.f32.mrf.mxu0  ;;  %3034 = vmatprep.mubr.msk.bf16.mxu1 %vm2115_vm1, %v79_v11  ;;  %v46_v23 = vld [vmem:[%s4548_s0 + $0xf0] sm:$0xff]  ;;  %s3646_s0 = smov [#allocation2]  }
 0x10a   :  { %v2278_v16 = vadd.f32 %v3119_v9, %v2238_v12  ;;  %v3121_v17 = vpop.f32.mrf.mxu1  ;;  %2716 = vmatmul.mubr.bf16.vlgmr.msra.gmra.mxu0 %v76_v8  ;;  %v78_v24 = vpack.c.bf16 %v46_v23, %v46_v23  ;;  %s2771_s1 = sshll.u32 %s3646_s0, 4  ;;  %s2772_s1 = int_to_ptr.vmem [resolvable:$true] %s2771_s1 }
 0x10b   :  { %2744 = vmatpush2.bf16.msra.mxu1 %v2121_v14  ;;  %s3623_s2 = scalar_lea.vmem %s2772_s1, 128  ;;  %p3628_p1 = scmp.lt.s32.totalorder %s2772_s1, %s2772_s1 }
 0x10c   :  { %2745 = vmatprep.subr.bf16.mxu1 %v3645_v33  ;;  %p3624_p0 = scmp.ne.s32.totalorder %s2772_s1, %s3623_s2  ;;  %p3629_p2 = scmp.lt.s32.totalorder %s3623_s2, %s3623_s2 }
 0x10e   :  { %p3630_p3 = por %p3629_p2, %p3628_p1 }
 0x10f   :  { %2746 = vmatpush2.bf16.msra.mxu1 %v3616_v18 }
 0x110   :  { %2747 = vmatprep.subr.bf16.mxu1 %v3645_v33  ;;  %p3631_p4 = pnand %p3630_p3, %p3624_p0 }
 0x113   :  { %2748 = vmatpush2.bf16.msra.mxu1 %v3617_v19 }
 0x114   :  { %2749 = vmatprep.subr.bf16.mxu1 %v3645_v33 }
 0x117   :  { %2750 = vmatpush2.bf16.msra.mxu1 %v3618_v20 }
 0x118   :  { %2751 = vmatprep.subr.bf16.mxu1 %v3645_v33 }
 0x11b   :  { %2752 = vmatpush2.bf16.msra.mxu1 %v3619_v21 }
 0x11c   :  { %2753 = vmatprep.subr.bf16.mxu1 %v3645_v33 }
 0x11f   :  { %2754 = vmatpush2.bf16.msra.mxu1 %v3620_v22 }
 0x122   :  { %2756 = vmatmul.mubr.bf16.vlgmr.msra.gmra.mxu1 %v78_v24 }
 0x123   :  { %v3139_v25 = vpop.f32.mrf.mxu0 }
 0x124   :  { %v3161_v26 = vpop.f32.mrf.mxu1 }
 0x125   :  { %v3140_v27 = vpop.f32.mrf.mxu0 }
 0x126   :  { %v3141_v28 = vadd.f32 %v3140_v27, %v3139_v25  ;;  %v3162_v29 = vpop.f32.mrf.mxu1 }
 0x127   :  { %v3163_v30 = vadd.f32 %v3162_v29, %v3161_v26  ;;  %v3142_v31 = vpop.f32.mrf.mxu0 }
 0x128   :  { %v2318_v32 = vadd.f32 %v3141_v28, %v2278_v16  ;;  %v3164_v34 = vpop.f32.mrf.mxu1 }
 0x129   :  { %v3143_v35 = vpop.f32.mrf.mxu0 }
 0x12a   :  { %v2358_v36 = vadd.f32 %v3163_v30, %v2318_v32  ;;  %v3165_v37 = vpop.f32.mrf.mxu1 }
 0x143   :  { %v3183_v38 = vpop.f32.mrf.mxu0 }
 0x144   :  { %v3205_v39 = vpop.f32.mrf.mxu1 }
 0x145   :  { %v3184_v40 = vpop.f32.mrf.mxu0 }
 0x146   :  { %v3206_v41 = vpop.f32.mrf.mxu1  ;;  %v3185_v33 = vadd.f32 %v3184_v40, %v3183_v38 }
 0x147   :  { %v3207_v42 = vadd.f32 %v3206_v41, %v3205_v39  ;;  %v3186_v44 = vpop.f32.mrf.mxu0 }
 0x148   :  { %v3208_v43 = vpop.f32.mrf.mxu1  ;;  %v2398_v45 = vadd.f32 %v3185_v33, %v2358_v36 }
 0x149   :  { %v3187_v47 = vpop.f32.mrf.mxu0 }
 0x14a   :  { %v3209_v46 = vpop.f32.mrf.mxu1  ;;  %v2438_v48 = vadd.f32 %v3207_v42, %v2398_v45 }
 0x163   :  { %v3227_v49 = vpop.f32.mrf.mxu0 }
 0x164   :  { %v3249_v50 = vpop.f32.mrf.mxu1 }
 0x165   :  { %v3228_v51 = vpop.f32.mrf.mxu0 }
 0x166   :  { %v3229_v52 = vadd.f32 %v3228_v51, %v3227_v49  ;;  %v3250_v53 = vpop.f32.mrf.mxu1 }
 0x167   :  { %v3251_v54 = vadd.f32 %v3250_v53, %v3249_v50  ;;  %v3230_v55 = vpop.f32.mrf.mxu0 }
 0x168   :  { %v2478_v56 = vadd.f32 %v3229_v52, %v2438_v48  ;;  %v3252_v57 = vpop.f32.mrf.mxu1 }
 0x169   :  { %v3231_v58 = vpop.f32.mrf.mxu0 }
 0x16a   :  { %v2518_v59 = vadd.f32 %v3251_v54, %v2478_v56  ;;  %v3253_v60 = vpop.f32.mrf.mxu1 }
 0x183   :  { %v3271_v61 = vpop.f32.mrf.mxu0 }
 0x184   :  { %v3293_v62 = vpop.f32.mrf.mxu1 }
 0x185   :  { %v3272_v63 = vpop.f32.mrf.mxu0 }
 0x186   :  { %v3273_v0 = vadd.f32 %v3272_v63, %v3271_v61  ;;  %v3294_v1 = vpop.f32.mrf.mxu1 }
 0x187   :  { %v3295_v2 = vadd.f32 %v3294_v1, %v3293_v62  ;;  %v3274_v3 = vpop.f32.mrf.mxu0 }
 0x188   :  { %v2558_v4 = vadd.f32 %v3273_v0, %v2518_v59  ;;  %v3296_v5 = vpop.f32.mrf.mxu1 }
 0x189   :  { %v3275_v6 = vpop.f32.mrf.mxu0 }
 0x18a   :  { %v2598_v7 = vadd.f32 %v3295_v2, %v2558_v4  ;;  %v3297_v8 = vpop.f32.mrf.mxu1 }
 0x1a3   :  { %v3315_v9 = vpop.f32.mrf.mxu0 }
 0x1a4   :  { %v3337_v10 = vpop.f32.mrf.mxu1 }
 0x1a5   :  { %v3316_v11 = vpop.f32.mrf.mxu0 }
 0x1a6   :  { %v3338_v12 = vpop.f32.mrf.mxu1  ;;  %v3317_v21 = vadd.f32 %v3316_v11, %v3315_v9 }
 0x1a7   :  { %v3318_v14 = vpop.f32.mrf.mxu0  ;;  %v3339_v23 = vadd.f32 %v3338_v12, %v3337_v10 }
 0x1a8   :  { %v3340_v13 = vpop.f32.mrf.mxu1  ;;  %v2638_v22 = vadd.f32 %v3317_v21, %v2598_v7 }
 0x1a9   :  { %v3319_v16 = vpop.f32.mrf.mxu0 }
 0x1aa   :  { %v3341_v15 = vpop.f32.mrf.mxu1  ;;  %v2678_v25 = vadd.f32 %v3339_v23, %v2638_v22 }
 0x1ca   :  { %v3359_v17 = vpop.f32.mrf.mxu0 }
 0x1cc   :  { %v3360_v18 = vpop.f32.mrf.mxu0 }
 0x1cd   :  { %v3361_v24 = vadd.f32 %v3360_v18, %v3359_v17 }
 0x1ce   :  { %v3362_v19 = vpop.f32.mrf.mxu0 }
 0x1cf   :  { %v2718_v26 = vadd.f32 %v3361_v24, %v2678_v25 }
 0x1d0   :  { %v3363_v20 = vpop.f32.mrf.mxu0 }
 0x1e2   :  { %v2757_v27 = vpop.f32.mrf.mxu1 }
 0x1e3   :  { %v2758_v28 = vadd.f32 %v2757_v27, %v2718_v26 }
 0x1e4   :  { %v2759_v29 = vpop.f32.mrf.mxu1 }
 0x1e5   :  { %3621 = vtanh.f32 %v2758_v28 }
 0x1e6   :  { %v2760_v30 = vpop.f32.mrf.mxu1 }
 0x1e8   :  { %v2761_v31 = vpop.f32.mrf.mxu1 }
 0x1f2   :  { %v3622_v32 = vpop.eup %3621 }
 0x1f3   :  { %2764 = vst [vmem:[#allocation2] sm:$0xff] %v3622_v32 }
 0x1f4   :  { %3634 = shalt.err (!%p3631_p4)
}
 0x1f5   :  { %2774 = dma.vmem_to_hbm [thread:$0]  %s2772_s1, 128, %s4551_s3, [#allocation3]  }
 0x1f6   :  { %3643 = dma.done.wait [#allocation3], 128  }
 0x1f7   :  { %3644 = vsyncadd [#allocation3], 4294967168 }
 0x1f8   :  { %2778 = vsyncpa [#allocation3], 1 }

// kernel: ae_forward.14
= control target key start
LH: loop header
LB: loop body
LE: loop exit
PB: predicated region body
PF: predicated region fallthrough
CT: control target
= control target key end

     0   :  { %s5719_s12 = smov 0   ;;  %s5721_s13 = smov 0   ;;  %s7447_s0 = inlined_call_operand.vmem [shape: f32[8,1024], index: 0, kind: input, shape index: {}]   ;;  %s7448_s1 = inlined_call_operand.vmem [shape: bf16[1024,4056], index: 1, kind: input, shape index: {}]   ;;  %s7449_s2 = inlined_call_operand.vmem [shape: f32[1,4056], index: 2, kind: input, shape index: {}]   ;;  %s7450_s3 = inlined_call_operand.vmem [shape: f32[8,4056], index: 3, kind: output, shape index: {}]  }
   0x1   :  { %s5723_s14 = smov 0  }
   0x2 LB: > { %s5123_s15 = sadd.s32 4294967295, %s5697_s14   ;;  %s5736_s16 = sadd.s32 1, %s5697_s14   ;;  %s5697_s14 = sphi %s5723_s14, %s7453_s14   ;;  %s5693_s13 = sphi %s5721_s13, %s7452_s13   ;;  %s5689_s12 = sphi %s5719_s12, %s7451_s12  }
   0x3   : > { %s38_s17 = ssub.s32 %s5697_s14, %s5736_s16  ;;  %s41_s18 = sadd.s32 1, %s5693_s13 }
   0x4   : > { %p39_p0 = scmp.eq.s32.totalorder %s38_s17, 0  ;;  %p48_p1 = scmp.ne.s32.totalorder %s5693_s13, %s5689_s12 }
   0x5   : > { %p49_p2 = scmp.eq.s32.totalorder %s5697_s14, 0  ;;  %p5126_p4 = scmp.ge.s32.totalorder %s5697_s14, 4 }
   0x6   : > { %s5745_s19 = scalar_select %p39_p0, %s5693_s13, %s41_s18  }
   0x7   : > { %p50_p3 = por %p49_p2, %p48_p1  ;;  %129 = sbr.rel (%p5126_p4) target bundleno = 272 (0x110), region = 20 }
   0xc   : > { %132 = sbr.rel (!%p50_p3) target bundleno = 272 (0x110), region = 24  ;;  %s134_s20 = sand.u32 (%p50_p3), 1, %s5693_s13  }
   0xd   : > { %s5649_s21 = sshll.u32 (%p50_p3), %s5697_s14, 5  ;;  %s5127_s22 = sshll.u32 (%p50_p3), %s134_s20, 12 }
   0xe   : > { %s5753_s25 = scalar_lea.vmem (%p50_p3), %s7448_s1, %s5649_s21  ;;  %s5758_s26 = scalar_lea.vmem (%p50_p3), [#allocation2], %s5127_s22 }
   0xf   : > { %v152_v0 = vld [vmem:[%s5753_s25] sm:$0xff] (%p50_p3)  ;;  %v154_v1 = vld [vmem:[%s5753_s25 + $0x8] sm:$0xff] (%p50_p3)  ;;  %v156_v2 = vld [vmem:[%s5753_s25 + $0x10] sm:$0xff] (%p50_p3) }
  0x10   : > { %153 = vst [vmem:[%s5758_s26] sm:$0xff] (%p50_p3), %v152_v0  ;;  %155 = vst [vmem:[%s5758_s26 + $0x8] sm:$0xff] (%p50_p3), %v154_v1  ;;  %v158_v3 = vld [vmem:[%s5753_s25 + $0x18] sm:$0xff] (%p50_p3)  ;;  %v160_v4 = vld [vmem:[%s5753_s25 + $0x80] sm:$0xff] (%p50_p3) }
  0x11   : > { %157 = vst [vmem:[%s5758_s26 + $0x10] sm:$0xff] %v156_v2  ;;  %v162_v5 = vld [vmem:[%s5753_s25 + $0x88] sm:$0xff]  ;;  %159 = vst [vmem:[%s5758_s26 + $0x18] sm:$0xff] %v158_v3  ;;  %v164_v6 = vld [vmem:[%s5753_s25 + $0x90] sm:$0xff] }
  0x12   : > { %161 = vst [vmem:[%s5758_s26 + $0x20] sm:$0xff] %v160_v4  ;;  %163 = vst [vmem:[%s5758_s26 + $0x28] sm:$0xff] %v162_v5  ;;  %v166_v7 = vld [vmem:[%s5753_s25 + $0x98] sm:$0xff]  ;;  %v168_v8 = vld [vmem:[%s5753_s25 + $0x100] sm:$0xff] }
  0x13   : > { %165 = vst [vmem:[%s5758_s26 + $0x30] sm:$0xff] %v164_v6  ;;  %167 = vst [vmem:[%s5758_s26 + $0x38] sm:$0xff] %v166_v7  ;;  %v170_v9 = vld [vmem:[%s5753_s25 + $0x108] sm:$0xff]  ;;  %v172_v10 = vld [vmem:[%s5753_s25 + $0x110] sm:$0xff] }
  0x14   : > { %169 = vst [vmem:[%s5758_s26 + $0x40] sm:$0xff] %v168_v8  ;;  %v174_v11 = vld [vmem:[%s5753_s25 + $0x118] sm:$0xff]  ;;  %171 = vst [vmem:[%s5758_s26 + $0x48] sm:$0xff] %v170_v9  ;;  %v176_v12 = vld [vmem:[%s5753_s25 + $0x180] sm:$0xff] }
  0x15   : > { %173 = vst [vmem:[%s5758_s26 + $0x50] sm:$0xff] %v172_v10  ;;  %175 = vst [vmem:[%s5758_s26 + $0x58] sm:$0xff] %v174_v11  ;;  %v178_v13 = vld [vmem:[%s5753_s25 + $0x188] sm:$0xff]  ;;  %v180_v14 = vld [vmem:[%s5753_s25 + $0x190] sm:$0xff] }
  0x16   : > { %177 = vst [vmem:[%s5758_s26 + $0x60] sm:$0xff] %v176_v12  ;;  %179 = vst [vmem:[%s5758_s26 + $0x68] sm:$0xff] %v178_v13  ;;  %v182_v15 = vld [vmem:[%s5753_s25 + $0x198] sm:$0xff]  ;;  %v184_v16 = vld [vmem:[%s5753_s25 + $0x200] sm:$0xff] }
  0x17   : > { %181 = vst [vmem:[%s5758_s26 + $0x70] sm:$0xff] %v180_v14  ;;  %v186_v17 = vld [vmem:[%s5753_s25 + $0x208] sm:$0xff]  ;;  %183 = vst [vmem:[%s5758_s26 + $0x78] sm:$0xff] %v182_v15  ;;  %v188_v18 = vld [vmem:[%s5753_s25 + $0x210] sm:$0xff] }
  0x18   : > { %185 = vst [vmem:[%s5758_s26 + $0x80] sm:$0xff] %v184_v16  ;;  %187 = vst [vmem:[%s5758_s26 + $0x88] sm:$0xff] %v186_v17  ;;  %v190_v19 = vld [vmem:[%s5753_s25 + $0x218] sm:$0xff]  ;;  %v192_v20 = vld [vmem:[%s5753_s25 + $0x280] sm:$0xff] }
  0x19   : > { %189 = vst [vmem:[%s5758_s26 + $0x90] sm:$0xff] %v188_v18  ;;  %191 = vst [vmem:[%s5758_s26 + $0x98] sm:$0xff] %v190_v19  ;;  %v194_v21 = vld [vmem:[%s5753_s25 + $0x288] sm:$0xff]  ;;  %v196_v22 = vld [vmem:[%s5753_s25 + $0x290] sm:$0xff] }
  0x1a   : > { %193 = vst [vmem:[%s5758_s26 + $0xa0] sm:$0xff] %v192_v20  ;;  %v198_v23 = vld [vmem:[%s5753_s25 + $0x298] sm:$0xff]  ;;  %195 = vst [vmem:[%s5758_s26 + $0xa8] sm:$0xff] %v194_v21  ;;  %v200_v24 = vld [vmem:[%s5753_s25 + $0x300] sm:$0xff] }
  0x1b   : > { %197 = vst [vmem:[%s5758_s26 + $0xb0] sm:$0xff] %v196_v22  ;;  %199 = vst [vmem:[%s5758_s26 + $0xb8] sm:$0xff] %v198_v23  ;;  %v202_v25 = vld [vmem:[%s5753_s25 + $0x308] sm:$0xff]  ;;  %v204_v26 = vld [vmem:[%s5753_s25 + $0x310] sm:$0xff] }
  0x1c   : > { %201 = vst [vmem:[%s5758_s26 + $0xc0] sm:$0xff] %v200_v24  ;;  %203 = vst [vmem:[%s5758_s26 + $0xc8] sm:$0xff] %v202_v25  ;;  %v206_v27 = vld [vmem:[%s5753_s25 + $0x318] sm:$0xff]  ;;  %v208_v28 = vld [vmem:[%s5753_s25 + $0x380] sm:$0xff] }
  0x1d   : > { %205 = vst [vmem:[%s5758_s26 + $0xd0] sm:$0xff] %v204_v26  ;;  %v210_v29 = vld [vmem:[%s5753_s25 + $0x388] sm:$0xff]  ;;  %207 = vst [vmem:[%s5758_s26 + $0xd8] sm:$0xff] %v206_v27  ;;  %v212_v30 = vld [vmem:[%s5753_s25 + $0x390] sm:$0xff] }
  0x1e   : > { %209 = vst [vmem:[%s5758_s26 + $0xe0] sm:$0xff] %v208_v28  ;;  %211 = vst [vmem:[%s5758_s26 + $0xe8] sm:$0xff] %v210_v29  ;;  %v214_v31 = vld [vmem:[%s5753_s25 + $0x398] sm:$0xff]  ;;  %v216_v32 = vld [vmem:[%s5753_s25 + $0x400] sm:$0xff] }
  0x1f   : > { %213 = vst [vmem:[%s5758_s26 + $0xf0] sm:$0xff] %v212_v30  ;;  %215 = vst [vmem:[%s5758_s26 + $0xf8] sm:$0xff] %v214_v31  ;;  %v218_v33 = vld [vmem:[%s5753_s25 + $0x408] sm:$0xff]  ;;  %v220_v34 = vld [vmem:[%s5753_s25 + $0x410] sm:$0xff] }
  0x20   : > { %217 = vst [vmem:[%s5758_s26 + $0x100] sm:$0xff] %v216_v32  ;;  %v222_v35 = vld [vmem:[%s5753_s25 + $0x418] sm:$0xff]  ;;  %219 = vst [vmem:[%s5758_s26 + $0x108] sm:$0xff] %v218_v33  ;;  %v224_v36 = vld [vmem:[%s5753_s25 + $0x480] sm:$0xff] }
  0x21   : > { %221 = vst [vmem:[%s5758_s26 + $0x110] sm:$0xff] %v220_v34  ;;  %223 = vst [vmem:[%s5758_s26 + $0x118] sm:$0xff] %v222_v35  ;;  %v226_v37 = vld [vmem:[%s5753_s25 + $0x488] sm:$0xff]  ;;  %v228_v38 = vld [vmem:[%s5753_s25 + $0x490] sm:$0xff] }
  0x22   : > { %225 = vst [vmem:[%s5758_s26 + $0x120] sm:$0xff] %v224_v36  ;;  %227 = vst [vmem:[%s5758_s26 + $0x128] sm:$0xff] %v226_v37  ;;  %v230_v39 = vld [vmem:[%s5753_s25 + $0x498] sm:$0xff]  ;;  %v232_v40 = vld [vmem:[%s5753_s25 + $0x500] sm:$0xff] }
  0x23   : > { %229 = vst [vmem:[%s5758_s26 + $0x130] sm:$0xff] %v228_v38  ;;  %v234_v41 = vld [vmem:[%s5753_s25 + $0x508] sm:$0xff]  ;;  %231 = vst [vmem:[%s5758_s26 + $0x138] sm:$0xff] %v230_v39  ;;  %v236_v42 = vld [vmem:[%s5753_s25 + $0x510] sm:$0xff] }
  0x24   : > { %233 = vst [vmem:[%s5758_s26 + $0x140] sm:$0xff] %v232_v40  ;;  %235 = vst [vmem:[%s5758_s26 + $0x148] sm:$0xff] %v234_v41  ;;  %v238_v43 = vld [vmem:[%s5753_s25 + $0x518] sm:$0xff]  ;;  %v240_v44 = vld [vmem:[%s5753_s25 + $0x580] sm:$0xff] }
  0x25   : > { %237 = vst [vmem:[%s5758_s26 + $0x150] sm:$0xff] %v236_v42  ;;  %239 = vst [vmem:[%s5758_s26 + $0x158] sm:$0xff] %v238_v43  ;;  %v242_v45 = vld [vmem:[%s5753_s25 + $0x588] sm:$0xff]  ;;  %v244_v46 = vld [vmem:[%s5753_s25 + $0x590] sm:$0xff] }
  0x26   : > { %241 = vst [vmem:[%s5758_s26 + $0x160] sm:$0xff] %v240_v44  ;;  %v246_v47 = vld [vmem:[%s5753_s25 + $0x598] sm:$0xff]  ;;  %243 = vst [vmem:[%s5758_s26 + $0x168] sm:$0xff] %v242_v45  ;;  %v248_v48 = vld [vmem:[%s5753_s25 + $0x600] sm:$0xff] }
  0x27   : > { %245 = vst [vmem:[%s5758_s26 + $0x170] sm:$0xff] %v244_v46  ;;  %247 = vst [vmem:[%s5758_s26 + $0x178] sm:$0xff] %v246_v47  ;;  %v250_v49 = vld [vmem:[%s5753_s25 + $0x608] sm:$0xff]  ;;  %v252_v50 = vld [vmem:[%s5753_s25 + $0x610] sm:$0xff] }
  0x28   : > { %249 = vst [vmem:[%s5758_s26 + $0x180] sm:$0xff] %v248_v48  ;;  %251 = vst [vmem:[%s5758_s26 + $0x188] sm:$0xff] %v250_v49  ;;  %v254_v51 = vld [vmem:[%s5753_s25 + $0x618] sm:$0xff]  ;;  %v256_v52 = vld [vmem:[%s5753_s25 + $0x680] sm:$0xff] }
  0x29   : > { %253 = vst [vmem:[%s5758_s26 + $0x190] sm:$0xff] %v252_v50  ;;  %v258_v53 = vld [vmem:[%s5753_s25 + $0x688] sm:$0xff]  ;;  %255 = vst [vmem:[%s5758_s26 + $0x198] sm:$0xff] %v254_v51  ;;  %v260_v54 = vld [vmem:[%s5753_s25 + $0x690] sm:$0xff] }
  0x2a   : > { %257 = vst [vmem:[%s5758_s26 + $0x1a0] sm:$0xff] %v256_v52  ;;  %259 = vst [vmem:[%s5758_s26 + $0x1a8] sm:$0xff] %v258_v53  ;;  %v262_v55 = vld [vmem:[%s5753_s25 + $0x698] sm:$0xff]  ;;  %v264_v56 = vld [vmem:[%s5753_s25 + $0x700] sm:$0xff] }
  0x2b   : > { %261 = vst [vmem:[%s5758_s26 + $0x1b0] sm:$0xff] %v260_v54  ;;  %263 = vst [vmem:[%s5758_s26 + $0x1b8] sm:$0xff] %v262_v55  ;;  %v266_v57 = vld [vmem:[%s5753_s25 + $0x708] sm:$0xff]  ;;  %v268_v58 = vld [vmem:[%s5753_s25 + $0x710] sm:$0xff] }
  0x2c   : > { %265 = vst [vmem:[%s5758_s26 + $0x1c0] sm:$0xff] %v264_v56  ;;  %v270_v59 = vld [vmem:[%s5753_s25 + $0x718] sm:$0xff]  ;;  %267 = vst [vmem:[%s5758_s26 + $0x1c8] sm:$0xff] %v266_v57  ;;  %v272_v60 = vld [vmem:[%s5753_s25 + $0x780] sm:$0xff] }
  0x2d   : > { %269 = vst [vmem:[%s5758_s26 + $0x1d0] sm:$0xff] %v268_v58  ;;  %271 = vst [vmem:[%s5758_s26 + $0x1d8] sm:$0xff] %v270_v59  ;;  %v274_v61 = vld [vmem:[%s5753_s25 + $0x788] sm:$0xff]  ;;  %v276_v62 = vld [vmem:[%s5753_s25 + $0x790] sm:$0xff] }
  0x2e   : > { %273 = vst [vmem:[%s5758_s26 + $0x1e0] sm:$0xff] %v272_v60  ;;  %275 = vst [vmem:[%s5758_s26 + $0x1e8] sm:$0xff] %v274_v61  ;;  %v278_v63 = vld [vmem:[%s5753_s25 + $0x798] sm:$0xff]  ;;  %v280_v0 = vld [vmem:[%s5753_s25 + $0x800] sm:$0xff] }
  0x2f   : > { %277 = vst [vmem:[%s5758_s26 + $0x1f0] sm:$0xff] %v276_v62  ;;  %v282_v1 = vld [vmem:[%s5753_s25 + $0x808] sm:$0xff]  ;;  %279 = vst [vmem:[%s5758_s26 + $0x1f8] sm:$0xff] %v278_v63  ;;  %v284_v2 = vld [vmem:[%s5753_s25 + $0x810] sm:$0xff] }
  0x30   : > { %281 = vst [vmem:[%s5758_s26 + $0x200] sm:$0xff] %v280_v0  ;;  %283 = vst [vmem:[%s5758_s26 + $0x208] sm:$0xff] %v282_v1  ;;  %v286_v3 = vld [vmem:[%s5753_s25 + $0x818] sm:$0xff]  ;;  %v288_v4 = vld [vmem:[%s5753_s25 + $0x880] sm:$0xff] }
  0x31   : > { %285 = vst [vmem:[%s5758_s26 + $0x210] sm:$0xff] %v284_v2  ;;  %287 = vst [vmem:[%s5758_s26 + $0x218] sm:$0xff] %v286_v3  ;;  %v290_v5 = vld [vmem:[%s5753_s25 + $0x888] sm:$0xff]  ;;  %v292_v6 = vld [vmem:[%s5753_s25 + $0x890] sm:$0xff] }
  0x32   : > { %289 = vst [vmem:[%s5758_s26 + $0x220] sm:$0xff] %v288_v4  ;;  %v294_v7 = vld [vmem:[%s5753_s25 + $0x898] sm:$0xff]  ;;  %291 = vst [vmem:[%s5758_s26 + $0x228] sm:$0xff] %v290_v5  ;;  %v296_v8 = vld [vmem:[%s5753_s25 + $0x900] sm:$0xff] }
  0x33   : > { %293 = vst [vmem:[%s5758_s26 + $0x230] sm:$0xff] %v292_v6  ;;  %295 = vst [vmem:[%s5758_s26 + $0x238] sm:$0xff] %v294_v7  ;;  %v298_v9 = vld [vmem:[%s5753_s25 + $0x908] sm:$0xff]  ;;  %v300_v10 = vld [vmem:[%s5753_s25 + $0x910] sm:$0xff] }
  0x34   : > { %297 = vst [vmem:[%s5758_s26 + $0x240] sm:$0xff] %v296_v8  ;;  %299 = vst [vmem:[%s5758_s26 + $0x248] sm:$0xff] %v298_v9  ;;  %v302_v11 = vld [vmem:[%s5753_s25 + $0x918] sm:$0xff]  ;;  %v304_v12 = vld [vmem:[%s5753_s25 + $0x980] sm:$0xff] }
  0x35   : > { %301 = vst [vmem:[%s5758_s26 + $0x250] sm:$0xff] %v300_v10  ;;  %v306_v13 = vld [vmem:[%s5753_s25 + $0x988] sm:$0xff]  ;;  %303 = vst [vmem:[%s5758_s26 + $0x258] sm:$0xff] %v302_v11  ;;  %v308_v14 = vld [vmem:[%s5753_s25 + $0x990] sm:$0xff] }
  0x36   : > { %305 = vst [vmem:[%s5758_s26 + $0x260] sm:$0xff] %v304_v12  ;;  %307 = vst [vmem:[%s5758_s26 + $0x268] sm:$0xff] %v306_v13  ;;  %v310_v15 = vld [vmem:[%s5753_s25 + $0x998] sm:$0xff]  ;;  %v312_v16 = vld [vmem:[%s5753_s25 + $0xa00] sm:$0xff] }
  0x37   : > { %309 = vst [vmem:[%s5758_s26 + $0x270] sm:$0xff] %v308_v14  ;;  %311 = vst [vmem:[%s5758_s26 + $0x278] sm:$0xff] %v310_v15  ;;  %v314_v17 = vld [vmem:[%s5753_s25 + $0xa08] sm:$0xff]  ;;  %v316_v18 = vld [vmem:[%s5753_s25 + $0xa10] sm:$0xff] }
  0x38   : > { %313 = vst [vmem:[%s5758_s26 + $0x280] sm:$0xff] %v312_v16  ;;  %v318_v19 = vld [vmem:[%s5753_s25 + $0xa18] sm:$0xff]  ;;  %315 = vst [vmem:[%s5758_s26 + $0x288] sm:$0xff] %v314_v17  ;;  %v320_v20 = vld [vmem:[%s5753_s25 + $0xa80] sm:$0xff] }
  0x39   : > { %317 = vst [vmem:[%s5758_s26 + $0x290] sm:$0xff] %v316_v18  ;;  %319 = vst [vmem:[%s5758_s26 + $0x298] sm:$0xff] %v318_v19  ;;  %v322_v21 = vld [vmem:[%s5753_s25 + $0xa88] sm:$0xff]  ;;  %v324_v22 = vld [vmem:[%s5753_s25 + $0xa90] sm:$0xff] }
  0x3a   : > { %321 = vst [vmem:[%s5758_s26 + $0x2a0] sm:$0xff] %v320_v20  ;;  %323 = vst [vmem:[%s5758_s26 + $0x2a8] sm:$0xff] %v322_v21  ;;  %v326_v23 = vld [vmem:[%s5753_s25 + $0xa98] sm:$0xff]  ;;  %v328_v24 = vld [vmem:[%s5753_s25 + $0xb00] sm:$0xff] }
  0x3b   : > { %325 = vst [vmem:[%s5758_s26 + $0x2b0] sm:$0xff] %v324_v22  ;;  %v330_v25 = vld [vmem:[%s5753_s25 + $0xb08] sm:$0xff]  ;;  %327 = vst [vmem:[%s5758_s26 + $0x2b8] sm:$0xff] %v326_v23  ;;  %v332_v26 = vld [vmem:[%s5753_s25 + $0xb10] sm:$0xff] }
  0x3c   : > { %329 = vst [vmem:[%s5758_s26 + $0x2c0] sm:$0xff] %v328_v24  ;;  %331 = vst [vmem:[%s5758_s26 + $0x2c8] sm:$0xff] %v330_v25  ;;  %v334_v27 = vld [vmem:[%s5753_s25 + $0xb18] sm:$0xff]  ;;  %v336_v28 = vld [vmem:[%s5753_s25 + $0xb80] sm:$0xff] }
  0x3d   : > { %333 = vst [vmem:[%s5758_s26 + $0x2d0] sm:$0xff] %v332_v26  ;;  %335 = vst [vmem:[%s5758_s26 + $0x2d8] sm:$0xff] %v334_v27  ;;  %v338_v29 = vld [vmem:[%s5753_s25 + $0xb88] sm:$0xff]  ;;  %v340_v30 = vld [vmem:[%s5753_s25 + $0xb90] sm:$0xff] }
  0x3e   : > { %337 = vst [vmem:[%s5758_s26 + $0x2e0] sm:$0xff] %v336_v28  ;;  %v342_v31 = vld [vmem:[%s5753_s25 + $0xb98] sm:$0xff]  ;;  %339 = vst [vmem:[%s5758_s26 + $0x2e8] sm:$0xff] %v338_v29  ;;  %v344_v32 = vld [vmem:[%s5753_s25 + $0xc00] sm:$0xff] }
  0x3f   : > { %341 = vst [vmem:[%s5758_s26 + $0x2f0] sm:$0xff] %v340_v30  ;;  %343 = vst [vmem:[%s5758_s26 + $0x2f8] sm:$0xff] %v342_v31  ;;  %v346_v33 = vld [vmem:[%s5753_s25 + $0xc08] sm:$0xff]  ;;  %v348_v34 = vld [vmem:[%s5753_s25 + $0xc10] sm:$0xff] }
  0x40   : > { %345 = vst [vmem:[%s5758_s26 + $0x300] sm:$0xff] %v344_v32  ;;  %347 = vst [vmem:[%s5758_s26 + $0x308] sm:$0xff] %v346_v33  ;;  %v350_v35 = vld [vmem:[%s5753_s25 + $0xc18] sm:$0xff]  ;;  %v352_v36 = vld [vmem:[%s5753_s25 + $0xc80] sm:$0xff] }
  0x41   : > { %349 = vst [vmem:[%s5758_s26 + $0x310] sm:$0xff] %v348_v34  ;;  %v354_v37 = vld [vmem:[%s5753_s25 + $0xc88] sm:$0xff]  ;;  %351 = vst [vmem:[%s5758_s26 + $0x318] sm:$0xff] %v350_v35  ;;  %v356_v38 = vld [vmem:[%s5753_s25 + $0xc90] sm:$0xff] }
  0x42   : > { %353 = vst [vmem:[%s5758_s26 + $0x320] sm:$0xff] %v352_v36  ;;  %355 = vst [vmem:[%s5758_s26 + $0x328] sm:$0xff] %v354_v37  ;;  %v358_v39 = vld [vmem:[%s5753_s25 + $0xc98] sm:$0xff]  ;;  %v360_v40 = vld [vmem:[%s5753_s25 + $0xd00] sm:$0xff] }
  0x43   : > { %357 = vst [vmem:[%s5758_s26 + $0x330] sm:$0xff] %v356_v38  ;;  %359 = vst [vmem:[%s5758_s26 + $0x338] sm:$0xff] %v358_v39  ;;  %v362_v41 = vld [vmem:[%s5753_s25 + $0xd08] sm:$0xff]  ;;  %v364_v42 = vld [vmem:[%s5753_s25 + $0xd10] sm:$0xff] }
  0x44   : > { %361 = vst [vmem:[%s5758_s26 + $0x340] sm:$0xff] %v360_v40  ;;  %v366_v43 = vld [vmem:[%s5753_s25 + $0xd18] sm:$0xff]  ;;  %363 = vst [vmem:[%s5758_s26 + $0x348] sm:$0xff] %v362_v41  ;;  %v368_v44 = vld [vmem:[%s5753_s25 + $0xd80] sm:$0xff] }
  0x45   : > { %365 = vst [vmem:[%s5758_s26 + $0x350] sm:$0xff] %v364_v42  ;;  %367 = vst [vmem:[%s5758_s26 + $0x358] sm:$0xff] %v366_v43  ;;  %v370_v45 = vld [vmem:[%s5753_s25 + $0xd88] sm:$0xff]  ;;  %v372_v46 = vld [vmem:[%s5753_s25 + $0xd90] sm:$0xff] }
  0x46   : > { %369 = vst [vmem:[%s5758_s26 + $0x360] sm:$0xff] %v368_v44  ;;  %371 = vst [vmem:[%s5758_s26 + $0x368] sm:$0xff] %v370_v45  ;;  %v374_v47 = vld [vmem:[%s5753_s25 + $0xd98] sm:$0xff]  ;;  %v376_v48 = vld [vmem:[%s5753_s25 + $0xe00] sm:$0xff] }
  0x47   : > { %373 = vst [vmem:[%s5758_s26 + $0x370] sm:$0xff] %v372_v46  ;;  %v378_v49 = vld [vmem:[%s5753_s25 + $0xe08] sm:$0xff]  ;;  %375 = vst [vmem:[%s5758_s26 + $0x378] sm:$0xff] %v374_v47  ;;  %v380_v50 = vld [vmem:[%s5753_s25 + $0xe10] sm:$0xff] }
  0x48   : > { %377 = vst [vmem:[%s5758_s26 + $0x380] sm:$0xff] %v376_v48  ;;  %379 = vst [vmem:[%s5758_s26 + $0x388] sm:$0xff] %v378_v49  ;;  %v382_v51 = vld [vmem:[%s5753_s25 + $0xe18] sm:$0xff]  ;;  %v384_v52 = vld [vmem:[%s5753_s25 + $0xe80] sm:$0xff] }
  0x49   : > { %381 = vst [vmem:[%s5758_s26 + $0x390] sm:$0xff] %v380_v50  ;;  %383 = vst [vmem:[%s5758_s26 + $0x398] sm:$0xff] %v382_v51  ;;  %v386_v53 = vld [vmem:[%s5753_s25 + $0xe88] sm:$0xff]  ;;  %v388_v54 = vld [vmem:[%s5753_s25 + $0xe90] sm:$0xff] }
  0x4a   : > { %385 = vst [vmem:[%s5758_s26 + $0x3a0] sm:$0xff] %v384_v52  ;;  %v390_v55 = vld [vmem:[%s5753_s25 + $0xe98] sm:$0xff]  ;;  %387 = vst [vmem:[%s5758_s26 + $0x3a8] sm:$0xff] %v386_v53  ;;  %v392_v56 = vld [vmem:[%s5753_s25 + $0xf00] sm:$0xff] }
  0x4b   : > { %389 = vst [vmem:[%s5758_s26 + $0x3b0] sm:$0xff] %v388_v54  ;;  %391 = vst [vmem:[%s5758_s26 + $0x3b8] sm:$0xff] %v390_v55  ;;  %v394_v57 = vld [vmem:[%s5753_s25 + $0xf08] sm:$0xff]  ;;  %v396_v58 = vld [vmem:[%s5753_s25 + $0xf10] sm:$0xff] }
  0x4c   : > { %393 = vst [vmem:[%s5758_s26 + $0x3c0] sm:$0xff] %v392_v56  ;;  %395 = vst [vmem:[%s5758_s26 + $0x3c8] sm:$0xff] %v394_v57  ;;  %v398_v59 = vld [vmem:[%s5753_s25 + $0xf18] sm:$0xff]  ;;  %v400_v60 = vld [vmem:[%s5753_s25 + $0xf80] sm:$0xff] }
  0x4d   : > { %397 = vst [vmem:[%s5758_s26 + $0x3d0] sm:$0xff] %v396_v58  ;;  %v402_v61 = vld [vmem:[%s5753_s25 + $0xf88] sm:$0xff]  ;;  %399 = vst [vmem:[%s5758_s26 + $0x3d8] sm:$0xff] %v398_v59  ;;  %v404_v62 = vld [vmem:[%s5753_s25 + $0xf90] sm:$0xff] }
  0x4e   : > { %401 = vst [vmem:[%s5758_s26 + $0x3e0] sm:$0xff] %v400_v60  ;;  %403 = vst [vmem:[%s5758_s26 + $0x3e8] sm:$0xff] %v402_v61  ;;  %v406_v63 = vld [vmem:[%s5753_s25 + $0xf98] sm:$0xff]  ;;  %v408_v0 = vld [vmem:[%s5753_s25 + $0x1000] sm:$0xff] }
  0x4f   : > { %405 = vst [vmem:[%s5758_s26 + $0x3f0] sm:$0xff] %v404_v62  ;;  %407 = vst [vmem:[%s5758_s26 + $0x3f8] sm:$0xff] %v406_v63  ;;  %v410_v1 = vld [vmem:[%s5753_s25 + $0x1008] sm:$0xff]  ;;  %v412_v2 = vld [vmem:[%s5753_s25 + $0x1010] sm:$0xff] }
  0x50   : > { %409 = vst [vmem:[%s5758_s26 + $0x400] sm:$0xff] %v408_v0  ;;  %v414_v3 = vld [vmem:[%s5753_s25 + $0x1018] sm:$0xff]  ;;  %411 = vst [vmem:[%s5758_s26 + $0x408] sm:$0xff] %v410_v1  ;;  %v416_v4 = vld [vmem:[%s5753_s25 + $0x1080] sm:$0xff] }
  0x51   : > { %413 = vst [vmem:[%s5758_s26 + $0x410] sm:$0xff] %v412_v2  ;;  %415 = vst [vmem:[%s5758_s26 + $0x418] sm:$0xff] %v414_v3  ;;  %v418_v5 = vld [vmem:[%s5753_s25 + $0x1088] sm:$0xff]  ;;  %v420_v6 = vld [vmem:[%s5753_s25 + $0x1090] sm:$0xff] }
  0x52   : > { %417 = vst [vmem:[%s5758_s26 + $0x420] sm:$0xff] %v416_v4  ;;  %419 = vst [vmem:[%s5758_s26 + $0x428] sm:$0xff] %v418_v5  ;;  %v422_v7 = vld [vmem:[%s5753_s25 + $0x1098] sm:$0xff]  ;;  %v424_v8 = vld [vmem:[%s5753_s25 + $0x1100] sm:$0xff] }
  0x53   : > { %421 = vst [vmem:[%s5758_s26 + $0x430] sm:$0xff] %v420_v6  ;;  %v426_v9 = vld [vmem:[%s5753_s25 + $0x1108] sm:$0xff]  ;;  %423 = vst [vmem:[%s5758_s26 + $0x438] sm:$0xff] %v422_v7  ;;  %v428_v10 = vld [vmem:[%s5753_s25 + $0x1110] sm:$0xff] }
  0x54   : > { %425 = vst [vmem:[%s5758_s26 + $0x440] sm:$0xff] %v424_v8  ;;  %427 = vst [vmem:[%s5758_s26 + $0x448] sm:$0xff] %v426_v9  ;;  %v430_v11 = vld [vmem:[%s5753_s25 + $0x1118] sm:$0xff]  ;;  %v432_v12 = vld [vmem:[%s5753_s25 + $0x1180] sm:$0xff] }
  0x55   : > { %429 = vst [vmem:[%s5758_s26 + $0x450] sm:$0xff] %v428_v10  ;;  %431 = vst [vmem:[%s5758_s26 + $0x458] sm:$0xff] %v430_v11  ;;  %v434_v13 = vld [vmem:[%s5753_s25 + $0x1188] sm:$0xff]  ;;  %v436_v14 = vld [vmem:[%s5753_s25 + $0x1190] sm:$0xff] }
  0x56   : > { %433 = vst [vmem:[%s5758_s26 + $0x460] sm:$0xff] %v432_v12  ;;  %v438_v15 = vld [vmem:[%s5753_s25 + $0x1198] sm:$0xff]  ;;  %435 = vst [vmem:[%s5758_s26 + $0x468] sm:$0xff] %v434_v13  ;;  %v440_v16 = vld [vmem:[%s5753_s25 + $0x1200] sm:$0xff] }
  0x57   : > { %437 = vst [vmem:[%s5758_s26 + $0x470] sm:$0xff] %v436_v14  ;;  %439 = vst [vmem:[%s5758_s26 + $0x478] sm:$0xff] %v438_v15  ;;  %v442_v17 = vld [vmem:[%s5753_s25 + $0x1208] sm:$0xff]  ;;  %v444_v18 = vld [vmem:[%s5753_s25 + $0x1210] sm:$0xff] }
  0x58   : > { %441 = vst [vmem:[%s5758_s26 + $0x480] sm:$0xff] %v440_v16  ;;  %443 = vst [vmem:[%s5758_s26 + $0x488] sm:$0xff] %v442_v17  ;;  %v446_v19 = vld [vmem:[%s5753_s25 + $0x1218] sm:$0xff]  ;;  %v448_v20 = vld [vmem:[%s5753_s25 + $0x1280] sm:$0xff] }
  0x59   : > { %445 = vst [vmem:[%s5758_s26 + $0x490] sm:$0xff] %v444_v18  ;;  %v450_v21 = vld [vmem:[%s5753_s25 + $0x1288] sm:$0xff]  ;;  %447 = vst [vmem:[%s5758_s26 + $0x498] sm:$0xff] %v446_v19  ;;  %v452_v22 = vld [vmem:[%s5753_s25 + $0x1290] sm:$0xff] }
  0x5a   : > { %449 = vst [vmem:[%s5758_s26 + $0x4a0] sm:$0xff] %v448_v20  ;;  %451 = vst [vmem:[%s5758_s26 + $0x4a8] sm:$0xff] %v450_v21  ;;  %v454_v23 = vld [vmem:[%s5753_s25 + $0x1298] sm:$0xff]  ;;  %v456_v24 = vld [vmem:[%s5753_s25 + $0x1300] sm:$0xff] }
  0x5b   : > { %453 = vst [vmem:[%s5758_s26 + $0x4b0] sm:$0xff] %v452_v22  ;;  %455 = vst [vmem:[%s5758_s26 + $0x4b8] sm:$0xff] %v454_v23  ;;  %v458_v25 = vld [vmem:[%s5753_s25 + $0x1308] sm:$0xff]  ;;  %v460_v26 = vld [vmem:[%s5753_s25 + $0x1310] sm:$0xff] }
  0x5c   : > { %457 = vst [vmem:[%s5758_s26 + $0x4c0] sm:$0xff] %v456_v24  ;;  %v462_v27 = vld [vmem:[%s5753_s25 + $0x1318] sm:$0xff]  ;;  %459 = vst [vmem:[%s5758_s26 + $0x4c8] sm:$0xff] %v458_v25  ;;  %v464_v28 = vld [vmem:[%s5753_s25 + $0x1380] sm:$0xff] }
  0x5d   : > { %461 = vst [vmem:[%s5758_s26 + $0x4d0] sm:$0xff] %v460_v26  ;;  %463 = vst [vmem:[%s5758_s26 + $0x4d8] sm:$0xff] %v462_v27  ;;  %v466_v29 = vld [vmem:[%s5753_s25 + $0x1388] sm:$0xff]  ;;  %v468_v30 = vld [vmem:[%s5753_s25 + $0x1390] sm:$0xff] }
  0x5e   : > { %465 = vst [vmem:[%s5758_s26 + $0x4e0] sm:$0xff] %v464_v28  ;;  %467 = vst [vmem:[%s5758_s26 + $0x4e8] sm:$0xff] %v466_v29  ;;  %v470_v31 = vld [vmem:[%s5753_s25 + $0x1398] sm:$0xff]  ;;  %v472_v32 = vld [vmem:[%s5753_s25 + $0x1400] sm:$0xff] }
  0x5f   : > { %469 = vst [vmem:[%s5758_s26 + $0x4f0] sm:$0xff] %v468_v30  ;;  %v474_v33 = vld [vmem:[%s5753_s25 + $0x1408] sm:$0xff]  ;;  %471 = vst [vmem:[%s5758_s26 + $0x4f8] sm:$0xff] %v470_v31  ;;  %v476_v34 = vld [vmem:[%s5753_s25 + $0x1410] sm:$0xff] }
  0x60   : > { %473 = vst [vmem:[%s5758_s26 + $0x500] sm:$0xff] %v472_v32  ;;  %475 = vst [vmem:[%s5758_s26 + $0x508] sm:$0xff] %v474_v33  ;;  %v478_v35 = vld [vmem:[%s5753_s25 + $0x1418] sm:$0xff]  ;;  %v480_v36 = vld [vmem:[%s5753_s25 + $0x1480] sm:$0xff] }
  0x61   : > { %477 = vst [vmem:[%s5758_s26 + $0x510] sm:$0xff] %v476_v34  ;;  %479 = vst [vmem:[%s5758_s26 + $0x518] sm:$0xff] %v478_v35  ;;  %v482_v37 = vld [vmem:[%s5753_s25 + $0x1488] sm:$0xff]  ;;  %v484_v38 = vld [vmem:[%s5753_s25 + $0x1490] sm:$0xff] }
  0x62   : > { %481 = vst [vmem:[%s5758_s26 + $0x520] sm:$0xff] %v480_v36  ;;  %v486_v39 = vld [vmem:[%s5753_s25 + $0x1498] sm:$0xff]  ;;  %483 = vst [vmem:[%s5758_s26 + $0x528] sm:$0xff] %v482_v37  ;;  %v488_v40 = vld [vmem:[%s5753_s25 + $0x1500] sm:$0xff] }
  0x63   : > { %485 = vst [vmem:[%s5758_s26 + $0x530] sm:$0xff] %v484_v38  ;;  %487 = vst [vmem:[%s5758_s26 + $0x538] sm:$0xff] %v486_v39  ;;  %v490_v41 = vld [vmem:[%s5753_s25 + $0x1508] sm:$0xff]  ;;  %v492_v42 = vld [vmem:[%s5753_s25 + $0x1510] sm:$0xff] }
  0x64   : > { %489 = vst [vmem:[%s5758_s26 + $0x540] sm:$0xff] %v488_v40  ;;  %491 = vst [vmem:[%s5758_s26 + $0x548] sm:$0xff] %v490_v41  ;;  %v494_v43 = vld [vmem:[%s5753_s25 + $0x1518] sm:$0xff]  ;;  %v496_v44 = vld [vmem:[%s5753_s25 + $0x1580] sm:$0xff] }
  0x65   : > { %493 = vst [vmem:[%s5758_s26 + $0x550] sm:$0xff] %v492_v42  ;;  %v498_v45 = vld [vmem:[%s5753_s25 + $0x1588] sm:$0xff]  ;;  %495 = vst [vmem:[%s5758_s26 + $0x558] sm:$0xff] %v494_v43  ;;  %v500_v46 = vld [vmem:[%s5753_s25 + $0x1590] sm:$0xff] }
  0x66   : > { %497 = vst [vmem:[%s5758_s26 + $0x560] sm:$0xff] %v496_v44  ;;  %499 = vst [vmem:[%s5758_s26 + $0x568] sm:$0xff] %v498_v45  ;;  %v502_v47 = vld [vmem:[%s5753_s25 + $0x1598] sm:$0xff]  ;;  %v504_v48 = vld [vmem:[%s5753_s25 + $0x1600] sm:$0xff] }
  0x67   : > { %501 = vst [vmem:[%s5758_s26 + $0x570] sm:$0xff] %v500_v46  ;;  %503 = vst [vmem:[%s5758_s26 + $0x578] sm:$0xff] %v502_v47  ;;  %v506_v49 = vld [vmem:[%s5753_s25 + $0x1608] sm:$0xff]  ;;  %v508_v50 = vld [vmem:[%s5753_s25 + $0x1610] sm:$0xff] }
  0x68   : > { %505 = vst [vmem:[%s5758_s26 + $0x580] sm:$0xff] %v504_v48  ;;  %v510_v51 = vld [vmem:[%s5753_s25 + $0x1618] sm:$0xff]  ;;  %507 = vst [vmem:[%s5758_s26 + $0x588] sm:$0xff] %v506_v49  ;;  %v512_v52 = vld [vmem:[%s5753_s25 + $0x1680] sm:$0xff] }
  0x69   : > { %509 = vst [vmem:[%s5758_s26 + $0x590] sm:$0xff] %v508_v50  ;;  %511 = vst [vmem:[%s5758_s26 + $0x598] sm:$0xff] %v510_v51  ;;  %v514_v53 = vld [vmem:[%s5753_s25 + $0x1688] sm:$0xff]  ;;  %v516_v54 = vld [vmem:[%s5753_s25 + $0x1690] sm:$0xff] }
  0x6a   : > { %513 = vst [vmem:[%s5758_s26 + $0x5a0] sm:$0xff] %v512_v52  ;;  %515 = vst [vmem:[%s5758_s26 + $0x5a8] sm:$0xff] %v514_v53  ;;  %v518_v55 = vld [vmem:[%s5753_s25 + $0x1698] sm:$0xff]  ;;  %v520_v56 = vld [vmem:[%s5753_s25 + $0x1700] sm:$0xff] }
  0x6b   : > { %517 = vst [vmem:[%s5758_s26 + $0x5b0] sm:$0xff] %v516_v54  ;;  %v522_v57 = vld [vmem:[%s5753_s25 + $0x1708] sm:$0xff]  ;;  %519 = vst [vmem:[%s5758_s26 + $0x5b8] sm:$0xff] %v518_v55  ;;  %v524_v58 = vld [vmem:[%s5753_s25 + $0x1710] sm:$0xff] }
  0x6c   : > { %521 = vst [vmem:[%s5758_s26 + $0x5c0] sm:$0xff] %v520_v56  ;;  %523 = vst [vmem:[%s5758_s26 + $0x5c8] sm:$0xff] %v522_v57  ;;  %v526_v59 = vld [vmem:[%s5753_s25 + $0x1718] sm:$0xff]  ;;  %v528_v60 = vld [vmem:[%s5753_s25 + $0x1780] sm:$0xff] }
  0x6d   : > { %525 = vst [vmem:[%s5758_s26 + $0x5d0] sm:$0xff] %v524_v58  ;;  %527 = vst [vmem:[%s5758_s26 + $0x5d8] sm:$0xff] %v526_v59  ;;  %v530_v61 = vld [vmem:[%s5753_s25 + $0x1788] sm:$0xff]  ;;  %v532_v62 = vld [vmem:[%s5753_s25 + $0x1790] sm:$0xff] }
  0x6e   : > { %529 = vst [vmem:[%s5758_s26 + $0x5e0] sm:$0xff] %v528_v60  ;;  %v534_v63 = vld [vmem:[%s5753_s25 + $0x1798] sm:$0xff]  ;;  %531 = vst [vmem:[%s5758_s26 + $0x5e8] sm:$0xff] %v530_v61  ;;  %v536_v0 = vld [vmem:[%s5753_s25 + $0x1800] sm:$0xff] }
  0x6f   : > { %533 = vst [vmem:[%s5758_s26 + $0x5f0] sm:$0xff] %v532_v62  ;;  %535 = vst [vmem:[%s5758_s26 + $0x5f8] sm:$0xff] %v534_v63  ;;  %v538_v1 = vld [vmem:[%s5753_s25 + $0x1808] sm:$0xff]  ;;  %v540_v2 = vld [vmem:[%s5753_s25 + $0x1810] sm:$0xff] }
  0x70   : > { %537 = vst [vmem:[%s5758_s26 + $0x600] sm:$0xff] %v536_v0  ;;  %539 = vst [vmem:[%s5758_s26 + $0x608] sm:$0xff] %v538_v1  ;;  %v542_v3 = vld [vmem:[%s5753_s25 + $0x1818] sm:$0xff]  ;;  %v544_v4 = vld [vmem:[%s5753_s25 + $0x1880] sm:$0xff] }
  0x71   : > { %541 = vst [vmem:[%s5758_s26 + $0x610] sm:$0xff] %v540_v2  ;;  %v546_v5 = vld [vmem:[%s5753_s25 + $0x1888] sm:$0xff]  ;;  %543 = vst [vmem:[%s5758_s26 + $0x618] sm:$0xff] %v542_v3  ;;  %v548_v6 = vld [vmem:[%s5753_s25 + $0x1890] sm:$0xff] }
  0x72   : > { %545 = vst [vmem:[%s5758_s26 + $0x620] sm:$0xff] %v544_v4  ;;  %547 = vst [vmem:[%s5758_s26 + $0x628] sm:$0xff] %v546_v5  ;;  %v550_v7 = vld [vmem:[%s5753_s25 + $0x1898] sm:$0xff]  ;;  %v552_v8 = vld [vmem:[%s5753_s25 + $0x1900] sm:$0xff] }
  0x73   : > { %549 = vst [vmem:[%s5758_s26 + $0x630] sm:$0xff] %v548_v6  ;;  %551 = vst [vmem:[%s5758_s26 + $0x638] sm:$0xff] %v550_v7  ;;  %v554_v9 = vld [vmem:[%s5753_s25 + $0x1908] sm:$0xff]  ;;  %v556_v10 = vld [vmem:[%s5753_s25 + $0x1910] sm:$0xff] }
  0x74   : > { %553 = vst [vmem:[%s5758_s26 + $0x640] sm:$0xff] %v552_v8  ;;  %v558_v11 = vld [vmem:[%s5753_s25 + $0x1918] sm:$0xff]  ;;  %555 = vst [vmem:[%s5758_s26 + $0x648] sm:$0xff] %v554_v9  ;;  %v560_v12 = vld [vmem:[%s5753_s25 + $0x1980] sm:$0xff] }
  0x75   : > { %557 = vst [vmem:[%s5758_s26 + $0x650] sm:$0xff] %v556_v10  ;;  %559 = vst [vmem:[%s5758_s26 + $0x658] sm:$0xff] %v558_v11  ;;  %v562_v13 = vld [vmem:[%s5753_s25 + $0x1988] sm:$0xff]  ;;  %v564_v14 = vld [vmem:[%s5753_s25 + $0x1990] sm:$0xff] }
  0x76   : > { %561 = vst [vmem:[%s5758_s26 + $0x660] sm:$0xff] %v560_v12  ;;  %563 = vst [vmem:[%s5758_s26 + $0x668] sm:$0xff] %v562_v13  ;;  %v566_v15 = vld [vmem:[%s5753_s25 + $0x1998] sm:$0xff]  ;;  %v568_v16 = vld [vmem:[%s5753_s25 + $0x1a00] sm:$0xff] }
  0x77   : > { %565 = vst [vmem:[%s5758_s26 + $0x670] sm:$0xff] %v564_v14  ;;  %v570_v17 = vld [vmem:[%s5753_s25 + $0x1a08] sm:$0xff]  ;;  %567 = vst [vmem:[%s5758_s26 + $0x678] sm:$0xff] %v566_v15  ;;  %v572_v18 = vld [vmem:[%s5753_s25 + $0x1a10] sm:$0xff] }
  0x78   : > { %569 = vst [vmem:[%s5758_s26 + $0x680] sm:$0xff] %v568_v16  ;;  %571 = vst [vmem:[%s5758_s26 + $0x688] sm:$0xff] %v570_v17  ;;  %v574_v19 = vld [vmem:[%s5753_s25 + $0x1a18] sm:$0xff]  ;;  %v576_v20 = vld [vmem:[%s5753_s25 + $0x1a80] sm:$0xff] }
  0x79   : > { %573 = vst [vmem:[%s5758_s26 + $0x690] sm:$0xff] %v572_v18  ;;  %575 = vst [vmem:[%s5758_s26 + $0x698] sm:$0xff] %v574_v19  ;;  %v578_v21 = vld [vmem:[%s5753_s25 + $0x1a88] sm:$0xff]  ;;  %v580_v22 = vld [vmem:[%s5753_s25 + $0x1a90] sm:$0xff] }
  0x7a   : > { %577 = vst [vmem:[%s5758_s26 + $0x6a0] sm:$0xff] %v576_v20  ;;  %v582_v23 = vld [vmem:[%s5753_s25 + $0x1a98] sm:$0xff]  ;;  %579 = vst [vmem:[%s5758_s26 + $0x6a8] sm:$0xff] %v578_v21  ;;  %v584_v24 = vld [vmem:[%s5753_s25 + $0x1b00] sm:$0xff] }
  0x7b   : > { %581 = vst [vmem:[%s5758_s26 + $0x6b0] sm:$0xff] %v580_v22  ;;  %583 = vst [vmem:[%s5758_s26 + $0x6b8] sm:$0xff] %v582_v23  ;;  %v586_v25 = vld [vmem:[%s5753_s25 + $0x1b08] sm:$0xff]  ;;  %v588_v26 = vld [vmem:[%s5753_s25 + $0x1b10] sm:$0xff] }
  0x7c   : > { %585 = vst [vmem:[%s5758_s26 + $0x6c0] sm:$0xff] %v584_v24  ;;  %587 = vst [vmem:[%s5758_s26 + $0x6c8] sm:$0xff] %v586_v25  ;;  %v590_v27 = vld [vmem:[%s5753_s25 + $0x1b18] sm:$0xff]  ;;  %v592_v28 = vld [vmem:[%s5753_s25 + $0x1b80] sm:$0xff] }
  0x7d   : > { %589 = vst [vmem:[%s5758_s26 + $0x6d0] sm:$0xff] %v588_v26  ;;  %v594_v29 = vld [vmem:[%s5753_s25 + $0x1b88] sm:$0xff]  ;;  %591 = vst [vmem:[%s5758_s26 + $0x6d8] sm:$0xff] %v590_v27  ;;  %v596_v30 = vld [vmem:[%s5753_s25 + $0x1b90] sm:$0xff] }
  0x7e   : > { %593 = vst [vmem:[%s5758_s26 + $0x6e0] sm:$0xff] %v592_v28  ;;  %595 = vst [vmem:[%s5758_s26 + $0x6e8] sm:$0xff] %v594_v29  ;;  %v598_v31 = vld [vmem:[%s5753_s25 + $0x1b98] sm:$0xff]  ;;  %v600_v32 = vld [vmem:[%s5753_s25 + $0x1c00] sm:$0xff] }
  0x7f   : > { %597 = vst [vmem:[%s5758_s26 + $0x6f0] sm:$0xff] %v596_v30  ;;  %599 = vst [vmem:[%s5758_s26 + $0x6f8] sm:$0xff] %v598_v31  ;;  %v602_v33 = vld [vmem:[%s5753_s25 + $0x1c08] sm:$0xff]  ;;  %v604_v34 = vld [vmem:[%s5753_s25 + $0x1c10] sm:$0xff] }
  0x80   : > { %601 = vst [vmem:[%s5758_s26 + $0x700] sm:$0xff] %v600_v32  ;;  %v606_v35 = vld [vmem:[%s5753_s25 + $0x1c18] sm:$0xff]  ;;  %603 = vst [vmem:[%s5758_s26 + $0x708] sm:$0xff] %v602_v33  ;;  %v608_v36 = vld [vmem:[%s5753_s25 + $0x1c80] sm:$0xff] }
  0x81   : > { %605 = vst [vmem:[%s5758_s26 + $0x710] sm:$0xff] %v604_v34  ;;  %607 = vst [vmem:[%s5758_s26 + $0x718] sm:$0xff] %v606_v35  ;;  %v610_v37 = vld [vmem:[%s5753_s25 + $0x1c88] sm:$0xff]  ;;  %v612_v38 = vld [vmem:[%s5753_s25 + $0x1c90] sm:$0xff] }
  0x82   : > { %609 = vst [vmem:[%s5758_s26 + $0x720] sm:$0xff] %v608_v36  ;;  %611 = vst [vmem:[%s5758_s26 + $0x728] sm:$0xff] %v610_v37  ;;  %v614_v39 = vld [vmem:[%s5753_s25 + $0x1c98] sm:$0xff]  ;;  %v616_v40 = vld [vmem:[%s5753_s25 + $0x1d00] sm:$0xff] }
  0x83   : > { %613 = vst [vmem:[%s5758_s26 + $0x730] sm:$0xff] %v612_v38  ;;  %v618_v41 = vld [vmem:[%s5753_s25 + $0x1d08] sm:$0xff]  ;;  %615 = vst [vmem:[%s5758_s26 + $0x738] sm:$0xff] %v614_v39  ;;  %v620_v42 = vld [vmem:[%s5753_s25 + $0x1d10] sm:$0xff] }
  0x84   : > { %617 = vst [vmem:[%s5758_s26 + $0x740] sm:$0xff] %v616_v40  ;;  %619 = vst [vmem:[%s5758_s26 + $0x748] sm:$0xff] %v618_v41  ;;  %v622_v43 = vld [vmem:[%s5753_s25 + $0x1d18] sm:$0xff]  ;;  %v624_v44 = vld [vmem:[%s5753_s25 + $0x1d80] sm:$0xff] }
  0x85   : > { %621 = vst [vmem:[%s5758_s26 + $0x750] sm:$0xff] %v620_v42  ;;  %623 = vst [vmem:[%s5758_s26 + $0x758] sm:$0xff] %v622_v43  ;;  %v626_v45 = vld [vmem:[%s5753_s25 + $0x1d88] sm:$0xff]  ;;  %v628_v46 = vld [vmem:[%s5753_s25 + $0x1d90] sm:$0xff] }
  0x86   : > { %625 = vst [vmem:[%s5758_s26 + $0x760] sm:$0xff] %v624_v44  ;;  %v630_v47 = vld [vmem:[%s5753_s25 + $0x1d98] sm:$0xff]  ;;  %627 = vst [vmem:[%s5758_s26 + $0x768] sm:$0xff] %v626_v45  ;;  %v632_v48 = vld [vmem:[%s5753_s25 + $0x1e00] sm:$0xff] }
  0x87   : > { %629 = vst [vmem:[%s5758_s26 + $0x770] sm:$0xff] %v628_v46  ;;  %631 = vst [vmem:[%s5758_s26 + $0x778] sm:$0xff] %v630_v47  ;;  %v634_v49 = vld [vmem:[%s5753_s25 + $0x1e08] sm:$0xff]  ;;  %v636_v50 = vld [vmem:[%s5753_s25 + $0x1e10] sm:$0xff] }
  0x88   : > { %633 = vst [vmem:[%s5758_s26 + $0x780] sm:$0xff] %v632_v48  ;;  %635 = vst [vmem:[%s5758_s26 + $0x788] sm:$0xff] %v634_v49  ;;  %v638_v51 = vld [vmem:[%s5753_s25 + $0x1e18] sm:$0xff]  ;;  %v640_v52 = vld [vmem:[%s5753_s25 + $0x1e80] sm:$0xff] }
  0x89   : > { %637 = vst [vmem:[%s5758_s26 + $0x790] sm:$0xff] %v636_v50  ;;  %v642_v53 = vld [vmem:[%s5753_s25 + $0x1e88] sm:$0xff]  ;;  %639 = vst [vmem:[%s5758_s26 + $0x798] sm:$0xff] %v638_v51  ;;  %v644_v54 = vld [vmem:[%s5753_s25 + $0x1e90] sm:$0xff] }
  0x8a   : > { %641 = vst [vmem:[%s5758_s26 + $0x7a0] sm:$0xff] %v640_v52  ;;  %643 = vst [vmem:[%s5758_s26 + $0x7a8] sm:$0xff] %v642_v53  ;;  %v646_v55 = vld [vmem:[%s5753_s25 + $0x1e98] sm:$0xff]  ;;  %v648_v56 = vld [vmem:[%s5753_s25 + $0x1f00] sm:$0xff] }
  0x8b   : > { %645 = vst [vmem:[%s5758_s26 + $0x7b0] sm:$0xff] %v644_v54  ;;  %647 = vst [vmem:[%s5758_s26 + $0x7b8] sm:$0xff] %v646_v55  ;;  %v650_v57 = vld [vmem:[%s5753_s25 + $0x1f08] sm:$0xff]  ;;  %v652_v58 = vld [vmem:[%s5753_s25 + $0x1f10] sm:$0xff] }
  0x8c   : > { %649 = vst [vmem:[%s5758_s26 + $0x7c0] sm:$0xff] %v648_v56  ;;  %v654_v59 = vld [vmem:[%s5753_s25 + $0x1f18] sm:$0xff]  ;;  %651 = vst [vmem:[%s5758_s26 + $0x7c8] sm:$0xff] %v650_v57  ;;  %v656_v60 = vld [vmem:[%s5753_s25 + $0x1f80] sm:$0xff] }
  0x8d   : > { %653 = vst [vmem:[%s5758_s26 + $0x7d0] sm:$0xff] %v652_v58  ;;  %655 = vst [vmem:[%s5758_s26 + $0x7d8] sm:$0xff] %v654_v59  ;;  %v658_v61 = vld [vmem:[%s5753_s25 + $0x1f88] sm:$0xff]  ;;  %v660_v62 = vld [vmem:[%s5753_s25 + $0x1f90] sm:$0xff] }
  0x8e   : > { %657 = vst [vmem:[%s5758_s26 + $0x7e0] sm:$0xff] %v656_v60  ;;  %659 = vst [vmem:[%s5758_s26 + $0x7e8] sm:$0xff] %v658_v61  ;;  %v662_v63 = vld [vmem:[%s5753_s25 + $0x1f98] sm:$0xff]  ;;  %v664_v0 = vld [vmem:[%s5753_s25 + $0x2000] sm:$0xff] }
  0x8f   : > { %661 = vst [vmem:[%s5758_s26 + $0x7f0] sm:$0xff] %v660_v62  ;;  %v666_v1 = vld [vmem:[%s5753_s25 + $0x2008] sm:$0xff]  ;;  %663 = vst [vmem:[%s5758_s26 + $0x7f8] sm:$0xff] %v662_v63  ;;  %v668_v2 = vld [vmem:[%s5753_s25 + $0x2010] sm:$0xff] }
  0x90   : > { %665 = vst [vmem:[%s5758_s26 + $0x800] sm:$0xff] %v664_v0  ;;  %667 = vst [vmem:[%s5758_s26 + $0x808] sm:$0xff] %v666_v1  ;;  %v670_v3 = vld [vmem:[%s5753_s25 + $0x2018] sm:$0xff]  ;;  %v672_v4 = vld [vmem:[%s5753_s25 + $0x2080] sm:$0xff] }
  0x91   : > { %669 = vst [vmem:[%s5758_s26 + $0x810] sm:$0xff] %v668_v2  ;;  %671 = vst [vmem:[%s5758_s26 + $0x818] sm:$0xff] %v670_v3  ;;  %v674_v5 = vld [vmem:[%s5753_s25 + $0x2088] sm:$0xff]  ;;  %v676_v6 = vld [vmem:[%s5753_s25 + $0x2090] sm:$0xff] }
  0x92   : > { %673 = vst [vmem:[%s5758_s26 + $0x820] sm:$0xff] %v672_v4  ;;  %v678_v7 = vld [vmem:[%s5753_s25 + $0x2098] sm:$0xff]  ;;  %675 = vst [vmem:[%s5758_s26 + $0x828] sm:$0xff] %v674_v5  ;;  %v680_v8 = vld [vmem:[%s5753_s25 + $0x2100] sm:$0xff] }
  0x93   : > { %677 = vst [vmem:[%s5758_s26 + $0x830] sm:$0xff] %v676_v6  ;;  %679 = vst [vmem:[%s5758_s26 + $0x838] sm:$0xff] %v678_v7  ;;  %v682_v9 = vld [vmem:[%s5753_s25 + $0x2108] sm:$0xff]  ;;  %v684_v10 = vld [vmem:[%s5753_s25 + $0x2110] sm:$0xff] }
  0x94   : > { %681 = vst [vmem:[%s5758_s26 + $0x840] sm:$0xff] %v680_v8  ;;  %683 = vst [vmem:[%s5758_s26 + $0x848] sm:$0xff] %v682_v9  ;;  %v686_v11 = vld [vmem:[%s5753_s25 + $0x2118] sm:$0xff]  ;;  %v688_v12 = vld [vmem:[%s5753_s25 + $0x2180] sm:$0xff] }
  0x95   : > { %685 = vst [vmem:[%s5758_s26 + $0x850] sm:$0xff] %v684_v10  ;;  %v690_v13 = vld [vmem:[%s5753_s25 + $0x2188] sm:$0xff]  ;;  %687 = vst [vmem:[%s5758_s26 + $0x858] sm:$0xff] %v686_v11  ;;  %v692_v14 = vld [vmem:[%s5753_s25 + $0x2190] sm:$0xff] }
  0x96   : > { %689 = vst [vmem:[%s5758_s26 + $0x860] sm:$0xff] %v688_v12  ;;  %691 = vst [vmem:[%s5758_s26 + $0x868] sm:$0xff] %v690_v13  ;;  %v694_v15 = vld [vmem:[%s5753_s25 + $0x2198] sm:$0xff]  ;;  %v696_v16 = vld [vmem:[%s5753_s25 + $0x2200] sm:$0xff] }
  0x97   : > { %693 = vst [vmem:[%s5758_s26 + $0x870] sm:$0xff] %v692_v14  ;;  %695 = vst [vmem:[%s5758_s26 + $0x878] sm:$0xff] %v694_v15  ;;  %v698_v17 = vld [vmem:[%s5753_s25 + $0x2208] sm:$0xff]  ;;  %v700_v18 = vld [vmem:[%s5753_s25 + $0x2210] sm:$0xff] }
  0x98   : > { %697 = vst [vmem:[%s5758_s26 + $0x880] sm:$0xff] %v696_v16  ;;  %v702_v19 = vld [vmem:[%s5753_s25 + $0x2218] sm:$0xff]  ;;  %699 = vst [vmem:[%s5758_s26 + $0x888] sm:$0xff] %v698_v17  ;;  %v704_v20 = vld [vmem:[%s5753_s25 + $0x2280] sm:$0xff] }
  0x99   : > { %701 = vst [vmem:[%s5758_s26 + $0x890] sm:$0xff] %v700_v18  ;;  %703 = vst [vmem:[%s5758_s26 + $0x898] sm:$0xff] %v702_v19  ;;  %v706_v21 = vld [vmem:[%s5753_s25 + $0x2288] sm:$0xff]  ;;  %v708_v22 = vld [vmem:[%s5753_s25 + $0x2290] sm:$0xff] }
  0x9a   : > { %705 = vst [vmem:[%s5758_s26 + $0x8a0] sm:$0xff] %v704_v20  ;;  %707 = vst [vmem:[%s5758_s26 + $0x8a8] sm:$0xff] %v706_v21  ;;  %v710_v23 = vld [vmem:[%s5753_s25 + $0x2298] sm:$0xff]  ;;  %v712_v24 = vld [vmem:[%s5753_s25 + $0x2300] sm:$0xff] }
  0x9b   : > { %709 = vst [vmem:[%s5758_s26 + $0x8b0] sm:$0xff] %v708_v22  ;;  %v714_v25 = vld [vmem:[%s5753_s25 + $0x2308] sm:$0xff]  ;;  %711 = vst [vmem:[%s5758_s26 + $0x8b8] sm:$0xff] %v710_v23  ;;  %v716_v26 = vld [vmem:[%s5753_s25 + $0x2310] sm:$0xff] }
  0x9c   : > { %713 = vst [vmem:[%s5758_s26 + $0x8c0] sm:$0xff] %v712_v24  ;;  %715 = vst [vmem:[%s5758_s26 + $0x8c8] sm:$0xff] %v714_v25  ;;  %v718_v27 = vld [vmem:[%s5753_s25 + $0x2318] sm:$0xff]  ;;  %v720_v28 = vld [vmem:[%s5753_s25 + $0x2380] sm:$0xff] }
  0x9d   : > { %717 = vst [vmem:[%s5758_s26 + $0x8d0] sm:$0xff] %v716_v26  ;;  %719 = vst [vmem:[%s5758_s26 + $0x8d8] sm:$0xff] %v718_v27  ;;  %v722_v29 = vld [vmem:[%s5753_s25 + $0x2388] sm:$0xff]  ;;  %v724_v30 = vld [vmem:[%s5753_s25 + $0x2390] sm:$0xff] }
  0x9e   : > { %721 = vst [vmem:[%s5758_s26 + $0x8e0] sm:$0xff] %v720_v28  ;;  %v726_v31 = vld [vmem:[%s5753_s25 + $0x2398] sm:$0xff]  ;;  %723 = vst [vmem:[%s5758_s26 + $0x8e8] sm:$0xff] %v722_v29  ;;  %v728_v32 = vld [vmem:[%s5753_s25 + $0x2400] sm:$0xff] }
  0x9f   : > { %725 = vst [vmem:[%s5758_s26 + $0x8f0] sm:$0xff] %v724_v30  ;;  %727 = vst [vmem:[%s5758_s26 + $0x8f8] sm:$0xff] %v726_v31  ;;  %v730_v33 = vld [vmem:[%s5753_s25 + $0x2408] sm:$0xff]  ;;  %v732_v34 = vld [vmem:[%s5753_s25 + $0x2410] sm:$0xff] }
  0xa0   : > { %729 = vst [vmem:[%s5758_s26 + $0x900] sm:$0xff] %v728_v32  ;;  %731 = vst [vmem:[%s5758_s26 + $0x908] sm:$0xff] %v730_v33  ;;  %v734_v35 = vld [vmem:[%s5753_s25 + $0x2418] sm:$0xff]  ;;  %v736_v36 = vld [vmem:[%s5753_s25 + $0x2480] sm:$0xff] }
  0xa1   : > { %733 = vst [vmem:[%s5758_s26 + $0x910] sm:$0xff] %v732_v34  ;;  %v738_v37 = vld [vmem:[%s5753_s25 + $0x2488] sm:$0xff]  ;;  %735 = vst [vmem:[%s5758_s26 + $0x918] sm:$0xff] %v734_v35  ;;  %v740_v38 = vld [vmem:[%s5753_s25 + $0x2490] sm:$0xff] }
  0xa2   : > { %737 = vst [vmem:[%s5758_s26 + $0x920] sm:$0xff] %v736_v36  ;;  %739 = vst [vmem:[%s5758_s26 + $0x928] sm:$0xff] %v738_v37  ;;  %v742_v39 = vld [vmem:[%s5753_s25 + $0x2498] sm:$0xff]  ;;  %v744_v40 = vld [vmem:[%s5753_s25 + $0x2500] sm:$0xff] }
  0xa3   : > { %741 = vst [vmem:[%s5758_s26 + $0x930] sm:$0xff] %v740_v38  ;;  %743 = vst [vmem:[%s5758_s26 + $0x938] sm:$0xff] %v742_v39  ;;  %v746_v41 = vld [vmem:[%s5753_s25 + $0x2508] sm:$0xff]  ;;  %v748_v42 = vld [vmem:[%s5753_s25 + $0x2510] sm:$0xff] }
  0xa4   : > { %745 = vst [vmem:[%s5758_s26 + $0x940] sm:$0xff] %v744_v40  ;;  %v750_v43 = vld [vmem:[%s5753_s25 + $0x2518] sm:$0xff]  ;;  %747 = vst [vmem:[%s5758_s26 + $0x948] sm:$0xff] %v746_v41  ;;  %v752_v44 = vld [vmem:[%s5753_s25 + $0x2580] sm:$0xff] }
  0xa5   : > { %749 = vst [vmem:[%s5758_s26 + $0x950] sm:$0xff] %v748_v42  ;;  %751 = vst [vmem:[%s5758_s26 + $0x958] sm:$0xff] %v750_v43  ;;  %v754_v45 = vld [vmem:[%s5753_s25 + $0x2588] sm:$0xff]  ;;  %v756_v46 = vld [vmem:[%s5753_s25 + $0x2590] sm:$0xff] }
  0xa6   : > { %753 = vst [vmem:[%s5758_s26 + $0x960] sm:$0xff] %v752_v44  ;;  %755 = vst [vmem:[%s5758_s26 + $0x968] sm:$0xff] %v754_v45  ;;  %v758_v47 = vld [vmem:[%s5753_s25 + $0x2598] sm:$0xff]  ;;  %v760_v48 = vld [vmem:[%s5753_s25 + $0x2600] sm:$0xff] }
  0xa7   : > { %757 = vst [vmem:[%s5758_s26 + $0x970] sm:$0xff] %v756_v46  ;;  %v762_v49 = vld [vmem:[%s5753_s25 + $0x2608] sm:$0xff]  ;;  %759 = vst [vmem:[%s5758_s26 + $0x978] sm:$0xff] %v758_v47  ;;  %v764_v50 = vld [vmem:[%s5753_s25 + $0x2610] sm:$0xff] }
  0xa8   : > { %761 = vst [vmem:[%s5758_s26 + $0x980] sm:$0xff] %v760_v48  ;;  %763 = vst [vmem:[%s5758_s26 + $0x988] sm:$0xff] %v762_v49  ;;  %v766_v51 = vld [vmem:[%s5753_s25 + $0x2618] sm:$0xff]  ;;  %v768_v52 = vld [vmem:[%s5753_s25 + $0x2680] sm:$0xff] }
  0xa9   : > { %765 = vst [vmem:[%s5758_s26 + $0x990] sm:$0xff] %v764_v50  ;;  %767 = vst [vmem:[%s5758_s26 + $0x998] sm:$0xff] %v766_v51  ;;  %v770_v53 = vld [vmem:[%s5753_s25 + $0x2688] sm:$0xff]  ;;  %v772_v54 = vld [vmem:[%s5753_s25 + $0x2690] sm:$0xff] }
  0xaa   : > { %769 = vst [vmem:[%s5758_s26 + $0x9a0] sm:$0xff] %v768_v52  ;;  %v774_v55 = vld [vmem:[%s5753_s25 + $0x2698] sm:$0xff]  ;;  %771 = vst [vmem:[%s5758_s26 + $0x9a8] sm:$0xff] %v770_v53  ;;  %v776_v56 = vld [vmem:[%s5753_s25 + $0x2700] sm:$0xff] }
  0xab   : > { %773 = vst [vmem:[%s5758_s26 + $0x9b0] sm:$0xff] %v772_v54  ;;  %775 = vst [vmem:[%s5758_s26 + $0x9b8] sm:$0xff] %v774_v55  ;;  %v778_v57 = vld [vmem:[%s5753_s25 + $0x2708] sm:$0xff]  ;;  %v780_v58 = vld [vmem:[%s5753_s25 + $0x2710] sm:$0xff] }
  0xac   : > { %777 = vst [vmem:[%s5758_s26 + $0x9c0] sm:$0xff] %v776_v56  ;;  %779 = vst [vmem:[%s5758_s26 + $0x9c8] sm:$0xff] %v778_v57  ;;  %v782_v59 = vld [vmem:[%s5753_s25 + $0x2718] sm:$0xff]  ;;  %v784_v60 = vld [vmem:[%s5753_s25 + $0x2780] sm:$0xff] }
  0xad   : > { %781 = vst [vmem:[%s5758_s26 + $0x9d0] sm:$0xff] %v780_v58  ;;  %v786_v61 = vld [vmem:[%s5753_s25 + $0x2788] sm:$0xff]  ;;  %783 = vst [vmem:[%s5758_s26 + $0x9d8] sm:$0xff] %v782_v59  ;;  %v788_v62 = vld [vmem:[%s5753_s25 + $0x2790] sm:$0xff] }
  0xae   : > { %785 = vst [vmem:[%s5758_s26 + $0x9e0] sm:$0xff] %v784_v60  ;;  %787 = vst [vmem:[%s5758_s26 + $0x9e8] sm:$0xff] %v786_v61  ;;  %v790_v63 = vld [vmem:[%s5753_s25 + $0x2798] sm:$0xff]  ;;  %v792_v0 = vld [vmem:[%s5753_s25 + $0x2800] sm:$0xff] }
  0xaf   : > { %789 = vst [vmem:[%s5758_s26 + $0x9f0] sm:$0xff] %v788_v62  ;;  %791 = vst [vmem:[%s5758_s26 + $0x9f8] sm:$0xff] %v790_v63  ;;  %v794_v1 = vld [vmem:[%s5753_s25 + $0x2808] sm:$0xff]  ;;  %v796_v2 = vld [vmem:[%s5753_s25 + $0x2810] sm:$0xff] }
  0xb0   : > { %793 = vst [vmem:[%s5758_s26 + $0xa00] sm:$0xff] %v792_v0  ;;  %v798_v3 = vld [vmem:[%s5753_s25 + $0x2818] sm:$0xff]  ;;  %795 = vst [vmem:[%s5758_s26 + $0xa08] sm:$0xff] %v794_v1  ;;  %v800_v4 = vld [vmem:[%s5753_s25 + $0x2880] sm:$0xff] }
  0xb1   : > { %797 = vst [vmem:[%s5758_s26 + $0xa10] sm:$0xff] %v796_v2  ;;  %799 = vst [vmem:[%s5758_s26 + $0xa18] sm:$0xff] %v798_v3  ;;  %v802_v5 = vld [vmem:[%s5753_s25 + $0x2888] sm:$0xff]  ;;  %v804_v6 = vld [vmem:[%s5753_s25 + $0x2890] sm:$0xff] }
  0xb2   : > { %801 = vst [vmem:[%s5758_s26 + $0xa20] sm:$0xff] %v800_v4  ;;  %803 = vst [vmem:[%s5758_s26 + $0xa28] sm:$0xff] %v802_v5  ;;  %v806_v7 = vld [vmem:[%s5753_s25 + $0x2898] sm:$0xff]  ;;  %v808_v8 = vld [vmem:[%s5753_s25 + $0x2900] sm:$0xff] }
  0xb3   : > { %805 = vst [vmem:[%s5758_s26 + $0xa30] sm:$0xff] %v804_v6  ;;  %v810_v9 = vld [vmem:[%s5753_s25 + $0x2908] sm:$0xff]  ;;  %807 = vst [vmem:[%s5758_s26 + $0xa38] sm:$0xff] %v806_v7  ;;  %v812_v10 = vld [vmem:[%s5753_s25 + $0x2910] sm:$0xff] }
  0xb4   : > { %809 = vst [vmem:[%s5758_s26 + $0xa40] sm:$0xff] %v808_v8  ;;  %811 = vst [vmem:[%s5758_s26 + $0xa48] sm:$0xff] %v810_v9  ;;  %v814_v11 = vld [vmem:[%s5753_s25 + $0x2918] sm:$0xff]  ;;  %v816_v12 = vld [vmem:[%s5753_s25 + $0x2980] sm:$0xff] }
  0xb5   : > { %813 = vst [vmem:[%s5758_s26 + $0xa50] sm:$0xff] %v812_v10  ;;  %815 = vst [vmem:[%s5758_s26 + $0xa58] sm:$0xff] %v814_v11  ;;  %v818_v13 = vld [vmem:[%s5753_s25 + $0x2988] sm:$0xff]  ;;  %v820_v14 = vld [vmem:[%s5753_s25 + $0x2990] sm:$0xff] }
  0xb6   : > { %817 = vst [vmem:[%s5758_s26 + $0xa60] sm:$0xff] %v816_v12  ;;  %v822_v15 = vld [vmem:[%s5753_s25 + $0x2998] sm:$0xff]  ;;  %819 = vst [vmem:[%s5758_s26 + $0xa68] sm:$0xff] %v818_v13  ;;  %v824_v16 = vld [vmem:[%s5753_s25 + $0x2a00] sm:$0xff] }
  0xb7   : > { %821 = vst [vmem:[%s5758_s26 + $0xa70] sm:$0xff] %v820_v14  ;;  %823 = vst [vmem:[%s5758_s26 + $0xa78] sm:$0xff] %v822_v15  ;;  %v826_v17 = vld [vmem:[%s5753_s25 + $0x2a08] sm:$0xff]  ;;  %v828_v18 = vld [vmem:[%s5753_s25 + $0x2a10] sm:$0xff] }
  0xb8   : > { %825 = vst [vmem:[%s5758_s26 + $0xa80] sm:$0xff] %v824_v16  ;;  %827 = vst [vmem:[%s5758_s26 + $0xa88] sm:$0xff] %v826_v17  ;;  %v830_v19 = vld [vmem:[%s5753_s25 + $0x2a18] sm:$0xff]  ;;  %v832_v20 = vld [vmem:[%s5753_s25 + $0x2a80] sm:$0xff] }
  0xb9   : > { %829 = vst [vmem:[%s5758_s26 + $0xa90] sm:$0xff] %v828_v18  ;;  %v834_v21 = vld [vmem:[%s5753_s25 + $0x2a88] sm:$0xff]  ;;  %831 = vst [vmem:[%s5758_s26 + $0xa98] sm:$0xff] %v830_v19  ;;  %v836_v22 = vld [vmem:[%s5753_s25 + $0x2a90] sm:$0xff] }
  0xba   : > { %833 = vst [vmem:[%s5758_s26 + $0xaa0] sm:$0xff] %v832_v20  ;;  %835 = vst [vmem:[%s5758_s26 + $0xaa8] sm:$0xff] %v834_v21  ;;  %v838_v23 = vld [vmem:[%s5753_s25 + $0x2a98] sm:$0xff]  ;;  %v840_v24 = vld [vmem:[%s5753_s25 + $0x2b00] sm:$0xff] }
  0xbb   : > { %837 = vst [vmem:[%s5758_s26 + $0xab0] sm:$0xff] %v836_v22  ;;  %839 = vst [vmem:[%s5758_s26 + $0xab8] sm:$0xff] %v838_v23  ;;  %v842_v25 = vld [vmem:[%s5753_s25 + $0x2b08] sm:$0xff]  ;;  %v844_v26 = vld [vmem:[%s5753_s25 + $0x2b10] sm:$0xff] }
  0xbc   : > { %841 = vst [vmem:[%s5758_s26 + $0xac0] sm:$0xff] %v840_v24  ;;  %v846_v27 = vld [vmem:[%s5753_s25 + $0x2b18] sm:$0xff]  ;;  %843 = vst [vmem:[%s5758_s26 + $0xac8] sm:$0xff] %v842_v25  ;;  %v848_v28 = vld [vmem:[%s5753_s25 + $0x2b80] sm:$0xff] }
  0xbd   : > { %845 = vst [vmem:[%s5758_s26 + $0xad0] sm:$0xff] %v844_v26  ;;  %847 = vst [vmem:[%s5758_s26 + $0xad8] sm:$0xff] %v846_v27  ;;  %v850_v29 = vld [vmem:[%s5753_s25 + $0x2b88] sm:$0xff]  ;;  %v852_v30 = vld [vmem:[%s5753_s25 + $0x2b90] sm:$0xff] }
  0xbe   : > { %849 = vst [vmem:[%s5758_s26 + $0xae0] sm:$0xff] %v848_v28  ;;  %851 = vst [vmem:[%s5758_s26 + $0xae8] sm:$0xff] %v850_v29  ;;  %v854_v31 = vld [vmem:[%s5753_s25 + $0x2b98] sm:$0xff]  ;;  %v856_v32 = vld [vmem:[%s5753_s25 + $0x2c00] sm:$0xff] }
  0xbf   : > { %853 = vst [vmem:[%s5758_s26 + $0xaf0] sm:$0xff] %v852_v30  ;;  %v858_v33 = vld [vmem:[%s5753_s25 + $0x2c08] sm:$0xff]  ;;  %855 = vst [vmem:[%s5758_s26 + $0xaf8] sm:$0xff] %v854_v31  ;;  %v860_v34 = vld [vmem:[%s5753_s25 + $0x2c10] sm:$0xff] }
  0xc0   : > { %857 = vst [vmem:[%s5758_s26 + $0xb00] sm:$0xff] %v856_v32  ;;  %859 = vst [vmem:[%s5758_s26 + $0xb08] sm:$0xff] %v858_v33  ;;  %v862_v35 = vld [vmem:[%s5753_s25 + $0x2c18] sm:$0xff]  ;;  %v864_v36 = vld [vmem:[%s5753_s25 + $0x2c80] sm:$0xff] }
  0xc1   : > { %861 = vst [vmem:[%s5758_s26 + $0xb10] sm:$0xff] %v860_v34  ;;  %863 = vst [vmem:[%s5758_s26 + $0xb18] sm:$0xff] %v862_v35  ;;  %v866_v37 = vld [vmem:[%s5753_s25 + $0x2c88] sm:$0xff]  ;;  %v868_v38 = vld [vmem:[%s5753_s25 + $0x2c90] sm:$0xff] }
  0xc2   : > { %865 = vst [vmem:[%s5758_s26 + $0xb20] sm:$0xff] %v864_v36  ;;  %v870_v39 = vld [vmem:[%s5753_s25 + $0x2c98] sm:$0xff]  ;;  %867 = vst [vmem:[%s5758_s26 + $0xb28] sm:$0xff] %v866_v37  ;;  %v872_v40 = vld [vmem:[%s5753_s25 + $0x2d00] sm:$0xff] }
  0xc3   : > { %869 = vst [vmem:[%s5758_s26 + $0xb30] sm:$0xff] %v868_v38  ;;  %871 = vst [vmem:[%s5758_s26 + $0xb38] sm:$0xff] %v870_v39  ;;  %v874_v41 = vld [vmem:[%s5753_s25 + $0x2d08] sm:$0xff]  ;;  %v876_v42 = vld [vmem:[%s5753_s25 + $0x2d10] sm:$0xff] }
  0xc4   : > { %873 = vst [vmem:[%s5758_s26 + $0xb40] sm:$0xff] %v872_v40  ;;  %875 = vst [vmem:[%s5758_s26 + $0xb48] sm:$0xff] %v874_v41  ;;  %v878_v43 = vld [vmem:[%s5753_s25 + $0x2d18] sm:$0xff]  ;;  %v880_v44 = vld [vmem:[%s5753_s25 + $0x2d80] sm:$0xff] }
  0xc5   : > { %877 = vst [vmem:[%s5758_s26 + $0xb50] sm:$0xff] %v876_v42  ;;  %v882_v45 = vld [vmem:[%s5753_s25 + $0x2d88] sm:$0xff]  ;;  %879 = vst [vmem:[%s5758_s26 + $0xb58] sm:$0xff] %v878_v43  ;;  %v884_v46 = vld [vmem:[%s5753_s25 + $0x2d90] sm:$0xff] }
  0xc6   : > { %881 = vst [vmem:[%s5758_s26 + $0xb60] sm:$0xff] %v880_v44  ;;  %883 = vst [vmem:[%s5758_s26 + $0xb68] sm:$0xff] %v882_v45  ;;  %v886_v47 = vld [vmem:[%s5753_s25 + $0x2d98] sm:$0xff]  ;;  %v888_v48 = vld [vmem:[%s5753_s25 + $0x2e00] sm:$0xff] }
  0xc7   : > { %885 = vst [vmem:[%s5758_s26 + $0xb70] sm:$0xff] %v884_v46  ;;  %887 = vst [vmem:[%s5758_s26 + $0xb78] sm:$0xff] %v886_v47  ;;  %v890_v49 = vld [vmem:[%s5753_s25 + $0x2e08] sm:$0xff]  ;;  %v892_v50 = vld [vmem:[%s5753_s25 + $0x2e10] sm:$0xff] }
  0xc8   : > { %889 = vst [vmem:[%s5758_s26 + $0xb80] sm:$0xff] %v888_v48  ;;  %v894_v51 = vld [vmem:[%s5753_s25 + $0x2e18] sm:$0xff]  ;;  %891 = vst [vmem:[%s5758_s26 + $0xb88] sm:$0xff] %v890_v49  ;;  %v896_v52 = vld [vmem:[%s5753_s25 + $0x2e80] sm:$0xff] }
  0xc9   : > { %893 = vst [vmem:[%s5758_s26 + $0xb90] sm:$0xff] %v892_v50  ;;  %895 = vst [vmem:[%s5758_s26 + $0xb98] sm:$0xff] %v894_v51  ;;  %v898_v53 = vld [vmem:[%s5753_s25 + $0x2e88] sm:$0xff]  ;;  %v900_v54 = vld [vmem:[%s5753_s25 + $0x2e90] sm:$0xff] }
  0xca   : > { %897 = vst [vmem:[%s5758_s26 + $0xba0] sm:$0xff] %v896_v52  ;;  %899 = vst [vmem:[%s5758_s26 + $0xba8] sm:$0xff] %v898_v53  ;;  %v902_v55 = vld [vmem:[%s5753_s25 + $0x2e98] sm:$0xff]  ;;  %v904_v56 = vld [vmem:[%s5753_s25 + $0x2f00] sm:$0xff] }
  0xcb   : > { %901 = vst [vmem:[%s5758_s26 + $0xbb0] sm:$0xff] %v900_v54  ;;  %v906_v57 = vld [vmem:[%s5753_s25 + $0x2f08] sm:$0xff]  ;;  %903 = vst [vmem:[%s5758_s26 + $0xbb8] sm:$0xff] %v902_v55  ;;  %v908_v58 = vld [vmem:[%s5753_s25 + $0x2f10] sm:$0xff] }
  0xcc   : > { %905 = vst [vmem:[%s5758_s26 + $0xbc0] sm:$0xff] %v904_v56  ;;  %907 = vst [vmem:[%s5758_s26 + $0xbc8] sm:$0xff] %v906_v57  ;;  %v910_v59 = vld [vmem:[%s5753_s25 + $0x2f18] sm:$0xff]  ;;  %v912_v60 = vld [vmem:[%s5753_s25 + $0x2f80] sm:$0xff] }
  0xcd   : > { %909 = vst [vmem:[%s5758_s26 + $0xbd0] sm:$0xff] %v908_v58  ;;  %911 = vst [vmem:[%s5758_s26 + $0xbd8] sm:$0xff] %v910_v59  ;;  %v914_v61 = vld [vmem:[%s5753_s25 + $0x2f88] sm:$0xff]  ;;  %v916_v62 = vld [vmem:[%s5753_s25 + $0x2f90] sm:$0xff] }
  0xce   : > { %913 = vst [vmem:[%s5758_s26 + $0xbe0] sm:$0xff] %v912_v60  ;;  %v918_v63 = vld [vmem:[%s5753_s25 + $0x2f98] sm:$0xff]  ;;  %915 = vst [vmem:[%s5758_s26 + $0xbe8] sm:$0xff] %v914_v61  ;;  %v920_v0 = vld [vmem:[%s5753_s25 + $0x3000] sm:$0xff] }
  0xcf   : > { %917 = vst [vmem:[%s5758_s26 + $0xbf0] sm:$0xff] %v916_v62  ;;  %919 = vst [vmem:[%s5758_s26 + $0xbf8] sm:$0xff] %v918_v63  ;;  %v922_v1 = vld [vmem:[%s5753_s25 + $0x3008] sm:$0xff]  ;;  %v924_v2 = vld [vmem:[%s5753_s25 + $0x3010] sm:$0xff] }
  0xd0   : > { %921 = vst [vmem:[%s5758_s26 + $0xc00] sm:$0xff] %v920_v0  ;;  %923 = vst [vmem:[%s5758_s26 + $0xc08] sm:$0xff] %v922_v1  ;;  %v926_v3 = vld [vmem:[%s5753_s25 + $0x3018] sm:$0xff]  ;;  %v928_v4 = vld [vmem:[%s5753_s25 + $0x3080] sm:$0xff] }
  0xd1   : > { %925 = vst [vmem:[%s5758_s26 + $0xc10] sm:$0xff] %v924_v2  ;;  %v930_v5 = vld [vmem:[%s5753_s25 + $0x3088] sm:$0xff]  ;;  %927 = vst [vmem:[%s5758_s26 + $0xc18] sm:$0xff] %v926_v3  ;;  %v932_v6 = vld [vmem:[%s5753_s25 + $0x3090] sm:$0xff] }
  0xd2   : > { %929 = vst [vmem:[%s5758_s26 + $0xc20] sm:$0xff] %v928_v4  ;;  %931 = vst [vmem:[%s5758_s26 + $0xc28] sm:$0xff] %v930_v5  ;;  %v934_v7 = vld [vmem:[%s5753_s25 + $0x3098] sm:$0xff]  ;;  %v936_v8 = vld [vmem:[%s5753_s25 + $0x3100] sm:$0xff] }
  0xd3   : > { %933 = vst [vmem:[%s5758_s26 + $0xc30] sm:$0xff] %v932_v6  ;;  %935 = vst [vmem:[%s5758_s26 + $0xc38] sm:$0xff] %v934_v7  ;;  %v938_v9 = vld [vmem:[%s5753_s25 + $0x3108] sm:$0xff]  ;;  %v940_v10 = vld [vmem:[%s5753_s25 + $0x3110] sm:$0xff] }
  0xd4   : > { %937 = vst [vmem:[%s5758_s26 + $0xc40] sm:$0xff] %v936_v8  ;;  %v942_v11 = vld [vmem:[%s5753_s25 + $0x3118] sm:$0xff]  ;;  %939 = vst [vmem:[%s5758_s26 + $0xc48] sm:$0xff] %v938_v9  ;;  %v944_v12 = vld [vmem:[%s5753_s25 + $0x3180] sm:$0xff] }
  0xd5   : > { %941 = vst [vmem:[%s5758_s26 + $0xc50] sm:$0xff] %v940_v10  ;;  %943 = vst [vmem:[%s5758_s26 + $0xc58] sm:$0xff] %v942_v11  ;;  %v946_v13 = vld [vmem:[%s5753_s25 + $0x3188] sm:$0xff]  ;;  %v948_v14 = vld [vmem:[%s5753_s25 + $0x3190] sm:$0xff] }
  0xd6   : > { %945 = vst [vmem:[%s5758_s26 + $0xc60] sm:$0xff] %v944_v12  ;;  %947 = vst [vmem:[%s5758_s26 + $0xc68] sm:$0xff] %v946_v13  ;;  %v950_v15 = vld [vmem:[%s5753_s25 + $0x3198] sm:$0xff]  ;;  %v952_v16 = vld [vmem:[%s5753_s25 + $0x3200] sm:$0xff] }
  0xd7   : > { %949 = vst [vmem:[%s5758_s26 + $0xc70] sm:$0xff] %v948_v14  ;;  %v954_v17 = vld [vmem:[%s5753_s25 + $0x3208] sm:$0xff]  ;;  %951 = vst [vmem:[%s5758_s26 + $0xc78] sm:$0xff] %v950_v15  ;;  %v956_v18 = vld [vmem:[%s5753_s25 + $0x3210] sm:$0xff] }
  0xd8   : > { %953 = vst [vmem:[%s5758_s26 + $0xc80] sm:$0xff] %v952_v16  ;;  %955 = vst [vmem:[%s5758_s26 + $0xc88] sm:$0xff] %v954_v17  ;;  %v958_v19 = vld [vmem:[%s5753_s25 + $0x3218] sm:$0xff]  ;;  %v960_v20 = vld [vmem:[%s5753_s25 + $0x3280] sm:$0xff] }
  0xd9   : > { %957 = vst [vmem:[%s5758_s26 + $0xc90] sm:$0xff] %v956_v18  ;;  %959 = vst [vmem:[%s5758_s26 + $0xc98] sm:$0xff] %v958_v19  ;;  %v962_v21 = vld [vmem:[%s5753_s25 + $0x3288] sm:$0xff]  ;;  %v964_v22 = vld [vmem:[%s5753_s25 + $0x3290] sm:$0xff] }
  0xda   : > { %961 = vst [vmem:[%s5758_s26 + $0xca0] sm:$0xff] %v960_v20  ;;  %v966_v23 = vld [vmem:[%s5753_s25 + $0x3298] sm:$0xff]  ;;  %963 = vst [vmem:[%s5758_s26 + $0xca8] sm:$0xff] %v962_v21  ;;  %v968_v24 = vld [vmem:[%s5753_s25 + $0x3300] sm:$0xff] }
  0xdb   : > { %965 = vst [vmem:[%s5758_s26 + $0xcb0] sm:$0xff] %v964_v22  ;;  %967 = vst [vmem:[%s5758_s26 + $0xcb8] sm:$0xff] %v966_v23  ;;  %v970_v25 = vld [vmem:[%s5753_s25 + $0x3308] sm:$0xff]  ;;  %v972_v26 = vld [vmem:[%s5753_s25 + $0x3310] sm:$0xff] }
  0xdc   : > { %969 = vst [vmem:[%s5758_s26 + $0xcc0] sm:$0xff] %v968_v24  ;;  %971 = vst [vmem:[%s5758_s26 + $0xcc8] sm:$0xff] %v970_v25  ;;  %v974_v27 = vld [vmem:[%s5753_s25 + $0x3318] sm:$0xff]  ;;  %v976_v28 = vld [vmem:[%s5753_s25 + $0x3380] sm:$0xff] }
  0xdd   : > { %973 = vst [vmem:[%s5758_s26 + $0xcd0] sm:$0xff] %v972_v26  ;;  %v978_v29 = vld [vmem:[%s5753_s25 + $0x3388] sm:$0xff]  ;;  %975 = vst [vmem:[%s5758_s26 + $0xcd8] sm:$0xff] %v974_v27  ;;  %v980_v30 = vld [vmem:[%s5753_s25 + $0x3390] sm:$0xff] }
  0xde   : > { %977 = vst [vmem:[%s5758_s26 + $0xce0] sm:$0xff] %v976_v28  ;;  %979 = vst [vmem:[%s5758_s26 + $0xce8] sm:$0xff] %v978_v29  ;;  %v982_v31 = vld [vmem:[%s5753_s25 + $0x3398] sm:$0xff]  ;;  %v984_v32 = vld [vmem:[%s5753_s25 + $0x3400] sm:$0xff] }
  0xdf   : > { %981 = vst [vmem:[%s5758_s26 + $0xcf0] sm:$0xff] %v980_v30  ;;  %983 = vst [vmem:[%s5758_s26 + $0xcf8] sm:$0xff] %v982_v31  ;;  %v986_v33 = vld [vmem:[%s5753_s25 + $0x3408] sm:$0xff]  ;;  %v988_v34 = vld [vmem:[%s5753_s25 + $0x3410] sm:$0xff] }
  0xe0   : > { %985 = vst [vmem:[%s5758_s26 + $0xd00] sm:$0xff] %v984_v32  ;;  %v990_v35 = vld [vmem:[%s5753_s25 + $0x3418] sm:$0xff]  ;;  %987 = vst [vmem:[%s5758_s26 + $0xd08] sm:$0xff] %v986_v33  ;;  %v992_v36 = vld [vmem:[%s5753_s25 + $0x3480] sm:$0xff] }
  0xe1   : > { %989 = vst [vmem:[%s5758_s26 + $0xd10] sm:$0xff] %v988_v34  ;;  %991 = vst [vmem:[%s5758_s26 + $0xd18] sm:$0xff] %v990_v35  ;;  %v994_v37 = vld [vmem:[%s5753_s25 + $0x3488] sm:$0xff]  ;;  %v996_v38 = vld [vmem:[%s5753_s25 + $0x3490] sm:$0xff] }
  0xe2   : > { %993 = vst [vmem:[%s5758_s26 + $0xd20] sm:$0xff] %v992_v36  ;;  %995 = vst [vmem:[%s5758_s26 + $0xd28] sm:$0xff] %v994_v37  ;;  %v998_v39 = vld [vmem:[%s5753_s25 + $0x3498] sm:$0xff]  ;;  %v1000_v40 = vld [vmem:[%s5753_s25 + $0x3500] sm:$0xff] }
  0xe3   : > { %997 = vst [vmem:[%s5758_s26 + $0xd30] sm:$0xff] %v996_v38  ;;  %v1002_v41 = vld [vmem:[%s5753_s25 + $0x3508] sm:$0xff]  ;;  %999 = vst [vmem:[%s5758_s26 + $0xd38] sm:$0xff] %v998_v39  ;;  %v1004_v42 = vld [vmem:[%s5753_s25 + $0x3510] sm:$0xff] }
  0xe4   : > { %1001 = vst [vmem:[%s5758_s26 + $0xd40] sm:$0xff] %v1000_v40  ;;  %1003 = vst [vmem:[%s5758_s26 + $0xd48] sm:$0xff] %v1002_v41  ;;  %v1006_v43 = vld [vmem:[%s5753_s25 + $0x3518] sm:$0xff]  ;;  %v1008_v44 = vld [vmem:[%s5753_s25 + $0x3580] sm:$0xff] }
  0xe5   : > { %1005 = vst [vmem:[%s5758_s26 + $0xd50] sm:$0xff] %v1004_v42  ;;  %1007 = vst [vmem:[%s5758_s26 + $0xd58] sm:$0xff] %v1006_v43  ;;  %v1010_v45 = vld [vmem:[%s5753_s25 + $0x3588] sm:$0xff]  ;;  %v1012_v46 = vld [vmem:[%s5753_s25 + $0x3590] sm:$0xff] }
  0xe6   : > { %1009 = vst [vmem:[%s5758_s26 + $0xd60] sm:$0xff] %v1008_v44  ;;  %v1014_v47 = vld [vmem:[%s5753_s25 + $0x3598] sm:$0xff]  ;;  %1011 = vst [vmem:[%s5758_s26 + $0xd68] sm:$0xff] %v1010_v45  ;;  %v1016_v48 = vld [vmem:[%s5753_s25 + $0x3600] sm:$0xff] }
  0xe7   : > { %1013 = vst [vmem:[%s5758_s26 + $0xd70] sm:$0xff] %v1012_v46  ;;  %1015 = vst [vmem:[%s5758_s26 + $0xd78] sm:$0xff] %v1014_v47  ;;  %v1018_v49 = vld [vmem:[%s5753_s25 + $0x3608] sm:$0xff]  ;;  %v1020_v50 = vld [vmem:[%s5753_s25 + $0x3610] sm:$0xff] }
  0xe8   : > { %1017 = vst [vmem:[%s5758_s26 + $0xd80] sm:$0xff] %v1016_v48  ;;  %1019 = vst [vmem:[%s5758_s26 + $0xd88] sm:$0xff] %v1018_v49  ;;  %v1022_v51 = vld [vmem:[%s5753_s25 + $0x3618] sm:$0xff]  ;;  %v1024_v52 = vld [vmem:[%s5753_s25 + $0x3680] sm:$0xff] }
  0xe9   : > { %1021 = vst [vmem:[%s5758_s26 + $0xd90] sm:$0xff] %v1020_v50  ;;  %v1026_v53 = vld [vmem:[%s5753_s25 + $0x3688] sm:$0xff]  ;;  %1023 = vst [vmem:[%s5758_s26 + $0xd98] sm:$0xff] %v1022_v51  ;;  %v1028_v54 = vld [vmem:[%s5753_s25 + $0x3690] sm:$0xff] }
  0xea   : > { %1025 = vst [vmem:[%s5758_s26 + $0xda0] sm:$0xff] %v1024_v52  ;;  %1027 = vst [vmem:[%s5758_s26 + $0xda8] sm:$0xff] %v1026_v53  ;;  %v1030_v55 = vld [vmem:[%s5753_s25 + $0x3698] sm:$0xff]  ;;  %v1032_v56 = vld [vmem:[%s5753_s25 + $0x3700] sm:$0xff] }
  0xeb   : > { %1029 = vst [vmem:[%s5758_s26 + $0xdb0] sm:$0xff] %v1028_v54  ;;  %1031 = vst [vmem:[%s5758_s26 + $0xdb8] sm:$0xff] %v1030_v55  ;;  %v1034_v57 = vld [vmem:[%s5753_s25 + $0x3708] sm:$0xff]  ;;  %v1036_v58 = vld [vmem:[%s5753_s25 + $0x3710] sm:$0xff] }
  0xec   : > { %1033 = vst [vmem:[%s5758_s26 + $0xdc0] sm:$0xff] %v1032_v56  ;;  %v1038_v59 = vld [vmem:[%s5753_s25 + $0x3718] sm:$0xff]  ;;  %1035 = vst [vmem:[%s5758_s26 + $0xdc8] sm:$0xff] %v1034_v57  ;;  %v1040_v60 = vld [vmem:[%s5753_s25 + $0x3780] sm:$0xff] }
  0xed   : > { %1037 = vst [vmem:[%s5758_s26 + $0xdd0] sm:$0xff] %v1036_v58  ;;  %1039 = vst [vmem:[%s5758_s26 + $0xdd8] sm:$0xff] %v1038_v59  ;;  %v1042_v61 = vld [vmem:[%s5753_s25 + $0x3788] sm:$0xff]  ;;  %v1044_v62 = vld [vmem:[%s5753_s25 + $0x3790] sm:$0xff] }
  0xee   : > { %1041 = vst [vmem:[%s5758_s26 + $0xde0] sm:$0xff] %v1040_v60  ;;  %1043 = vst [vmem:[%s5758_s26 + $0xde8] sm:$0xff] %v1042_v61  ;;  %v1046_v63 = vld [vmem:[%s5753_s25 + $0x3798] sm:$0xff]  ;;  %v1048_v0 = vld [vmem:[%s5753_s25 + $0x3800] sm:$0xff] }
  0xef   : > { %1045 = vst [vmem:[%s5758_s26 + $0xdf0] sm:$0xff] %v1044_v62  ;;  %v1050_v1 = vld [vmem:[%s5753_s25 + $0x3808] sm:$0xff]  ;;  %1047 = vst [vmem:[%s5758_s26 + $0xdf8] sm:$0xff] %v1046_v63  ;;  %v1052_v2 = vld [vmem:[%s5753_s25 + $0x3810] sm:$0xff] }
  0xf0   : > { %1049 = vst [vmem:[%s5758_s26 + $0xe00] sm:$0xff] %v1048_v0  ;;  %1051 = vst [vmem:[%s5758_s26 + $0xe08] sm:$0xff] %v1050_v1  ;;  %v1054_v3 = vld [vmem:[%s5753_s25 + $0x3818] sm:$0xff]  ;;  %v1056_v4 = vld [vmem:[%s5753_s25 + $0x3880] sm:$0xff] }
  0xf1   : > { %1053 = vst [vmem:[%s5758_s26 + $0xe10] sm:$0xff] %v1052_v2  ;;  %1055 = vst [vmem:[%s5758_s26 + $0xe18] sm:$0xff] %v1054_v3  ;;  %v1058_v5 = vld [vmem:[%s5753_s25 + $0x3888] sm:$0xff]  ;;  %v1060_v6 = vld [vmem:[%s5753_s25 + $0x3890] sm:$0xff] }
  0xf2   : > { %1057 = vst [vmem:[%s5758_s26 + $0xe20] sm:$0xff] %v1056_v4  ;;  %v1062_v7 = vld [vmem:[%s5753_s25 + $0x3898] sm:$0xff]  ;;  %1059 = vst [vmem:[%s5758_s26 + $0xe28] sm:$0xff] %v1058_v5  ;;  %v1064_v8 = vld [vmem:[%s5753_s25 + $0x3900] sm:$0xff] }
  0xf3   : > { %1061 = vst [vmem:[%s5758_s26 + $0xe30] sm:$0xff] %v1060_v6  ;;  %1063 = vst [vmem:[%s5758_s26 + $0xe38] sm:$0xff] %v1062_v7  ;;  %v1066_v9 = vld [vmem:[%s5753_s25 + $0x3908] sm:$0xff]  ;;  %v1068_v10 = vld [vmem:[%s5753_s25 + $0x3910] sm:$0xff] }
  0xf4   : > { %1065 = vst [vmem:[%s5758_s26 + $0xe40] sm:$0xff] %v1064_v8  ;;  %1067 = vst [vmem:[%s5758_s26 + $0xe48] sm:$0xff] %v1066_v9  ;;  %v1070_v11 = vld [vmem:[%s5753_s25 + $0x3918] sm:$0xff]  ;;  %v1072_v12 = vld [vmem:[%s5753_s25 + $0x3980] sm:$0xff] }
  0xf5   : > { %1069 = vst [vmem:[%s5758_s26 + $0xe50] sm:$0xff] %v1068_v10  ;;  %v1074_v13 = vld [vmem:[%s5753_s25 + $0x3988] sm:$0xff]  ;;  %1071 = vst [vmem:[%s5758_s26 + $0xe58] sm:$0xff] %v1070_v11  ;;  %v1076_v14 = vld [vmem:[%s5753_s25 + $0x3990] sm:$0xff] }
  0xf6   : > { %1073 = vst [vmem:[%s5758_s26 + $0xe60] sm:$0xff] %v1072_v12  ;;  %1075 = vst [vmem:[%s5758_s26 + $0xe68] sm:$0xff] %v1074_v13  ;;  %v1078_v15 = vld [vmem:[%s5753_s25 + $0x3998] sm:$0xff]  ;;  %v1080_v16 = vld [vmem:[%s5753_s25 + $0x3a00] sm:$0xff] }
  0xf7   : > { %1077 = vst [vmem:[%s5758_s26 + $0xe70] sm:$0xff] %v1076_v14  ;;  %1079 = vst [vmem:[%s5758_s26 + $0xe78] sm:$0xff] %v1078_v15  ;;  %v1082_v17 = vld [vmem:[%s5753_s25 + $0x3a08] sm:$0xff]  ;;  %v1084_v18 = vld [vmem:[%s5753_s25 + $0x3a10] sm:$0xff] }
  0xf8   : > { %1081 = vst [vmem:[%s5758_s26 + $0xe80] sm:$0xff] %v1080_v16  ;;  %v1086_v19 = vld [vmem:[%s5753_s25 + $0x3a18] sm:$0xff]  ;;  %1083 = vst [vmem:[%s5758_s26 + $0xe88] sm:$0xff] %v1082_v17  ;;  %v1088_v20 = vld [vmem:[%s5753_s25 + $0x3a80] sm:$0xff] }
  0xf9   : > { %1085 = vst [vmem:[%s5758_s26 + $0xe90] sm:$0xff] %v1084_v18  ;;  %1087 = vst [vmem:[%s5758_s26 + $0xe98] sm:$0xff] %v1086_v19  ;;  %v1090_v21 = vld [vmem:[%s5753_s25 + $0x3a88] sm:$0xff]  ;;  %v1092_v22 = vld [vmem:[%s5753_s25 + $0x3a90] sm:$0xff] }
  0xfa   : > { %1089 = vst [vmem:[%s5758_s26 + $0xea0] sm:$0xff] %v1088_v20  ;;  %1091 = vst [vmem:[%s5758_s26 + $0xea8] sm:$0xff] %v1090_v21  ;;  %v1094_v23 = vld [vmem:[%s5753_s25 + $0x3a98] sm:$0xff]  ;;  %v1096_v24 = vld [vmem:[%s5753_s25 + $0x3b00] sm:$0xff] }
  0xfb   : > { %1093 = vst [vmem:[%s5758_s26 + $0xeb0] sm:$0xff] %v1092_v22  ;;  %v1098_v25 = vld [vmem:[%s5753_s25 + $0x3b08] sm:$0xff]  ;;  %1095 = vst [vmem:[%s5758_s26 + $0xeb8] sm:$0xff] %v1094_v23  ;;  %v1100_v26 = vld [vmem:[%s5753_s25 + $0x3b10] sm:$0xff] }
  0xfc   : > { %1097 = vst [vmem:[%s5758_s26 + $0xec0] sm:$0xff] %v1096_v24  ;;  %1099 = vst [vmem:[%s5758_s26 + $0xec8] sm:$0xff] %v1098_v25  ;;  %v1102_v27 = vld [vmem:[%s5753_s25 + $0x3b18] sm:$0xff]  ;;  %v1104_v28 = vld [vmem:[%s5753_s25 + $0x3b80] sm:$0xff] }
  0xfd   : > { %1101 = vst [vmem:[%s5758_s26 + $0xed0] sm:$0xff] %v1100_v26  ;;  %1103 = vst [vmem:[%s5758_s26 + $0xed8] sm:$0xff] %v1102_v27  ;;  %v1106_v29 = vld [vmem:[%s5753_s25 + $0x3b88] sm:$0xff]  ;;  %v1108_v30 = vld [vmem:[%s5753_s25 + $0x3b90] sm:$0xff] }
  0xfe   : > { %1105 = vst [vmem:[%s5758_s26 + $0xee0] sm:$0xff] %v1104_v28  ;;  %v1110_v31 = vld [vmem:[%s5753_s25 + $0x3b98] sm:$0xff]  ;;  %1107 = vst [vmem:[%s5758_s26 + $0xee8] sm:$0xff] %v1106_v29  ;;  %v1112_v32 = vld [vmem:[%s5753_s25 + $0x3c00] sm:$0xff] }
  0xff   : > { %1109 = vst [vmem:[%s5758_s26 + $0xef0] sm:$0xff] %v1108_v30  ;;  %1111 = vst [vmem:[%s5758_s26 + $0xef8] sm:$0xff] %v1110_v31  ;;  %v1114_v33 = vld [vmem:[%s5753_s25 + $0x3c08] sm:$0xff]  ;;  %v1116_v34 = vld [vmem:[%s5753_s25 + $0x3c10] sm:$0xff] }
 0x100   : > { %1113 = vst [vmem:[%s5758_s26 + $0xf00] sm:$0xff] %v1112_v32  ;;  %1115 = vst [vmem:[%s5758_s26 + $0xf08] sm:$0xff] %v1114_v33  ;;  %v1118_v35 = vld [vmem:[%s5753_s25 + $0x3c18] sm:$0xff]  ;;  %v1120_v36 = vld [vmem:[%s5753_s25 + $0x3c80] sm:$0xff] }
 0x101   : > { %1117 = vst [vmem:[%s5758_s26 + $0xf10] sm:$0xff] %v1116_v34  ;;  %v1122_v37 = vld [vmem:[%s5753_s25 + $0x3c88] sm:$0xff]  ;;  %1119 = vst [vmem:[%s5758_s26 + $0xf18] sm:$0xff] %v1118_v35  ;;  %v1124_v38 = vld [vmem:[%s5753_s25 + $0x3c90] sm:$0xff] }
 0x102   : > { %1121 = vst [vmem:[%s5758_s26 + $0xf20] sm:$0xff] %v1120_v36  ;;  %1123 = vst [vmem:[%s5758_s26 + $0xf28] sm:$0xff] %v1122_v37  ;;  %v1126_v39 = vld [vmem:[%s5753_s25 + $0x3c98] sm:$0xff]  ;;  %v1128_v40 = vld [vmem:[%s5753_s25 + $0x3d00] sm:$0xff] }
 0x103   : > { %1125 = vst [vmem:[%s5758_s26 + $0xf30] sm:$0xff] %v1124_v38  ;;  %1127 = vst [vmem:[%s5758_s26 + $0xf38] sm:$0xff] %v1126_v39  ;;  %v1130_v41 = vld [vmem:[%s5753_s25 + $0x3d08] sm:$0xff]  ;;  %v1132_v42 = vld [vmem:[%s5753_s25 + $0x3d10] sm:$0xff] }
 0x104   : > { %1129 = vst [vmem:[%s5758_s26 + $0xf40] sm:$0xff] %v1128_v40  ;;  %v1134_v43 = vld [vmem:[%s5753_s25 + $0x3d18] sm:$0xff]  ;;  %1131 = vst [vmem:[%s5758_s26 + $0xf48] sm:$0xff] %v1130_v41  ;;  %v1136_v44 = vld [vmem:[%s5753_s25 + $0x3d80] sm:$0xff] }
 0x105   : > { %1133 = vst [vmem:[%s5758_s26 + $0xf50] sm:$0xff] %v1132_v42  ;;  %1135 = vst [vmem:[%s5758_s26 + $0xf58] sm:$0xff] %v1134_v43  ;;  %v1138_v45 = vld [vmem:[%s5753_s25 + $0x3d88] sm:$0xff]  ;;  %v1140_v46 = vld [vmem:[%s5753_s25 + $0x3d90] sm:$0xff] }
 0x106   : > { %1137 = vst [vmem:[%s5758_s26 + $0xf60] sm:$0xff] %v1136_v44  ;;  %1139 = vst [vmem:[%s5758_s26 + $0xf68] sm:$0xff] %v1138_v45  ;;  %v1142_v47 = vld [vmem:[%s5753_s25 + $0x3d98] sm:$0xff]  ;;  %v1144_v48 = vld [vmem:[%s5753_s25 + $0x3e00] sm:$0xff] }
 0x107   : > { %1141 = vst [vmem:[%s5758_s26 + $0xf70] sm:$0xff] %v1140_v46  ;;  %v1146_v49 = vld [vmem:[%s5753_s25 + $0x3e08] sm:$0xff]  ;;  %1143 = vst [vmem:[%s5758_s26 + $0xf78] sm:$0xff] %v1142_v47  ;;  %v1148_v50 = vld [vmem:[%s5753_s25 + $0x3e10] sm:$0xff] }
 0x108   : > { %1145 = vst [vmem:[%s5758_s26 + $0xf80] sm:$0xff] %v1144_v48  ;;  %1147 = vst [vmem:[%s5758_s26 + $0xf88] sm:$0xff] %v1146_v49  ;;  %v1150_v51 = vld [vmem:[%s5753_s25 + $0x3e18] sm:$0xff]  ;;  %v1152_v52 = vld [vmem:[%s5753_s25 + $0x3e80] sm:$0xff] }
 0x109   : > { %1149 = vst [vmem:[%s5758_s26 + $0xf90] sm:$0xff] %v1148_v50  ;;  %1151 = vst [vmem:[%s5758_s26 + $0xf98] sm:$0xff] %v1150_v51  ;;  %v1154_v53 = vld [vmem:[%s5753_s25 + $0x3e88] sm:$0xff]  ;;  %v1156_v54 = vld [vmem:[%s5753_s25 + $0x3e90] sm:$0xff] }
 0x10a   : > { %1153 = vst [vmem:[%s5758_s26 + $0xfa0] sm:$0xff] %v1152_v52  ;;  %v1158_v55 = vld [vmem:[%s5753_s25 + $0x3e98] sm:$0xff]  ;;  %1155 = vst [vmem:[%s5758_s26 + $0xfa8] sm:$0xff] %v1154_v53  ;;  %v1160_v56 = vld [vmem:[%s5753_s25 + $0x3f00] sm:$0xff] }
 0x10b   : > { %1157 = vst [vmem:[%s5758_s26 + $0xfb0] sm:$0xff] %v1156_v54  ;;  %1159 = vst [vmem:[%s5758_s26 + $0xfb8] sm:$0xff] %v1158_v55  ;;  %v1162_v57 = vld [vmem:[%s5753_s25 + $0x3f08] sm:$0xff]  ;;  %v1164_v58 = vld [vmem:[%s5753_s25 + $0x3f10] sm:$0xff] }
 0x10c   : > { %1161 = vst [vmem:[%s5758_s26 + $0xfc0] sm:$0xff] %v1160_v56  ;;  %1163 = vst [vmem:[%s5758_s26 + $0xfc8] sm:$0xff] %v1162_v57  ;;  %v1166_v59 = vld [vmem:[%s5753_s25 + $0x3f18] sm:$0xff]  ;;  %v1168_v60 = vld [vmem:[%s5753_s25 + $0x3f80] sm:$0xff] }
 0x10d   : > { %1165 = vst [vmem:[%s5758_s26 + $0xfd0] sm:$0xff] %v1164_v58  ;;  %v1170_v61 = vld [vmem:[%s5753_s25 + $0x3f88] sm:$0xff]  ;;  %1167 = vst [vmem:[%s5758_s26 + $0xfd8] sm:$0xff] %v1166_v59  ;;  %v1172_v62 = vld [vmem:[%s5753_s25 + $0x3f90] sm:$0xff] }
 0x10e   : > { %1169 = vst [vmem:[%s5758_s26 + $0xfe0] sm:$0xff] %v1168_v60  ;;  %1171 = vst [vmem:[%s5758_s26 + $0xfe8] sm:$0xff] %v1170_v61  ;;  %v1174_v63 = vld [vmem:[%s5753_s25 + $0x3f98] sm:$0xff] }
 0x10f   : > { %1173 = vst [vmem:[%s5758_s26 + $0xff0] sm:$0xff] %v1172_v62  ;;  %1175 = vst [vmem:[%s5758_s26 + $0xff8] sm:$0xff] %v1174_v63 }
 0x110 PF: > { %p5130_p5 = scmp.ge.s32.totalorder %s5697_s14, 1  ;;  %p1188_p6 = scmp.lt.s32.totalorder %s5697_s14, 5 }
 0x112   : > { %p1189_p7 = pnand %p5130_p5, %p1188_p6 }
 0x113   : > { %s1195_s27 = sand.u32 (!%p1189_p7), 1, %s5689_s12   ;;  %s5132_s24 = sshll.u32 (!%p1189_p7), %s5123_s15, 3 }
 0x114   : > { %1192 = sbr.rel (%p1189_p7) target bundleno = 1003 (0x3eb), region = 51  ;;  %s5131_s5 = sshll.u32 (!%p1189_p7), %s1195_s27, 12 }
 0x115   : > { %s6794_s6 = scalar_lea.vmem (!%p1189_p7), [#allocation2], %s5131_s5  ;;  %p1224_p8 = scmp.lt.s32.totalorder (!%p1189_p7), %s5132_s24, 31 }
 0x119   : > { %v1235_v0 = vld [vmem:[%s7447_s0 + $0x8] sm:$0xff]  ;;  %v1237_v1 = vld [vmem:[%s7447_s0 + $0x18] sm:$0xff]  ;;  %v1306_v4 = vld [vmem:[%s6794_s6 + $0x1c0] sm:$0xff]  ;;  %s7455_s24 = smov (!%p1224_p8, %s5132_s24), 31 }
 0x11a   : > { %v6790_v2 = vpack.c.bf16 %v1235_v0, %v1235_v0  ;;  %v6792_v3 = vpack.c.bf16 %v1237_v1, %v1237_v1  ;;  %v1310_v5 = vld [vmem:[%s6794_s6 + $0x1e0] sm:$0xff]  ;;  %s7179_s25 = scalar_lea.vmem %s7449_s2, %s7455_s24  ;;  %s5134_s26 = sshll.u32 %s7455_s24, 3 }
 0x11b   : > { %v1434_v6 = vld [vmem:[%s6794_s6 + $0x5c0] sm:$0xff]  ;;  %v5192_v7 = vcombine.high %v1306_v4, %v1310_v5  ;;  %v5191_v9 = vcombine.low %v1306_v4, %v1310_v5  ;;  %s7220_s29 = scalar_lea.vmem %s7450_s3, %s5134_s26 }
 0x11c   : > { %4396 = vmatprep.mubr.bf16.mxu0 %v6790_v2  ;;  %4437 = vmatprep.mubr.bf16.mxu1 %v6792_v3  ;;  %v1438_v8 = vld [vmem:[%s6794_s6 + $0x5e0] sm:$0xff] }
 0x11d   : > { %v1298_v10 = vld [vmem:[%s6794_s6 + $0x180] sm:$0xff]  ;;  %v5320_v12 = vcombine.high %v1434_v6, %v1438_v8  ;;  %v5319_v13 = vcombine.low %v1434_v6, %v1438_v8  ;;  %4364 = vmatprep.subr.bf16.mxu0 %v5192_v7 }
 0x11e   : > { %v1302_v11 = vld [vmem:[%s6794_s6 + $0x1a0] sm:$0xff]  ;;  %4365 = vmatpush1.bf16.msra.mxu0 %v5191_v9 }
 0x11f   : > { %v5184_v14 = vcombine.high %v1298_v10, %v1302_v11  ;;  %v1426_v15 = vld [vmem:[%s6794_s6 + $0x580] sm:$0xff]  ;;  %4405 = vmatprep.subr.bf16.mxu1 %v5320_v12  ;;  %v5183_v22 = vcombine.low %v1298_v10, %v1302_v11 }
 0x120   : > { %v1430_v16 = vld [vmem:[%s6794_s6 + $0x5a0] sm:$0xff]  ;;  %4406 = vmatpush1.bf16.msra.mxu1 %v5319_v13 }
 0x121   : > { %v1290_v17 = vld [vmem:[%s6794_s6 + $0x140] sm:$0xff]  ;;  %v5312_v18 = vcombine.high %v1426_v15, %v1430_v16  ;;  %4366 = vmatprep.subr.bf16.mxu0 %v5184_v14  ;;  %v5311_v23 = vcombine.low %v1426_v15, %v1430_v16 }
 0x122   : > { %v1294_v19 = vld [vmem:[%s6794_s6 + $0x160] sm:$0xff]  ;;  %4367 = vmatpush1.bf16.msra.mxu0 %v5183_v22 }
 0x123   : > { %v1418_v20 = vld [vmem:[%s6794_s6 + $0x540] sm:$0xff]  ;;  %v5176_v24 = vcombine.high %v1290_v17, %v1294_v19  ;;  %4407 = vmatprep.subr.bf16.mxu1 %v5312_v18  ;;  %v5175_v30 = vcombine.low %v1290_v17, %v1294_v19 }
 0x124   : > { %v1422_v21 = vld [vmem:[%s6794_s6 + $0x560] sm:$0xff]  ;;  %4408 = vmatpush1.bf16.msra.mxu1 %v5311_v23 }
 0x125   : > { %v5304_v25 = vcombine.high %v1418_v20, %v1422_v21  ;;  %v1282_v26 = vld [vmem:[%s6794_s6 + $0x100] sm:$0xff]  ;;  %4368 = vmatprep.subr.bf16.mxu0 %v5176_v24  ;;  %v5303_v31 = vcombine.low %v1418_v20, %v1422_v21 }
 0x126   : > { %v1286_v27 = vld [vmem:[%s6794_s6 + $0x120] sm:$0xff]  ;;  %4369 = vmatpush1.bf16.msra.mxu0 %v5175_v30 }
 0x127   : > { %v1410_v28 = vld [vmem:[%s6794_s6 + $0x500] sm:$0xff]  ;;  %v5168_v32 = vcombine.high %v1282_v26, %v1286_v27  ;;  %4409 = vmatprep.subr.bf16.mxu1 %v5304_v25  ;;  %v5167_v38 = vcombine.low %v1282_v26, %v1286_v27 }
 0x128   : > { %v1414_v29 = vld [vmem:[%s6794_s6 + $0x520] sm:$0xff]  ;;  %4410 = vmatpush1.bf16.msra.mxu1 %v5303_v31 }
 0x129   : > { %v5296_v33 = vcombine.high %v1410_v28, %v1414_v29  ;;  %v1274_v34 = vld [vmem:[%s6794_s6 + $0xc0] sm:$0xff]  ;;  %4370 = vmatprep.subr.bf16.mxu0 %v5168_v32  ;;  %v5295_v39 = vcombine.low %v1410_v28, %v1414_v29 }
 0x12a   : > { %v1278_v35 = vld [vmem:[%s6794_s6 + $0xe0] sm:$0xff]  ;;  %4371 = vmatpush1.bf16.msra.mxu0 %v5167_v38 }
 0x12b   : > { %v1402_v36 = vld [vmem:[%s6794_s6 + $0x4c0] sm:$0xff]  ;;  %v5160_v40 = vcombine.high %v1274_v34, %v1278_v35  ;;  %4411 = vmatprep.subr.bf16.mxu1 %v5296_v33  ;;  %v5159_v46 = vcombine.low %v1274_v34, %v1278_v35 }
 0x12c   : > { %v1406_v37 = vld [vmem:[%s6794_s6 + $0x4e0] sm:$0xff]  ;;  %4412 = vmatpush1.bf16.msra.mxu1 %v5295_v39 }
 0x12d   : > { %v5288_v41 = vcombine.high %v1402_v36, %v1406_v37  ;;  %v1266_v42 = vld [vmem:[%s6794_s6 + $0x80] sm:$0xff]  ;;  %4372 = vmatprep.subr.bf16.mxu0 %v5160_v40  ;;  %v5287_v47 = vcombine.low %v1402_v36, %v1406_v37 }
 0x12e   : > { %v1270_v43 = vld [vmem:[%s6794_s6 + $0xa0] sm:$0xff]  ;;  %4373 = vmatpush1.bf16.msra.mxu0 %v5159_v46 }
 0x12f   : > { %v1394_v44 = vld [vmem:[%s6794_s6 + $0x480] sm:$0xff]  ;;  %v5152_v48 = vcombine.high %v1266_v42, %v1270_v43  ;;  %4413 = vmatprep.subr.bf16.mxu1 %v5288_v41  ;;  %v5151_v54 = vcombine.low %v1266_v42, %v1270_v43 }
 0x130   : > { %v1398_v45 = vld [vmem:[%s6794_s6 + $0x4a0] sm:$0xff]  ;;  %4414 = vmatpush1.bf16.msra.mxu1 %v5287_v47 }
 0x131   : > { %v5280_v49 = vcombine.high %v1394_v44, %v1398_v45  ;;  %v1258_v50 = vld [vmem:[%s6794_s6 + $0x40] sm:$0xff]  ;;  %4374 = vmatprep.subr.bf16.mxu0 %v5152_v48  ;;  %v5279_v55 = vcombine.low %v1394_v44, %v1398_v45 }
 0x132   : > { %v1262_v51 = vld [vmem:[%s6794_s6 + $0x60] sm:$0xff]  ;;  %4375 = vmatpush1.bf16.msra.mxu0 %v5151_v54 }
 0x133   : > { %v1386_v52 = vld [vmem:[%s6794_s6 + $0x440] sm:$0xff]  ;;  %v5144_v56 = vcombine.high %v1258_v50, %v1262_v51  ;;  %4415 = vmatprep.subr.bf16.mxu1 %v5280_v49  ;;  %v5143_v62 = vcombine.low %v1258_v50, %v1262_v51 }
 0x134   : > { %v1390_v53 = vld [vmem:[%s6794_s6 + $0x460] sm:$0xff]  ;;  %4416 = vmatpush1.bf16.msra.mxu1 %v5279_v55 }
 0x135   : > { %v5272_v57 = vcombine.high %v1386_v52, %v1390_v53  ;;  %v1250_v58 = vld [vmem:[%s6794_s6] sm:$0xff]  ;;  %4376 = vmatprep.subr.bf16.mxu0 %v5144_v56  ;;  %v5271_v63 = vcombine.low %v1386_v52, %v1390_v53 }
 0x136   : > { %v1254_v59 = vld [vmem:[%s6794_s6 + $0x20] sm:$0xff]  ;;  %4377 = vmatpush1.bf16.msra.mxu0 %v5143_v62 }
 0x137   : > { %v1378_v60 = vld [vmem:[%s6794_s6 + $0x400] sm:$0xff]  ;;  %v5136_v0 = vcombine.high %v1250_v58, %v1254_v59  ;;  %4417 = vmatprep.subr.bf16.mxu1 %v5272_v57  ;;  %v5135_v8 = vcombine.low %v1250_v58, %v1254_v59 }
 0x138   : > { %v1382_v61 = vld [vmem:[%s6794_s6 + $0x420] sm:$0xff]  ;;  %4418 = vmatpush1.bf16.msra.mxu1 %v5271_v63 }
 0x139   : > { %v5264_v1 = vcombine.high %v1378_v60, %v1382_v61  ;;  %v1370_v4 = vld [vmem:[%s6794_s6 + $0x3c0] sm:$0xff]  ;;  %4378 = vmatprep.subr.bf16.mxu0 %v5136_v0  ;;  %v5263_v9 = vcombine.low %v1378_v60, %v1382_v61 }
 0x13a   : > { %v1374_v5 = vld [vmem:[%s6794_s6 + $0x3e0] sm:$0xff]  ;;  %4379 = vmatpush1.bf16.msra.mxu0 %v5135_v8 }
 0x13b   : > { %v1498_v6 = vld [vmem:[%s6794_s6 + $0x7c0] sm:$0xff]  ;;  %v5256_v10 = vcombine.high %v1370_v4, %v1374_v5  ;;  %4419 = vmatprep.subr.bf16.mxu1 %v5264_v1  ;;  %v5255_v16 = vcombine.low %v1370_v4, %v1374_v5 }
 0x13c   : > { %v1502_v7 = vld [vmem:[%s6794_s6 + $0x7e0] sm:$0xff]  ;;  %4420 = vmatpush1.bf16.msra.mxu1 %v5263_v9 }
 0x13d   : > { %v5384_v11 = vcombine.high %v1498_v6, %v1502_v7  ;;  %v1362_v12 = vld [vmem:[%s6794_s6 + $0x380] sm:$0xff]  ;;  %4380 = vmatprep.subr.bf16.mxu0 %v5256_v10  ;;  %v5383_v17 = vcombine.low %v1498_v6, %v1502_v7 }
 0x13e   : > { %v1366_v13 = vld [vmem:[%s6794_s6 + $0x3a0] sm:$0xff]  ;;  %4381 = vmatpush2.bf16.msra.mxu0 %v5255_v16 }
 0x13f   : > { %v1490_v14 = vld [vmem:[%s6794_s6 + $0x780] sm:$0xff]  ;;  %v5248_v18 = vcombine.high %v1362_v12, %v1366_v13  ;;  %4421 = vmatprep.subr.bf16.mxu1 %v5384_v11  ;;  %v5247_v24 = vcombine.low %v1362_v12, %v1366_v13  ;;  %v1236_v13 = vld [vmem:[%s7447_s0 + $0x10] sm:$0xff] }
 0x140   : > { %v1494_v15 = vld [vmem:[%s6794_s6 + $0x7a0] sm:$0xff]  ;;  %4422 = vmatpush2.bf16.msra.mxu1 %v5383_v17 }
 0x141   : > { %v5376_v19 = vcombine.high %v1490_v14, %v1494_v15  ;;  %v1354_v20 = vld [vmem:[%s6794_s6 + $0x340] sm:$0xff]  ;;  %4382 = vmatprep.subr.bf16.mxu0 %v5248_v18  ;;  %v5375_v25 = vcombine.low %v1490_v14, %v1494_v15 }
 0x142   : > { %v1358_v21 = vld [vmem:[%s6794_s6 + $0x360] sm:$0xff]  ;;  %4383 = vmatpush2.bf16.msra.mxu0 %v5247_v24  ;;  %v1241_v24 = vld [vmem:[%s7447_s0 + $0x38] sm:$0xff] }
 0x143   : > { %v1482_v22 = vld [vmem:[%s6794_s6 + $0x740] sm:$0xff]  ;;  %v5240_v26 = vcombine.high %v1354_v20, %v1358_v21  ;;  %4423 = vmatprep.subr.bf16.mxu1 %v5376_v19  ;;  %v5239_v32 = vcombine.low %v1354_v20, %v1358_v21  ;;  %v1239_v21 = vld [vmem:[%s7447_s0 + $0x28] sm:$0xff] }
 0x144   : > { %v1486_v23 = vld [vmem:[%s6794_s6 + $0x760] sm:$0xff]  ;;  %4424 = vmatpush2.bf16.msra.mxu1 %v5375_v25 }
 0x145   : > { %v5368_v27 = vcombine.high %v1482_v22, %v1486_v23  ;;  %v1346_v28 = vld [vmem:[%s6794_s6 + $0x300] sm:$0xff]  ;;  %4384 = vmatprep.subr.bf16.mxu0 %v5240_v26  ;;  %v5367_v33 = vcombine.low %v1482_v22, %v1486_v23  ;;  %v6881_v22 = vpack.c.bf16 %v1236_v13, %v1236_v13 }
 0x146   : > { %v1350_v29 = vld [vmem:[%s6794_s6 + $0x320] sm:$0xff]  ;;  %4385 = vmatpush2.bf16.msra.mxu0 %v5239_v32 }
 0x147   : > { %v1474_v30 = vld [vmem:[%s6794_s6 + $0x700] sm:$0xff]  ;;  %v5232_v34 = vcombine.high %v1346_v28, %v1350_v29  ;;  %4425 = vmatprep.subr.bf16.mxu1 %v5368_v27  ;;  %v5231_v40 = vcombine.low %v1346_v28, %v1350_v29 }
 0x148   : > { %v1478_v31 = vld [vmem:[%s6794_s6 + $0x720] sm:$0xff]  ;;  %4426 = vmatpush2.bf16.msra.mxu1 %v5367_v33  ;;  %v6893_v33 = vpack.c.bf16 %v1241_v24, %v1241_v24 }
 0x149   : > { %v5360_v35 = vcombine.high %v1474_v30, %v1478_v31  ;;  %v1338_v36 = vld [vmem:[%s6794_s6 + $0x2c0] sm:$0xff]  ;;  %4386 = vmatprep.subr.bf16.mxu0 %v5232_v34  ;;  %v5359_v41 = vcombine.low %v1474_v30, %v1478_v31  ;;  %v6888_v30 = vpack.c.bf16 %v1239_v21, %v1239_v21 }
 0x14a   : > { %v1342_v37 = vld [vmem:[%s6794_s6 + $0x2e0] sm:$0xff]  ;;  %4387 = vmatpush2.bf16.msra.mxu0 %v5231_v40 }
 0x14b   : > { %v1466_v38 = vld [vmem:[%s6794_s6 + $0x6c0] sm:$0xff]  ;;  %v5224_v42 = vcombine.high %v1338_v36, %v1342_v37  ;;  %4427 = vmatprep.subr.bf16.mxu1 %v5360_v35  ;;  %v5223_v48 = vcombine.low %v1338_v36, %v1342_v37 }
 0x14c   : > { %v1470_v39 = vld [vmem:[%s6794_s6 + $0x6e0] sm:$0xff]  ;;  %4428 = vmatpush2.bf16.msra.mxu1 %v5359_v41 }
 0x14d   : > { %v5352_v43 = vcombine.high %v1466_v38, %v1470_v39  ;;  %v1330_v44 = vld [vmem:[%s6794_s6 + $0x280] sm:$0xff]  ;;  %4388 = vmatprep.subr.bf16.mxu0 %v5224_v42  ;;  %v5351_v49 = vcombine.low %v1466_v38, %v1470_v39 }
 0x14e   : > { %v1334_v45 = vld [vmem:[%s6794_s6 + $0x2a0] sm:$0xff]  ;;  %4389 = vmatpush2.bf16.msra.mxu0 %v5223_v48 }
 0x14f   : > { %v1458_v46 = vld [vmem:[%s6794_s6 + $0x680] sm:$0xff]  ;;  %v5216_v50 = vcombine.high %v1330_v44, %v1334_v45  ;;  %4429 = vmatprep.subr.bf16.mxu1 %v5352_v43  ;;  %v5215_v56 = vcombine.low %v1330_v44, %v1334_v45 }
 0x150   : > { %v1462_v47 = vld [vmem:[%s6794_s6 + $0x6a0] sm:$0xff]  ;;  %4430 = vmatpush2.bf16.msra.mxu1 %v5351_v49 }
 0x151   : > { %v5344_v51 = vcombine.high %v1458_v46, %v1462_v47  ;;  %v1322_v52 = vld [vmem:[%s6794_s6 + $0x240] sm:$0xff]  ;;  %4390 = vmatprep.subr.bf16.mxu0 %v5216_v50  ;;  %v5343_v57 = vcombine.low %v1458_v46, %v1462_v47 }
 0x152   : > { %v1326_v53 = vld [vmem:[%s6794_s6 + $0x260] sm:$0xff]  ;;  %4391 = vmatpush2.bf16.msra.mxu0 %v5215_v56 }
 0x153   : > { %v1450_v54 = vld [vmem:[%s6794_s6 + $0x640] sm:$0xff]  ;;  %v5208_v58 = vcombine.high %v1322_v52, %v1326_v53  ;;  %4431 = vmatprep.subr.bf16.mxu1 %v5344_v51  ;;  %v5207_v0 = vcombine.low %v1322_v52, %v1326_v53 }
 0x154   : > { %v1454_v55 = vld [vmem:[%s6794_s6 + $0x660] sm:$0xff]  ;;  %4432 = vmatpush2.bf16.msra.mxu1 %v5343_v57 }
 0x155   : > { %v5336_v59 = vcombine.high %v1450_v54, %v1454_v55  ;;  %v1314_v60 = vld [vmem:[%s6794_s6 + $0x200] sm:$0xff]  ;;  %4392 = vmatprep.subr.bf16.mxu0 %v5208_v58  ;;  %v5335_v1 = vcombine.low %v1450_v54, %v1454_v55 }
 0x156   : > { %v1318_v61 = vld [vmem:[%s6794_s6 + $0x220] sm:$0xff]  ;;  %4393 = vmatpush2.bf16.msra.mxu0 %v5207_v0 }
 0x157   : > { %v1442_v62 = vld [vmem:[%s6794_s6 + $0x600] sm:$0xff]  ;;  %v5200_v4 = vcombine.high %v1314_v60, %v1318_v61  ;;  %4433 = vmatprep.subr.bf16.mxu1 %v5336_v59  ;;  %v5199_v10 = vcombine.low %v1314_v60, %v1318_v61 }
 0x158   : > { %v1446_v63 = vld [vmem:[%s6794_s6 + $0x620] sm:$0xff]  ;;  %4434 = vmatpush2.bf16.msra.mxu1 %v5335_v1 }
 0x159   : > { %v5328_v5 = vcombine.high %v1442_v62, %v1446_v63  ;;  %v1562_v6 = vld [vmem:[%s6794_s6 + $0x9c0] sm:$0xff]  ;;  %4394 = vmatprep.subr.bf16.mxu0 %v5200_v4  ;;  %v5327_v12 = vcombine.low %v1442_v62, %v1446_v63 }
 0x15a   : > { %v1566_v7 = vld [vmem:[%s6794_s6 + $0x9e0] sm:$0xff]  ;;  %4395 = vmatpush2.bf16.msra.mxu0 %v5199_v10 }
 0x15b   : > { %v1690_v8 = vld [vmem:[%s6794_s6 + $0xdc0] sm:$0xff]  ;;  %v5448_v14 = vcombine.high %v1562_v6, %v1566_v7  ;;  %4435 = vmatprep.subr.bf16.mxu1 %v5328_v5  ;;  %v5447_v23 = vcombine.low %v1562_v6, %v1566_v7 }
 0x15c   : > { %v1694_v9 = vld [vmem:[%s6794_s6 + $0xde0] sm:$0xff]  ;;  %4436 = vmatpush2.bf16.msra.mxu1 %v5327_v12 }
 0x15d   : > { %v1234_v11 = vld [vmem:[%s7447_s0] sm:$0xff]  ;;  %v5576_v15 = vcombine.high %v1690_v8, %v1694_v9  ;;  %4446 = vmatprep.subr.bf16.mxu0 %v5448_v14  ;;  %v5575_v25 = vcombine.low %v1690_v8, %v1694_v9 }
 0x15e   : > { %v1554_v16 = vld [vmem:[%s6794_s6 + $0x980] sm:$0xff]  ;;  %v6874_v18 = vpack.c.bf16 %v1234_v11, %v1234_v11 }
 0x15f   : > { %v1558_v17 = vld [vmem:[%s6794_s6 + $0x9a0] sm:$0xff]  ;;  %4487 = vmatprep.subr.bf16.mxu1 %v5576_v15  ;;  %4438 = vmatmul.mubr.bf16.vlgmr.msra.gmra.mxu1 %v6881_v22 }
 0x160   : > { %v1682_v19 = vld [vmem:[%s6794_s6 + $0xd80] sm:$0xff]  ;;  %v5440_v26 = vcombine.high %v1554_v16, %v1558_v17  ;;  %4397 = vmatmul.mubr.bf16.vlgmr.msra.gmra.mxu0 %v6874_v18  ;;  %v5439_v34 = vcombine.low %v1554_v16, %v1558_v17  ;;  %4488 = vmatpush1.bf16.msra.mxu1 %v5575_v25 }
 0x161   : > { %v1686_v20 = vld [vmem:[%s6794_s6 + $0xda0] sm:$0xff]  ;;  %4447 = vmatpush1.bf16.msra.mxu0 %v5447_v23  ;;  %4478 = vmatprep.mubr.bf16.mxu0 %v6888_v30 }
 0x162   : > { %v5568_v27 = vcombine.high %v1682_v19, %v1686_v20  ;;  %v1546_v28 = vld [vmem:[%s6794_s6 + $0x940] sm:$0xff]  ;;  %4448 = vmatprep.subr.bf16.mxu0 %v5440_v26  ;;  %v5567_v35 = vcombine.low %v1682_v19, %v1686_v20  ;;  %4519 = vmatprep.mubr.bf16.mxu1 %v6893_v33 }
 0x163   : > { %v1550_v29 = vld [vmem:[%s6794_s6 + $0x960] sm:$0xff] }
 0x164   : > { %v1674_v31 = vld [vmem:[%s6794_s6 + $0xd40] sm:$0xff]  ;;  %v5432_v36 = vcombine.high %v1546_v28, %v1550_v29  ;;  %4489 = vmatprep.subr.bf16.mxu1 %v5568_v27  ;;  %v5431_v42 = vcombine.low %v1546_v28, %v1550_v29 }
 0x165   : > { %v1678_v32 = vld [vmem:[%s6794_s6 + $0xd60] sm:$0xff]  ;;  %4449 = vmatpush1.bf16.msra.mxu0 %v5439_v34  ;;  %4490 = vmatpush1.bf16.msra.mxu1 %v5567_v35 }
 0x166   : > { %v5560_v37 = vcombine.high %v1674_v31, %v1678_v32  ;;  %v1538_v38 = vld [vmem:[%s6794_s6 + $0x900] sm:$0xff]  ;;  %4450 = vmatprep.subr.bf16.mxu0 %v5432_v36  ;;  %v5559_v43 = vcombine.low %v1674_v31, %v1678_v32 }
 0x167   : > { %v1542_v39 = vld [vmem:[%s6794_s6 + $0x920] sm:$0xff] }
 0x168   : > { %v1666_v40 = vld [vmem:[%s6794_s6 + $0xd00] sm:$0xff]  ;;  %v5424_v44 = vcombine.high %v1538_v38, %v1542_v39  ;;  %4491 = vmatprep.subr.bf16.mxu1 %v5560_v37  ;;  %v5423_v50 = vcombine.low %v1538_v38, %v1542_v39 }
 0x169   : > { %v1670_v41 = vld [vmem:[%s6794_s6 + $0xd20] sm:$0xff]  ;;  %4451 = vmatpush1.bf16.msra.mxu0 %v5431_v42  ;;  %4492 = vmatpush1.bf16.msra.mxu1 %v5559_v43 }
 0x16a   : > { %v5552_v45 = vcombine.high %v1666_v40, %v1670_v41  ;;  %v1530_v46 = vld [vmem:[%s6794_s6 + $0x8c0] sm:$0xff]  ;;  %4452 = vmatprep.subr.bf16.mxu0 %v5424_v44  ;;  %v5551_v51 = vcombine.low %v1666_v40, %v1670_v41 }
 0x16b   : > { %v1534_v47 = vld [vmem:[%s6794_s6 + $0x8e0] sm:$0xff] }
 0x16c   : > { %v1658_v48 = vld [vmem:[%s6794_s6 + $0xcc0] sm:$0xff]  ;;  %v5416_v52 = vcombine.high %v1530_v46, %v1534_v47  ;;  %4493 = vmatprep.subr.bf16.mxu1 %v5552_v45  ;;  %v5415_v58 = vcombine.low %v1530_v46, %v1534_v47 }
 0x16d   : > { %v1662_v49 = vld [vmem:[%s6794_s6 + $0xce0] sm:$0xff]  ;;  %4453 = vmatpush1.bf16.msra.mxu0 %v5423_v50  ;;  %4494 = vmatpush1.bf16.msra.mxu1 %v5551_v51 }
 0x16e   : > { %v5544_v53 = vcombine.high %v1658_v48, %v1662_v49  ;;  %v1522_v54 = vld [vmem:[%s6794_s6 + $0x880] sm:$0xff]  ;;  %4454 = vmatprep.subr.bf16.mxu0 %v5416_v52  ;;  %v5543_v59 = vcombine.low %v1658_v48, %v1662_v49 }
 0x16f   : > { %v1526_v55 = vld [vmem:[%s6794_s6 + $0x8a0] sm:$0xff] }
 0x170   : > { %v1650_v56 = vld [vmem:[%s6794_s6 + $0xc80] sm:$0xff]  ;;  %v5408_v60 = vcombine.high %v1522_v54, %v1526_v55  ;;  %4495 = vmatprep.subr.bf16.mxu1 %v5544_v53  ;;  %v5407_v4 = vcombine.low %v1522_v54, %v1526_v55 }
 0x171   : > { %v1654_v57 = vld [vmem:[%s6794_s6 + $0xca0] sm:$0xff]  ;;  %4455 = vmatpush1.bf16.msra.mxu0 %v5415_v58  ;;  %4496 = vmatpush1.bf16.msra.mxu1 %v5543_v59 }
 0x172   : > { %v5536_v61 = vcombine.high %v1650_v56, %v1654_v57  ;;  %v1514_v62 = vld [vmem:[%s6794_s6 + $0x840] sm:$0xff]  ;;  %4456 = vmatprep.subr.bf16.mxu0 %v5408_v60  ;;  %v5535_v5 = vcombine.low %v1650_v56, %v1654_v57 }
 0x173   : > { %v1518_v63 = vld [vmem:[%s6794_s6 + $0x860] sm:$0xff] }
 0x174   : > { %v1642_v0 = vld [vmem:[%s6794_s6 + $0xc40] sm:$0xff]  ;;  %v5400_v6 = vcombine.high %v1514_v62, %v1518_v63  ;;  %4497 = vmatprep.subr.bf16.mxu1 %v5536_v61  ;;  %v5399_v12 = vcombine.low %v1514_v62, %v1518_v63 }
 0x175   : > { %v1646_v1 = vld [vmem:[%s6794_s6 + $0xc60] sm:$0xff]  ;;  %4457 = vmatpush1.bf16.msra.mxu0 %v5407_v4  ;;  %4498 = vmatpush1.bf16.msra.mxu1 %v5535_v5 }
 0x176   : > { %v5528_v7 = vcombine.high %v1642_v0, %v1646_v1  ;;  %v1506_v8 = vld [vmem:[%s6794_s6 + $0x800] sm:$0xff]  ;;  %4458 = vmatprep.subr.bf16.mxu0 %v5400_v6  ;;  %v5527_v13 = vcombine.low %v1642_v0, %v1646_v1 }
 0x177   : > { %v1510_v9 = vld [vmem:[%s6794_s6 + $0x820] sm:$0xff] }
 0x178   : > { %v1634_v10 = vld [vmem:[%s6794_s6 + $0xc00] sm:$0xff]  ;;  %v5392_v14 = vcombine.high %v1506_v8, %v1510_v9  ;;  %4499 = vmatprep.subr.bf16.mxu1 %v5528_v7  ;;  %v5391_v21 = vcombine.low %v1506_v8, %v1510_v9 }
 0x179   : > { %v1638_v11 = vld [vmem:[%s6794_s6 + $0xc20] sm:$0xff]  ;;  %4459 = vmatpush1.bf16.msra.mxu0 %v5399_v12  ;;  %4500 = vmatpush1.bf16.msra.mxu1 %v5527_v13 }
 0x17a   : > { %v5520_v15 = vcombine.high %v1634_v10, %v1638_v11  ;;  %v1626_v16 = vld [vmem:[%s6794_s6 + $0xbc0] sm:$0xff]  ;;  %4460 = vmatprep.subr.bf16.mxu0 %v5392_v14  ;;  %v5519_v23 = vcombine.low %v1634_v10, %v1638_v11 }
 0x17b   : > { %v1630_v17 = vld [vmem:[%s6794_s6 + $0xbe0] sm:$0xff] }
 0x17c   : > { %v1754_v19 = vld [vmem:[%s6794_s6 + $0xfc0] sm:$0xff]  ;;  %v5512_v24 = vcombine.high %v1626_v16, %v1630_v17  ;;  %4501 = vmatprep.subr.bf16.mxu1 %v5520_v15  ;;  %v5511_v31 = vcombine.low %v1626_v16, %v1630_v17 }
 0x17d   : > { %v1758_v20 = vld [vmem:[%s6794_s6 + $0xfe0] sm:$0xff]  ;;  %4461 = vmatpush1.bf16.msra.mxu0 %v5391_v21  ;;  %4502 = vmatpush1.bf16.msra.mxu1 %v5519_v23 }
 0x17e   : > { %v5640_v25 = vcombine.high %v1754_v19, %v1758_v20  ;;  %v1618_v26 = vld [vmem:[%s6794_s6 + $0xb80] sm:$0xff]  ;;  %4462 = vmatprep.subr.bf16.mxu0 %v5512_v24  ;;  %v5639_v32 = vcombine.low %v1754_v19, %v1758_v20  ;;  %v1307_v24 = vld [vmem:[%s6794_s6 + $0x1c8] sm:$0xff] }
 0x17f   : > { %v1622_v27 = vld [vmem:[%s6794_s6 + $0xba0] sm:$0xff] }
 0x180   : > { %v1746_v28 = vld [vmem:[%s6794_s6 + $0xf80] sm:$0xff]  ;;  %v5504_v34 = vcombine.high %v1618_v26, %v1622_v27  ;;  %4503 = vmatprep.subr.bf16.mxu1 %v5640_v25  ;;  %v5503_v40 = vcombine.low %v1618_v26, %v1622_v27  ;;  %v1311_v25 = vld [vmem:[%s6794_s6 + $0x1e8] sm:$0xff] }
 0x181   : > { %v1750_v29 = vld [vmem:[%s6794_s6 + $0xfa0] sm:$0xff]  ;;  %4463 = vmatpush2.bf16.msra.mxu0 %v5511_v31  ;;  %4504 = vmatpush2.bf16.msra.mxu1 %v5639_v32  ;;  %v1435_v26 = vld [vmem:[%s6794_s6 + $0x5c8] sm:$0xff]  ;;  %v1240_v32 = vld [vmem:[%s7447_s0 + $0x30] sm:$0xff] }
 0x182   : > { %v5632_v35 = vcombine.high %v1746_v28, %v1750_v29  ;;  %v1610_v36 = vld [vmem:[%s6794_s6 + $0xb40] sm:$0xff]  ;;  %4464 = vmatprep.subr.bf16.mxu0 %v5504_v34  ;;  %v5631_v41 = vcombine.low %v1746_v28, %v1750_v29  ;;  %v1439_v27 = vld [vmem:[%s6794_s6 + $0x5e8] sm:$0xff]  ;;  %v5194_v34 = vcombine.high %v1307_v24, %v1311_v25 }
 0x183   : > { %v1614_v37 = vld [vmem:[%s6794_s6 + $0xb60] sm:$0xff] }
 0x184   : > { %v1738_v38 = vld [vmem:[%s6794_s6 + $0xf40] sm:$0xff]  ;;  %v5496_v42 = vcombine.high %v1610_v36, %v1614_v37  ;;  %4505 = vmatprep.subr.bf16.mxu1 %v5632_v35  ;;  %v5495_v48 = vcombine.low %v1610_v36, %v1614_v37  ;;  %v5322_v35 = vcombine.high %v1435_v26, %v1439_v27  ;;  %v1299_v36 = vld [vmem:[%s6794_s6 + $0x188] sm:$0xff] }
 0x185   : > { %v1742_v39 = vld [vmem:[%s6794_s6 + $0xf60] sm:$0xff]  ;;  %4465 = vmatpush2.bf16.msra.mxu0 %v5503_v40  ;;  %4506 = vmatpush2.bf16.msra.mxu1 %v5631_v41  ;;  %v1303_v37 = vld [vmem:[%s6794_s6 + $0x1a8] sm:$0xff]  ;;  %v6966_v41 = vpack.c.bf16 %v1240_v32, %v1240_v32 }
 0x186   : > { %v5624_v43 = vcombine.high %v1738_v38, %v1742_v39  ;;  %v1602_v44 = vld [vmem:[%s6794_s6 + $0xb00] sm:$0xff]  ;;  %4466 = vmatprep.subr.bf16.mxu0 %v5496_v42  ;;  %v5623_v49 = vcombine.low %v1738_v38, %v1742_v39  ;;  %v1427_v39 = vld [vmem:[%s6794_s6 + $0x588] sm:$0xff]  ;;  %v5193_v42 = vcombine.low %v1307_v24, %v1311_v25 }
 0x187   : > { %v1606_v45 = vld [vmem:[%s6794_s6 + $0xb20] sm:$0xff]  ;;  %v1431_v40 = vld [vmem:[%s6794_s6 + $0x5a8] sm:$0xff] }
 0x188   : > { %v1730_v46 = vld [vmem:[%s6794_s6 + $0xf00] sm:$0xff]  ;;  %v5488_v50 = vcombine.high %v1602_v44, %v1606_v45  ;;  %4507 = vmatprep.subr.bf16.mxu1 %v5624_v43  ;;  %v5487_v56 = vcombine.low %v1602_v44, %v1606_v45  ;;  %v5321_v43 = vcombine.low %v1435_v26, %v1439_v27  ;;  %v5186_v44 = vcombine.high %v1299_v36, %v1303_v37  ;;  %v1251_v26 = vld [vmem:[%s6794_s6 + $0x8] sm:$0xff] }
 0x189   : > { %v1734_v47 = vld [vmem:[%s6794_s6 + $0xf20] sm:$0xff]  ;;  %4467 = vmatpush2.bf16.msra.mxu0 %v5495_v48  ;;  %4508 = vmatpush2.bf16.msra.mxu1 %v5623_v49  ;;  %v5314_v45 = vcombine.high %v1427_v39, %v1431_v40  ;;  %v1419_v48 = vld [vmem:[%s6794_s6 + $0x548] sm:$0xff] }
 0x18a   : > { %v5616_v51 = vcombine.high %v1730_v46, %v1734_v47  ;;  %v1594_v52 = vld [vmem:[%s6794_s6 + $0xac0] sm:$0xff]  ;;  %4468 = vmatprep.subr.bf16.mxu0 %v5488_v50  ;;  %v5615_v57 = vcombine.low %v1730_v46, %v1734_v47  ;;  %v1291_v46 = vld [vmem:[%s6794_s6 + $0x148] sm:$0xff]  ;;  %v5185_v50 = vcombine.low %v1299_v36, %v1303_v37 }
 0x18b   : > { %v1598_v53 = vld [vmem:[%s6794_s6 + $0xae0] sm:$0xff]  ;;  %v1295_v47 = vld [vmem:[%s6794_s6 + $0x168] sm:$0xff] }
 0x18c   : > { %v1722_v54 = vld [vmem:[%s6794_s6 + $0xec0] sm:$0xff]  ;;  %v5480_v58 = vcombine.high %v1594_v52, %v1598_v53  ;;  %4509 = vmatprep.subr.bf16.mxu1 %v5616_v51  ;;  %v5479_v0 = vcombine.low %v1594_v52, %v1598_v53  ;;  %v1423_v49 = vld [vmem:[%s6794_s6 + $0x568] sm:$0xff]  ;;  %v5313_v51 = vcombine.low %v1427_v39, %v1431_v40  ;;  %v5178_v52 = vcombine.high %v1291_v46, %v1295_v47 }
 0x18d   : > { %v1726_v55 = vld [vmem:[%s6794_s6 + $0xee0] sm:$0xff]  ;;  %4469 = vmatpush2.bf16.msra.mxu0 %v5487_v56  ;;  %4510 = vmatpush2.bf16.msra.mxu1 %v5615_v57  ;;  %v5306_v53 = vcombine.high %v1419_v48, %v1423_v49  ;;  %v1411_v56 = vld [vmem:[%s6794_s6 + $0x508] sm:$0xff] }
 0x18e   : > { %v5608_v59 = vcombine.high %v1722_v54, %v1726_v55  ;;  %v1586_v60 = vld [vmem:[%s6794_s6 + $0xa80] sm:$0xff]  ;;  %4470 = vmatprep.subr.bf16.mxu0 %v5480_v58  ;;  %v5607_v1 = vcombine.low %v1722_v54, %v1726_v55  ;;  %v1283_v54 = vld [vmem:[%s6794_s6 + $0x108] sm:$0xff]  ;;  %v5177_v58 = vcombine.low %v1291_v46, %v1295_v47 }
 0x18f   : > { %v1590_v61 = vld [vmem:[%s6794_s6 + $0xaa0] sm:$0xff]  ;;  %v1287_v55 = vld [vmem:[%s6794_s6 + $0x128] sm:$0xff] }
 0x190   : > { %v1714_v62 = vld [vmem:[%s6794_s6 + $0xe80] sm:$0xff]  ;;  %v5472_v4 = vcombine.high %v1586_v60, %v1590_v61  ;;  %4511 = vmatprep.subr.bf16.mxu1 %v5608_v59  ;;  %v5471_v10 = vcombine.low %v1586_v60, %v1590_v61  ;;  %v1415_v57 = vld [vmem:[%s6794_s6 + $0x528] sm:$0xff]  ;;  %v5305_v59 = vcombine.low %v1419_v48, %v1423_v49  ;;  %v5170_v60 = vcombine.high %v1283_v54, %v1287_v55 }
 0x191   : > { %v1718_v63 = vld [vmem:[%s6794_s6 + $0xea0] sm:$0xff]  ;;  %4471 = vmatpush2.bf16.msra.mxu0 %v5479_v0  ;;  %4512 = vmatpush2.bf16.msra.mxu1 %v5607_v1  ;;  %v5298_v61 = vcombine.high %v1411_v56, %v1415_v57  ;;  %v1403_v0 = vld [vmem:[%s6794_s6 + $0x4c8] sm:$0xff] }
 0x192   : > { %v5600_v5 = vcombine.high %v1714_v62, %v1718_v63  ;;  %v1578_v6 = vld [vmem:[%s6794_s6 + $0xa40] sm:$0xff]  ;;  %4472 = vmatprep.subr.bf16.mxu0 %v5472_v4  ;;  %v5599_v11 = vcombine.low %v1714_v62, %v1718_v63  ;;  %v1275_v62 = vld [vmem:[%s6794_s6 + $0xc8] sm:$0xff]  ;;  %v5169_v4 = vcombine.low %v1283_v54, %v1287_v55 }
 0x193   : > { %v1582_v7 = vld [vmem:[%s6794_s6 + $0xa60] sm:$0xff]  ;;  %v1279_v63 = vld [vmem:[%s6794_s6 + $0xe8] sm:$0xff] }
 0x194   : > { %v1706_v8 = vld [vmem:[%s6794_s6 + $0xe40] sm:$0xff]  ;;  %v5464_v12 = vcombine.high %v1578_v6, %v1582_v7  ;;  %4513 = vmatprep.subr.bf16.mxu1 %v5600_v5  ;;  %v5463_v19 = vcombine.low %v1578_v6, %v1582_v7  ;;  %v1407_v1 = vld [vmem:[%s6794_s6 + $0x4e8] sm:$0xff]  ;;  %v5297_v5 = vcombine.low %v1411_v56, %v1415_v57  ;;  %v5162_v6 = vcombine.high %v1275_v62, %v1279_v63 }
 0x195   : > { %v1710_v9 = vld [vmem:[%s6794_s6 + $0xe60] sm:$0xff]  ;;  %4473 = vmatpush2.bf16.msra.mxu0 %v5471_v10  ;;  %4514 = vmatpush2.bf16.msra.mxu1 %v5599_v11  ;;  %v5290_v7 = vcombine.high %v1403_v0, %v1407_v1  ;;  %v1395_v10 = vld [vmem:[%s6794_s6 + $0x488] sm:$0xff] }
 0x196   : > { %v5592_v13 = vcombine.high %v1706_v8, %v1710_v9  ;;  %v1570_v14 = vld [vmem:[%s6794_s6 + $0xa00] sm:$0xff]  ;;  %4474 = vmatprep.subr.bf16.mxu0 %v5464_v12  ;;  %v5591_v20 = vcombine.low %v1706_v8, %v1710_v9  ;;  %v1267_v8 = vld [vmem:[%s6794_s6 + $0x88] sm:$0xff]  ;;  %v5161_v12 = vcombine.low %v1275_v62, %v1279_v63 }
 0x197   : > { %v1574_v15 = vld [vmem:[%s6794_s6 + $0xa20] sm:$0xff]  ;;  %v1271_v9 = vld [vmem:[%s6794_s6 + $0xa8] sm:$0xff] }
 0x198   : > { %v1698_v16 = vld [vmem:[%s6794_s6 + $0xe00] sm:$0xff]  ;;  %v5456_v21 = vcombine.high %v1570_v14, %v1574_v15  ;;  %4515 = vmatprep.subr.bf16.mxu1 %v5592_v13  ;;  %v5455_v28 = vcombine.low %v1570_v14, %v1574_v15  ;;  %v1399_v11 = vld [vmem:[%s6794_s6 + $0x4a8] sm:$0xff]  ;;  %v5289_v13 = vcombine.low %v1403_v0, %v1407_v1  ;;  %v5154_v14 = vcombine.high %v1267_v8, %v1271_v9 }
 0x199   : > { %v1702_v17 = vld [vmem:[%s6794_s6 + $0xe20] sm:$0xff]  ;;  %4475 = vmatpush2.bf16.msra.mxu0 %v5463_v19  ;;  %4516 = vmatpush2.bf16.msra.mxu1 %v5591_v20  ;;  %v5282_v15 = vcombine.high %v1395_v10, %v1399_v11  ;;  %v1387_v19 = vld [vmem:[%s6794_s6 + $0x448] sm:$0xff] }
 0x19a   : > { %v5584_v23 = vcombine.high %v1698_v16, %v1702_v17  ;;  %v1238_v29 = vld [vmem:[%s7447_s0 + $0x20] sm:$0xff]  ;;  %4476 = vmatprep.subr.bf16.mxu0 %v5456_v21  ;;  %v5583_v31 = vcombine.low %v1698_v16, %v1702_v17  ;;  %v1259_v16 = vld [vmem:[%s6794_s6 + $0x48] sm:$0xff]  ;;  %v5153_v21 = vcombine.low %v1267_v8, %v1271_v9 }
 0x19b   : > { %v6962_v38 = vpack.c.bf16 %v1238_v29, %v1238_v29  ;;  %v1263_v17 = vld [vmem:[%s6794_s6 + $0x68] sm:$0xff] }
 0x19c   : > { %4517 = vmatprep.subr.bf16.mxu1 %v5584_v23  ;;  %v1391_v20 = vld [vmem:[%s6794_s6 + $0x468] sm:$0xff]  ;;  %v5281_v23 = vcombine.low %v1395_v10, %v1399_v11  ;;  %v5146_v24 = vcombine.high %v1259_v16, %v1263_v17 }
 0x19d   : > { %4477 = vmatpush2.bf16.msra.mxu0 %v5455_v28  ;;  %4518 = vmatpush2.bf16.msra.mxu1 %v5583_v31  ;;  %v5274_v25 = vcombine.high %v1387_v19, %v1391_v20  ;;  %v1255_v27 = vld [vmem:[%s6794_s6 + $0x28] sm:$0xff]  ;;  %v5145_v31 = vcombine.low %v1259_v16, %v1263_v17  ;;  %v5273_v32 = vcombine.low %v1387_v19, %v1391_v20 }
 0x19e   : > { %4528 = vmatprep.subr.bf16.mxu0 %v5194_v34  ;;  %4569 = vmatprep.subr.bf16.mxu1 %v5322_v35  ;;  %v1379_v28 = vld [vmem:[%s6794_s6 + $0x408] sm:$0xff]  ;;  %v5138_v34 = vcombine.high %v1251_v26, %v1255_v27 }
 0x19f   : > { %v1383_v29 = vld [vmem:[%s6794_s6 + $0x428] sm:$0xff] }
 0x1a0   : > { %4479 = vmatmul.mubr.bf16.vlgmr.msra.gmra.mxu0 %v6962_v38  ;;  %4520 = vmatmul.mubr.bf16.vlgmr.msra.gmra.mxu1 %v6966_v41  ;;  %v5266_v35 = vcombine.high %v1379_v28, %v1383_v29  ;;  %v1371_v36 = vld [vmem:[%s6794_s6 + $0x3c8] sm:$0xff] }
 0x1a1   : > { %4529 = vmatpush1.bf16.msra.mxu0 %v5193_v42  ;;  %4570 = vmatpush1.bf16.msra.mxu1 %v5321_v43  ;;  %v1375_v37 = vld [vmem:[%s6794_s6 + $0x3e8] sm:$0xff]  ;;  %v5137_v42 = vcombine.low %v1251_v26, %v1255_v27  ;;  %v5265_v43 = vcombine.low %v1379_v28, %v1383_v29 }
 0x1a2   : > { %4530 = vmatprep.subr.bf16.mxu0 %v5186_v44  ;;  %4571 = vmatprep.subr.bf16.mxu1 %v5314_v45  ;;  %v1499_v39 = vld [vmem:[%s6794_s6 + $0x7c8] sm:$0xff]  ;;  %v5258_v44 = vcombine.high %v1371_v36, %v1375_v37 }
 0x1a3   : > { %4560 = vmatprep.mubr.bf16.mxu0 %v6790_v2  ;;  %4601 = vmatprep.mubr.bf16.mxu1 %v6792_v3  ;;  %v1503_v40 = vld [vmem:[%s6794_s6 + $0x7e8] sm:$0xff] }
 0x1a4   : > { %v5386_v45 = vcombine.high %v1499_v39, %v1503_v40  ;;  %v1363_v46 = vld [vmem:[%s6794_s6 + $0x388] sm:$0xff] }
 0x1a5   : > { %4531 = vmatpush1.bf16.msra.mxu0 %v5185_v50  ;;  %4572 = vmatpush1.bf16.msra.mxu1 %v5313_v51  ;;  %v1367_v47 = vld [vmem:[%s6794_s6 + $0x3a8] sm:$0xff]  ;;  %v5257_v50 = vcombine.low %v1371_v36, %v1375_v37  ;;  %v5385_v51 = vcombine.low %v1499_v39, %v1503_v40 }
 0x1a6   : > { %4532 = vmatprep.subr.bf16.mxu0 %v5178_v52  ;;  %4573 = vmatprep.subr.bf16.mxu1 %v5306_v53  ;;  %v1491_v48 = vld [vmem:[%s6794_s6 + $0x788] sm:$0xff]  ;;  %v5250_v52 = vcombine.high %v1363_v46, %v1367_v47 }
 0x1a7   : > { %v1495_v49 = vld [vmem:[%s6794_s6 + $0x7a8] sm:$0xff] }
 0x1a8   : > { %v5378_v53 = vcombine.high %v1491_v48, %v1495_v49  ;;  %v1355_v54 = vld [vmem:[%s6794_s6 + $0x348] sm:$0xff] }
 0x1a9   : > { %4533 = vmatpush1.bf16.msra.mxu0 %v5177_v58  ;;  %4574 = vmatpush1.bf16.msra.mxu1 %v5305_v59  ;;  %v1359_v55 = vld [vmem:[%s6794_s6 + $0x368] sm:$0xff]  ;;  %v5249_v58 = vcombine.low %v1363_v46, %v1367_v47  ;;  %v5377_v59 = vcombine.low %v1491_v48, %v1495_v49 }
 0x1aa   : > { %4534 = vmatprep.subr.bf16.mxu0 %v5170_v60  ;;  %4575 = vmatprep.subr.bf16.mxu1 %v5298_v61  ;;  %v1483_v56 = vld [vmem:[%s6794_s6 + $0x748] sm:$0xff]  ;;  %v5242_v60 = vcombine.high %v1355_v54, %v1359_v55 }
 0x1ab   : > { %v1487_v57 = vld [vmem:[%s6794_s6 + $0x768] sm:$0xff] }
 0x1ac   : > { %v5370_v61 = vcombine.high %v1483_v56, %v1487_v57  ;;  %v1347_v62 = vld [vmem:[%s6794_s6 + $0x308] sm:$0xff] }
 0x1ad   : > { %4535 = vmatpush1.bf16.msra.mxu0 %v5169_v4  ;;  %4576 = vmatpush1.bf16.msra.mxu1 %v5297_v5  ;;  %v1351_v63 = vld [vmem:[%s6794_s6 + $0x328] sm:$0xff]  ;;  %v5241_v4 = vcombine.low %v1355_v54, %v1359_v55  ;;  %v5369_v5 = vcombine.low %v1483_v56, %v1487_v57 }
 0x1ae   : > { %4536 = vmatprep.subr.bf16.mxu0 %v5162_v6  ;;  %4577 = vmatprep.subr.bf16.mxu1 %v5290_v7  ;;  %v1475_v0 = vld [vmem:[%s6794_s6 + $0x708] sm:$0xff]  ;;  %v5234_v6 = vcombine.high %v1347_v62, %v1351_v63 }
 0x1af   : > { %v1479_v1 = vld [vmem:[%s6794_s6 + $0x728] sm:$0xff] }
 0x1b0   : > { %v5362_v7 = vcombine.high %v1475_v0, %v1479_v1  ;;  %v1339_v8 = vld [vmem:[%s6794_s6 + $0x2c8] sm:$0xff] }
 0x1b1   : > { %4537 = vmatpush1.bf16.msra.mxu0 %v5161_v12  ;;  %4578 = vmatpush1.bf16.msra.mxu1 %v5289_v13  ;;  %v1343_v9 = vld [vmem:[%s6794_s6 + $0x2e8] sm:$0xff]  ;;  %v5233_v12 = vcombine.low %v1347_v62, %v1351_v63  ;;  %v5361_v13 = vcombine.low %v1475_v0, %v1479_v1 }
 0x1b2   : > { %4538 = vmatprep.subr.bf16.mxu0 %v5154_v14  ;;  %4579 = vmatprep.subr.bf16.mxu1 %v5282_v15  ;;  %v1467_v10 = vld [vmem:[%s6794_s6 + $0x6c8] sm:$0xff]  ;;  %v5226_v14 = vcombine.high %v1339_v8, %v1343_v9 }
 0x1b3   : > { %v1471_v11 = vld [vmem:[%s6794_s6 + $0x6e8] sm:$0xff] }
 0x1b4   : > { %v5354_v15 = vcombine.high %v1467_v10, %v1471_v11  ;;  %v1331_v16 = vld [vmem:[%s6794_s6 + $0x288] sm:$0xff] }
 0x1b5   : > { %4539 = vmatpush1.bf16.msra.mxu0 %v5153_v21  ;;  %4580 = vmatpush1.bf16.msra.mxu1 %v5281_v23  ;;  %v1335_v17 = vld [vmem:[%s6794_s6 + $0x2a8] sm:$0xff]  ;;  %v5225_v21 = vcombine.low %v1339_v8, %v1343_v9  ;;  %v5353_v23 = vcombine.low %v1467_v10, %v1471_v11 }
 0x1b6   : > { %4540 = vmatprep.subr.bf16.mxu0 %v5146_v24  ;;  %4581 = vmatprep.subr.bf16.mxu1 %v5274_v25  ;;  %v1459_v19 = vld [vmem:[%s6794_s6 + $0x688] sm:$0xff]  ;;  %v5218_v24 = vcombine.high %v1331_v16, %v1335_v17 }
 0x1b7   : > { %v1463_v20 = vld [vmem:[%s6794_s6 + $0x6a8] sm:$0xff] }
 0x1b8   : > { %v5346_v25 = vcombine.high %v1459_v19, %v1463_v20  ;;  %v1323_v26 = vld [vmem:[%s6794_s6 + $0x248] sm:$0xff] }
 0x1b9   : > { %4541 = vmatpush1.bf16.msra.mxu0 %v5145_v31  ;;  %4582 = vmatpush1.bf16.msra.mxu1 %v5273_v32  ;;  %v1327_v27 = vld [vmem:[%s6794_s6 + $0x268] sm:$0xff]  ;;  %v5217_v31 = vcombine.low %v1331_v16, %v1335_v17  ;;  %v5345_v32 = vcombine.low %v1459_v19, %v1463_v20 }
 0x1ba   : > { %4542 = vmatprep.subr.bf16.mxu0 %v5138_v34  ;;  %4583 = vmatprep.subr.bf16.mxu1 %v5266_v35  ;;  %v1451_v28 = vld [vmem:[%s6794_s6 + $0x648] sm:$0xff]  ;;  %v5210_v34 = vcombine.high %v1323_v26, %v1327_v27 }
 0x1bb   : > { %v1455_v29 = vld [vmem:[%s6794_s6 + $0x668] sm:$0xff] }
 0x1bc   : > { %v5338_v35 = vcombine.high %v1451_v28, %v1455_v29  ;;  %v1315_v36 = vld [vmem:[%s6794_s6 + $0x208] sm:$0xff] }
 0x1bd   : > { %4543 = vmatpush1.bf16.msra.mxu0 %v5137_v42  ;;  %4584 = vmatpush1.bf16.msra.mxu1 %v5265_v43  ;;  %v1319_v37 = vld [vmem:[%s6794_s6 + $0x228] sm:$0xff]  ;;  %v5209_v42 = vcombine.low %v1323_v26, %v1327_v27  ;;  %v5337_v43 = vcombine.low %v1451_v28, %v1455_v29 }
 0x1be   : > { %4544 = vmatprep.subr.bf16.mxu0 %v5258_v44  ;;  %4585 = vmatprep.subr.bf16.mxu1 %v5386_v45  ;;  %v1443_v39 = vld [vmem:[%s6794_s6 + $0x608] sm:$0xff]  ;;  %v5202_v44 = vcombine.high %v1315_v36, %v1319_v37 }
 0x1bf   : > { %v1447_v40 = vld [vmem:[%s6794_s6 + $0x628] sm:$0xff] }
 0x1c0   : > { %v5330_v45 = vcombine.high %v1443_v39, %v1447_v40  ;;  %v1563_v46 = vld [vmem:[%s6794_s6 + $0x9c8] sm:$0xff] }
 0x1c1   : > { %4545 = vmatpush2.bf16.msra.mxu0 %v5257_v50  ;;  %4586 = vmatpush2.bf16.msra.mxu1 %v5385_v51  ;;  %v1567_v47 = vld [vmem:[%s6794_s6 + $0x9e8] sm:$0xff]  ;;  %v5201_v50 = vcombine.low %v1315_v36, %v1319_v37  ;;  %v5329_v51 = vcombine.low %v1443_v39, %v1447_v40 }
 0x1c2   : > { %4546 = vmatprep.subr.bf16.mxu0 %v5250_v52  ;;  %4587 = vmatprep.subr.bf16.mxu1 %v5378_v53  ;;  %v1691_v48 = vld [vmem:[%s6794_s6 + $0xdc8] sm:$0xff]  ;;  %v5450_v52 = vcombine.high %v1563_v46, %v1567_v47 }
 0x1c3   : > { %v1695_v49 = vld [vmem:[%s6794_s6 + $0xde8] sm:$0xff] }
 0x1c4   : > { %v5578_v53 = vcombine.high %v1691_v48, %v1695_v49  ;;  %v1555_v54 = vld [vmem:[%s6794_s6 + $0x988] sm:$0xff] }
 0x1c5   : > { %4547 = vmatpush2.bf16.msra.mxu0 %v5249_v58  ;;  %4588 = vmatpush2.bf16.msra.mxu1 %v5377_v59  ;;  %v1559_v55 = vld [vmem:[%s6794_s6 + $0x9a8] sm:$0xff]  ;;  %v5449_v58 = vcombine.low %v1563_v46, %v1567_v47  ;;  %v5577_v59 = vcombine.low %v1691_v48, %v1695_v49 }
 0x1c6   : > { %4548 = vmatprep.subr.bf16.mxu0 %v5242_v60  ;;  %4589 = vmatprep.subr.bf16.mxu1 %v5370_v61  ;;  %v1683_v56 = vld [vmem:[%s6794_s6 + $0xd88] sm:$0xff]  ;;  %v5442_v60 = vcombine.high %v1555_v54, %v1559_v55 }
 0x1c7   : > { %v1687_v57 = vld [vmem:[%s6794_s6 + $0xda8] sm:$0xff] }
 0x1c8   : > { %v5570_v61 = vcombine.high %v1683_v56, %v1687_v57  ;;  %v1547_v62 = vld [vmem:[%s6794_s6 + $0x948] sm:$0xff] }
 0x1c9   : > { %4549 = vmatpush2.bf16.msra.mxu0 %v5241_v4  ;;  %4590 = vmatpush2.bf16.msra.mxu1 %v5369_v5  ;;  %v1551_v63 = vld [vmem:[%s6794_s6 + $0x968] sm:$0xff]  ;;  %v5441_v4 = vcombine.low %v1555_v54, %v1559_v55  ;;  %v5569_v5 = vcombine.low %v1683_v56, %v1687_v57 }
 0x1ca   : > { %4550 = vmatprep.subr.bf16.mxu0 %v5234_v6  ;;  %4591 = vmatprep.subr.bf16.mxu1 %v5362_v7  ;;  %v1675_v0 = vld [vmem:[%s6794_s6 + $0xd48] sm:$0xff]  ;;  %v5434_v6 = vcombine.high %v1547_v62, %v1551_v63 }
 0x1cb   : > { %v1679_v1 = vld [vmem:[%s6794_s6 + $0xd68] sm:$0xff] }
 0x1cc   : > { %v5562_v7 = vcombine.high %v1675_v0, %v1679_v1  ;;  %v1539_v8 = vld [vmem:[%s6794_s6 + $0x908] sm:$0xff] }
 0x1cd   : > { %4551 = vmatpush2.bf16.msra.mxu0 %v5233_v12  ;;  %4592 = vmatpush2.bf16.msra.mxu1 %v5361_v13  ;;  %v1543_v9 = vld [vmem:[%s6794_s6 + $0x928] sm:$0xff]  ;;  %v5433_v12 = vcombine.low %v1547_v62, %v1551_v63  ;;  %v5561_v13 = vcombine.low %v1675_v0, %v1679_v1 }
 0x1ce   : > { %4552 = vmatprep.subr.bf16.mxu0 %v5226_v14  ;;  %4593 = vmatprep.subr.bf16.mxu1 %v5354_v15  ;;  %v1667_v10 = vld [vmem:[%s6794_s6 + $0xd08] sm:$0xff]  ;;  %v5426_v14 = vcombine.high %v1539_v8, %v1543_v9 }
 0x1cf   : > { %v1671_v11 = vld [vmem:[%s6794_s6 + $0xd28] sm:$0xff] }
 0x1d0   : > { %v5554_v15 = vcombine.high %v1667_v10, %v1671_v11  ;;  %v1531_v16 = vld [vmem:[%s6794_s6 + $0x8c8] sm:$0xff] }
 0x1d1   : > { %4553 = vmatpush2.bf16.msra.mxu0 %v5225_v21  ;;  %4594 = vmatpush2.bf16.msra.mxu1 %v5353_v23  ;;  %v1535_v17 = vld [vmem:[%s6794_s6 + $0x8e8] sm:$0xff]  ;;  %v5425_v21 = vcombine.low %v1539_v8, %v1543_v9  ;;  %v5553_v23 = vcombine.low %v1667_v10, %v1671_v11 }
 0x1d2   : > { %4554 = vmatprep.subr.bf16.mxu0 %v5218_v24  ;;  %4595 = vmatprep.subr.bf16.mxu1 %v5346_v25  ;;  %v1659_v19 = vld [vmem:[%s6794_s6 + $0xcc8] sm:$0xff]  ;;  %v5418_v24 = vcombine.high %v1531_v16, %v1535_v17 }
 0x1d3   : > { %v1663_v20 = vld [vmem:[%s6794_s6 + $0xce8] sm:$0xff] }
 0x1d4   : > { %v5546_v25 = vcombine.high %v1659_v19, %v1663_v20  ;;  %v1523_v26 = vld [vmem:[%s6794_s6 + $0x888] sm:$0xff] }
 0x1d5   : > { %4555 = vmatpush2.bf16.msra.mxu0 %v5217_v31  ;;  %4596 = vmatpush2.bf16.msra.mxu1 %v5345_v32  ;;  %v1527_v27 = vld [vmem:[%s6794_s6 + $0x8a8] sm:$0xff]  ;;  %v5417_v31 = vcombine.low %v1531_v16, %v1535_v17  ;;  %v5545_v32 = vcombine.low %v1659_v19, %v1663_v20 }
 0x1d6   : > { %4556 = vmatprep.subr.bf16.mxu0 %v5210_v34  ;;  %4597 = vmatprep.subr.bf16.mxu1 %v5338_v35  ;;  %v1651_v28 = vld [vmem:[%s6794_s6 + $0xc88] sm:$0xff]  ;;  %v5410_v34 = vcombine.high %v1523_v26, %v1527_v27 }
 0x1d7   : > { %v1655_v29 = vld [vmem:[%s6794_s6 + $0xca8] sm:$0xff] }
 0x1d8   : > { %v5538_v35 = vcombine.high %v1651_v28, %v1655_v29  ;;  %v1515_v36 = vld [vmem:[%s6794_s6 + $0x848] sm:$0xff] }
 0x1d9   : > { %4557 = vmatpush2.bf16.msra.mxu0 %v5209_v42  ;;  %4598 = vmatpush2.bf16.msra.mxu1 %v5337_v43  ;;  %v1519_v37 = vld [vmem:[%s6794_s6 + $0x868] sm:$0xff]  ;;  %v5409_v42 = vcombine.low %v1523_v26, %v1527_v27  ;;  %v5537_v43 = vcombine.low %v1651_v28, %v1655_v29 }
 0x1da   : > { %4558 = vmatprep.subr.bf16.mxu0 %v5202_v44  ;;  %4599 = vmatprep.subr.bf16.mxu1 %v5330_v45  ;;  %v1643_v39 = vld [vmem:[%s6794_s6 + $0xc48] sm:$0xff]  ;;  %v5402_v44 = vcombine.high %v1515_v36, %v1519_v37 }
 0x1db   : > { %v1647_v40 = vld [vmem:[%s6794_s6 + $0xc68] sm:$0xff] }
 0x1dc   : > { %v5530_v45 = vcombine.high %v1643_v39, %v1647_v40  ;;  %v1507_v46 = vld [vmem:[%s6794_s6 + $0x808] sm:$0xff] }
 0x1dd   : > { %4559 = vmatpush2.bf16.msra.mxu0 %v5201_v50  ;;  %4600 = vmatpush2.bf16.msra.mxu1 %v5329_v51  ;;  %v1511_v47 = vld [vmem:[%s6794_s6 + $0x828] sm:$0xff]  ;;  %v5401_v50 = vcombine.low %v1515_v36, %v1519_v37  ;;  %v5529_v51 = vcombine.low %v1643_v39, %v1647_v40 }
 0x1de   : > { %4610 = vmatprep.subr.bf16.mxu0 %v5450_v52  ;;  %4651 = vmatprep.subr.bf16.mxu1 %v5578_v53  ;;  %v1635_v48 = vld [vmem:[%s6794_s6 + $0xc08] sm:$0xff]  ;;  %v5394_v52 = vcombine.high %v1507_v46, %v1511_v47 }
 0x1df   : > { %v1639_v49 = vld [vmem:[%s6794_s6 + $0xc28] sm:$0xff] }
 0x1e0   : > { %4561 = vmatmul.mubr.bf16.vlgmr.msra.gmra.mxu0 %v6874_v18  ;;  %4602 = vmatmul.mubr.bf16.vlgmr.msra.gmra.mxu1 %v6881_v22  ;;  %v5522_v53 = vcombine.high %v1635_v48, %v1639_v49  ;;  %v1627_v54 = vld [vmem:[%s6794_s6 + $0xbc8] sm:$0xff] }
 0x1e1   : > { %4611 = vmatpush1.bf16.msra.mxu0 %v5449_v58  ;;  %4652 = vmatpush1.bf16.msra.mxu1 %v5577_v59  ;;  %v1631_v55 = vld [vmem:[%s6794_s6 + $0xbe8] sm:$0xff]  ;;  %v5393_v58 = vcombine.low %v1507_v46, %v1511_v47  ;;  %v5521_v59 = vcombine.low %v1635_v48, %v1639_v49 }
 0x1e2   : > { %4612 = vmatprep.subr.bf16.mxu0 %v5442_v60  ;;  %4653 = vmatprep.subr.bf16.mxu1 %v5570_v61  ;;  %v1755_v56 = vld [vmem:[%s6794_s6 + $0xfc8] sm:$0xff]  ;;  %v5514_v60 = vcombine.high %v1627_v54, %v1631_v55 }
 0x1e3   : > { %4642 = vmatprep.mubr.bf16.mxu0 %v6888_v30  ;;  %4683 = vmatprep.mubr.bf16.mxu1 %v6893_v33  ;;  %v1759_v57 = vld [vmem:[%s6794_s6 + $0xfe8] sm:$0xff] }
 0x1e4   : > { %v5642_v61 = vcombine.high %v1755_v56, %v1759_v57  ;;  %v1619_v62 = vld [vmem:[%s6794_s6 + $0xb88] sm:$0xff] }
 0x1e5   : > { %4613 = vmatpush1.bf16.msra.mxu0 %v5441_v4  ;;  %4654 = vmatpush1.bf16.msra.mxu1 %v5569_v5  ;;  %v1623_v63 = vld [vmem:[%s6794_s6 + $0xba8] sm:$0xff]  ;;  %v5513_v4 = vcombine.low %v1627_v54, %v1631_v55  ;;  %v5641_v5 = vcombine.low %v1755_v56, %v1759_v57 }
 0x1e6   : > { %4614 = vmatprep.subr.bf16.mxu0 %v5434_v6  ;;  %4655 = vmatprep.subr.bf16.mxu1 %v5562_v7  ;;  %v1747_v0 = vld [vmem:[%s6794_s6 + $0xf88] sm:$0xff]  ;;  %v5506_v6 = vcombine.high %v1619_v62, %v1623_v63 }
 0x1e7   : > { %v1751_v1 = vld [vmem:[%s6794_s6 + $0xfa8] sm:$0xff] }
 0x1e8   : > { %v5634_v7 = vcombine.high %v1747_v0, %v1751_v1  ;;  %v1611_v8 = vld [vmem:[%s6794_s6 + $0xb48] sm:$0xff] }
 0x1e9   : > { %4615 = vmatpush1.bf16.msra.mxu0 %v5433_v12  ;;  %4656 = vmatpush1.bf16.msra.mxu1 %v5561_v13  ;;  %v1615_v9 = vld [vmem:[%s6794_s6 + $0xb68] sm:$0xff]  ;;  %v5505_v12 = vcombine.low %v1619_v62, %v1623_v63  ;;  %v5633_v13 = vcombine.low %v1747_v0, %v1751_v1  ;;  %v1308_v62 = vld [vmem:[%s6794_s6 + $0x1d0] sm:$0xff] }
 0x1ea   : > { %4616 = vmatprep.subr.bf16.mxu0 %v5426_v14  ;;  %4657 = vmatprep.subr.bf16.mxu1 %v5554_v15  ;;  %v1739_v10 = vld [vmem:[%s6794_s6 + $0xf48] sm:$0xff]  ;;  %v5498_v14 = vcombine.high %v1611_v8, %v1615_v9  ;;  %v1312_v63 = vld [vmem:[%s6794_s6 + $0x1f0] sm:$0xff] }
 0x1eb   : > { %v1743_v11 = vld [vmem:[%s6794_s6 + $0xf68] sm:$0xff]  ;;  %v1436_v0 = vld [vmem:[%s6794_s6 + $0x5d0] sm:$0xff] }
 0x1ec   : > { %v5626_v15 = vcombine.high %v1739_v10, %v1743_v11  ;;  %v1603_v16 = vld [vmem:[%s6794_s6 + $0xb08] sm:$0xff]  ;;  %v1440_v1 = vld [vmem:[%s6794_s6 + $0x5f0] sm:$0xff] }
 0x1ed   : > { %4617 = vmatpush1.bf16.msra.mxu0 %v5425_v21  ;;  %4658 = vmatpush1.bf16.msra.mxu1 %v5553_v23  ;;  %v1607_v17 = vld [vmem:[%s6794_s6 + $0xb28] sm:$0xff]  ;;  %v5497_v21 = vcombine.low %v1611_v8, %v1615_v9  ;;  %v5625_v23 = vcombine.low %v1739_v10, %v1743_v11  ;;  %v1300_v8 = vld [vmem:[%s6794_s6 + $0x190] sm:$0xff] }
 0x1ee   : > { %4618 = vmatprep.subr.bf16.mxu0 %v5418_v24  ;;  %4659 = vmatprep.subr.bf16.mxu1 %v5546_v25  ;;  %v1731_v19 = vld [vmem:[%s6794_s6 + $0xf08] sm:$0xff]  ;;  %v5490_v24 = vcombine.high %v1603_v16, %v1607_v17  ;;  %v1304_v9 = vld [vmem:[%s6794_s6 + $0x1b0] sm:$0xff] }
 0x1ef   : > { %v1735_v20 = vld [vmem:[%s6794_s6 + $0xf28] sm:$0xff]  ;;  %v1428_v10 = vld [vmem:[%s6794_s6 + $0x590] sm:$0xff] }
 0x1f0   : > { %v5618_v25 = vcombine.high %v1731_v19, %v1735_v20  ;;  %v1595_v26 = vld [vmem:[%s6794_s6 + $0xac8] sm:$0xff]  ;;  %v1432_v11 = vld [vmem:[%s6794_s6 + $0x5b0] sm:$0xff] }
 0x1f1   : > { %4619 = vmatpush1.bf16.msra.mxu0 %v5417_v31  ;;  %4660 = vmatpush1.bf16.msra.mxu1 %v5545_v32  ;;  %v1599_v27 = vld [vmem:[%s6794_s6 + $0xae8] sm:$0xff]  ;;  %v5489_v31 = vcombine.low %v1603_v16, %v1607_v17  ;;  %v5617_v32 = vcombine.low %v1731_v19, %v1735_v20  ;;  %v1292_v16 = vld [vmem:[%s6794_s6 + $0x150] sm:$0xff] }
 0x1f2   : > { %4620 = vmatprep.subr.bf16.mxu0 %v5410_v34  ;;  %4661 = vmatprep.subr.bf16.mxu1 %v5538_v35  ;;  %v1723_v28 = vld [vmem:[%s6794_s6 + $0xec8] sm:$0xff]  ;;  %v5482_v34 = vcombine.high %v1595_v26, %v1599_v27  ;;  %v1296_v17 = vld [vmem:[%s6794_s6 + $0x170] sm:$0xff] }
 0x1f3   : > { %v1727_v29 = vld [vmem:[%s6794_s6 + $0xee8] sm:$0xff]  ;;  %v1420_v20 = vld [vmem:[%s6794_s6 + $0x550] sm:$0xff] }
 0x1f4   : > { %v5610_v35 = vcombine.high %v1723_v28, %v1727_v29  ;;  %v1587_v36 = vld [vmem:[%s6794_s6 + $0xa88] sm:$0xff] }
 0x1f5   : > { %4621 = vmatpush1.bf16.msra.mxu0 %v5409_v42  ;;  %4662 = vmatpush1.bf16.msra.mxu1 %v5537_v43  ;;  %v1591_v37 = vld [vmem:[%s6794_s6 + $0xaa8] sm:$0xff]  ;;  %v5481_v42 = vcombine.low %v1595_v26, %v1599_v27  ;;  %v5609_v43 = vcombine.low %v1723_v28, %v1727_v29  ;;  %v5315_v26 = vcombine.low %v1428_v10, %v1432_v11 }
 0x1f6   : > { %4622 = vmatprep.subr.bf16.mxu0 %v5402_v44  ;;  %4663 = vmatprep.subr.bf16.mxu1 %v5530_v45  ;;  %v1715_v39 = vld [vmem:[%s6794_s6 + $0xe88] sm:$0xff]  ;;  %v5474_v44 = vcombine.high %v1587_v36, %v1591_v37  ;;  %v5180_v27 = vcombine.high %v1292_v16, %v1296_v17 }
 0x1f7   : > { %v1719_v40 = vld [vmem:[%s6794_s6 + $0xea8] sm:$0xff] }
 0x1f8   : > { %v5602_v45 = vcombine.high %v1715_v39, %v1719_v40  ;;  %v1579_v46 = vld [vmem:[%s6794_s6 + $0xa48] sm:$0xff] }
 0x1f9   : > { %4623 = vmatpush1.bf16.msra.mxu0 %v5401_v50  ;;  %4664 = vmatpush1.bf16.msra.mxu1 %v5529_v51  ;;  %v1583_v47 = vld [vmem:[%s6794_s6 + $0xa68] sm:$0xff]  ;;  %v5473_v50 = vcombine.low %v1587_v36, %v1591_v37  ;;  %v5601_v51 = vcombine.low %v1715_v39, %v1719_v40  ;;  %v1416_v36 = vld [vmem:[%s6794_s6 + $0x530] sm:$0xff]  ;;  %v5179_v39 = vcombine.low %v1292_v16, %v1296_v17 }
 0x1fa   : > { %4624 = vmatprep.subr.bf16.mxu0 %v5394_v52  ;;  %4665 = vmatprep.subr.bf16.mxu1 %v5522_v53  ;;  %v1707_v48 = vld [vmem:[%s6794_s6 + $0xe48] sm:$0xff]  ;;  %v5466_v52 = vcombine.high %v1579_v46, %v1583_v47  ;;  %v1372_v16 = vld [vmem:[%s6794_s6 + $0x3d0] sm:$0xff] }
 0x1fb   : > { %v1711_v49 = vld [vmem:[%s6794_s6 + $0xe68] sm:$0xff]  ;;  %v1376_v17 = vld [vmem:[%s6794_s6 + $0x3f0] sm:$0xff] }
 0x1fc   : > { %v5594_v53 = vcombine.high %v1707_v48, %v1711_v49  ;;  %v1571_v54 = vld [vmem:[%s6794_s6 + $0xa08] sm:$0xff] }
 0x1fd   : > { %4625 = vmatpush1.bf16.msra.mxu0 %v5393_v58  ;;  %4666 = vmatpush1.bf16.msra.mxu1 %v5521_v59  ;;  %v1575_v55 = vld [vmem:[%s6794_s6 + $0xa28] sm:$0xff]  ;;  %v5465_v58 = vcombine.low %v1579_v46, %v1583_v47  ;;  %v5593_v59 = vcombine.low %v1707_v48, %v1711_v49  ;;  %v1276_v46 = vld [vmem:[%s6794_s6 + $0xd0] sm:$0xff] }
 0x1fe   : > { %4626 = vmatprep.subr.bf16.mxu0 %v5514_v60  ;;  %4667 = vmatprep.subr.bf16.mxu1 %v5642_v61  ;;  %v1699_v56 = vld [vmem:[%s6794_s6 + $0xe08] sm:$0xff]  ;;  %v5458_v60 = vcombine.high %v1571_v54, %v1575_v55  ;;  %v1280_v47 = vld [vmem:[%s6794_s6 + $0xf0] sm:$0xff] }
 0x1ff   : > { %v1703_v57 = vld [vmem:[%s6794_s6 + $0xe28] sm:$0xff]  ;;  %v1404_v48 = vld [vmem:[%s6794_s6 + $0x4d0] sm:$0xff] }
 0x200   : > { %v5586_v61 = vcombine.high %v1699_v56, %v1703_v57  ;;  %v1408_v49 = vld [vmem:[%s6794_s6 + $0x4f0] sm:$0xff] }
 0x201   : > { %4627 = vmatpush2.bf16.msra.mxu0 %v5513_v4  ;;  %4668 = vmatpush2.bf16.msra.mxu1 %v5641_v5  ;;  %v5457_v4 = vcombine.low %v1571_v54, %v1575_v55  ;;  %v5585_v5 = vcombine.low %v1699_v56, %v1703_v57  ;;  %v1268_v54 = vld [vmem:[%s6794_s6 + $0x90] sm:$0xff] }
 0x202   : > { %4628 = vmatprep.subr.bf16.mxu0 %v5506_v6  ;;  %4669 = vmatprep.subr.bf16.mxu1 %v5634_v7  ;;  %v5196_v6 = vcombine.high %v1308_v62, %v1312_v63  ;;  %v5324_v7 = vcombine.high %v1436_v0, %v1440_v1  ;;  %v1272_v55 = vld [vmem:[%s6794_s6 + $0xb0] sm:$0xff] }
 0x203   : > { %v1396_v56 = vld [vmem:[%s6794_s6 + $0x490] sm:$0xff] }
 0x204   : > { %v1400_v57 = vld [vmem:[%s6794_s6 + $0x4b0] sm:$0xff] }
 0x205   : > { %4629 = vmatpush2.bf16.msra.mxu0 %v5505_v12  ;;  %4670 = vmatpush2.bf16.msra.mxu1 %v5633_v13  ;;  %v5195_v12 = vcombine.low %v1308_v62, %v1312_v63  ;;  %v5323_v13 = vcombine.low %v1436_v0, %v1440_v1  ;;  %v1260_v62 = vld [vmem:[%s6794_s6 + $0x50] sm:$0xff] }
 0x206   : > { %4630 = vmatprep.subr.bf16.mxu0 %v5498_v14  ;;  %4671 = vmatprep.subr.bf16.mxu1 %v5626_v15  ;;  %v5188_v14 = vcombine.high %v1300_v8, %v1304_v9  ;;  %v5316_v15 = vcombine.high %v1428_v10, %v1432_v11  ;;  %v1264_v63 = vld [vmem:[%s6794_s6 + $0x70] sm:$0xff] }
 0x207   : > { %v1388_v0 = vld [vmem:[%s6794_s6 + $0x450] sm:$0xff] }
 0x208   : > { %v1392_v1 = vld [vmem:[%s6794_s6 + $0x470] sm:$0xff] }
 0x209   : > { %4631 = vmatpush2.bf16.msra.mxu0 %v5497_v21  ;;  %4672 = vmatpush2.bf16.msra.mxu1 %v5625_v23  ;;  %v1424_v21 = vld [vmem:[%s6794_s6 + $0x570] sm:$0xff] }
 0x20a   : > { %4632 = vmatprep.subr.bf16.mxu0 %v5490_v24  ;;  %4673 = vmatprep.subr.bf16.mxu1 %v5618_v25  ;;  %v5187_v24 = vcombine.low %v1300_v8, %v1304_v9  ;;  %v5308_v29 = vcombine.high %v1420_v20, %v1424_v21  ;;  %v1252_v8 = vld [vmem:[%s6794_s6 + $0x10] sm:$0xff] }
 0x20b   : > { %v1256_v9 = vld [vmem:[%s6794_s6 + $0x30] sm:$0xff] }
 0x20c   : > { %v1380_v10 = vld [vmem:[%s6794_s6 + $0x410] sm:$0xff] }
 0x20d   : > { %4633 = vmatpush2.bf16.msra.mxu0 %v5489_v31  ;;  %4674 = vmatpush2.bf16.msra.mxu1 %v5617_v32  ;;  %v1284_v31 = vld [vmem:[%s6794_s6 + $0x110] sm:$0xff] }
 0x20e   : > { %4634 = vmatprep.subr.bf16.mxu0 %v5482_v34  ;;  %4675 = vmatprep.subr.bf16.mxu1 %v5610_v35  ;;  %v1288_v32 = vld [vmem:[%s6794_s6 + $0x130] sm:$0xff] }
 0x20f   : > { %v1412_v35 = vld [vmem:[%s6794_s6 + $0x510] sm:$0xff] }
 0x210   : > { %v1384_v11 = vld [vmem:[%s6794_s6 + $0x430] sm:$0xff] }
 0x211   : > { %4635 = vmatpush2.bf16.msra.mxu0 %v5481_v42  ;;  %4676 = vmatpush2.bf16.msra.mxu1 %v5609_v43  ;;  %v5307_v42 = vcombine.low %v1420_v20, %v1424_v21  ;;  %v5172_v43 = vcombine.high %v1284_v31, %v1288_v32  ;;  %v1500_v20 = vld [vmem:[%s6794_s6 + $0x7d0] sm:$0xff] }
 0x212   : > { %4636 = vmatprep.subr.bf16.mxu0 %v5474_v44  ;;  %4677 = vmatprep.subr.bf16.mxu1 %v5602_v45  ;;  %v5300_v45 = vcombine.high %v1412_v35, %v1416_v36  ;;  %v1504_v21 = vld [vmem:[%s6794_s6 + $0x7f0] sm:$0xff] }
 0x215   : > { %4637 = vmatpush2.bf16.msra.mxu0 %v5473_v50  ;;  %4678 = vmatpush2.bf16.msra.mxu1 %v5601_v51  ;;  %v5171_v50 = vcombine.low %v1284_v31, %v1288_v32  ;;  %v5299_v51 = vcombine.low %v1412_v35, %v1416_v36  ;;  %v1364_v31 = vld [vmem:[%s6794_s6 + $0x390] sm:$0xff]  ;;  %v5259_v36 = vcombine.low %v1372_v16, %v1376_v17 }
 0x216   : > { %4638 = vmatprep.subr.bf16.mxu0 %v5466_v52  ;;  %4679 = vmatprep.subr.bf16.mxu1 %v5594_v53  ;;  %v5164_v52 = vcombine.high %v1276_v46, %v1280_v47  ;;  %v5292_v53 = vcombine.high %v1404_v48, %v1408_v49  ;;  %v1368_v32 = vld [vmem:[%s6794_s6 + $0x3b0] sm:$0xff] }
 0x217   : > { %v1496_v35 = vld [vmem:[%s6794_s6 + $0x7b0] sm:$0xff] }
 0x219   : > { %4639 = vmatpush2.bf16.msra.mxu0 %v5465_v58  ;;  %4680 = vmatpush2.bf16.msra.mxu1 %v5593_v59  ;;  %v5163_v58 = vcombine.low %v1276_v46, %v1280_v47  ;;  %v5291_v59 = vcombine.low %v1404_v48, %v1408_v49  ;;  %v5251_v46 = vcombine.low %v1364_v31, %v1368_v32 }
 0x21a   : > { %4640 = vmatprep.subr.bf16.mxu0 %v5458_v60  ;;  %4681 = vmatprep.subr.bf16.mxu1 %v5586_v61  ;;  %v5156_v60 = vcombine.high %v1268_v54, %v1272_v55  ;;  %v5284_v61 = vcombine.high %v1396_v56, %v1400_v57 }
 0x21d   : > { %4641 = vmatpush2.bf16.msra.mxu0 %v5457_v4  ;;  %4682 = vmatpush2.bf16.msra.mxu1 %v5585_v5  ;;  %v5155_v4 = vcombine.low %v1268_v54, %v1272_v55  ;;  %v5283_v5 = vcombine.low %v1396_v56, %v1400_v57 }
 0x21e   : > { %4692 = vmatprep.subr.bf16.mxu0 %v5196_v6  ;;  %4733 = vmatprep.subr.bf16.mxu1 %v5324_v7  ;;  %v5148_v6 = vcombine.high %v1260_v62, %v1264_v63  ;;  %v5276_v7 = vcombine.high %v1388_v0, %v1392_v1 }
 0x21f   : > { %v7111_v23 = vpop.f32.mrf.mxu1 }
 0x220   : > { %v7106_v19 = vpop.f32.mrf.mxu0  ;;  %4643 = vmatmul.mubr.bf16.vlgmr.msra.gmra.mxu0 %v6962_v38  ;;  %4684 = vmatmul.mubr.bf16.vlgmr.msra.gmra.mxu1 %v6966_v41 }
 0x221   : > { %4693 = vmatpush1.bf16.msra.mxu0 %v5195_v12  ;;  %4734 = vmatpush1.bf16.msra.mxu1 %v5323_v13  ;;  %v7116_v28 = vpop.f32.mrf.mxu1  ;;  %v5147_v12 = vcombine.low %v1260_v62, %v1264_v63  ;;  %v5275_v13 = vcombine.low %v1388_v0, %v1392_v1  ;;  %v1764_v1 = vlaneseq }
 0x222   : > { %v7114_v25 = vpop.f32.mrf.mxu0  ;;  %4694 = vmatprep.subr.bf16.mxu0 %v5188_v14  ;;  %4735 = vmatprep.subr.bf16.mxu1 %v5316_v15  ;;  %v5140_v14 = vcombine.high %v1252_v8, %v1256_v9  ;;  %v5268_v15 = vcombine.high %v1380_v10, %v1384_v11 }
 0x223   : > { %4724 = vmatprep.mubr.bf16.mxu0 %v6790_v2  ;;  %4765 = vmatprep.mubr.bf16.mxu1 %v6792_v3  ;;  %v4443_v37 = vpop.f32.mrf.mxu1 }
 0x224   : > { %v4402_v34 = vpop.f32.mrf.mxu0  ;;  %v5387_v37 = vcombine.low %v1500_v20, %v1504_v21 }
 0x225   : > { %4695 = vmatpush1.bf16.msra.mxu0 %v5187_v24  ;;  %4736 = vmatpush1.bf16.msra.mxu1 %v5315_v26  ;;  %v4444_v44 = vpop.f32.mrf.mxu1  ;;  %v5139_v24 = vcombine.low %v1252_v8, %v1256_v9  ;;  %v5267_v26 = vcombine.low %v1380_v10, %v1384_v11  ;;  %v1492_v34 = vld [vmem:[%s6794_s6 + $0x790] sm:$0xff] }
 0x226   : > { %v4403_v40 = vpop.f32.mrf.mxu0  ;;  %4696 = vmatprep.subr.bf16.mxu0 %v5180_v27  ;;  %4737 = vmatprep.subr.bf16.mxu1 %v5308_v29  ;;  %v5260_v27 = vcombine.high %v1372_v16, %v1376_v17  ;;  %v5388_v29 = vcombine.high %v1500_v20, %v1504_v21  ;;  %v1484_v44 = vld [vmem:[%s6794_s6 + $0x750] sm:$0xff]  ;;  %v5379_v47 = vcombine.low %v1492_v34, %v1496_v35 }
 0x227   : > { %v5380_v40 = vcombine.high %v1492_v34, %v1496_v35  ;;  %v1464_v8 = vld [vmem:[%s6794_s6 + $0x6b0] sm:$0xff] }
 0x228   : > { %v1452_v16 = vld [vmem:[%s6794_s6 + $0x650] sm:$0xff] }
 0x229   : > { %4697 = vmatpush1.bf16.msra.mxu0 %v5179_v39  ;;  %4738 = vmatpush1.bf16.msra.mxu1 %v5307_v42  ;;  %v5252_v39 = vcombine.high %v1364_v31, %v1368_v32  ;;  %v1356_v42 = vld [vmem:[%s6794_s6 + $0x350] sm:$0xff]  ;;  %v7185_v32 = vld [vmem:[%s7179_s25] sm:$0xff] }
 0x22a   : > { %4698 = vmatprep.subr.bf16.mxu0 %v5172_v43  ;;  %4739 = vmatprep.subr.bf16.mxu1 %v5300_v45  ;;  %v1360_v43 = vld [vmem:[%s6794_s6 + $0x370] sm:$0xff] }
 0x22b   : > { %v1488_v45 = vld [vmem:[%s6794_s6 + $0x770] sm:$0xff]  ;;  %v5244_v48 = vcombine.high %v1356_v42, %v1360_v43  ;;  %v5243_v54 = vcombine.low %v1356_v42, %v1360_v43 }
 0x22c   : > { %v5372_v49 = vcombine.high %v1484_v44, %v1488_v45  ;;  %v5371_v55 = vcombine.low %v1484_v44, %v1488_v45  ;;  %v1456_v17 = vld [vmem:[%s6794_s6 + $0x670] sm:$0xff] }
 0x22d   : > { %4699 = vmatpush1.bf16.msra.mxu0 %v5171_v50  ;;  %4740 = vmatpush1.bf16.msra.mxu1 %v5299_v51  ;;  %v1348_v50 = vld [vmem:[%s6794_s6 + $0x310] sm:$0xff] }
 0x22e   : > { %4700 = vmatprep.subr.bf16.mxu0 %v5164_v52  ;;  %4741 = vmatprep.subr.bf16.mxu1 %v5292_v53  ;;  %v1352_v51 = vld [vmem:[%s6794_s6 + $0x330] sm:$0xff] }
 0x22f   : > { %v1476_v52 = vld [vmem:[%s6794_s6 + $0x710] sm:$0xff]  ;;  %v5236_v56 = vcombine.high %v1348_v50, %v1352_v51  ;;  %v5235_v62 = vcombine.low %v1348_v50, %v1352_v51 }
 0x230   : > { %v1480_v53 = vld [vmem:[%s6794_s6 + $0x730] sm:$0xff] }
 0x231   : > { %4701 = vmatpush1.bf16.msra.mxu0 %v5163_v58  ;;  %4742 = vmatpush1.bf16.msra.mxu1 %v5291_v59  ;;  %v5364_v57 = vcombine.high %v1476_v52, %v1480_v53  ;;  %v1340_v58 = vld [vmem:[%s6794_s6 + $0x2d0] sm:$0xff]  ;;  %v5363_v63 = vcombine.low %v1476_v52, %v1480_v53 }
 0x232   : > { %4702 = vmatprep.subr.bf16.mxu0 %v5156_v60  ;;  %4743 = vmatprep.subr.bf16.mxu1 %v5284_v61  ;;  %v1344_v59 = vld [vmem:[%s6794_s6 + $0x2f0] sm:$0xff] }
 0x233   : > { %v1468_v60 = vld [vmem:[%s6794_s6 + $0x6d0] sm:$0xff]  ;;  %v5228_v0 = vcombine.high %v1340_v58, %v1344_v59  ;;  %v5227_v9 = vcombine.low %v1340_v58, %v1344_v59 }
 0x234   : > { %v1472_v61 = vld [vmem:[%s6794_s6 + $0x6f0] sm:$0xff] }
 0x235   : > { %4703 = vmatpush1.bf16.msra.mxu0 %v5155_v4  ;;  %4744 = vmatpush1.bf16.msra.mxu1 %v5283_v5  ;;  %v5356_v4 = vcombine.high %v1468_v60, %v1472_v61  ;;  %v1332_v5 = vld [vmem:[%s6794_s6 + $0x290] sm:$0xff]  ;;  %v5355_v10 = vcombine.low %v1468_v60, %v1472_v61 }
 0x236   : > { %4704 = vmatprep.subr.bf16.mxu0 %v5148_v6  ;;  %4745 = vmatprep.subr.bf16.mxu1 %v5276_v7  ;;  %v1336_v6 = vld [vmem:[%s6794_s6 + $0x2b0] sm:$0xff] }
 0x237   : > { %v1460_v7 = vld [vmem:[%s6794_s6 + $0x690] sm:$0xff]  ;;  %v5220_v11 = vcombine.high %v1332_v5, %v1336_v6  ;;  %v5219_v20 = vcombine.low %v1332_v5, %v1336_v6 }
 0x238   : > { %v5347_v21 = vcombine.low %v1460_v7, %v1464_v8  ;;  %v1320_v31 = vld [vmem:[%s6794_s6 + $0x230] sm:$0xff] }
 0x239   : > { %4705 = vmatpush1.bf16.msra.mxu0 %v5147_v12  ;;  %4746 = vmatpush1.bf16.msra.mxu1 %v5275_v13  ;;  %v7169_v12 = vshrl.u32 %v1764_v1, 7  ;;  %v5348_v13 = vcombine.high %v1460_v7, %v1464_v8  ;;  %v1444_v34 = vld [vmem:[%s6794_s6 + $0x610] sm:$0xff] }
 0x23a   : > { %4706 = vmatprep.subr.bf16.mxu0 %v5140_v14  ;;  %4747 = vmatprep.subr.bf16.mxu1 %v5268_v15  ;;  %v1324_v14 = vld [vmem:[%s6794_s6 + $0x250] sm:$0xff] }
 0x23b   : > { %v1328_v15 = vld [vmem:[%s6794_s6 + $0x270] sm:$0xff] }
 0x23c   : > { %v1448_v35 = vld [vmem:[%s6794_s6 + $0x630] sm:$0xff] }
 0x23d   : > { %4707 = vmatpush1.bf16.msra.mxu0 %v5139_v24  ;;  %4748 = vmatpush1.bf16.msra.mxu1 %v5267_v26  ;;  %v5212_v24 = vcombine.high %v1324_v14, %v1328_v15  ;;  %v1766_v26 = vsub.s32 0, %v7169_v12  ;;  %v5332_v43 = vcombine.high %v1444_v34, %v1448_v35  ;;  %v1564_v44 = vld [vmem:[%s6794_s6 + $0x9d0] sm:$0xff]  ;;  %v5331_v50 = vcombine.low %v1444_v34, %v1448_v35 }
 0x23e   : > { %4708 = vmatprep.subr.bf16.mxu0 %v5260_v27  ;;  %4749 = vmatprep.subr.bf16.mxu1 %v5388_v29  ;;  %v5340_v27 = vcombine.high %v1452_v16, %v1456_v17  ;;  %v1316_v29 = vld [vmem:[%s6794_s6 + $0x210] sm:$0xff] }
 0x23f   : > { %v1767_v42 = vrot.slane %v7185_v32, %v1766_v26  ;;  %v1568_v45 = vld [vmem:[%s6794_s6 + $0x9f0] sm:$0xff] }
 0x240   : > { %v5452_v51 = vcombine.high %v1564_v44, %v1568_v45  ;;  %v5451_v59 = vcombine.low %v1564_v44, %v1568_v45  ;;  %v1680_v5 = vld [vmem:[%s6794_s6 + $0xd70] sm:$0xff] }
 0x241   : > { %4709 = vmatpush2.bf16.msra.mxu0 %v5259_v36  ;;  %4750 = vmatpush2.bf16.msra.mxu1 %v5387_v37  ;;  %v1770_v36 = vsub.s32 1, %v7169_v12  ;;  %v5211_v37 = vcombine.low %v1324_v14, %v1328_v15  ;;  %v4399_v52 = vadd.f32 %v7106_v19, %v1767_v42  ;;  %v1540_v15 = vld [vmem:[%s6794_s6 + $0x910] sm:$0xff] }
 0x242   : > { %4710 = vmatprep.subr.bf16.mxu0 %v5252_v39  ;;  %4751 = vmatprep.subr.bf16.mxu1 %v5380_v40  ;;  %v5339_v39 = vcombine.low %v1452_v16, %v1456_v17  ;;  %v5204_v40 = vcombine.high %v1316_v29, %v1320_v31  ;;  %v1544_v16 = vld [vmem:[%s6794_s6 + $0x930] sm:$0xff] }
 0x243   : > { %v4440_v19 = vadd.f32 %v7111_v23, %v4399_v52  ;;  %v5428_v35 = vcombine.high %v1540_v15, %v1544_v16  ;;  %v1532_v42 = vld [vmem:[%s6794_s6 + $0x8d0] sm:$0xff] }
 0x244   : > { %v1660_v44 = vld [vmem:[%s6794_s6 + $0xcd0] sm:$0xff] }
 0x245   : > { %4711 = vmatpush2.bf16.msra.mxu0 %v5251_v46  ;;  %4752 = vmatpush2.bf16.msra.mxu1 %v5379_v47  ;;  %v1692_v46 = vld [vmem:[%s6794_s6 + $0xdd0] sm:$0xff] }
 0x246   : > { %4712 = vmatprep.subr.bf16.mxu0 %v5244_v48  ;;  %4753 = vmatprep.subr.bf16.mxu1 %v5372_v49  ;;  %v1696_v47 = vld [vmem:[%s6794_s6 + $0xdf0] sm:$0xff]  ;;  %v1771_v48 = vrot.slane %v7185_v32, %v1770_v36  ;;  %v5203_v49 = vcombine.low %v1316_v29, %v1320_v31 }
 0x247   : > { %v5580_v53 = vcombine.high %v1692_v46, %v1696_v47  ;;  %v5579_v60 = vcombine.low %v1692_v46, %v1696_v47  ;;  %v1664_v45 = vld [vmem:[%s6794_s6 + $0xcf0] sm:$0xff]  ;;  %v5427_v47 = vcombine.low %v1540_v15, %v1544_v16 }
 0x248   : > { %v4401_v58 = vadd.f32 %v7114_v25, %v1771_v48  ;;  %v1528_v52 = vld [vmem:[%s6794_s6 + $0x8b0] sm:$0xff] }
 0x249   : > { %4713 = vmatpush2.bf16.msra.mxu0 %v5243_v54  ;;  %4754 = vmatpush2.bf16.msra.mxu1 %v5371_v55  ;;  %v1556_v54 = vld [vmem:[%s6794_s6 + $0x990] sm:$0xff] }
 0x24a   : > { %4714 = vmatprep.subr.bf16.mxu0 %v5236_v56  ;;  %4755 = vmatprep.subr.bf16.mxu1 %v5364_v57  ;;  %v1560_v55 = vld [vmem:[%s6794_s6 + $0x9b0] sm:$0xff]  ;;  %v4442_v25 = vadd.f32 %v7116_v28, %v4401_v58 }
 0x24b   : > { %v1684_v56 = vld [vmem:[%s6794_s6 + $0xd90] sm:$0xff]  ;;  %v5444_v61 = vcombine.high %v1556_v54, %v1560_v55  ;;  %v5443_v8 = vcombine.low %v1556_v54, %v1560_v55 }
 0x24c   : > { %v1688_v57 = vld [vmem:[%s6794_s6 + $0xdb0] sm:$0xff] }
 0x24d   : > { %4715 = vmatpush2.bf16.msra.mxu0 %v5235_v62  ;;  %4756 = vmatpush2.bf16.msra.mxu1 %v5363_v63  ;;  %v5572_v62 = vcombine.high %v1684_v56, %v1688_v57  ;;  %v1548_v63 = vld [vmem:[%s6794_s6 + $0x950] sm:$0xff] }
 0x24e   : > { %4716 = vmatprep.subr.bf16.mxu0 %v5228_v0  ;;  %4757 = vmatprep.subr.bf16.mxu1 %v5356_v4  ;;  %v1552_v0 = vld [vmem:[%s6794_s6 + $0x970] sm:$0xff] }
 0x24f   : > { %v1676_v4 = vld [vmem:[%s6794_s6 + $0xd50] sm:$0xff]  ;;  %v5435_v29 = vcombine.low %v1548_v63, %v1552_v0 }
 0x250   : > { %v5564_v28 = vcombine.high %v1676_v4, %v1680_v5  ;;  %v5563_v34 = vcombine.low %v1676_v4, %v1680_v5  ;;  %v1656_v54 = vld [vmem:[%s6794_s6 + $0xcb0] sm:$0xff] }
 0x251   : > { %4717 = vmatpush2.bf16.msra.mxu0 %v5227_v9  ;;  %4758 = vmatpush2.bf16.msra.mxu1 %v5355_v10  ;;  %v5571_v9 = vcombine.low %v1684_v56, %v1688_v57  ;;  %v5436_v10 = vcombine.high %v1548_v63, %v1552_v0  ;;  %v5547_v56 = vcombine.low %v1660_v44, %v1664_v45  ;;  %v1508_v4 = vld [vmem:[%s6794_s6 + $0x810] sm:$0xff] }
 0x252   : > { %4718 = vmatprep.subr.bf16.mxu0 %v5220_v11  ;;  %4759 = vmatprep.subr.bf16.mxu1 %v5348_v13  ;;  %v1512_v5 = vld [vmem:[%s6794_s6 + $0x830] sm:$0xff] }
 0x255   : > { %4719 = vmatpush2.bf16.msra.mxu0 %v5219_v20  ;;  %4760 = vmatpush2.bf16.msra.mxu1 %v5347_v21  ;;  %v1668_v20 = vld [vmem:[%s6794_s6 + $0xd10] sm:$0xff] }
 0x256   : > { %4720 = vmatprep.subr.bf16.mxu0 %v5212_v24  ;;  %4761 = vmatprep.subr.bf16.mxu1 %v5340_v27  ;;  %v1672_v21 = vld [vmem:[%s6794_s6 + $0xd30] sm:$0xff] }
 0x257   : > { %v5555_v48 = vcombine.low %v1668_v20, %v1672_v21 }
 0x259   : > { %4721 = vmatpush2.bf16.msra.mxu0 %v5211_v37  ;;  %4762 = vmatpush2.bf16.msra.mxu1 %v5339_v39 }
 0x25a   : > { %4722 = vmatprep.subr.bf16.mxu0 %v5204_v40  ;;  %4763 = vmatprep.subr.bf16.mxu1 %v5332_v43  ;;  %v5556_v40 = vcombine.high %v1668_v20, %v1672_v21  ;;  %v1536_v43 = vld [vmem:[%s6794_s6 + $0x8f0] sm:$0xff] }
 0x25b   : > { %v5419_v55 = vcombine.low %v1532_v42, %v1536_v43  ;;  %v1620_v20 = vld [vmem:[%s6794_s6 + $0xb90] sm:$0xff] }
 0x25c   : > { %v1624_v21 = vld [vmem:[%s6794_s6 + $0xbb0] sm:$0xff] }
 0x25d   : > { %4723 = vmatpush2.bf16.msra.mxu0 %v5203_v49  ;;  %4764 = vmatpush2.bf16.msra.mxu1 %v5331_v50  ;;  %v5420_v49 = vcombine.high %v1532_v42, %v1536_v43  ;;  %v5548_v50 = vcombine.high %v1660_v44, %v1664_v45  ;;  %v1604_v45 = vld [vmem:[%s6794_s6 + $0xb10] sm:$0xff] }
 0x25e   : > { %4774 = vmatprep.subr.bf16.mxu0 %v5452_v51  ;;  %4815 = vmatprep.subr.bf16.mxu1 %v5580_v53  ;;  %v1524_v51 = vld [vmem:[%s6794_s6 + $0x890] sm:$0xff] }
 0x25f   : > { %v1652_v53 = vld [vmem:[%s6794_s6 + $0xc90] sm:$0xff]  ;;  %v5412_v57 = vcombine.high %v1524_v51, %v1528_v52 }
 0x260   : > { %v4480_v1 = vpop.f32.mrf.mxu0  ;;  %4725 = vmatmul.mubr.bf16.vlgmr.msra.gmra.mxu0 %v6874_v18  ;;  %v4521_v7 = vpop.f32.mrf.mxu1  ;;  %4766 = vmatmul.mubr.bf16.vlgmr.msra.gmra.mxu1 %v6881_v22  ;;  %v5540_v58 = vcombine.high %v1652_v53, %v1656_v54  ;;  %v5539_v63 = vcombine.low %v1652_v53, %v1656_v54  ;;  %v1596_v53 = vld [vmem:[%s6794_s6 + $0xad0] sm:$0xff] }
 0x261   : > { %v4481_v6 = vadd.f32 %v4480_v1, %v4440_v19  ;;  %4775 = vmatpush1.bf16.msra.mxu0 %v5451_v59  ;;  %4816 = vmatpush1.bf16.msra.mxu1 %v5579_v60  ;;  %v1516_v59 = vld [vmem:[%s6794_s6 + $0x850] sm:$0xff] }
 0x262   : > { %v4482_v23 = vpop.f32.mrf.mxu0  ;;  %4776 = vmatprep.subr.bf16.mxu0 %v5444_v61  ;;  %v4523_v14 = vpop.f32.mrf.mxu1  ;;  %4817 = vmatprep.subr.bf16.mxu1 %v5572_v62  ;;  %v1520_v60 = vld [vmem:[%s6794_s6 + $0x870] sm:$0xff]  ;;  %v5411_v62 = vcombine.low %v1524_v51, %v1528_v52 }
 0x263   : > { %v4522_v11 = vadd.f32 %v4521_v7, %v4481_v6  ;;  %v4483_v13 = vadd.f32 %v4482_v23, %v4442_v25  ;;  %4806 = vmatprep.mubr.bf16.mxu0 %v6888_v30  ;;  %4847 = vmatprep.mubr.bf16.mxu1 %v6893_v33  ;;  %v1644_v61 = vld [vmem:[%s6794_s6 + $0xc50] sm:$0xff]  ;;  %v5404_v0 = vcombine.high %v1516_v59, %v1520_v60 }
 0x264   : > { %v4484_v17 = vpop.f32.mrf.mxu0  ;;  %v4525_v27 = vpop.f32.mrf.mxu1  ;;  %v1648_v19 = vld [vmem:[%s6794_s6 + $0xc70] sm:$0xff]  ;;  %v5403_v7 = vcombine.low %v1516_v59, %v1520_v60  ;;  %v5396_v23 = vcombine.high %v1508_v4, %v1512_v5 }
 0x265   : > { %vm5020_vm0 = vcmp.gt.f32.partialorder %v4522_v11, 0.0  ;;  %v5028_v24 = vmul.f32 0.2, %v4522_v11  ;;  %v4524_v26 = vadd.f32 %v4523_v14, %v4483_v13  ;;  %4777 = vmatpush1.bf16.msra.mxu0 %v5443_v8  ;;  %4818 = vmatpush1.bf16.msra.mxu1 %v5571_v9  ;;  %v5532_v1 = vcombine.high %v1644_v61, %v1648_v19  ;;  %v1636_v25 = vld [vmem:[%s6794_s6 + $0xc10] sm:$0xff] }
 0x266   : > { %v4485_v31 = vpop.f32.mrf.mxu0  ;;  %4778 = vmatprep.subr.bf16.mxu0 %v5436_v10  ;;  %v4526_v39 = vpop.f32.mrf.mxu1  ;;  %4819 = vmatprep.subr.bf16.mxu1 %v5564_v28  ;;  %v1640_v6 = vld [vmem:[%s6794_s6 + $0xc30] sm:$0xff]  ;;  %v5531_v8 = vcombine.low %v1644_v61, %v1648_v19  ;;  %v5395_v28 = vcombine.low %v1508_v4, %v1512_v5 }
 0x267   : > { %v5036_v36 = vsel %vm5020_vm0, %v4522_v11, %v5028_v24  ;;  %vm5021_vm1 = vcmp.gt.f32.partialorder %v4524_v26, 0.0  ;;  %v5029_v37 = vmul.f32 0.2, %v4524_v26  ;;  %v5524_v9 = vcombine.high %v1636_v25, %v1640_v6  ;;  %v1628_v10 = vld [vmem:[%s6794_s6 + $0xbd0] sm:$0xff] }
 0x268   : > { %5044 = vst [vmem:[%s7220_s29] sm:$0xff] %v5036_v36  ;;  %v1632_v11 = vld [vmem:[%s6794_s6 + $0xbf0] sm:$0xff]  ;;  %v5523_v15 = vcombine.low %v1636_v25, %v1640_v6  ;;  %v5508_v31 = vcombine.high %v1620_v20, %v1624_v21 }
 0x269   : > { %v5037_v46 = vsel %vm5021_vm1, %v4524_v26, %v5029_v37  ;;  %4779 = vmatpush1.bf16.msra.mxu0 %v5435_v29  ;;  %4820 = vmatpush1.bf16.msra.mxu1 %v5563_v34  ;;  %v1756_v13 = vld [vmem:[%s6794_s6 + $0xfd0] sm:$0xff]  ;;  %v5516_v16 = vcombine.high %v1628_v10, %v1632_v11  ;;  %v5515_v27 = vcombine.low %v1628_v10, %v1632_v11 }
 0x26a   : > { %5045 = vst [vmem:[%s7220_s29 + $0x8] sm:$0xff] %v5037_v46  ;;  %4780 = vmatprep.subr.bf16.mxu0 %v5428_v35  ;;  %4821 = vmatprep.subr.bf16.mxu1 %v5556_v40  ;;  %v1760_v14 = vld [vmem:[%s6794_s6 + $0xff0] sm:$0xff]  ;;  %v5507_v40 = vcombine.low %v1620_v20, %v1624_v21 }
 0x26b   : > { %v5644_v17 = vcombine.high %v1756_v13, %v1760_v14  ;;  %v1748_v24 = vld [vmem:[%s6794_s6 + $0xf90] sm:$0xff]  ;;  %v5643_v29 = vcombine.low %v1756_v13, %v1760_v14 }
 0x26c   : > { %v1752_v26 = vld [vmem:[%s6794_s6 + $0xfb0] sm:$0xff] }
 0x26d   : > { %4781 = vmatpush1.bf16.msra.mxu0 %v5427_v47  ;;  %4822 = vmatpush1.bf16.msra.mxu1 %v5555_v48  ;;  %v5636_v34 = vcombine.high %v1748_v24, %v1752_v26  ;;  %v1612_v35 = vld [vmem:[%s6794_s6 + $0xb50] sm:$0xff]  ;;  %v5635_v42 = vcombine.low %v1748_v24, %v1752_v26  ;;  %v1309_v24 = vld [vmem:[%s6794_s6 + $0x1d8] sm:$0xff] }
 0x26e   : > { %4782 = vmatprep.subr.bf16.mxu0 %v5420_v49  ;;  %4823 = vmatprep.subr.bf16.mxu1 %v5548_v50  ;;  %v1616_v36 = vld [vmem:[%s6794_s6 + $0xb70] sm:$0xff]  ;;  %v1313_v26 = vld [vmem:[%s6794_s6 + $0x1f8] sm:$0xff] }
 0x26f   : > { %v1740_v37 = vld [vmem:[%s6794_s6 + $0xf50] sm:$0xff]  ;;  %v5500_v43 = vcombine.high %v1612_v35, %v1616_v36  ;;  %v5499_v49 = vcombine.low %v1612_v35, %v1616_v36  ;;  %v5198_v35 = vcombine.high %v1309_v24, %v1313_v26 }
 0x270   : > { %v1744_v39 = vld [vmem:[%s6794_s6 + $0xf70] sm:$0xff] }
 0x271   : > { %4783 = vmatpush1.bf16.msra.mxu0 %v5419_v55  ;;  %4824 = vmatpush1.bf16.msra.mxu1 %v5547_v56  ;;  %v5628_v44 = vcombine.high %v1740_v37, %v1744_v39  ;;  %v1608_v46 = vld [vmem:[%s6794_s6 + $0xb30] sm:$0xff]  ;;  %v5627_v50 = vcombine.low %v1740_v37, %v1744_v39  ;;  %v1301_v37 = vld [vmem:[%s6794_s6 + $0x198] sm:$0xff] }
 0x272   : > { %4784 = vmatprep.subr.bf16.mxu0 %v5412_v57  ;;  %4825 = vmatprep.subr.bf16.mxu1 %v5540_v58  ;;  %v1732_v47 = vld [vmem:[%s6794_s6 + $0xf10] sm:$0xff]  ;;  %v5492_v51 = vcombine.high %v1604_v45, %v1608_v46  ;;  %v5491_v57 = vcombine.low %v1604_v45, %v1608_v46  ;;  %v1305_v39 = vld [vmem:[%s6794_s6 + $0x1b8] sm:$0xff] }
 0x273   : > { %v1736_v48 = vld [vmem:[%s6794_s6 + $0xf30] sm:$0xff]  ;;  %v5190_v45 = vcombine.high %v1301_v37, %v1305_v39 }
 0x274   : > { %v5620_v52 = vcombine.high %v1732_v47, %v1736_v48  ;;  %v1600_v54 = vld [vmem:[%s6794_s6 + $0xaf0] sm:$0xff]  ;;  %v5619_v58 = vcombine.low %v1732_v47, %v1736_v48  ;;  %v1293_v47 = vld [vmem:[%s6794_s6 + $0x158] sm:$0xff] }
 0x275   : > { %4785 = vmatpush1.bf16.msra.mxu0 %v5411_v62  ;;  %4826 = vmatpush1.bf16.msra.mxu1 %v5539_v63  ;;  %v1724_v55 = vld [vmem:[%s6794_s6 + $0xed0] sm:$0xff]  ;;  %v5484_v59 = vcombine.high %v1596_v53, %v1600_v54  ;;  %v1297_v48 = vld [vmem:[%s6794_s6 + $0x178] sm:$0xff] }
 0x276   : > { %4786 = vmatprep.subr.bf16.mxu0 %v5404_v0  ;;  %4827 = vmatprep.subr.bf16.mxu1 %v5532_v1  ;;  %v1728_v56 = vld [vmem:[%s6794_s6 + $0xef0] sm:$0xff]  ;;  %v5483_v0 = vcombine.low %v1596_v53, %v1600_v54  ;;  %v5189_v53 = vcombine.low %v1301_v37, %v1305_v39  ;;  %v1253_v37 = vld [vmem:[%s6794_s6 + $0x18] sm:$0xff] }
 0x277   : > { %v5612_v60 = vcombine.high %v1724_v55, %v1728_v56  ;;  %v1588_v61 = vld [vmem:[%s6794_s6 + $0xa90] sm:$0xff]  ;;  %v5611_v1 = vcombine.low %v1724_v55, %v1728_v56  ;;  %v5182_v56 = vcombine.high %v1293_v47, %v1297_v48  ;;  %v1257_v39 = vld [vmem:[%s6794_s6 + $0x38] sm:$0xff] }
 0x278   : > { %v1592_v19 = vld [vmem:[%s6794_s6 + $0xab0] sm:$0xff] }
 0x279   : > { %4787 = vmatpush1.bf16.msra.mxu0 %v5403_v7  ;;  %4828 = vmatpush1.bf16.msra.mxu1 %v5531_v8  ;;  %v1716_v62 = vld [vmem:[%s6794_s6 + $0xe90] sm:$0xff]  ;;  %v5476_v4 = vcombine.high %v1588_v61, %v1592_v19 }
 0x27a   : > { %4788 = vmatprep.subr.bf16.mxu0 %v5396_v23  ;;  %4829 = vmatprep.subr.bf16.mxu1 %v5524_v9  ;;  %v1720_v63 = vld [vmem:[%s6794_s6 + $0xeb0] sm:$0xff]  ;;  %v5475_v23 = vcombine.low %v1588_v61, %v1592_v19  ;;  %v1413_v19 = vld [vmem:[%s6794_s6 + $0x518] sm:$0xff] }
 0x27b   : > { %v5604_v5 = vcombine.high %v1716_v62, %v1720_v63  ;;  %v1580_v25 = vld [vmem:[%s6794_s6 + $0xa50] sm:$0xff]  ;;  %v5603_v9 = vcombine.low %v1716_v62, %v1720_v63  ;;  %v1417_v62 = vld [vmem:[%s6794_s6 + $0x538] sm:$0xff] }
 0x27c   : > { %v1584_v6 = vld [vmem:[%s6794_s6 + $0xa70] sm:$0xff] }
 0x27d   : > { %4789 = vmatpush1.bf16.msra.mxu0 %v5395_v28  ;;  %4830 = vmatpush1.bf16.msra.mxu1 %v5523_v15  ;;  %v1708_v7 = vld [vmem:[%s6794_s6 + $0xe50] sm:$0xff]  ;;  %v5468_v10 = vcombine.high %v1580_v25, %v1584_v6 }
 0x27e   : > { %4790 = vmatprep.subr.bf16.mxu0 %v5516_v16  ;;  %4831 = vmatprep.subr.bf16.mxu1 %v5644_v17  ;;  %v1712_v8 = vld [vmem:[%s6794_s6 + $0xe70] sm:$0xff]  ;;  %v5467_v16 = vcombine.low %v1580_v25, %v1584_v6  ;;  %v1277_v6 = vld [vmem:[%s6794_s6 + $0xd8] sm:$0xff] }
 0x27f   : > { %v5596_v11 = vcombine.high %v1708_v7, %v1712_v8  ;;  %v1572_v13 = vld [vmem:[%s6794_s6 + $0xa10] sm:$0xff]  ;;  %v5595_v17 = vcombine.low %v1708_v7, %v1712_v8  ;;  %v1281_v7 = vld [vmem:[%s6794_s6 + $0xf8] sm:$0xff] }
 0x280   : > { %v1576_v14 = vld [vmem:[%s6794_s6 + $0xa30] sm:$0xff]  ;;  %v1405_v8 = vld [vmem:[%s6794_s6 + $0x4d8] sm:$0xff] }
 0x281   : > { %4791 = vmatpush2.bf16.msra.mxu0 %v5515_v27  ;;  %4832 = vmatpush2.bf16.msra.mxu1 %v5643_v29  ;;  %v1700_v28 = vld [vmem:[%s6794_s6 + $0xe10] sm:$0xff]  ;;  %v5460_v20 = vcombine.high %v1572_v13, %v1576_v14  ;;  %v1437_v27 = vld [vmem:[%s6794_s6 + $0x5d8] sm:$0xff] }
 0x282   : > { %4792 = vmatprep.subr.bf16.mxu0 %v5508_v31  ;;  %4833 = vmatprep.subr.bf16.mxu1 %v5636_v34  ;;  %v1704_v15 = vld [vmem:[%s6794_s6 + $0xe30] sm:$0xff]  ;;  %v1441_v29 = vld [vmem:[%s6794_s6 + $0x5f8] sm:$0xff]  ;;  %v5459_v31 = vcombine.low %v1572_v13, %v1576_v14 }
 0x283   : > { %v5588_v21 = vcombine.high %v1700_v28, %v1704_v15  ;;  %v5587_v34 = vcombine.low %v1700_v28, %v1704_v15  ;;  %v5326_v36 = vcombine.high %v1437_v27, %v1441_v29  ;;  %v1269_v13 = vld [vmem:[%s6794_s6 + $0x98] sm:$0xff] }
 0x284   : > { %v1273_v14 = vld [vmem:[%s6794_s6 + $0xb8] sm:$0xff] }
 0x285   : > { %4793 = vmatpush2.bf16.msra.mxu0 %v5507_v40  ;;  %4834 = vmatpush2.bf16.msra.mxu1 %v5635_v42  ;;  %v1429_v40 = vld [vmem:[%s6794_s6 + $0x598] sm:$0xff] }
 0x286   : > { %4794 = vmatprep.subr.bf16.mxu0 %v5500_v43  ;;  %4835 = vmatprep.subr.bf16.mxu1 %v5628_v44  ;;  %v1433_v42 = vld [vmem:[%s6794_s6 + $0x5b8] sm:$0xff]  ;;  %v5197_v43 = vcombine.low %v1309_v24, %v1313_v26  ;;  %v5325_v44 = vcombine.low %v1437_v27, %v1441_v29 }
 0x287   : > { %v5318_v46 = vcombine.high %v1429_v40, %v1433_v42  ;;  %v5317_v55 = vcombine.low %v1429_v40, %v1433_v42  ;;  %v1397_v28 = vld [vmem:[%s6794_s6 + $0x498] sm:$0xff] }
 0x288   : > { %v1401_v15 = vld [vmem:[%s6794_s6 + $0x4b8] sm:$0xff] }
 0x289   : > { %4795 = vmatpush2.bf16.msra.mxu0 %v5499_v49  ;;  %4836 = vmatpush2.bf16.msra.mxu1 %v5627_v50  ;;  %v1421_v50 = vld [vmem:[%s6794_s6 + $0x558] sm:$0xff] }
 0x28a   : > { %4796 = vmatprep.subr.bf16.mxu0 %v5492_v51  ;;  %4837 = vmatprep.subr.bf16.mxu1 %v5620_v52  ;;  %v1425_v51 = vld [vmem:[%s6794_s6 + $0x578] sm:$0xff] }
 0x28b   : > { %v1261_v24 = vld [vmem:[%s6794_s6 + $0x58] sm:$0xff] }
 0x28c   : > { %v1265_v26 = vld [vmem:[%s6794_s6 + $0x78] sm:$0xff] }
 0x28d   : > { %4797 = vmatpush2.bf16.msra.mxu0 %v5491_v57  ;;  %4838 = vmatpush2.bf16.msra.mxu1 %v5619_v58  ;;  %v5310_v58 = vcombine.high %v1421_v50, %v1425_v51  ;;  %v1389_v27 = vld [vmem:[%s6794_s6 + $0x458] sm:$0xff] }
 0x28e   : > { %4798 = vmatprep.subr.bf16.mxu0 %v5484_v59  ;;  %4839 = vmatprep.subr.bf16.mxu1 %v5612_v60  ;;  %v1285_v59 = vld [vmem:[%s6794_s6 + $0x118] sm:$0xff] }
 0x28f   : > { %v1289_v60 = vld [vmem:[%s6794_s6 + $0x138] sm:$0xff] }
 0x290   : > { %v1393_v29 = vld [vmem:[%s6794_s6 + $0x478] sm:$0xff] }
 0x291   : > { %4799 = vmatpush2.bf16.msra.mxu0 %v5483_v0  ;;  %4840 = vmatpush2.bf16.msra.mxu1 %v5611_v1  ;;  %v5181_v0 = vcombine.low %v1293_v47, %v1297_v48  ;;  %v1381_v40 = vld [vmem:[%s6794_s6 + $0x418] sm:$0xff] }
 0x292   : > { %4800 = vmatprep.subr.bf16.mxu0 %v5476_v4  ;;  %4841 = vmatprep.subr.bf16.mxu1 %v5604_v5  ;;  %v5309_v4 = vcombine.low %v1421_v50, %v1425_v51  ;;  %v5174_v5 = vcombine.high %v1285_v59, %v1289_v60  ;;  %v1385_v42 = vld [vmem:[%s6794_s6 + $0x438] sm:$0xff] }
 0x293   : > { %v1373_v47 = vld [vmem:[%s6794_s6 + $0x3d8] sm:$0xff] }
 0x294   : > { %v1377_v48 = vld [vmem:[%s6794_s6 + $0x3f8] sm:$0xff] }
 0x295   : > { %4801 = vmatpush2.bf16.msra.mxu0 %v5475_v23  ;;  %4842 = vmatpush2.bf16.msra.mxu1 %v5603_v9  ;;  %v1409_v23 = vld [vmem:[%s6794_s6 + $0x4f8] sm:$0xff]  ;;  %v5301_v9 = vcombine.low %v1413_v19, %v1417_v62 }
 0x296   : > { %4802 = vmatprep.subr.bf16.mxu0 %v5468_v10  ;;  %4843 = vmatprep.subr.bf16.mxu1 %v5596_v11  ;;  %v5166_v10 = vcombine.high %v1277_v6, %v1281_v7  ;;  %v5294_v11 = vcombine.high %v1405_v8, %v1409_v23  ;;  %v1501_v50 = vld [vmem:[%s6794_s6 + $0x7d8] sm:$0xff] }
 0x297   : > { %v1505_v51 = vld [vmem:[%s6794_s6 + $0x7f8] sm:$0xff] }
 0x299   : > { %4803 = vmatpush2.bf16.msra.mxu0 %v5467_v16  ;;  %4844 = vmatpush2.bf16.msra.mxu1 %v5595_v17  ;;  %v5165_v16 = vcombine.low %v1277_v6, %v1281_v7  ;;  %v5293_v17 = vcombine.low %v1405_v8, %v1409_v23 }
 0x29a   : > { %4804 = vmatprep.subr.bf16.mxu0 %v5460_v20  ;;  %4845 = vmatprep.subr.bf16.mxu1 %v5588_v21  ;;  %v5158_v20 = vcombine.high %v1269_v13, %v1273_v14  ;;  %v5286_v21 = vcombine.high %v1397_v28, %v1401_v15 }
 0x29d   : > { %4805 = vmatpush2.bf16.msra.mxu0 %v5459_v31  ;;  %4846 = vmatpush2.bf16.msra.mxu1 %v5587_v34  ;;  %v5157_v31 = vcombine.low %v1269_v13, %v1273_v14  ;;  %v5285_v34 = vcombine.low %v1397_v28, %v1401_v15 }
 0x29e   : > { %4856 = vmatprep.subr.bf16.mxu0 %v5198_v35  ;;  %4897 = vmatprep.subr.bf16.mxu1 %v5326_v36  ;;  %v5150_v35 = vcombine.high %v1261_v24, %v1265_v26  ;;  %v5278_v36 = vcombine.high %v1389_v27, %v1393_v29 }
 0x2a0   : > { %v7282_v49 = vpop.f32.mrf.mxu0  ;;  %4807 = vmatmul.mubr.bf16.vlgmr.msra.gmra.mxu0 %v6962_v38  ;;  %v7287_v52 = vpop.f32.mrf.mxu1  ;;  %4848 = vmatmul.mubr.bf16.vlgmr.msra.gmra.mxu1 %v6966_v41 }
 0x2a1   : > { %4857 = vmatpush1.bf16.msra.mxu0 %v5197_v43  ;;  %4898 = vmatpush1.bf16.msra.mxu1 %v5325_v44  ;;  %v5149_v43 = vcombine.low %v1261_v24, %v1265_v26  ;;  %v5277_v44 = vcombine.low %v1389_v27, %v1393_v29 }
 0x2a2   : > { %v7290_v54 = vpop.f32.mrf.mxu0  ;;  %4858 = vmatprep.subr.bf16.mxu0 %v5190_v45  ;;  %v7292_v57 = vpop.f32.mrf.mxu1  ;;  %4899 = vmatprep.subr.bf16.mxu1 %v5318_v46  ;;  %v5142_v45 = vcombine.high %v1253_v37, %v1257_v39  ;;  %v5270_v46 = vcombine.high %v1381_v40, %v1385_v42 }
 0x2a3   : > { %4888 = vmatprep.mubr.bf16.mxu0 %v6790_v2  ;;  %4929 = vmatprep.mubr.bf16.mxu1 %v6792_v3  ;;  %v5302_v2 = vcombine.high %v1413_v19, %v1417_v62  ;;  %v5173_v3 = vcombine.low %v1285_v59, %v1289_v60  ;;  %v1365_v59 = vld [vmem:[%s6794_s6 + $0x398] sm:$0xff]  ;;  %v5261_v62 = vcombine.low %v1373_v47, %v1377_v48 }
 0x2a4   : > { %v4566_v61 = vpop.f32.mrf.mxu0  ;;  %v4607_v63 = vpop.f32.mrf.mxu1  ;;  %v1369_v60 = vld [vmem:[%s6794_s6 + $0x3b8] sm:$0xff] }
 0x2a5   : > { %4859 = vmatpush1.bf16.msra.mxu0 %v5189_v53  ;;  %4900 = vmatpush1.bf16.msra.mxu1 %v5317_v55  ;;  %v5141_v53 = vcombine.low %v1253_v37, %v1257_v39  ;;  %v5269_v55 = vcombine.low %v1381_v40, %v1385_v42  ;;  %v1493_v61 = vld [vmem:[%s6794_s6 + $0x798] sm:$0xff]  ;;  %v5389_v63 = vcombine.low %v1501_v50, %v1505_v51 }
 0x2a6   : > { %v4567_v1 = vpop.f32.mrf.mxu0  ;;  %4860 = vmatprep.subr.bf16.mxu0 %v5182_v56  ;;  %v4608_v25 = vpop.f32.mrf.mxu1  ;;  %4901 = vmatprep.subr.bf16.mxu1 %v5310_v58  ;;  %v5262_v56 = vcombine.high %v1373_v47, %v1377_v48  ;;  %v5390_v58 = vcombine.high %v1501_v50, %v1505_v51  ;;  %v1497_v19 = vld [vmem:[%s6794_s6 + $0x7b8] sm:$0xff]  ;;  %v5253_v6 = vcombine.low %v1365_v59, %v1369_v60  ;;  %v1774_v51 = vsub.s32 2, %v7169_v12 }
 0x2a7   : > { %v5382_v1 = vcombine.high %v1493_v61, %v1497_v19  ;;  %v1485_v25 = vld [vmem:[%s6794_s6 + $0x758] sm:$0xff]  ;;  %v5381_v7 = vcombine.low %v1493_v61, %v1497_v19 }
 0x2a9   : > { %4861 = vmatpush1.bf16.msra.mxu0 %v5181_v0  ;;  %4902 = vmatpush1.bf16.msra.mxu1 %v5309_v4  ;;  %v5254_v0 = vcombine.high %v1365_v59, %v1369_v60  ;;  %v1357_v4 = vld [vmem:[%s6794_s6 + $0x358] sm:$0xff]  ;;  %v1778_v60 = vsub.s32 3, %v7169_v12 }
 0x2aa   : > { %4862 = vmatprep.subr.bf16.mxu0 %v5174_v5  ;;  %4903 = vmatprep.subr.bf16.mxu1 %v5302_v2  ;;  %v1361_v5 = vld [vmem:[%s6794_s6 + $0x378] sm:$0xff] }
 0x2ab   : > { %v1489_v2 = vld [vmem:[%s6794_s6 + $0x778] sm:$0xff]  ;;  %v5246_v8 = vcombine.high %v1357_v4, %v1361_v5  ;;  %v5245_v13 = vcombine.low %v1357_v4, %v1361_v5 }
 0x2ac   : > { %v5374_v23 = vcombine.high %v1485_v25, %v1489_v2  ;;  %v5373_v14 = vcombine.low %v1485_v25, %v1489_v2  ;;  %v1449_v59 = vld [vmem:[%s6794_s6 + $0x638] sm:$0xff]  ;;  %v1779_v2 = vrot.slane %v7185_v32, %v1778_v60 }
 0x2ad   : > { %4863 = vmatpush1.bf16.msra.mxu0 %v5173_v3  ;;  %4904 = vmatpush1.bf16.msra.mxu1 %v5301_v9  ;;  %v1349_v3 = vld [vmem:[%s6794_s6 + $0x318] sm:$0xff] }
 0x2ae   : > { %4864 = vmatprep.subr.bf16.mxu0 %v5166_v10  ;;  %4905 = vmatprep.subr.bf16.mxu1 %v5294_v11  ;;  %v1353_v9 = vld [vmem:[%s6794_s6 + $0x338] sm:$0xff] }
 0x2af   : > { %v1477_v10 = vld [vmem:[%s6794_s6 + $0x718] sm:$0xff]  ;;  %v5238_v28 = vcombine.high %v1349_v3, %v1353_v9  ;;  %v5237_v24 = vcombine.low %v1349_v3, %v1353_v9 }
 0x2b0   : > { %v1481_v11 = vld [vmem:[%s6794_s6 + $0x738] sm:$0xff] }
 0x2b1   : > { %4865 = vmatpush1.bf16.msra.mxu0 %v5165_v16  ;;  %4906 = vmatpush1.bf16.msra.mxu1 %v5293_v17  ;;  %v5366_v15 = vcombine.high %v1477_v10, %v1481_v11  ;;  %v1341_v16 = vld [vmem:[%s6794_s6 + $0x2d8] sm:$0xff]  ;;  %v5365_v26 = vcombine.low %v1477_v10, %v1481_v11 }
 0x2b2   : > { %4866 = vmatprep.subr.bf16.mxu0 %v5158_v20  ;;  %4907 = vmatprep.subr.bf16.mxu1 %v5286_v21  ;;  %v1345_v17 = vld [vmem:[%s6794_s6 + $0x2f8] sm:$0xff] }
 0x2b3   : > { %v1469_v20 = vld [vmem:[%s6794_s6 + $0x6d8] sm:$0xff]  ;;  %v5230_v27 = vcombine.high %v1341_v16, %v1345_v17  ;;  %v5229_v37 = vcombine.low %v1341_v16, %v1345_v17 }
 0x2b4   : > { %v1473_v21 = vld [vmem:[%s6794_s6 + $0x6f8] sm:$0xff] }
 0x2b5   : > { %4867 = vmatpush1.bf16.msra.mxu0 %v5157_v31  ;;  %4908 = vmatpush1.bf16.msra.mxu1 %v5285_v34  ;;  %v5358_v29 = vcombine.high %v1469_v20, %v1473_v21  ;;  %v1333_v31 = vld [vmem:[%s6794_s6 + $0x298] sm:$0xff]  ;;  %v5357_v39 = vcombine.low %v1469_v20, %v1473_v21 }
 0x2b6   : > { %4868 = vmatprep.subr.bf16.mxu0 %v5150_v35  ;;  %4909 = vmatprep.subr.bf16.mxu1 %v5278_v36  ;;  %v1337_v34 = vld [vmem:[%s6794_s6 + $0x2b8] sm:$0xff] }
 0x2b7   : > { %v1461_v35 = vld [vmem:[%s6794_s6 + $0x698] sm:$0xff]  ;;  %v5222_v40 = vcombine.high %v1333_v31, %v1337_v34  ;;  %v5221_v47 = vcombine.low %v1333_v31, %v1337_v34 }
 0x2b8   : > { %v1465_v36 = vld [vmem:[%s6794_s6 + $0x6b8] sm:$0xff] }
 0x2b9   : > { %4869 = vmatpush1.bf16.msra.mxu0 %v5149_v43  ;;  %4910 = vmatpush1.bf16.msra.mxu1 %v5277_v44  ;;  %v5350_v42 = vcombine.high %v1461_v35, %v1465_v36  ;;  %v1325_v43 = vld [vmem:[%s6794_s6 + $0x258] sm:$0xff]  ;;  %v5349_v48 = vcombine.low %v1461_v35, %v1465_v36 }
 0x2ba   : > { %4870 = vmatprep.subr.bf16.mxu0 %v5142_v45  ;;  %4911 = vmatprep.subr.bf16.mxu1 %v5270_v46  ;;  %v1329_v44 = vld [vmem:[%s6794_s6 + $0x278] sm:$0xff] }
 0x2bb   : > { %v1453_v45 = vld [vmem:[%s6794_s6 + $0x658] sm:$0xff]  ;;  %v5214_v50 = vcombine.high %v1325_v43, %v1329_v44  ;;  %v5213_v61 = vcombine.low %v1325_v43, %v1329_v44 }
 0x2bc   : > { %v1457_v46 = vld [vmem:[%s6794_s6 + $0x678] sm:$0xff] }
 0x2bd   : > { %4871 = vmatpush1.bf16.msra.mxu0 %v5141_v53  ;;  %4912 = vmatpush1.bf16.msra.mxu1 %v5269_v55  ;;  %v5342_v53 = vcombine.high %v1453_v45, %v1457_v46  ;;  %v1317_v55 = vld [vmem:[%s6794_s6 + $0x218] sm:$0xff]  ;;  %v5341_v19 = vcombine.low %v1453_v45, %v1457_v46 }
 0x2be   : > { %4872 = vmatprep.subr.bf16.mxu0 %v5262_v56  ;;  %4913 = vmatprep.subr.bf16.mxu1 %v5390_v58  ;;  %v1321_v56 = vld [vmem:[%s6794_s6 + $0x238] sm:$0xff] }
 0x2bf   : > { %v1445_v58 = vld [vmem:[%s6794_s6 + $0x618] sm:$0xff] }
 0x2c0   : > { %v1569_v4 = vld [vmem:[%s6794_s6 + $0x9f8] sm:$0xff] }
 0x2c1   : > { %4873 = vmatpush2.bf16.msra.mxu0 %v5261_v62  ;;  %4914 = vmatpush2.bf16.msra.mxu1 %v5389_v63  ;;  %v5206_v62 = vcombine.high %v1317_v55, %v1321_v56  ;;  %v1775_v63 = vrot.slane %v7185_v32, %v1774_v51  ;;  %v1693_v5 = vld [vmem:[%s6794_s6 + $0xdd8] sm:$0xff]  ;;  %v4565_v32 = vadd.f32 %v7290_v54, %v1779_v2 }
 0x2c2   : > { %4874 = vmatprep.subr.bf16.mxu0 %v5254_v0  ;;  %4915 = vmatprep.subr.bf16.mxu1 %v5382_v1  ;;  %v5334_v0 = vcombine.high %v1445_v58, %v1449_v59  ;;  %v1565_v1 = vld [vmem:[%s6794_s6 + $0x9d8] sm:$0xff] }
 0x2c3   : > { %v1697_v25 = vld [vmem:[%s6794_s6 + $0xdf8] sm:$0xff] }
 0x2c4   : > { %v5582_v3 = vcombine.high %v1693_v5, %v1697_v25  ;;  %v1557_v9 = vld [vmem:[%s6794_s6 + $0x998] sm:$0xff] }
 0x2c5   : > { %4875 = vmatpush2.bf16.msra.mxu0 %v5253_v6  ;;  %4916 = vmatpush2.bf16.msra.mxu1 %v5381_v7  ;;  %v5205_v6 = vcombine.low %v1317_v55, %v1321_v56  ;;  %v5333_v7 = vcombine.low %v1445_v58, %v1449_v59  ;;  %v1561_v10 = vld [vmem:[%s6794_s6 + $0x9b8] sm:$0xff] }
 0x2c6   : > { %4876 = vmatprep.subr.bf16.mxu0 %v5246_v8  ;;  %4917 = vmatprep.subr.bf16.mxu1 %v5374_v23  ;;  %v5454_v8 = vcombine.high %v1565_v1, %v1569_v4  ;;  %v4563_v23 = vadd.f32 %v7282_v49, %v1775_v63  ;;  %v1685_v11 = vld [vmem:[%s6794_s6 + $0xd98] sm:$0xff] }
 0x2c7   : > { %v1549_v17 = vld [vmem:[%s6794_s6 + $0x958] sm:$0xff] }
 0x2c8   : > { %v4604_v49 = vadd.f32 %v7287_v52, %v4563_v23  ;;  %v1553_v20 = vld [vmem:[%s6794_s6 + $0x978] sm:$0xff]  ;;  %v5445_v52 = vcombine.low %v1557_v9, %v1561_v10 }
 0x2c9   : > { %4877 = vmatpush2.bf16.msra.mxu0 %v5245_v13  ;;  %4918 = vmatpush2.bf16.msra.mxu1 %v5373_v14  ;;  %v1689_v13 = vld [vmem:[%s6794_s6 + $0xdb8] sm:$0xff]  ;;  %v5453_v14 = vcombine.low %v1565_v1, %v1569_v4  ;;  %v5438_v35 = vcombine.high %v1549_v17, %v1553_v20 }
 0x2ca   : > { %4878 = vmatprep.subr.bf16.mxu0 %v5238_v28  ;;  %4919 = vmatprep.subr.bf16.mxu1 %v5366_v15  ;;  %v5581_v28 = vcombine.low %v1693_v5, %v1697_v25  ;;  %v5446_v15 = vcombine.high %v1557_v9, %v1561_v10  ;;  %v5574_v16 = vcombine.high %v1685_v11, %v1689_v13  ;;  %v1673_v43 = vld [vmem:[%s6794_s6 + $0xd38] sm:$0xff] }
 0x2cb   : > { %v5573_v34 = vcombine.low %v1685_v11, %v1689_v13  ;;  %v1533_v56 = vld [vmem:[%s6794_s6 + $0x8d8] sm:$0xff] }
 0x2cc   : > { %v1537_v58 = vld [vmem:[%s6794_s6 + $0x8f8] sm:$0xff] }
 0x2cd   : > { %4879 = vmatpush2.bf16.msra.mxu0 %v5237_v24  ;;  %4920 = vmatpush2.bf16.msra.mxu1 %v5365_v26  ;;  %v1677_v24 = vld [vmem:[%s6794_s6 + $0xd58] sm:$0xff]  ;;  %v5422_v63 = vcombine.high %v1533_v56, %v1537_v58  ;;  %v5421_v2 = vcombine.low %v1533_v56, %v1537_v58 }
 0x2ce   : > { %4880 = vmatprep.subr.bf16.mxu0 %v5230_v27  ;;  %4921 = vmatprep.subr.bf16.mxu1 %v5358_v29  ;;  %v1681_v26 = vld [vmem:[%s6794_s6 + $0xd78] sm:$0xff]  ;;  %v4606_v27 = vadd.f32 %v7292_v57, %v4565_v32 }
 0x2cf   : > { %v5566_v57 = vcombine.high %v1677_v24, %v1681_v26  ;;  %v1661_v59 = vld [vmem:[%s6794_s6 + $0xcd8] sm:$0xff] }
 0x2d0   : > { %v1665_v60 = vld [vmem:[%s6794_s6 + $0xcf8] sm:$0xff] }
 0x2d1   : > { %4881 = vmatpush2.bf16.msra.mxu0 %v5229_v37  ;;  %4922 = vmatpush2.bf16.msra.mxu1 %v5357_v39  ;;  %v1541_v39 = vld [vmem:[%s6794_s6 + $0x918] sm:$0xff] }
 0x2d2   : > { %4882 = vmatprep.subr.bf16.mxu0 %v5222_v40  ;;  %4923 = vmatprep.subr.bf16.mxu1 %v5350_v42  ;;  %v1545_v40 = vld [vmem:[%s6794_s6 + $0x938] sm:$0xff] }
 0x2d3   : > { %v1525_v1 = vld [vmem:[%s6794_s6 + $0x898] sm:$0xff] }
 0x2d4   : > { %v1529_v4 = vld [vmem:[%s6794_s6 + $0x8b8] sm:$0xff] }
 0x2d5   : > { %4883 = vmatpush2.bf16.msra.mxu0 %v5221_v47  ;;  %4924 = vmatpush2.bf16.msra.mxu1 %v5349_v48  ;;  %v5437_v47 = vcombine.low %v1549_v17, %v1553_v20  ;;  %v1653_v5 = vld [vmem:[%s6794_s6 + $0xc98] sm:$0xff]  ;;  %v5413_v11 = vcombine.low %v1525_v1, %v1529_v4 }
 0x2d6   : > { %4884 = vmatprep.subr.bf16.mxu0 %v5214_v50  ;;  %4925 = vmatprep.subr.bf16.mxu1 %v5342_v53  ;;  %v5430_v50 = vcombine.high %v1541_v39, %v1545_v40  ;;  %v1657_v25 = vld [vmem:[%s6794_s6 + $0xcb8] sm:$0xff] }
 0x2d7   : > { %v1517_v23 = vld [vmem:[%s6794_s6 + $0x858] sm:$0xff]  ;;  %v5541_v13 = vcombine.low %v1653_v5, %v1657_v25 }
 0x2d8   : > { %v1645_v9 = vld [vmem:[%s6794_s6 + $0xc58] sm:$0xff] }
 0x2d9   : > { %4885 = vmatpush2.bf16.msra.mxu0 %v5213_v61  ;;  %4926 = vmatpush2.bf16.msra.mxu1 %v5341_v19  ;;  %v5429_v19 = vcombine.low %v1541_v39, %v1545_v40  ;;  %v1649_v10 = vld [vmem:[%s6794_s6 + $0xc78] sm:$0xff] }
 0x2da   : > { %4886 = vmatprep.subr.bf16.mxu0 %v5206_v62  ;;  %4927 = vmatprep.subr.bf16.mxu1 %v5334_v0  ;;  %v5550_v0 = vcombine.high %v1661_v59, %v1665_v60  ;;  %v5533_v20 = vcombine.low %v1645_v9, %v1649_v10 }
 0x2dd   : > { %4887 = vmatpush2.bf16.msra.mxu0 %v5205_v6  ;;  %4928 = vmatpush2.bf16.msra.mxu1 %v5333_v7  ;;  %v5549_v6 = vcombine.low %v1661_v59, %v1665_v60  ;;  %v5414_v7 = vcombine.high %v1525_v1, %v1529_v4 }
 0x2de   : > { %4938 = vmatprep.subr.bf16.mxu0 %v5454_v8  ;;  %4979 = vmatprep.subr.bf16.mxu1 %v5582_v3  ;;  %v5542_v8 = vcombine.high %v1653_v5, %v1657_v25  ;;  %v1521_v3 = vld [vmem:[%s6794_s6 + $0x878] sm:$0xff] }
 0x2df   : > { %v5406_v32 = vcombine.high %v1517_v23, %v1521_v3  ;;  %v5405_v17 = vcombine.low %v1517_v23, %v1521_v3  ;;  %v1589_v25 = vld [vmem:[%s6794_s6 + $0xa98] sm:$0xff] }
 0x2e0   : > { %v4644_v21 = vpop.f32.mrf.mxu0  ;;  %4889 = vmatmul.mubr.bf16.vlgmr.msra.gmra.mxu0 %v6874_v18  ;;  %v4685_v29 = vpop.f32.mrf.mxu1  ;;  %4930 = vmatmul.mubr.bf16.vlgmr.msra.gmra.mxu1 %v6881_v22  ;;  %v1669_v22 = vld [vmem:[%s6794_s6 + $0xd18] sm:$0xff] }
 0x2e1   : > { %v4645_v54 = vadd.f32 %v4644_v21, %v4604_v49  ;;  %4939 = vmatpush1.bf16.msra.mxu0 %v5453_v14  ;;  %4980 = vmatpush1.bf16.msra.mxu1 %v5581_v28  ;;  %v5558_v55 = vcombine.high %v1669_v22, %v1673_v43  ;;  %v5557_v62 = vcombine.low %v1669_v22, %v1673_v43  ;;  %v1509_v28 = vld [vmem:[%s6794_s6 + $0x818] sm:$0xff] }
 0x2e2   : > { %v4646_v31 = vpop.f32.mrf.mxu0  ;;  %4940 = vmatprep.subr.bf16.mxu0 %v5446_v15  ;;  %v4687_v37 = vpop.f32.mrf.mxu1  ;;  %4981 = vmatprep.subr.bf16.mxu1 %v5574_v16  ;;  %v5534_v14 = vcombine.high %v1645_v9, %v1649_v10  ;;  %v1513_v15 = vld [vmem:[%s6794_s6 + $0x838] sm:$0xff] }
 0x2e3   : > { %v4686_v18 = vadd.f32 %v4685_v29, %v4645_v54  ;;  %v4647_v36 = vadd.f32 %v4646_v31, %v4606_v27  ;;  %4970 = vmatprep.mubr.bf16.mxu0 %v6888_v30  ;;  %5011 = vmatprep.mubr.bf16.mxu1 %v6893_v33  ;;  %v5565_v30 = vcombine.low %v1677_v24, %v1681_v26  ;;  %v1637_v49 = vld [vmem:[%s6794_s6 + $0xc18] sm:$0xff] }
 0x2e4   : > { %v4648_v42 = vpop.f32.mrf.mxu0  ;;  %v4689_v46 = vpop.f32.mrf.mxu1  ;;  %v1641_v16 = vld [vmem:[%s6794_s6 + $0xc38] sm:$0xff]  ;;  %v5398_v21 = vcombine.high %v1509_v28, %v1513_v15 }
 0x2e5   : > { %vm5022_vm2 = vcmp.gt.f32.partialorder %v4686_v18, 0.0  ;;  %v5030_v44 = vmul.f32 0.2, %v4686_v18  ;;  %v4688_v45 = vadd.f32 %v4687_v37, %v4647_v36  ;;  %4941 = vmatpush1.bf16.msra.mxu0 %v5445_v52  ;;  %4982 = vmatpush1.bf16.msra.mxu1 %v5573_v34  ;;  %v5526_v24 = vcombine.high %v1637_v49, %v1641_v16  ;;  %v1629_v26 = vld [vmem:[%s6794_s6 + $0xbd8] sm:$0xff] }
 0x2e6   : > { %v4649_v48 = vpop.f32.mrf.mxu0  ;;  %4942 = vmatprep.subr.bf16.mxu0 %v5438_v35  ;;  %v4690_v53 = vpop.f32.mrf.mxu1  ;;  %4983 = vmatprep.subr.bf16.mxu1 %v5566_v57  ;;  %v1633_v27 = vld [vmem:[%s6794_s6 + $0xbf8] sm:$0xff]  ;;  %v5397_v52 = vcombine.low %v1509_v28, %v1513_v15  ;;  %v5525_v31 = vcombine.low %v1637_v49, %v1641_v16 }
 0x2e7   : > { %v5038_v51 = vsel %vm5022_vm2, %v4686_v18, %v5030_v44  ;;  %vm5023_vm3 = vcmp.gt.f32.partialorder %v4688_v45, 0.0  ;;  %v5031_v33 = vmul.f32 0.2, %v4688_v45  ;;  %v1757_v54 = vld [vmem:[%s6794_s6 + $0xfd8] sm:$0xff]  ;;  %v5518_v34 = vcombine.high %v1629_v26, %v1633_v27 }
 0x2e8   : > { %5046 = vst [vmem:[%s7220_s29 + $0x10] sm:$0xff] %v5038_v51  ;;  %v1761_v29 = vld [vmem:[%s6794_s6 + $0xff8] sm:$0xff]  ;;  %v5517_v39 = vcombine.low %v1629_v26, %v1633_v27 }
 0x2e9   : > { %v5039_v61 = vsel %vm5023_vm3, %v4688_v45, %v5031_v33  ;;  %4943 = vmatpush1.bf16.msra.mxu0 %v5437_v47  ;;  %4984 = vmatpush1.bf16.msra.mxu1 %v5565_v30  ;;  %v5646_v35 = vcombine.high %v1757_v54, %v1761_v29  ;;  %v1621_v18 = vld [vmem:[%s6794_s6 + $0xb98] sm:$0xff]  ;;  %v5645_v40 = vcombine.low %v1757_v54, %v1761_v29 }
 0x2ea   : > { %5047 = vst [vmem:[%s7220_s29 + $0x18] sm:$0xff] %v5039_v61  ;;  %4944 = vmatprep.subr.bf16.mxu0 %v5430_v50  ;;  %4985 = vmatprep.subr.bf16.mxu1 %v5558_v55  ;;  %v1625_v36 = vld [vmem:[%s6794_s6 + $0xbb8] sm:$0xff] }
 0x2eb   : > { %v1749_v37 = vld [vmem:[%s6794_s6 + $0xf98] sm:$0xff]  ;;  %v5510_v42 = vcombine.high %v1621_v18, %v1625_v36  ;;  %v5509_v47 = vcombine.low %v1621_v18, %v1625_v36 }
 0x2ec   : > { %v1753_v57 = vld [vmem:[%s6794_s6 + $0xfb8] sm:$0xff] }
 0x2ed   : > { %4945 = vmatpush1.bf16.msra.mxu0 %v5429_v19  ;;  %4986 = vmatpush1.bf16.msra.mxu1 %v5557_v62  ;;  %v5638_v22 = vcombine.high %v1749_v37, %v1753_v57  ;;  %v1613_v43 = vld [vmem:[%s6794_s6 + $0xb58] sm:$0xff]  ;;  %v5637_v48 = vcombine.low %v1749_v37, %v1753_v57 }
 0x2ee   : > { %4946 = vmatprep.subr.bf16.mxu0 %v5422_v63  ;;  %4987 = vmatprep.subr.bf16.mxu1 %v5550_v0  ;;  %v1617_v44 = vld [vmem:[%s6794_s6 + $0xb78] sm:$0xff] }
 0x2ef   : > { %v1741_v45 = vld [vmem:[%s6794_s6 + $0xf58] sm:$0xff]  ;;  %v5502_v30 = vcombine.high %v1613_v43, %v1617_v44  ;;  %v5501_v56 = vcombine.low %v1613_v43, %v1617_v44 }
 0x2f0   : > { %v1745_v46 = vld [vmem:[%s6794_s6 + $0xf78] sm:$0xff] }
 0x2f1   : > { %4947 = vmatpush1.bf16.msra.mxu0 %v5421_v2  ;;  %4988 = vmatpush1.bf16.msra.mxu1 %v5549_v6  ;;  %v5630_v50 = vcombine.high %v1741_v45, %v1745_v46  ;;  %v1605_v51 = vld [vmem:[%s6794_s6 + $0xb18] sm:$0xff]  ;;  %v5629_v58 = vcombine.low %v1741_v45, %v1745_v46 }
 0x2f2   : > { %4948 = vmatprep.subr.bf16.mxu0 %v5414_v7  ;;  %4989 = vmatprep.subr.bf16.mxu1 %v5542_v8  ;;  %v1609_v33 = vld [vmem:[%s6794_s6 + $0xb38] sm:$0xff] }
 0x2f3   : > { %v1733_v53 = vld [vmem:[%s6794_s6 + $0xf18] sm:$0xff]  ;;  %v5494_v59 = vcombine.high %v1605_v51, %v1609_v33  ;;  %v5493_v0 = vcombine.low %v1605_v51, %v1609_v33 }
 0x2f4   : > { %v1737_v55 = vld [vmem:[%s6794_s6 + $0xf38] sm:$0xff] }
 0x2f5   : > { %4949 = vmatpush1.bf16.msra.mxu0 %v5413_v11  ;;  %4990 = vmatpush1.bf16.msra.mxu1 %v5541_v13  ;;  %v5622_v60 = vcombine.high %v1733_v53, %v1737_v55  ;;  %v1597_v61 = vld [vmem:[%s6794_s6 + $0xad8] sm:$0xff]  ;;  %v5621_v1 = vcombine.low %v1733_v53, %v1737_v55 }
 0x2f6   : > { %4950 = vmatprep.subr.bf16.mxu0 %v5406_v32  ;;  %4991 = vmatprep.subr.bf16.mxu1 %v5534_v14  ;;  %v1601_v19 = vld [vmem:[%s6794_s6 + $0xaf8] sm:$0xff] }
 0x2f7   : > { %v1725_v62 = vld [vmem:[%s6794_s6 + $0xed8] sm:$0xff]  ;;  %v5486_v4 = vcombine.high %v1597_v61, %v1601_v19  ;;  %v5485_v8 = vcombine.low %v1597_v61, %v1601_v19 }
 0x2f8   : > { %v1729_v63 = vld [vmem:[%s6794_s6 + $0xef8] sm:$0xff] }
 0x2f9   : > { %4951 = vmatpush1.bf16.msra.mxu0 %v5405_v17  ;;  %4992 = vmatpush1.bf16.msra.mxu1 %v5533_v20  ;;  %v5614_v5 = vcombine.high %v1725_v62, %v1729_v63  ;;  %v1593_v2 = vld [vmem:[%s6794_s6 + $0xab8] sm:$0xff]  ;;  %v5613_v23 = vcombine.low %v1725_v62, %v1729_v63 }
 0x2fa   : > { %4952 = vmatprep.subr.bf16.mxu0 %v5398_v21  ;;  %4993 = vmatprep.subr.bf16.mxu1 %v5526_v24  ;;  %v1717_v6 = vld [vmem:[%s6794_s6 + $0xe98] sm:$0xff]  ;;  %v5478_v3 = vcombine.high %v1589_v25, %v1593_v2  ;;  %v5477_v14 = vcombine.low %v1589_v25, %v1593_v2 }
 0x2fb   : > { %v1721_v7 = vld [vmem:[%s6794_s6 + $0xeb8] sm:$0xff] }
 0x2fc   : > { %v5606_v9 = vcombine.high %v1717_v6, %v1721_v7  ;;  %v1581_v10 = vld [vmem:[%s6794_s6 + $0xa58] sm:$0xff]  ;;  %v5605_v28 = vcombine.low %v1717_v6, %v1721_v7 }
 0x2fd   : > { %4953 = vmatpush1.bf16.msra.mxu0 %v5397_v52  ;;  %4994 = vmatpush1.bf16.msra.mxu1 %v5525_v31  ;;  %v1585_v11 = vld [vmem:[%s6794_s6 + $0xa78] sm:$0xff] }
 0x2fe   : > { %4954 = vmatprep.subr.bf16.mxu0 %v5518_v34  ;;  %4995 = vmatprep.subr.bf16.mxu1 %v5646_v35  ;;  %v1709_v13 = vld [vmem:[%s6794_s6 + $0xe58] sm:$0xff]  ;;  %v5470_v15 = vcombine.high %v1581_v10, %v1585_v11  ;;  %v5469_v24 = vcombine.low %v1581_v10, %v1585_v11 }
 0x2ff   : > { %v1713_v32 = vld [vmem:[%s6794_s6 + $0xe78] sm:$0xff] }
 0x300   : > { %v5598_v49 = vcombine.high %v1709_v13, %v1713_v32  ;;  %v1573_v16 = vld [vmem:[%s6794_s6 + $0xa18] sm:$0xff]  ;;  %v5597_v26 = vcombine.low %v1709_v13, %v1713_v32 }
 0x301   : > { %4955 = vmatpush2.bf16.msra.mxu0 %v5517_v39  ;;  %4996 = vmatpush2.bf16.msra.mxu1 %v5645_v40  ;;  %v1577_v17 = vld [vmem:[%s6794_s6 + $0xa38] sm:$0xff]  ;;  %v1782_v40 = vsub.s32 4, %v7169_v12 }
 0x302   : > { %4956 = vmatprep.subr.bf16.mxu0 %v5510_v42  ;;  %4997 = vmatprep.subr.bf16.mxu1 %v5638_v22  ;;  %v1701_v20 = vld [vmem:[%s6794_s6 + $0xe18] sm:$0xff]  ;;  %v5462_v27 = vcombine.high %v1573_v16, %v1577_v17  ;;  %v5461_v29 = vcombine.low %v1573_v16, %v1577_v17  ;;  %v1786_v42 = vsub.s32 5, %v7169_v12  ;;  %v5674_v22 = vld [vmem:[%s7179_s25] sm:$0xff] }
 0x303   : > { %v1705_v21 = vld [vmem:[%s6794_s6 + $0xe38] sm:$0xff]  ;;  %v1783_v43 = vrot.slane %v5674_v22, %v1782_v40 }
 0x304   : > { %v5590_v54 = vcombine.high %v1701_v20, %v1705_v21  ;;  %v5589_v52 = vcombine.low %v1701_v20, %v1705_v21  ;;  %v1787_v44 = vrot.slane %v5674_v22, %v1786_v42 }
 0x305   : > { %4957 = vmatpush2.bf16.msra.mxu0 %v5509_v47  ;;  %4998 = vmatpush2.bf16.msra.mxu1 %v5637_v48 }
 0x306   : > { %4958 = vmatprep.subr.bf16.mxu0 %v5502_v30  ;;  %4999 = vmatprep.subr.bf16.mxu1 %v5630_v50 }
 0x309   : > { %4959 = vmatpush2.bf16.msra.mxu0 %v5501_v56  ;;  %5000 = vmatpush2.bf16.msra.mxu1 %v5629_v58 }
 0x30a   : > { %4960 = vmatprep.subr.bf16.mxu0 %v5494_v59  ;;  %5001 = vmatprep.subr.bf16.mxu1 %v5622_v60 }
 0x30d   : > { %4961 = vmatpush2.bf16.msra.mxu0 %v5493_v0  ;;  %5002 = vmatpush2.bf16.msra.mxu1 %v5621_v1 }
 0x30e   : > { %4962 = vmatprep.subr.bf16.mxu0 %v5486_v4  ;;  %5003 = vmatprep.subr.bf16.mxu1 %v5614_v5 }
 0x311   : > { %4963 = vmatpush2.bf16.msra.mxu0 %v5485_v8  ;;  %5004 = vmatpush2.bf16.msra.mxu1 %v5613_v23  ;;  %v1790_v8 = vsub.s32 6, %v7169_v12  ;;  %v1794_v23 = vsub.s32 7, %v7169_v12 }
 0x312   : > { %4964 = vmatprep.subr.bf16.mxu0 %v5478_v3  ;;  %5005 = vmatprep.subr.bf16.mxu1 %v5606_v9 }
 0x313   : > { %v1791_v3 = vrot.slane %v5674_v22, %v1790_v8  ;;  %v1795_v9 = vrot.slane %v5674_v22, %v1794_v23 }
 0x315   : > { %4965 = vmatpush2.bf16.msra.mxu0 %v5477_v14  ;;  %5006 = vmatpush2.bf16.msra.mxu1 %v5605_v28 }
 0x316   : > { %4966 = vmatprep.subr.bf16.mxu0 %v5470_v15  ;;  %5007 = vmatprep.subr.bf16.mxu1 %v5598_v49 }
 0x319   : > { %4967 = vmatpush2.bf16.msra.mxu0 %v5469_v24  ;;  %5008 = vmatpush2.bf16.msra.mxu1 %v5597_v26 }
 0x31a   : > { %4968 = vmatprep.subr.bf16.mxu0 %v5462_v27  ;;  %5009 = vmatprep.subr.bf16.mxu1 %v5590_v54 }
 0x31d   : > { %4969 = vmatpush2.bf16.msra.mxu0 %v5461_v29  ;;  %5010 = vmatpush2.bf16.msra.mxu1 %v5589_v52 }
 0x320   : > { %v4726_v31 = vpop.f32.mrf.mxu0  ;;  %4971 = vmatmul.mubr.bf16.vlgmr.msra.gmra.mxu0 %v6962_v38  ;;  %v4767_v34 = vpop.f32.mrf.mxu1  ;;  %5012 = vmatmul.mubr.bf16.vlgmr.msra.gmra.mxu1 %v6966_v41 }
 0x321   : > { %v4727_v45 = vadd.f32 %v4726_v31, %v1783_v43 }
 0x322   : > { %v4728_v35 = vpop.f32.mrf.mxu0  ;;  %v4769_v18 = vpop.f32.mrf.mxu1 }
 0x323   : > { %v4729_v46 = vadd.f32 %v4728_v35, %v1787_v44  ;;  %v4768_v47 = vadd.f32 %v4767_v34, %v4727_v45 }
 0x324   : > { %v4730_v36 = vpop.f32.mrf.mxu0  ;;  %v4771_v37 = vpop.f32.mrf.mxu1 }
 0x325   : > { %v4770_v48 = vadd.f32 %v4769_v18, %v4729_v46 }
 0x326   : > { %v4731_v57 = vpop.f32.mrf.mxu0  ;;  %v4772_v39 = vpop.f32.mrf.mxu1 }
 0x360   : > { %v4808_v38 = vpop.f32.mrf.mxu0  ;;  %v4849_v41 = vpop.f32.mrf.mxu1 }
 0x361   : > { %v4809_v30 = vadd.f32 %v4808_v38, %v4768_v47 }
 0x362   : > { %v4810_v50 = vpop.f32.mrf.mxu0  ;;  %v4851_v53 = vpop.f32.mrf.mxu1 }
 0x363   : > { %v4850_v51 = vadd.f32 %v4849_v41, %v4809_v30  ;;  %v4811_v33 = vadd.f32 %v4810_v50, %v4770_v48 }
 0x364   : > { %v4812_v55 = vpop.f32.mrf.mxu0  ;;  %v4853_v59 = vpop.f32.mrf.mxu1 }
 0x365   : > { %vm5024_vm4 = vcmp.gt.f32.partialorder %v4850_v51, 0.0  ;;  %v5032_v56 = vmul.f32 0.2, %v4850_v51  ;;  %v4852_v58 = vadd.f32 %v4851_v53, %v4811_v33 }
 0x366   : > { %v4813_v60 = vpop.f32.mrf.mxu0  ;;  %v4854_v62 = vpop.f32.mrf.mxu1 }
 0x367   : > { %v5040_v61 = vsel %vm5024_vm4, %v4850_v51, %v5032_v56  ;;  %vm5025_vm5 = vcmp.gt.f32.partialorder %v4852_v58, 0.0  ;;  %v5033_v19 = vmul.f32 0.2, %v4852_v58 }
 0x368   : > { %5048 = vst [vmem:[%s7220_s29 + $0x20] sm:$0xff] %v5040_v61 }
 0x369   : > { %v5041_v63 = vsel %vm5025_vm5, %v4852_v58, %v5033_v19 }
 0x36a   : > { %5049 = vst [vmem:[%s7220_s29 + $0x28] sm:$0xff] %v5041_v63 }
 0x3a0   : > { %v4890_v0 = vpop.f32.mrf.mxu0  ;;  %v4931_v1 = vpop.f32.mrf.mxu1 }
 0x3a1   : > { %v4891_v10 = vadd.f32 %v4890_v0, %v1791_v3 }
 0x3a2   : > { %v4892_v4 = vpop.f32.mrf.mxu0  ;;  %v4933_v5 = vpop.f32.mrf.mxu1 }
 0x3a3   : > { %v4893_v11 = vadd.f32 %v4892_v4, %v1795_v9  ;;  %v4932_v13 = vadd.f32 %v4931_v1, %v4891_v10 }
 0x3a4   : > { %v4894_v25 = vpop.f32.mrf.mxu0  ;;  %v4935_v2 = vpop.f32.mrf.mxu1 }
 0x3a5   : > { %v4934_v14 = vadd.f32 %v4933_v5, %v4893_v11 }
 0x3a6   : > { %v4895_v6 = vpop.f32.mrf.mxu0  ;;  %v4936_v7 = vpop.f32.mrf.mxu1 }
 0x3e0   : > { %v4972_v32 = vpop.f32.mrf.mxu0  ;;  %v5013_v15 = vpop.f32.mrf.mxu1 }
 0x3e1   : > { %v4973_v28 = vadd.f32 %v4972_v32, %v4932_v13 }
 0x3e2   : > { %v4974_v49 = vpop.f32.mrf.mxu0  ;;  %v5015_v20 = vpop.f32.mrf.mxu1 }
 0x3e3   : > { %v5014_v16 = vadd.f32 %v5013_v15, %v4973_v28  ;;  %v4975_v17 = vadd.f32 %v4974_v49, %v4934_v14 }
 0x3e4   : > { %v4976_v21 = vpop.f32.mrf.mxu0  ;;  %v5017_v12 = vpop.f32.mrf.mxu1 }
 0x3e5   : > { %vm5026_vm6 = vcmp.gt.f32.partialorder %v5014_v16, 0.0  ;;  %v5034_v24 = vmul.f32 0.2, %v5014_v16  ;;  %v5016_v26 = vadd.f32 %v5015_v20, %v4975_v17 }
 0x3e6   : > { %v4977_v27 = vpop.f32.mrf.mxu0  ;;  %v5018_v52 = vpop.f32.mrf.mxu1 }
 0x3e7   : > { %v5042_v54 = vsel %vm5026_vm6, %v5014_v16, %v5034_v24  ;;  %vm5027_vm7 = vcmp.gt.f32.partialorder %v5016_v26, 0.0  ;;  %v5035_v29 = vmul.f32 0.2, %v5016_v26 }
 0x3e8   : > { %5050 = vst [vmem:[%s7220_s29 + $0x30] sm:$0xff] %v5042_v54 }
 0x3e9   : > { %v5043_v31 = vsel %vm5027_vm7, %v5016_v26, %v5035_v29 }
 0x3ea   : > { %5051 = vst [vmem:[%s7220_s29 + $0x38] sm:$0xff] %v5043_v31 }
 0x3eb PF: > { %p10_p9 = scmp.ge.s32.totalorder %s5736_s16, 6   ;;  %s7451_s12 = smov %s5693_s13 }
 0x3ec   : > { %s7452_s13 = smov %s5745_s19  ;;  %s7453_s14 = smov %s5736_s16 }
 0x3ed   :  { %12 = sbr.rel (!%p10_p9) target bundleno = 2 (0x2), region = 93 }

</bundles_post_ra>
